<compile_context>
chip_gen: v6e
topology: v6e:2x2x1
jax: 0.10.0
libtpu: 0.0.40
codegen_flags: <defaults>
</compile_context>

<pallas_src>
import jax
import jax.numpy as jnp
from jax.experimental import pallas as pl
from jax.experimental.pallas import tpu as pltpu

DIM = 64
SEQ_LEN = 10
VOCAB = 5000
VOCAB_PAD = 5120            # next multiple of 128: lane-dense contraction / head MXU N
H = DIM * SEQ_LEN           # 640
N_TILE = 128                # fc1 output-column tile -> 5 parallel grid steps
BATCH_SIZE = 8              # module default is 64; small demo batch, semantics unchanged


# ----------------------- kernel 1: fc1, parallel over output columns -----------------------

def fc1_kernel(noise_ref, w_ref, b_ref, out_ref):
    # w_ref is bf16 (halves the HBM stream); upcast on the VPU, accumulate in f32 on the MXU.
    out_ref[...] = (
        jnp.dot(noise_ref[...], w_ref[...].astype(jnp.float32),
                preferred_element_type=jnp.float32)
        + b_ref[...]
    )


# ------------- kernel 2: fused 3x ResBlock + 1x1 conv head + softmax -------------

def body_kernel(x_ref, res_w_ref, res_b_ref, hw_ref, hb_ref, out_ref):
    R = x_ref.shape[0]                 # rows in this tile = whole sequences (multiple of SEQ_LEN)
    x = x_ref[...]

    # Hoisted Conv1d padding masks, reused by all 6 convs in this tile.
    t = jax.lax.broadcasted_iota(jnp.int32, (R, 1), 0) % SEQ_LEN
    has_prev = t != 0
    has_next = t != (SEQ_LEN - 1)

    def conv3(h, w, b):
        # Conv1d(k=3, pad=1) as three K=64 matmuls (avoids the (R,192) concat relayout).
        prev = jnp.where(has_prev, pltpu.roll(h, shift=1, axis=0), 0.0)      # h[t-1]
        nxt = jnp.where(has_next, pltpu.roll(h, shift=R - 1, axis=0), 0.0)   # h[t+1]
        out = jnp.dot(prev, w[0], preferred_element_type=jnp.float32)
        out = out + jnp.dot(h, w[1], preferred_element_type=jnp.float32)
        out = out + jnp.dot(nxt, w[2], preferred_element_type=jnp.float32)
        return out + b

    for i in range(3):                 # statically unrolled ResBlocks
        h = jnp.maximum(x, 0.0)
        h = conv3(h, res_w_ref[2 * i], res_b_ref[2 * i])
        h = jnp.maximum(h, 0.0)
        h = conv3(h, res_w_ref[2 * i + 1], res_b_ref[2 * i + 1])
        x = x + 0.3 * h

    # 1x1 conv head (DIM -> VOCAB_PAD; padded columns have bias -1e30 so exp() -> 0 and the
    # softmax over 5120 lanes equals the softmax over the real 5000).
    logits = jnp.dot(x, hw_ref[...], preferred_element_type=jnp.float32) + hb_ref[...]
    m = jnp.max(logits, axis=-1, keepdims=True)
    e = jnp.exp(logits - m)
    inv = pl.reciprocal(jnp.sum(e, axis=-1, keepdims=True), approx=False)
    # Store only the real 5000 lanes (masked tail store) -> no post-kernel slice copy.
    out_ref[...] = e[:, :VOCAB] * inv


# ----------------------------------- wrapper -----------------------------------

def _pick_row_tile(rows):
    # Tiles must contain whole sequences (multiple of SEQ_LEN) and be sublane-friendly
    # (multiple of 8) -> multiples of 40; otherwise fall back to one full-rows tile.
    for cand in (160, 120, 80, 40):
        if rows % cand == 0 and rows // cand >= 2:
            return cand
    return rows


@jax.jit
def generator_forward(noise, kp):
    B = noise.shape[0]
    R = B * SEQ_LEN

    noise_p = jnp.pad(noise, ((0, 0), (0, VOCAB_PAD - VOCAB)))

    fc_out = pl.pallas_call(
        fc1_kernel,
        out_shape=jax.ShapeDtypeStruct((B, H), jnp.float32),
        grid_spec=pltpu.PrefetchScalarGridSpec(
            num_scalar_prefetch=0,
            grid=(H // N_TILE,),
            in_specs=[
                # Constant index map -> the noise is DMA'd once and stays resident.
                pl.BlockSpec((B, VOCAB_PAD), lambda n: (0, 0)),
                pl.BlockSpec((VOCAB_PAD, N_TILE), lambda n: (0, n)),   # bf16 weight columns
                pl.BlockSpec((1, N_TILE), lambda n: (0, n)),
            ],
            out_specs=pl.BlockSpec((B, N_TILE), lambda n: (0, n)),
        ),
        compiler_params=pltpu.CompilerParams(
            dimension_semantics=("parallel",),
            vmem_limit_bytes=32 << 20,
        ),
    )(noise_p, kp["fc1_w"], kp["fc1_b"])

    # fc1 weights were pre-permuted to (t, c)-major columns, so this reshape is free
    # (no transpose): row index = b*SEQ_LEN + t, lane = channel.
    x = fc_out.reshape(R, DIM)

    row_tile = _pick_row_tile(R)
    probs = pl.pallas_call(
        body_kernel,
        out_shape=jax.ShapeDtypeStruct((R, VOCAB), jnp.float32),
        grid_spec=pltpu.PrefetchScalarGridSpec(
            num_scalar_prefetch=0,
            grid=(R // row_tile,),
            in_specs=[
                pl.BlockSpec((row_tile, DIM), lambda r: (r, 0)),
                pl.BlockSpec((6, 3, DIM, DIM), lambda r: (0, 0, 0, 0)),
                pl.BlockSpec((6, 1, DIM), lambda r: (0, 0, 0)),
                pl.BlockSpec((DIM, VOCAB_PAD), lambda r: (0, 0)),
                pl.BlockSpec((1, VOCAB_PAD), lambda r: (0, 0)),
            ],
            out_specs=pl.BlockSpec((row_tile, VOCAB), lambda r: (r, 0)),
        ),
        compiler_params=pltpu.CompilerParams(
            dimension_semantics=("parallel",),
            vmem_limit_bytes=48 << 20,
        ),
    )(x, kp["res_w"], kp["res_b"], kp["head_w"], kp["head_b"])

    return probs.reshape(B, SEQ_LEN, VOCAB)


# ----------------------------- params & reference -----------------------------

def init_params(key):
    ks = jax.random.split(key, 20)
    p = {
        # Linear(5000, DIM*SEQ_LEN), stored (in, out); output column = c*SEQ_LEN + t (PyTorch view)
        "fc1_w": jax.random.normal(ks[0], (VOCAB, H), jnp.float32) * 0.02,
        "fc1_b": jax.random.normal(ks[1], (1, H), jnp.float32) * 0.02,
        # Conv1d(DIM, VOCAB, 1), stored (in, out)
        "conv1_w": jax.random.normal(ks[2], (DIM, VOCAB), jnp.float32) * 0.05,
        "conv1_b": jax.random.normal(ks[3], (1, VOCAB), jnp.float32) * 0.05,
    }
    j = 4
    for i in range(3):
        # Conv1d(DIM, DIM, 3, pad=1): (tap k, in, out); tap k <-> time offset k-1
        p[f"res{i}_w1"] = jax.random.normal(ks[j + 0], (3, DIM, DIM), jnp.float32) * 0.05
        p[f"res{i}_b1"] = jax.random.normal(ks[j + 1], (1, DIM), jnp.float32) * 0.05
        p[f"res{i}_w2"] = jax.random.normal(ks[j + 2], (3, DIM, DIM), jnp.float32) * 0.05
        p[f"res{i}_b2"] = jax.random.normal(ks[j + 3], (1, DIM), jnp.float32) * 0.05
        j += 4
    return p


def prepare_kernel_params(p):
    """One-time weight reshaping/permutation/padding for the kernels."""
    # fc1: permute output columns (c*SEQ_LEN+t) -> (t*DIM+c), zero-pad the contraction dim,
    # and store in bf16 (weight-only; kernel accumulates in f32).
    fc1_w = p["fc1_w"].reshape(VOCAB, DIM, SEQ_LEN).transpose(0, 2, 1).reshape(VOCAB, H)
    fc1_w = jnp.pad(fc1_w, ((0, VOCAB_PAD - VOCAB), (0, 0))).astype(jnp.bfloat16)
    fc1_b = p["fc1_b"].reshape(DIM, SEQ_LEN).transpose(1, 0).reshape(1, H)
    # ResBlock convs: keep the (tap, in, out) layout -> (6, 3, 64, 64) / (6, 1, 64).
    res_w = jnp.stack([p[f"res{i}_w{j}"] for i in range(3) for j in (1, 2)])
    res_b = jnp.stack([p[f"res{i}_b{j}"] for i in range(3) for j in (1, 2)])
    # Head: pad vocab to 5120; padded bias = -1e30 so softmax over 5120 == softmax over 5000.
    head_w = jnp.pad(p["conv1_w"], ((0, 0), (0, VOCAB_PAD - VOCAB)))
    head_b = jnp.pad(p["conv1_b"], ((0, 0), (0, VOCAB_PAD - VOCAB)), constant_values=-1e30)
    return {"fc1_w": fc1_w, "fc1_b": fc1_b, "res_w": res_w, "res_b": res_b,
            "head_w": head_w, "head_b": head_b}


def _ref_conv1d_ncw(x, w, b):
    # x: (B, DIM, S) NCW, w: (3, in, out), padding=1
    xp = jnp.pad(x, ((0, 0), (0, 0), (1, 1)))
    out = sum(jnp.einsum("bct,co->bot", xp[:, :, k:k + SEQ_LEN], w[k]) for k in range(3))
    return out + b.reshape(1, DIM, 1)


def reference_forward(noise, params):
    B = noise.shape[0]
    x = noise @ params["fc1_w"] + params["fc1_b"]
    x = x.reshape(B, DIM, SEQ_LEN)          # NCW, matches output.view(-1, DIM, SEQ_LEN)
    for i in range(3):
        h = jnp.maximum(x, 0.0)
        h = _ref_conv1d_ncw(h, params[f"res{i}_w1"], params[f"res{i}_b1"])
        h = jnp.maximum(h, 0.0)
        h = _ref_conv1d_ncw(h, params[f"res{i}_w2"], params[f"res{i}_b2"])
        x = x + 0.3 * h
    y = jnp.einsum("bct,cv->btv", x, params["conv1_w"]) + params["conv1_b"].reshape(1, 1, VOCAB)
    return jax.nn.softmax(y, axis=-1)


# ----------------------------------- main -----------------------------------

if __name__ == "__main__":
    key = jax.random.PRNGKey(0)
    kparam_key, noise_key = jax.random.split(key)
    params = init_params(kparam_key)
    kparams = prepare_kernel_params(params)
    noise = jax.random.normal(noise_key, (BATCH_SIZE, VOCAB), jnp.float32)

    out = jax.block_until_ready(generator_forward(noise, kparams))
    assert out.shape == (BATCH_SIZE, SEQ_LEN, VOCAB), out.shape

    ref = jax.block_until_ready(reference_forward(noise, params))
    assert bool(jnp.allclose(out, ref, rtol=5e-3, atol=1e-5)), "mismatch vs JAX reference"

    print("KERNEL_OK")
</pallas_src>

<mosaic_0001>
module attributes {stable_mosaic.version = 11 : i64} {
  func.func @body_kernel(%arg0: i32, %arg1: memref<40x64xf32, #tpu.memory_space<vmem>>, %arg2: memref<6x3x64x64xf32, #tpu.memory_space<vmem>>, %arg3: memref<6x1x64xf32, #tpu.memory_space<vmem>>, %arg4: memref<64x5120xf32, #tpu.memory_space<vmem>>, %arg5: memref<1x5120xf32, #tpu.memory_space<vmem>>, %arg6: memref<40x5000xf32, #tpu.memory_space<vmem>>) attributes {dimension_semantics = [#tpu.dimension_semantics<parallel>], iteration_bounds = array<i64: 2>, scalar_prefetch = 0 : i64, scratch_operands = 0 : i64, tpu.core_type = #tpu.core_type<tc>, window_params = [{transform_indices = @transform_0, window_bounds = array<i64: 40, 64>}, {pipeline_mode = #tpu.pipeline_mode<synchronous>, transform_indices = @transform_1, window_bounds = array<i64: 6, 3, 64, 64>}, {pipeline_mode = #tpu.pipeline_mode<synchronous>, transform_indices = @transform_2, window_bounds = array<i64: 6, 1, 64>}, {pipeline_mode = #tpu.pipeline_mode<synchronous>, transform_indices = @transform_3, window_bounds = array<i64: 64, 5120>}, {pipeline_mode = #tpu.pipeline_mode<synchronous>, transform_indices = @transform_4, window_bounds = array<i64: 1, 5120>}, {transform_indices = @transform_5, window_bounds = array<i64: 40, 5000>}]} {
    %c0 = arith.constant 0 : index
    %c0_0 = arith.constant 0 : index
    %0 = vector.load %arg1[%c0, %c0_0] : memref<40x64xf32, #tpu.memory_space<vmem>>, vector<40x64xf32>
    %1 = tpu.iota {dimensions = array<i32: 0>} : vector<40x1xi32>
    %c10_i32 = arith.constant 10 : i32
    %c0_i32 = arith.constant 0 : i32
    %2 = arith.cmpi eq, %c10_i32, %c0_i32 : i32
    %c1_i32 = arith.constant 1 : i32
    %3 = arith.select %2, %c1_i32, %c10_i32 : i32
    %4 = vector.broadcast %3 : i32 to vector<40x1xi32>
    %5 = arith.remsi %1, %4 : vector<40x1xi32>
    %c0_i32_1 = arith.constant 0 : i32
    %6 = vector.broadcast %c0_i32_1 : i32 to vector<40x1xi32>
    %7 = arith.cmpi ne, %5, %6 : vector<40x1xi32>
    %c0_i32_2 = arith.constant 0 : i32
    %8 = vector.broadcast %c0_i32_2 : i32 to vector<40x1xi32>
    %9 = arith.cmpi slt, %5, %8 : vector<40x1xi32>
    %c0_i32_3 = arith.constant 0 : i32
    %10 = arith.cmpi slt, %3, %c0_i32_3 : i32
    %11 = vector.broadcast %10 : i1 to vector<40x1xi1>
    %12 = vector.broadcast %11 : vector<40x1xi1> to vector<40x1xi1>
    %13 = arith.xori %9, %12 : vector<40x1xi1>
    %14 = arith.andi %13, %7 : vector<40x1xi1>
    %15 = vector.broadcast %3 : i32 to vector<40x1xi32>
    %16 = arith.addi %5, %15 : vector<40x1xi32>
    %17 = arith.select %14, %16, %5 : vector<40x1xi1>, vector<40x1xi32>
    %c0_i32_4 = arith.constant 0 : i32
    %18 = vector.broadcast %c0_i32_4 : i32 to vector<40x1xi32>
    %19 = arith.cmpi ne, %17, %18 : vector<40x1xi32>
    %c9_i32 = arith.constant 9 : i32
    %20 = vector.broadcast %c9_i32 : i32 to vector<40x1xi32>
    %21 = arith.cmpi ne, %17, %20 : vector<40x1xi32>
    %cst = arith.constant 0.000000e+00 : f32
    %22 = vector.broadcast %cst : f32 to vector<40x64xf32>
    %23 = arith.maximumf %0, %22 : vector<40x64xf32>
    %c0_5 = arith.constant 0 : index
    %c0_6 = arith.constant 0 : index
    %c0_7 = arith.constant 0 : index
    %c0_8 = arith.constant 0 : index
    %24 = vector.load %arg2[%c0_5, %c0_6, %c0_7, %c0_8] : memref<6x3x64x64xf32, #tpu.memory_space<vmem>>, vector<1x3x64x64xf32>
    %25 = vector.shape_cast %24 : vector<1x3x64x64xf32> to vector<3x64x64xf32>
    %c0_9 = arith.constant 0 : index
    %c0_10 = arith.constant 0 : index
    %c0_11 = arith.constant 0 : index
    %26 = vector.load %arg3[%c0_9, %c0_10, %c0_11] : memref<6x1x64xf32, #tpu.memory_space<vmem>>, vector<1x1x64xf32>
    %27 = vector.shape_cast %26 : vector<1x1x64xf32> to vector<1x64xf32>
    %c1_i32_12 = arith.constant 1 : i32
    %28 = tpu.dynamic_rotate %23 by %c1_i32_12 dim 0 : vector<40x64xf32>, i32 -> vector<40x64xf32>
    %cst_13 = arith.constant 0.000000e+00 : f32
    %29 = vector.shape_cast %19 : vector<40x1xi1> to vector<40x1xi1>
    %30 = vector.broadcast %29 : vector<40x1xi1> to vector<40x64xi1>
    %31 = vector.broadcast %cst_13 : f32 to vector<40x64xf32>
    %32 = arith.select %30, %28, %31 : vector<40x64xi1>, vector<40x64xf32>
    %c39_i32 = arith.constant 39 : i32
    %33 = tpu.dynamic_rotate %23 by %c39_i32 dim 0 : vector<40x64xf32>, i32 -> vector<40x64xf32>
    %cst_14 = arith.constant 0.000000e+00 : f32
    %34 = vector.shape_cast %21 : vector<40x1xi1> to vector<40x1xi1>
    %35 = vector.broadcast %34 : vector<40x1xi1> to vector<40x64xi1>
    %36 = vector.broadcast %cst_14 : f32 to vector<40x64xf32>
    %37 = arith.select %35, %33, %36 : vector<40x64xi1>, vector<40x64xf32>
    %38 = vector.extract_strided_slice %25 {offsets = [0, 0, 0], sizes = [1, 64, 64], strides = [1, 1, 1]} : vector<3x64x64xf32> to vector<1x64x64xf32>
    %39 = vector.shape_cast %38 : vector<1x64x64xf32> to vector<64x64xf32>
    %cst_15 = arith.constant dense<0.000000e+00> : vector<40x64xf32>
    %40 = tpu.matmul %32, %39, %cst_15 {dimension_numbers = #tpu.dot_dimension_numbers<[1], [0], [0], [1], [0, 0, 1, 1], [], []>} : vector<40x64xf32>, vector<64x64xf32>, vector<40x64xf32> -> vector<40x64xf32>
    %41 = vector.extract_strided_slice %25 {offsets = [1, 0, 0], sizes = [1, 64, 64], strides = [1, 1, 1]} : vector<3x64x64xf32> to vector<1x64x64xf32>
    %42 = vector.shape_cast %41 : vector<1x64x64xf32> to vector<64x64xf32>
    %cst_16 = arith.constant dense<0.000000e+00> : vector<40x64xf32>
    %43 = tpu.matmul %23, %42, %cst_16 {dimension_numbers = #tpu.dot_dimension_numbers<[1], [0], [0], [1], [0, 0, 1, 1], [], []>} : vector<40x64xf32>, vector<64x64xf32>, vector<40x64xf32> -> vector<40x64xf32>
    %44 = arith.addf %40, %43 : vector<40x64xf32>
    %45 = vector.extract_strided_slice %25 {offsets = [2, 0, 0], sizes = [1, 64, 64], strides = [1, 1, 1]} : vector<3x64x64xf32> to vector<1x64x64xf32>
    %46 = vector.shape_cast %45 : vector<1x64x64xf32> to vector<64x64xf32>
    %cst_17 = arith.constant dense<0.000000e+00> : vector<40x64xf32>
    %47 = tpu.matmul %37, %46, %cst_17 {dimension_numbers = #tpu.dot_dimension_numbers<[1], [0], [0], [1], [0, 0, 1, 1], [], []>} : vector<40x64xf32>, vector<64x64xf32>, vector<40x64xf32> -> vector<40x64xf32>
    %48 = arith.addf %44, %47 : vector<40x64xf32>
    %49 = vector.broadcast %27 : vector<1x64xf32> to vector<40x64xf32>
    %50 = arith.addf %48, %49 : vector<40x64xf32>
    %cst_18 = arith.constant 0.000000e+00 : f32
    %51 = vector.broadcast %cst_18 : f32 to vector<40x64xf32>
    %52 = arith.maximumf %50, %51 : vector<40x64xf32>
    %c1 = arith.constant 1 : index
    %c0_19 = arith.constant 0 : index
    %c0_20 = arith.constant 0 : index
    %c0_21 = arith.constant 0 : index
    %53 = vector.load %arg2[%c1, %c0_19, %c0_20, %c0_21] : memref<6x3x64x64xf32, #tpu.memory_space<vmem>>, vector<1x3x64x64xf32>
    %54 = vector.shape_cast %53 : vector<1x3x64x64xf32> to vector<3x64x64xf32>
    %c1_22 = arith.constant 1 : index
    %c0_23 = arith.constant 0 : index
    %c0_24 = arith.constant 0 : index
    %55 = vector.load %arg3[%c1_22, %c0_23, %c0_24] : memref<6x1x64xf32, #tpu.memory_space<vmem>>, vector<1x1x64xf32>
    %56 = vector.shape_cast %55 : vector<1x1x64xf32> to vector<1x64xf32>
    %c1_i32_25 = arith.constant 1 : i32
    %57 = tpu.dynamic_rotate %52 by %c1_i32_25 dim 0 : vector<40x64xf32>, i32 -> vector<40x64xf32>
    %cst_26 = arith.constant 0.000000e+00 : f32
    %58 = vector.shape_cast %19 : vector<40x1xi1> to vector<40x1xi1>
    %59 = vector.broadcast %58 : vector<40x1xi1> to vector<40x64xi1>
    %60 = vector.broadcast %cst_26 : f32 to vector<40x64xf32>
    %61 = arith.select %59, %57, %60 : vector<40x64xi1>, vector<40x64xf32>
    %c39_i32_27 = arith.constant 39 : i32
    %62 = tpu.dynamic_rotate %52 by %c39_i32_27 dim 0 : vector<40x64xf32>, i32 -> vector<40x64xf32>
    %cst_28 = arith.constant 0.000000e+00 : f32
    %63 = vector.shape_cast %21 : vector<40x1xi1> to vector<40x1xi1>
    %64 = vector.broadcast %63 : vector<40x1xi1> to vector<40x64xi1>
    %65 = vector.broadcast %cst_28 : f32 to vector<40x64xf32>
    %66 = arith.select %64, %62, %65 : vector<40x64xi1>, vector<40x64xf32>
    %67 = vector.extract_strided_slice %54 {offsets = [0, 0, 0], sizes = [1, 64, 64], strides = [1, 1, 1]} : vector<3x64x64xf32> to vector<1x64x64xf32>
    %68 = vector.shape_cast %67 : vector<1x64x64xf32> to vector<64x64xf32>
    %cst_29 = arith.constant dense<0.000000e+00> : vector<40x64xf32>
    %69 = tpu.matmul %61, %68, %cst_29 {dimension_numbers = #tpu.dot_dimension_numbers<[1], [0], [0], [1], [0, 0, 1, 1], [], []>} : vector<40x64xf32>, vector<64x64xf32>, vector<40x64xf32> -> vector<40x64xf32>
    %70 = vector.extract_strided_slice %54 {offsets = [1, 0, 0], sizes = [1, 64, 64], strides = [1, 1, 1]} : vector<3x64x64xf32> to vector<1x64x64xf32>
    %71 = vector.shape_cast %70 : vector<1x64x64xf32> to vector<64x64xf32>
    %cst_30 = arith.constant dense<0.000000e+00> : vector<40x64xf32>
    %72 = tpu.matmul %52, %71, %cst_30 {dimension_numbers = #tpu.dot_dimension_numbers<[1], [0], [0], [1], [0, 0, 1, 1], [], []>} : vector<40x64xf32>, vector<64x64xf32>, vector<40x64xf32> -> vector<40x64xf32>
    %73 = arith.addf %69, %72 : vector<40x64xf32>
    %74 = vector.extract_strided_slice %54 {offsets = [2, 0, 0], sizes = [1, 64, 64], strides = [1, 1, 1]} : vector<3x64x64xf32> to vector<1x64x64xf32>
    %75 = vector.shape_cast %74 : vector<1x64x64xf32> to vector<64x64xf32>
    %cst_31 = arith.constant dense<0.000000e+00> : vector<40x64xf32>
    %76 = tpu.matmul %66, %75, %cst_31 {dimension_numbers = #tpu.dot_dimension_numbers<[1], [0], [0], [1], [0, 0, 1, 1], [], []>} : vector<40x64xf32>, vector<64x64xf32>, vector<40x64xf32> -> vector<40x64xf32>
    %77 = arith.addf %73, %76 : vector<40x64xf32>
    %78 = vector.broadcast %56 : vector<1x64xf32> to vector<40x64xf32>
    %79 = arith.addf %77, %78 : vector<40x64xf32>
    %cst_32 = arith.constant 3.000000e-01 : f32
    %80 = vector.broadcast %cst_32 : f32 to vector<40x64xf32>
    %81 = arith.mulf %80, %79 : vector<40x64xf32>
    %82 = arith.addf %0, %81 : vector<40x64xf32>
    %cst_33 = arith.constant 0.000000e+00 : f32
    %83 = vector.broadcast %cst_33 : f32 to vector<40x64xf32>
    %84 = arith.maximumf %82, %83 : vector<40x64xf32>
    %c2 = arith.constant 2 : index
    %c0_34 = arith.constant 0 : index
    %c0_35 = arith.constant 0 : index
    %c0_36 = arith.constant 0 : index
    %85 = vector.load %arg2[%c2, %c0_34, %c0_35, %c0_36] : memref<6x3x64x64xf32, #tpu.memory_space<vmem>>, vector<1x3x64x64xf32>
    %86 = vector.shape_cast %85 : vector<1x3x64x64xf32> to vector<3x64x64xf32>
    %c2_37 = arith.constant 2 : index
    %c0_38 = arith.constant 0 : index
    %c0_39 = arith.constant 0 : index
    %87 = vector.load %arg3[%c2_37, %c0_38, %c0_39] : memref<6x1x64xf32, #tpu.memory_space<vmem>>, vector<1x1x64xf32>
    %88 = vector.shape_cast %87 : vector<1x1x64xf32> to vector<1x64xf32>
    %c1_i32_40 = arith.constant 1 : i32
    %89 = tpu.dynamic_rotate %84 by %c1_i32_40 dim 0 : vector<40x64xf32>, i32 -> vector<40x64xf32>
    %cst_41 = arith.constant 0.000000e+00 : f32
    %90 = vector.shape_cast %19 : vector<40x1xi1> to vector<40x1xi1>
    %91 = vector.broadcast %90 : vector<40x1xi1> to vector<40x64xi1>
    %92 = vector.broadcast %cst_41 : f32 to vector<40x64xf32>
    %93 = arith.select %91, %89, %92 : vector<40x64xi1>, vector<40x64xf32>
    %c39_i32_42 = arith.constant 39 : i32
    %94 = tpu.dynamic_rotate %84 by %c39_i32_42 dim 0 : vector<40x64xf32>, i32 -> vector<40x64xf32>
    %cst_43 = arith.constant 0.000000e+00 : f32
    %95 = vector.shape_cast %21 : vector<40x1xi1> to vector<40x1xi1>
    %96 = vector.broadcast %95 : vector<40x1xi1> to vector<40x64xi1>
    %97 = vector.broadcast %cst_43 : f32 to vector<40x64xf32>
    %98 = arith.select %96, %94, %97 : vector<40x64xi1>, vector<40x64xf32>
    %99 = vector.extract_strided_slice %86 {offsets = [0, 0, 0], sizes = [1, 64, 64], strides = [1, 1, 1]} : vector<3x64x64xf32> to vector<1x64x64xf32>
    %100 = vector.shape_cast %99 : vector<1x64x64xf32> to vector<64x64xf32>
    %cst_44 = arith.constant dense<0.000000e+00> : vector<40x64xf32>
    %101 = tpu.matmul %93, %100, %cst_44 {dimension_numbers = #tpu.dot_dimension_numbers<[1], [0], [0], [1], [0, 0, 1, 1], [], []>} : vector<40x64xf32>, vector<64x64xf32>, vector<40x64xf32> -> vector<40x64xf32>
    %102 = vector.extract_strided_slice %86 {offsets = [1, 0, 0], sizes = [1, 64, 64], strides = [1, 1, 1]} : vector<3x64x64xf32> to vector<1x64x64xf32>
    %103 = vector.shape_cast %102 : vector<1x64x64xf32> to vector<64x64xf32>
    %cst_45 = arith.constant dense<0.000000e+00> : vector<40x64xf32>
    %104 = tpu.matmul %84, %103, %cst_45 {dimension_numbers = #tpu.dot_dimension_numbers<[1], [0], [0], [1], [0, 0, 1, 1], [], []>} : vector<40x64xf32>, vector<64x64xf32>, vector<40x64xf32> -> vector<40x64xf32>
    %105 = arith.addf %101, %104 : vector<40x64xf32>
    %106 = vector.extract_strided_slice %86 {offsets = [2, 0, 0], sizes = [1, 64, 64], strides = [1, 1, 1]} : vector<3x64x64xf32> to vector<1x64x64xf32>
    %107 = vector.shape_cast %106 : vector<1x64x64xf32> to vector<64x64xf32>
    %cst_46 = arith.constant dense<0.000000e+00> : vector<40x64xf32>
    %108 = tpu.matmul %98, %107, %cst_46 {dimension_numbers = #tpu.dot_dimension_numbers<[1], [0], [0], [1], [0, 0, 1, 1], [], []>} : vector<40x64xf32>, vector<64x64xf32>, vector<40x64xf32> -> vector<40x64xf32>
    %109 = arith.addf %105, %108 : vector<40x64xf32>
    %110 = vector.broadcast %88 : vector<1x64xf32> to vector<40x64xf32>
    %111 = arith.addf %109, %110 : vector<40x64xf32>
    %cst_47 = arith.constant 0.000000e+00 : f32
    %112 = vector.broadcast %cst_47 : f32 to vector<40x64xf32>
    %113 = arith.maximumf %111, %112 : vector<40x64xf32>
    %c3 = arith.constant 3 : index
    %c0_48 = arith.constant 0 : index
    %c0_49 = arith.constant 0 : index
    %c0_50 = arith.constant 0 : index
    %114 = vector.load %arg2[%c3, %c0_48, %c0_49, %c0_50] : memref<6x3x64x64xf32, #tpu.memory_space<vmem>>, vector<1x3x64x64xf32>
    %115 = vector.shape_cast %114 : vector<1x3x64x64xf32> to vector<3x64x64xf32>
    %c3_51 = arith.constant 3 : index
    %c0_52 = arith.constant 0 : index
    %c0_53 = arith.constant 0 : index
    %116 = vector.load %arg3[%c3_51, %c0_52, %c0_53] : memref<6x1x64xf32, #tpu.memory_space<vmem>>, vector<1x1x64xf32>
    %117 = vector.shape_cast %116 : vector<1x1x64xf32> to vector<1x64xf32>
    %c1_i32_54 = arith.constant 1 : i32
    %118 = tpu.dynamic_rotate %113 by %c1_i32_54 dim 0 : vector<40x64xf32>, i32 -> vector<40x64xf32>
    %cst_55 = arith.constant 0.000000e+00 : f32
    %119 = vector.shape_cast %19 : vector<40x1xi1> to vector<40x1xi1>
    %120 = vector.broadcast %119 : vector<40x1xi1> to vector<40x64xi1>
    %121 = vector.broadcast %cst_55 : f32 to vector<40x64xf32>
    %122 = arith.select %120, %118, %121 : vector<40x64xi1>, vector<40x64xf32>
    %c39_i32_56 = arith.constant 39 : i32
    %123 = tpu.dynamic_rotate %113 by %c39_i32_56 dim 0 : vector<40x64xf32>, i32 -> vector<40x64xf32>
    %cst_57 = arith.constant 0.000000e+00 : f32
    %124 = vector.shape_cast %21 : vector<40x1xi1> to vector<40x1xi1>
    %125 = vector.broadcast %124 : vector<40x1xi1> to vector<40x64xi1>
    %126 = vector.broadcast %cst_57 : f32 to vector<40x64xf32>
    %127 = arith.select %125, %123, %126 : vector<40x64xi1>, vector<40x64xf32>
    %128 = vector.extract_strided_slice %115 {offsets = [0, 0, 0], sizes = [1, 64, 64], strides = [1, 1, 1]} : vector<3x64x64xf32> to vector<1x64x64xf32>
    %129 = vector.shape_cast %128 : vector<1x64x64xf32> to vector<64x64xf32>
    %cst_58 = arith.constant dense<0.000000e+00> : vector<40x64xf32>
    %130 = tpu.matmul %122, %129, %cst_58 {dimension_numbers = #tpu.dot_dimension_numbers<[1], [0], [0], [1], [0, 0, 1, 1], [], []>} : vector<40x64xf32>, vector<64x64xf32>, vector<40x64xf32> -> vector<40x64xf32>
    %131 = vector.extract_strided_slice %115 {offsets = [1, 0, 0], sizes = [1, 64, 64], strides = [1, 1, 1]} : vector<3x64x64xf32> to vector<1x64x64xf32>
    %132 = vector.shape_cast %131 : vector<1x64x64xf32> to vector<64x64xf32>
    %cst_59 = arith.constant dense<0.000000e+00> : vector<40x64xf32>
    %133 = tpu.matmul %113, %132, %cst_59 {dimension_numbers = #tpu.dot_dimension_numbers<[1], [0], [0], [1], [0, 0, 1, 1], [], []>} : vector<40x64xf32>, vector<64x64xf32>, vector<40x64xf32> -> vector<40x64xf32>
    %134 = arith.addf %130, %133 : vector<40x64xf32>
    %135 = vector.extract_strided_slice %115 {offsets = [2, 0, 0], sizes = [1, 64, 64], strides = [1, 1, 1]} : vector<3x64x64xf32> to vector<1x64x64xf32>
    %136 = vector.shape_cast %135 : vector<1x64x64xf32> to vector<64x64xf32>
    %cst_60 = arith.constant dense<0.000000e+00> : vector<40x64xf32>
    %137 = tpu.matmul %127, %136, %cst_60 {dimension_numbers = #tpu.dot_dimension_numbers<[1], [0], [0], [1], [0, 0, 1, 1], [], []>} : vector<40x64xf32>, vector<64x64xf32>, vector<40x64xf32> -> vector<40x64xf32>
    %138 = arith.addf %134, %137 : vector<40x64xf32>
    %139 = vector.broadcast %117 : vector<1x64xf32> to vector<40x64xf32>
    %140 = arith.addf %138, %139 : vector<40x64xf32>
    %cst_61 = arith.constant 3.000000e-01 : f32
    %141 = vector.broadcast %cst_61 : f32 to vector<40x64xf32>
    %142 = arith.mulf %141, %140 : vector<40x64xf32>
    %143 = arith.addf %82, %142 : vector<40x64xf32>
    %cst_62 = arith.constant 0.000000e+00 : f32
    %144 = vector.broadcast %cst_62 : f32 to vector<40x64xf32>
    %145 = arith.maximumf %143, %144 : vector<40x64xf32>
    %c4 = arith.constant 4 : index
    %c0_63 = arith.constant 0 : index
    %c0_64 = arith.constant 0 : index
    %c0_65 = arith.constant 0 : index
    %146 = vector.load %arg2[%c4, %c0_63, %c0_64, %c0_65] : memref<6x3x64x64xf32, #tpu.memory_space<vmem>>, vector<1x3x64x64xf32>
    %147 = vector.shape_cast %146 : vector<1x3x64x64xf32> to vector<3x64x64xf32>
    %c4_66 = arith.constant 4 : index
    %c0_67 = arith.constant 0 : index
    %c0_68 = arith.constant 0 : index
    %148 = vector.load %arg3[%c4_66, %c0_67, %c0_68] : memref<6x1x64xf32, #tpu.memory_space<vmem>>, vector<1x1x64xf32>
    %149 = vector.shape_cast %148 : vector<1x1x64xf32> to vector<1x64xf32>
    %c1_i32_69 = arith.constant 1 : i32
    %150 = tpu.dynamic_rotate %145 by %c1_i32_69 dim 0 : vector<40x64xf32>, i32 -> vector<40x64xf32>
    %cst_70 = arith.constant 0.000000e+00 : f32
    %151 = vector.shape_cast %19 : vector<40x1xi1> to vector<40x1xi1>
    %152 = vector.broadcast %151 : vector<40x1xi1> to vector<40x64xi1>
    %153 = vector.broadcast %cst_70 : f32 to vector<40x64xf32>
    %154 = arith.select %152, %150, %153 : vector<40x64xi1>, vector<40x64xf32>
    %c39_i32_71 = arith.constant 39 : i32
    %155 = tpu.dynamic_rotate %145 by %c39_i32_71 dim 0 : vector<40x64xf32>, i32 -> vector<40x64xf32>
    %cst_72 = arith.constant 0.000000e+00 : f32
    %156 = vector.shape_cast %21 : vector<40x1xi1> to vector<40x1xi1>
    %157 = vector.broadcast %156 : vector<40x1xi1> to vector<40x64xi1>
    %158 = vector.broadcast %cst_72 : f32 to vector<40x64xf32>
    %159 = arith.select %157, %155, %158 : vector<40x64xi1>, vector<40x64xf32>
    %160 = vector.extract_strided_slice %147 {offsets = [0, 0, 0], sizes = [1, 64, 64], strides = [1, 1, 1]} : vector<3x64x64xf32> to vector<1x64x64xf32>
    %161 = vector.shape_cast %160 : vector<1x64x64xf32> to vector<64x64xf32>
    %cst_73 = arith.constant dense<0.000000e+00> : vector<40x64xf32>
    %162 = tpu.matmul %154, %161, %cst_73 {dimension_numbers = #tpu.dot_dimension_numbers<[1], [0], [0], [1], [0, 0, 1, 1], [], []>} : vector<40x64xf32>, vector<64x64xf32>, vector<40x64xf32> -> vector<40x64xf32>
    %163 = vector.extract_strided_slice %147 {offsets = [1, 0, 0], sizes = [1, 64, 64], strides = [1, 1, 1]} : vector<3x64x64xf32> to vector<1x64x64xf32>
    %164 = vector.shape_cast %163 : vector<1x64x64xf32> to vector<64x64xf32>
    %cst_74 = arith.constant dense<0.000000e+00> : vector<40x64xf32>
    %165 = tpu.matmul %145, %164, %cst_74 {dimension_numbers = #tpu.dot_dimension_numbers<[1], [0], [0], [1], [0, 0, 1, 1], [], []>} : vector<40x64xf32>, vector<64x64xf32>, vector<40x64xf32> -> vector<40x64xf32>
    %166 = arith.addf %162, %165 : vector<40x64xf32>
    %167 = vector.extract_strided_slice %147 {offsets = [2, 0, 0], sizes = [1, 64, 64], strides = [1, 1, 1]} : vector<3x64x64xf32> to vector<1x64x64xf32>
    %168 = vector.shape_cast %167 : vector<1x64x64xf32> to vector<64x64xf32>
    %cst_75 = arith.constant dense<0.000000e+00> : vector<40x64xf32>
    %169 = tpu.matmul %159, %168, %cst_75 {dimension_numbers = #tpu.dot_dimension_numbers<[1], [0], [0], [1], [0, 0, 1, 1], [], []>} : vector<40x64xf32>, vector<64x64xf32>, vector<40x64xf32> -> vector<40x64xf32>
    %170 = arith.addf %166, %169 : vector<40x64xf32>
    %171 = vector.broadcast %149 : vector<1x64xf32> to vector<40x64xf32>
    %172 = arith.addf %170, %171 : vector<40x64xf32>
    %cst_76 = arith.constant 0.000000e+00 : f32
    %173 = vector.broadcast %cst_76 : f32 to vector<40x64xf32>
    %174 = arith.maximumf %172, %173 : vector<40x64xf32>
    %c5 = arith.constant 5 : index
    %c0_77 = arith.constant 0 : index
    %c0_78 = arith.constant 0 : index
    %c0_79 = arith.constant 0 : index
    %175 = vector.load %arg2[%c5, %c0_77, %c0_78, %c0_79] : memref<6x3x64x64xf32, #tpu.memory_space<vmem>>, vector<1x3x64x64xf32>
    %176 = vector.shape_cast %175 : vector<1x3x64x64xf32> to vector<3x64x64xf32>
    %c5_80 = arith.constant 5 : index
    %c0_81 = arith.constant 0 : index
    %c0_82 = arith.constant 0 : index
    %177 = vector.load %arg3[%c5_80, %c0_81, %c0_82] : memref<6x1x64xf32, #tpu.memory_space<vmem>>, vector<1x1x64xf32>
    %178 = vector.shape_cast %177 : vector<1x1x64xf32> to vector<1x64xf32>
    %c1_i32_83 = arith.constant 1 : i32
    %179 = tpu.dynamic_rotate %174 by %c1_i32_83 dim 0 : vector<40x64xf32>, i32 -> vector<40x64xf32>
    %cst_84 = arith.constant 0.000000e+00 : f32
    %180 = vector.shape_cast %19 : vector<40x1xi1> to vector<40x1xi1>
    %181 = vector.broadcast %180 : vector<40x1xi1> to vector<40x64xi1>
    %182 = vector.broadcast %cst_84 : f32 to vector<40x64xf32>
    %183 = arith.select %181, %179, %182 : vector<40x64xi1>, vector<40x64xf32>
    %c39_i32_85 = arith.constant 39 : i32
    %184 = tpu.dynamic_rotate %174 by %c39_i32_85 dim 0 : vector<40x64xf32>, i32 -> vector<40x64xf32>
    %cst_86 = arith.constant 0.000000e+00 : f32
    %185 = vector.shape_cast %21 : vector<40x1xi1> to vector<40x1xi1>
    %186 = vector.broadcast %185 : vector<40x1xi1> to vector<40x64xi1>
    %187 = vector.broadcast %cst_86 : f32 to vector<40x64xf32>
    %188 = arith.select %186, %184, %187 : vector<40x64xi1>, vector<40x64xf32>
    %189 = vector.extract_strided_slice %176 {offsets = [0, 0, 0], sizes = [1, 64, 64], strides = [1, 1, 1]} : vector<3x64x64xf32> to vector<1x64x64xf32>
    %190 = vector.shape_cast %189 : vector<1x64x64xf32> to vector<64x64xf32>
    %cst_87 = arith.constant dense<0.000000e+00> : vector<40x64xf32>
    %191 = tpu.matmul %183, %190, %cst_87 {dimension_numbers = #tpu.dot_dimension_numbers<[1], [0], [0], [1], [0, 0, 1, 1], [], []>} : vector<40x64xf32>, vector<64x64xf32>, vector<40x64xf32> -> vector<40x64xf32>
    %192 = vector.extract_strided_slice %176 {offsets = [1, 0, 0], sizes = [1, 64, 64], strides = [1, 1, 1]} : vector<3x64x64xf32> to vector<1x64x64xf32>
    %193 = vector.shape_cast %192 : vector<1x64x64xf32> to vector<64x64xf32>
    %cst_88 = arith.constant dense<0.000000e+00> : vector<40x64xf32>
    %194 = tpu.matmul %174, %193, %cst_88 {dimension_numbers = #tpu.dot_dimension_numbers<[1], [0], [0], [1], [0, 0, 1, 1], [], []>} : vector<40x64xf32>, vector<64x64xf32>, vector<40x64xf32> -> vector<40x64xf32>
    %195 = arith.addf %191, %194 : vector<40x64xf32>
    %196 = vector.extract_strided_slice %176 {offsets = [2, 0, 0], sizes = [1, 64, 64], strides = [1, 1, 1]} : vector<3x64x64xf32> to vector<1x64x64xf32>
    %197 = vector.shape_cast %196 : vector<1x64x64xf32> to vector<64x64xf32>
    %cst_89 = arith.constant dense<0.000000e+00> : vector<40x64xf32>
    %198 = tpu.matmul %188, %197, %cst_89 {dimension_numbers = #tpu.dot_dimension_numbers<[1], [0], [0], [1], [0, 0, 1, 1], [], []>} : vector<40x64xf32>, vector<64x64xf32>, vector<40x64xf32> -> vector<40x64xf32>
    %199 = arith.addf %195, %198 : vector<40x64xf32>
    %200 = vector.broadcast %178 : vector<1x64xf32> to vector<40x64xf32>
    %201 = arith.addf %199, %200 : vector<40x64xf32>
    %cst_90 = arith.constant 3.000000e-01 : f32
    %202 = vector.broadcast %cst_90 : f32 to vector<40x64xf32>
    %203 = arith.mulf %202, %201 : vector<40x64xf32>
    %204 = arith.addf %143, %203 : vector<40x64xf32>
    %c0_91 = arith.constant 0 : index
    %c0_92 = arith.constant 0 : index
    %205 = vector.load %arg4[%c0_91, %c0_92] : memref<64x5120xf32, #tpu.memory_space<vmem>>, vector<64x5120xf32>
    %cst_93 = arith.constant dense<0.000000e+00> : vector<40x5120xf32>
    %206 = tpu.matmul %204, %205, %cst_93 {dimension_numbers = #tpu.dot_dimension_numbers<[1], [0], [0], [1], [0, 0, 1, 1], [], []>} : vector<40x64xf32>, vector<64x5120xf32>, vector<40x5120xf32> -> vector<40x5120xf32>
    %c0_94 = arith.constant 0 : index
    %c0_95 = arith.constant 0 : index
    %207 = vector.load %arg5[%c0_94, %c0_95] : memref<1x5120xf32, #tpu.memory_space<vmem>>, vector<1x5120xf32>
    %208 = vector.broadcast %207 : vector<1x5120xf32> to vector<40x5120xf32>
    %209 = arith.addf %206, %208 : vector<40x5120xf32>
    %cst_96 = arith.constant dense<0xFF800000> : vector<40xf32>
    %210 = vector.multi_reduction <maximumf>, %209, %cst_96 [1] : vector<40x5120xf32> to vector<40xf32>
    %211 = vector.shape_cast %210 : vector<40xf32> to vector<40x1xf32>
    %212 = vector.broadcast %211 : vector<40x1xf32> to vector<40x5120xf32>
    %213 = arith.subf %209, %212 : vector<40x5120xf32>
    %214 = math.exp %213 : vector<40x5120xf32>
    %cst_97 = arith.constant dense<0.000000e+00> : vector<40xf32>
    %215 = vector.multi_reduction <add>, %214, %cst_97 [1] : vector<40x5120xf32> to vector<40xf32>
    %216 = vector.shape_cast %215 : vector<40xf32> to vector<40x1xf32>
    %217 = tpu.reciprocal %216 : vector<40x1xf32> -> vector<40x1xf32>
    %218 = vector.extract_strided_slice %214 {offsets = [0, 0], sizes = [40, 5000], strides = [1, 1]} : vector<40x5120xf32> to vector<40x5000xf32>
    %219 = vector.broadcast %217 : vector<40x1xf32> to vector<40x5000xf32>
    %220 = arith.mulf %218, %219 : vector<40x5000xf32>
    %c0_98 = arith.constant 0 : index
    %c0_99 = arith.constant 0 : index
    %221 = vector.load %arg6[%c0_98, %c0_99] : memref<40x5000xf32, #tpu.memory_space<vmem>>, vector<40x5000xf32>
    tpu.vector_store %arg6[%c0_98, %c0_99], %220 {strides = array<i32>} : memref<40x5000xf32, #tpu.memory_space<vmem>>, vector<40x5000xf32>,
    return
  }
  func.func @transform_0(%arg0: i32) -> (i32, i32) {
    %c0_i32 = arith.constant 0 : i32
    %c0_i32_0 = arith.constant 0 : i32
    return %arg0, %c0_i32 : i32, i32
  }
  func.func @transform_1(%arg0: i32) -> (i32, i32, i32, i32) {
    %c0_i32 = arith.constant 0 : i32
    %c0_i32_0 = arith.constant 0 : i32
    %c0_i32_1 = arith.constant 0 : i32
    %c0_i32_2 = arith.constant 0 : i32
    %c0_i32_3 = arith.constant 0 : i32
    return %c0_i32, %c0_i32_0, %c0_i32_1, %c0_i32_2 : i32, i32, i32, i32
  }
  func.func @transform_2(%arg0: i32) -> (i32, i32, i32) {
    %c0_i32 = arith.constant 0 : i32
    %c0_i32_0 = arith.constant 0 : i32
    %c0_i32_1 = arith.constant 0 : i32
    %c0_i32_2 = arith.constant 0 : i32
    return %c0_i32, %c0_i32_0, %c0_i32_1 : i32, i32, i32
  }
  func.func @transform_3(%arg0: i32) -> (i32, i32) {
    %c0_i32 = arith.constant 0 : i32
    %c0_i32_0 = arith.constant 0 : i32
    %c0_i32_1 = arith.constant 0 : i32
    return %c0_i32, %c0_i32_0 : i32, i32
  }
  func.func @transform_4(%arg0: i32) -> (i32, i32) {
    %c0_i32 = arith.constant 0 : i32
    %c0_i32_0 = arith.constant 0 : i32
    %c0_i32_1 = arith.constant 0 : i32
    return %c0_i32, %c0_i32_0 : i32, i32
  }
  func.func @transform_5(%arg0: i32) -> (i32, i32) {
    %c0_i32 = arith.constant 0 : i32
    %c0_i32_0 = arith.constant 0 : i32
    return %arg0, %c0_i32 : i32, i32
  }
}

module attributes {stable_mosaic.version = 11 : i64} {
  func.func @fc1_kernel(%arg0: i32, %arg1: memref<8x5120xf32, #tpu.memory_space<vmem>>, %arg2: memref<5120x128xbf16, #tpu.memory_space<vmem>>, %arg3: memref<1x128xf32, #tpu.memory_space<vmem>>, %arg4: memref<8x128xf32, #tpu.memory_space<vmem>>) attributes {dimension_semantics = [#tpu.dimension_semantics<parallel>], iteration_bounds = array<i64: 5>, scalar_prefetch = 0 : i64, scratch_operands = 0 : i64, tpu.core_type = #tpu.core_type<tc>, window_params = [{pipeline_mode = #tpu.pipeline_mode<synchronous>, transform_indices = @transform_0, window_bounds = array<i64: 8, 5120>}, {transform_indices = @transform_1, window_bounds = array<i64: 5120, 128>}, {transform_indices = @transform_2, window_bounds = array<i64: 1, 128>}, {transform_indices = @transform_3, window_bounds = array<i64: 8, 128>}]} {
    %c0 = arith.constant 0 : index
    %c0_0 = arith.constant 0 : index
    %0 = vector.load %arg1[%c0, %c0_0] : memref<8x5120xf32, #tpu.memory_space<vmem>>, vector<8x5120xf32>
    %c0_1 = arith.constant 0 : index
    %c0_2 = arith.constant 0 : index
    %1 = vector.load %arg2[%c0_1, %c0_2] : memref<5120x128xbf16, #tpu.memory_space<vmem>>, vector<5120x128xbf16>
    %2 = arith.extf %1 : vector<5120x128xbf16> to vector<5120x128xf32>
    %cst = arith.constant dense<0.000000e+00> : vector<8x128xf32>
    %3 = tpu.matmul %0, %2, %cst {dimension_numbers = #tpu.dot_dimension_numbers<[1], [0], [0], [1], [0, 0, 1, 1], [], []>} : vector<8x5120xf32>, vector<5120x128xf32>, vector<8x128xf32> -> vector<8x128xf32>
    %c0_3 = arith.constant 0 : index
    %c0_4 = arith.constant 0 : index
    %4 = vector.load %arg3[%c0_3, %c0_4] : memref<1x128xf32, #tpu.memory_space<vmem>>, vector<1x128xf32>
    %5 = vector.broadcast %4 : vector<1x128xf32> to vector<8x128xf32>
    %6 = arith.addf %3, %5 : vector<8x128xf32>
    %c0_5 = arith.constant 0 : index
    %c0_6 = arith.constant 0 : index
    %7 = vector.load %arg4[%c0_5, %c0_6] : memref<8x128xf32, #tpu.memory_space<vmem>>, vector<8x128xf32>
    tpu.vector_store %arg4[%c0_5, %c0_6], %6 {strides = array<i32>} : memref<8x128xf32, #tpu.memory_space<vmem>>, vector<8x128xf32>,
    return
  }
  func.func @transform_0(%arg0: i32) -> (i32, i32) {
    %c0_i32 = arith.constant 0 : i32
    %c0_i32_0 = arith.constant 0 : i32
    %c0_i32_1 = arith.constant 0 : i32
    return %c0_i32, %c0_i32_0 : i32, i32
  }
  func.func @transform_1(%arg0: i32) -> (i32, i32) {
    %c0_i32 = arith.constant 0 : i32
    %c0_i32_0 = arith.constant 0 : i32
    return %c0_i32, %arg0 : i32, i32
  }
  func.func @transform_2(%arg0: i32) -> (i32, i32) {
    %c0_i32 = arith.constant 0 : i32
    %c0_i32_0 = arith.constant 0 : i32
    return %c0_i32, %arg0 : i32, i32
  }
  func.func @transform_3(%arg0: i32) -> (i32, i32) {
    %c0_i32 = arith.constant 0 : i32
    %c0_i32_0 = arith.constant 0 : i32
    return %c0_i32, %arg0 : i32, i32
  }
}

</mosaic_0001>

<bundles_post_ra>
// kernel: generator_forward.2
= control target key start
LH: loop header
LB: loop body
LE: loop exit
PB: predicated region body
PF: predicated region fallthrough
CT: control target
= control target key end

     0   :  { %8 = vsyncpa [#allocation3], 0  ;;  %s6108_s0 = inlined_call_operand.vmem [shape: f32[8,5120], index: 0, kind: input, shape index: {}]   ;;  %s6109_s1 = inlined_call_operand.hbm [shape: bf16[5120,640], index: 1, kind: input, shape index: {}]   ;;  %s6110_s2 = inlined_call_operand.hbm [shape: f32[1,640], index: 2, kind: input, shape index: {}]   ;;  %s6111_s3 = inlined_call_operand.vmem [shape: f32[8,640], index: 3, kind: output, shape index: {}]  }
   0x1   :  { %10 = vsyncpa [#allocation3 + $0x1], 0 }
   0x2   :  { %11 = vsyncpa [#allocation5], 0 }
   0x3   :  { %13 = vsyncpa [#allocation5 + $0x1], 0  ;;  %s5514_s12 = smov 0   ;;  %s5516_s13 = smov 0  }
   0x4   :  { %s5518_s14 = smov 0   ;;  %s5520_s15 = smov 0  }
   0x5 LB: > { %s5533_s16 = sadd.s32 4294967295, %s5487_s15   ;;  %s5536_s17 = sadd.s32 1, %s5487_s15   ;;  %s5487_s15 = sphi %s5520_s15, %s6121_s15   ;;  %s5483_s14 = sphi %s5518_s14, %s6120_s14   ;;  %s5479_s13 = sphi %s5516_s13, %s6119_s13   ;;  %s5475_s12 = sphi %s5514_s12, %s6118_s12  }
   0x6   : > { %s44_s18 = ssub.s32 %s5487_s15, %s5536_s17  ;;  %s47_s19 = sadd.s32 1, %s5483_s14 }
   0x7   : > { %p45_p0 = scmp.eq.s32.totalorder %s44_s18, 0  ;;  %p54_p1 = scmp.ne.s32.totalorder %s5483_s14, %s5479_s13 }
   0x8   : > { %p55_p2 = scmp.eq.s32.totalorder %s5487_s15, 0  ;;  %p60_p3 = scmp.ne.s32.totalorder %s5479_s13, %s5475_s12 }
   0x9   : > { %s5546_s20 = scalar_select %p45_p0, %s5483_s14, %s47_s19  }
   0xa   : > { %p56_p4 = por %p55_p2, %p54_p1  ;;  %p61_p5 = scmp.eq.s32.totalorder %s5533_s16, 0 }
   0xb   : > { %p5357_p6 = scmp.lt.s32.totalorder %s5487_s15, 5  ;;  %s5555_s22 = sand.u32 1, %s5483_s14  }
   0xc   : > { %p5550_p7 = por %p61_p5, %p60_p3  ;;  %s5344_s23 = smul.u32 2560, %s5555_s22 }
   0xd   : > { %s3038_s24 = sshll.u32 %s5487_s15, 6  ;;  %p5559_p8 = pnand %p5357_p6, %p56_p4 }
   0xe   : > { %s6113_s21 = scalar_select %p5550_p7, 1, 0 }
   0xf   : > { %s5566_s28 = scalar_lea.hbm %s6109_s1, %s3038_s24  ;;  %s143_s29 = scalar_lea.vmem [#allocation2], %s5344_s23 }
  0x10   : > { %s149_s30 = sshll.u32 %s143_s29, 4  ;;  %s140_s4 = scalar_lea.sflag [#allocation3], %s5555_s22  ;;  %s5568_s30 = int_to_ptr.vmem [resolvable:$true] %s149_s30 }
  0x11   : > { %s5393_s5 = scalar_lea.hbm %s5566_s28, 40960  ;;  %p5395_p10 = pneg %p5559_p8 }
  0x12   : > { %p5394_p9 = scmp.ne.s32.totalorder %s5566_s28, %s5393_s5  ;;  %s5398_s8 = scalar_lea.hbm %s6109_s1, 204800 }
  0x13   : > { %p5399_p13 = scmp.lt.s32.totalorder %s5566_s28, %s6109_s1  ;;  %p5400_p0 = scmp.lt.s32.totalorder %s5398_s8, %s5393_s5 }
  0x14   : > { %p5396_p11 = pnand %p5395_p10, %p5394_p9 }
  0x15   : > { %p5401_p1 = por %p5400_p0, %p5399_p13 }
  0x16   : > { %p5397_p12 = pneg %p5396_p11 }
  0x18   : > { %p5402_p2 = pnand %p5401_p1, %p5397_p12 }
  0x1a   : > { %5405 = shalt.err (!%p5402_p2)
}
  0x1b   : > { %s5406_s11 = scalar_lea.vmem %s5568_s30, 40960  ;;  %s5489_s12 = smov [#allocation2]  }
  0x1c   : > { %p5407_p3 = scmp.ne.s32.totalorder %s5568_s30, %s5406_s11  ;;  %s5411_s18 = sshll.u32 %s5489_s12, 4  ;;  %s5412_s18 = int_to_ptr.vmem [resolvable:$false] %s5411_s18 }
  0x1d   : > { %s5413_s19 = scalar_lea.vmem %s5412_s18, 81920  ;;  %p5414_p6 = scmp.lt.s32.totalorder %s5568_s30, %s5412_s18 }
  0x1e   : > { %p5409_p4 = pnand %p5407_p3, %p5395_p10  ;;  %p5415_p9 = scmp.lt.s32.totalorder %s5413_s19, %s5406_s11 }
  0x20   : > { %p5410_p5 = pneg %p5409_p4  ;;  %p5416_p11 = por %p5415_p9, %p5414_p6 }
  0x22   : > { %p5417_p13 = pnand %p5416_p11, %p5410_p5 }
  0x24   : > { %5420 = shalt.err (!%p5417_p13)
}
  0x25   : > { %s5490_s23 = smov 320   ;;  %s5491_s24 = smov 64  }
  0x26   : > { %s5492_s26 = smov 4   ;;  %p3040_p12 = scmp.ge.s32.totalorder %s5487_s15, 1 }
  0x27   : > { %5353 = dma.hbm_to_vmem [thread:$0]  (!%p5559_p8), %s5566_s28, 40960, %s5568_s30, %s140_s4, %s5490_s23, %s5491_s24, %s5492_s26  }
  0x28   : > { %p174_p0 = scmp.lt.s32.totalorder %s5487_s15, 6  ;;  %s3039_s29 = sshll.u32 %s5487_s15, 4 }
  0x29   : > { %s5607_s7 = scalar_lea.hbm %s6110_s2, %s3039_s29  ;;  %s162_s8 = scalar_lea.vmem [#allocation4], %s5555_s22 }
  0x2a   : > { %p5599_p1 = pnand %p3040_p12, %p174_p0  ;;  %s169_s9 = sshll.u32 %s162_s8, 4  ;;  %s170_s9 = int_to_ptr.vmem [resolvable:$true] %s169_s9 }
  0x2b   : > { %s160_s10 = scalar_lea.sflag [#allocation5], %s5555_s22  ;;  %s5421_s28 = scalar_lea.hbm %s5607_s7, 16 }
  0x2c   : > { %s6115_s27 = scalar_select %p5599_p1, 1, 0 }
  0x2d   : > { %p5422_p2 = scmp.ne.s32.totalorder %s5607_s7, %s5421_s28  ;;  %s5426_s4 = scalar_lea.hbm %s6110_s2, 80 }
  0x2e   : > { %p5427_p5 = scmp.lt.s32.totalorder %s5607_s7, %s6110_s2  ;;  %p5428_p6 = scmp.lt.s32.totalorder %s5426_s4, %s5421_s28 }
  0x2f   : > { %p5424_p3 = pnand %p5422_p2, %p5395_p10 }
  0x30   : > { %p5429_p9 = por %p5428_p6, %p5427_p5 }
  0x31   : > { %p5425_p4 = pneg %p5424_p3 }
  0x33   : > { %p5430_p11 = pnand %p5429_p9, %p5425_p4 }
  0x35   : > { %5433 = shalt.err (!%p5430_p11)
}
  0x36   : > { %s5434_s18 = scalar_lea.vmem %s170_s9, 16  ;;  %s5493_s22 = smov [#allocation4]  }
  0x37   : > { %p5435_p13 = scmp.ne.s32.totalorder %s170_s9, %s5434_s18  ;;  %s5439_s19 = sshll.u32 %s5493_s22, 4  ;;  %s5440_s19 = int_to_ptr.vmem [resolvable:$false] %s5439_s19 }
  0x38   : > { %s5441_s23 = scalar_lea.vmem %s5440_s19, 32  ;;  %p5442_p2 = scmp.lt.s32.totalorder %s170_s9, %s5440_s19 }
  0x39   : > { %p5437_p12 = pnand %p5435_p13, %p5395_p10  ;;  %p5443_p3 = scmp.lt.s32.totalorder %s5441_s23, %s5434_s18 }
  0x3b   : > { %p5438_p0 = pneg %p5437_p12  ;;  %p5444_p7 = por %p5443_p3, %p5442_p2 }
  0x3d   : > { %p5445_p1 = pnand %p5444_p7, %p5438_p0 }
  0x3f   : > { %5448 = shalt.err (!%p5445_p1)
}
  0x40   : > { %5356 = dma.hbm_to_vmem [thread:$0]  (!%p5559_p8), %s5607_s7, 16, %s170_s9, %s160_s10  }
  0x41   : > { %p6116_p4 = scmp.ne.s32.totalorder %s6115_s27, 0 }
  0x42   : > { %s5632_s24 = sand.u32 (!%p6116_p4), 1, %s5479_s13   ;;  %p6117_p10 = scmp.ne.s32.totalorder (!%p6116_p4), %s6113_s21, 0 }
  0x43   : > { %178 = sbr.rel (%p6116_p4) target bundleno = 620 (0x26c), region = 32  ;;  %s181_s29 = scalar_lea.sflag (!%p6116_p4), [#allocation3], %s5632_s24 }
  0x44   : > { %s5345_s26 = smul.u32 (!%p6116_p4), 2560, %s5632_s24 }
  0x46   : > { %s5636_s5 = scalar_lea.vmem (!%p6116_p4), [#allocation2], %s5345_s26 }
  0x48   : > { %5466 = dma.done.wait (%p6117_p10), %s181_s29, 40960  }
  0x49   : > { %5468 = vsyncadd (%p6117_p10), %s181_s29, 4294926336  ;;  %s190_s25 = scalar_lea.sflag [#allocation5], %s5632_s24  ;;  %s192_s27 = scalar_lea.vmem [#allocation4], %s5632_s24 }
  0x4a   : > { %5470 = dma.done.wait (%p6117_p10), %s190_s25, 16  }
  0x4b   : > { %5472 = vsyncadd (%p6117_p10), %s190_s25, 4294967280  ;;  %v4339_v0 = vld [vmem:[%s5636_s5 + $0x78] sm:$0xff]   ;;  %v4338_v8 = vld [vmem:[%s5636_s5 + $0x70] sm:$0xff]   ;;  %p218_p7 = scmp.lt.s32.totalorder %s5533_s16, 4 }
  0x4c   : > { %v4355_v1 = vld [vmem:[%s5636_s5 + $0xf8] sm:$0xff]   ;;  %v3107_v3 = vunpack.c.l.bf16 %v4339_v0  ;;  %v3108_v4 = vunpack.c.h.bf16 %v4339_v0  ;;  %v4354_v9 = vld [vmem:[%s5636_s5 + $0xf0] sm:$0xff]   ;;  %v3104_v16 = vunpack.c.h.bf16 %v4338_v8  ;;  %v4337_v20 = vld [vmem:[%s5636_s5 + $0x68] sm:$0xff]   ;;  %v3103_v22 = vunpack.c.l.bf16 %v4338_v8 }
  0x4d   : > { %v4331_v2 = vld [vmem:[%s5636_s5 + $0x38] sm:$0xff]   ;;  %v3171_v5 = vunpack.c.l.bf16 %v4355_v1  ;;  %v3172_v6 = vunpack.c.h.bf16 %v4355_v1  ;;  %v4330_v14 = vld [vmem:[%s5636_s5 + $0x30] sm:$0xff]   ;;  %v3168_v17 = vunpack.c.h.bf16 %v4354_v9  ;;  %v4353_v21 = vld [vmem:[%s5636_s5 + $0xe8] sm:$0xff]   ;;  %v3167_v23 = vunpack.c.l.bf16 %v4354_v9  ;;  %s6123_s16 = smov (!%p218_p7, %s5533_s16), 4 }
  0x4e   : > { %v4347_v7 = vld [vmem:[%s5636_s5 + $0xb8] sm:$0xff]   ;;  %v3075_v10 = vunpack.c.l.bf16 %v4331_v2  ;;  %v3076_v11 = vunpack.c.h.bf16 %v4331_v2  ;;  %v4346_v15 = vld [vmem:[%s5636_s5 + $0xb0] sm:$0xff]   ;;  %4644 = vmatprep.subr.mxu0 %v3108_v4  ;;  %v3072_v18 = vunpack.c.h.bf16 %v4330_v14  ;;  %v4329_v24 = vld [vmem:[%s5636_s5 + $0x28] sm:$0xff]   ;;  %v3071_v26 = vunpack.c.l.bf16 %v4330_v14  ;;  %s3041_s24 = sshll.u32 %s6123_s16, 3 }
  0x4f   : > { %v3139_v12 = vunpack.c.l.bf16 %v4347_v7  ;;  %v3140_v13 = vunpack.c.h.bf16 %v4347_v7  ;;  %4679 = vmatprep.subr.mxu1 %v3172_v6  ;;  %v3136_v19 = vunpack.c.h.bf16 %v4346_v15  ;;  %v4345_v25 = vld [vmem:[%s5636_s5 + $0xa8] sm:$0xff]   ;;  %v3135_v27 = vunpack.c.l.bf16 %v4346_v15  ;;  %v4336_v32 = vld [vmem:[%s5636_s5 + $0x60] sm:$0xff]   ;;  %v4335_v44 = vld [vmem:[%s5636_s5 + $0x58] sm:$0xff]   ;;  %s221_s9 = scalar_lea.vmem %s6111_s3, %s3041_s24 }
  0x50   : > { %4645 = vmatpush3.msra.mxu0 %v3076_v11  ;;  %v3100_v28 = vunpack.c.h.bf16 %v4337_v20  ;;  %v3164_v29 = vunpack.c.h.bf16 %v4353_v21  ;;  %v3068_v30 = vunpack.c.h.bf16 %v4329_v24  ;;  %v3132_v31 = vunpack.c.h.bf16 %v4345_v25  ;;  %v4352_v33 = vld [vmem:[%s5636_s5 + $0xe0] sm:$0xff]   ;;  %v4351_v45 = vld [vmem:[%s5636_s5 + $0xd8] sm:$0xff]   ;;  %v4334_v56 = vld [vmem:[%s5636_s5 + $0x50] sm:$0xff]  }
  0x51   : > { %4680 = vmatpush3.msra.mxu1 %v3140_v13  ;;  %4646 = vmatprep.subr.mxu0 %v3107_v3  ;;  %v3099_v34 = vunpack.c.l.bf16 %v4337_v20  ;;  %v3163_v35 = vunpack.c.l.bf16 %v4353_v21  ;;  %v4328_v36 = vld [vmem:[%s5636_s5 + $0x20] sm:$0xff]   ;;  %v3067_v38 = vunpack.c.l.bf16 %v4329_v24  ;;  %v3131_v39 = vunpack.c.l.bf16 %v4345_v25  ;;  %v4327_v48 = vld [vmem:[%s5636_s5 + $0x18] sm:$0xff]   ;;  %v4350_v57 = vld [vmem:[%s5636_s5 + $0xd0] sm:$0xff]  }
  0x52   : > { %4681 = vmatprep.subr.mxu1 %v3171_v5  ;;  %4647 = vmatpush3.msra.mxu0 %v3075_v10  ;;  %v4344_v37 = vld [vmem:[%s5636_s5 + $0xa0] sm:$0xff]   ;;  %v3096_v40 = vunpack.c.h.bf16 %v4336_v32  ;;  %v3160_v41 = vunpack.c.h.bf16 %v4352_v33  ;;  %v3064_v42 = vunpack.c.h.bf16 %v4328_v36  ;;  %v3095_v46 = vunpack.c.l.bf16 %v4336_v32  ;;  %v4343_v49 = vld [vmem:[%s5636_s5 + $0x98] sm:$0xff]   ;;  %v4326_v60 = vld [vmem:[%s5636_s5 + $0x10] sm:$0xff]  }
  0x53   : > { %4682 = vmatpush3.msra.mxu1 %v3139_v12  ;;  %4648 = vmatprep.subr.mxu0 %v3104_v16  ;;  %v3128_v43 = vunpack.c.h.bf16 %v4344_v37  ;;  %v3159_v47 = vunpack.c.l.bf16 %v4352_v33  ;;  %v3063_v50 = vunpack.c.l.bf16 %v4328_v36  ;;  %v3127_v51 = vunpack.c.l.bf16 %v4344_v37  ;;  %v4342_v61 = vld [vmem:[%s5636_s5 + $0x90] sm:$0xff]   ;;  %v4333_v4 = vld [vmem:[%s5636_s5 + $0x48] sm:$0xff]   ;;  %v4332_v16 = vld [vmem:[%s5636_s5 + $0x40] sm:$0xff]  }
  0x54   : > { %4683 = vmatprep.subr.mxu1 %v3168_v17  ;;  %4649 = vmatpush3.msra.mxu0 %v3072_v18  ;;  %v3092_v52 = vunpack.c.h.bf16 %v4335_v44  ;;  %v3156_v53 = vunpack.c.h.bf16 %v4351_v45  ;;  %v3060_v54 = vunpack.c.h.bf16 %v4327_v48  ;;  %v3124_v55 = vunpack.c.h.bf16 %v4343_v49  ;;  %v4349_v5 = vld [vmem:[%s5636_s5 + $0xc8] sm:$0xff]   ;;  %v4348_v17 = vld [vmem:[%s5636_s5 + $0xc0] sm:$0xff]   ;;  %v4387_v32 = vld [vmem:[%s5636_s5 + $0x1f8] sm:$0xff]  }
  0x55   : > { %4684 = vmatpush3.msra.mxu1 %v3136_v19  ;;  %4650 = vmatprep.subr.mxu0 %v3103_v22  ;;  %v3091_v58 = vunpack.c.l.bf16 %v4335_v44  ;;  %v3155_v59 = vunpack.c.l.bf16 %v4351_v45  ;;  %v3059_v62 = vunpack.c.l.bf16 %v4327_v48  ;;  %v3123_v63 = vunpack.c.l.bf16 %v4343_v49  ;;  %v4325_v8 = vld [vmem:[%s5636_s5 + $0x8] sm:$0xff]   ;;  %v3046_v20 = vld [vmem:[%s5636_s5] sm:$0xff]   ;;  %v4379_v36 = vld [vmem:[%s5636_s5 + $0x1b8] sm:$0xff]  }
  0x56   : > { %4685 = vmatprep.subr.mxu1 %v3167_v23  ;;  %4651 = vmatpush3.msra.mxu0 %v3071_v26  ;;  %v3088_v0 = vunpack.c.h.bf16 %v4334_v56  ;;  %v3152_v1 = vunpack.c.h.bf16 %v4350_v57  ;;  %v3056_v2 = vunpack.c.h.bf16 %v4326_v60  ;;  %v3120_v3 = vunpack.c.h.bf16 %v4342_v61  ;;  %v4341_v9 = vld [vmem:[%s5636_s5 + $0x88] sm:$0xff]   ;;  %v4340_v21 = vld [vmem:[%s5636_s5 + $0x80] sm:$0xff]   ;;  %v4370_v44 = vld [vmem:[%s5636_s5 + $0x170] sm:$0xff]  }
  0x57   : > { %4686 = vmatpush3.msra.mxu1 %v3135_v27  ;;  %4652 = vmatprep.subr.mxu0 %v3100_v28  ;;  %v3087_v6 = vunpack.c.l.bf16 %v4334_v56  ;;  %v3151_v7 = vunpack.c.l.bf16 %v4350_v57  ;;  %v3055_v10 = vunpack.c.l.bf16 %v4326_v60  ;;  %v3119_v11 = vunpack.c.l.bf16 %v4342_v61  ;;  %v223_v33 = vld [vmem:[%s6108_s0 + $0x8] sm:$0xff]  ;;  %v222_v37 = vld [vmem:[%s6108_s0] sm:$0xff]  ;;  %v4386_v45 = vld [vmem:[%s5636_s5 + $0x1f0] sm:$0xff]  }
  0x58   : > { %4687 = vmatprep.subr.mxu1 %v3164_v29  ;;  %4653 = vmatpush3.msra.mxu0 %v3068_v30  ;;  %v3084_v12 = vunpack.c.h.bf16 %v4333_v4  ;;  %v3148_v13 = vunpack.c.h.bf16 %v4349_v5  ;;  %v3052_v14 = vunpack.c.h.bf16 %v4325_v8  ;;  %v3116_v15 = vunpack.c.h.bf16 %v4341_v9  ;;  %v4371_v30 = vld [vmem:[%s5636_s5 + $0x178] sm:$0xff]   ;;  %v4362_v48 = vld [vmem:[%s5636_s5 + $0x130] sm:$0xff]   ;;  %v4369_v56 = vld [vmem:[%s5636_s5 + $0x168] sm:$0xff]  }
  0x59   : > { %4688 = vmatpush3.msra.mxu1 %v3132_v31  ;;  %4654 = vmatprep.subr.mxu0 %v3099_v34  ;;  %v3083_v18 = vunpack.c.l.bf16 %v4333_v4  ;;  %v3147_v19 = vunpack.c.l.bf16 %v4349_v5  ;;  %v3051_v22 = vunpack.c.l.bf16 %v4325_v8  ;;  %v3115_v23 = vunpack.c.l.bf16 %v4341_v9  ;;  %v4378_v49 = vld [vmem:[%s5636_s5 + $0x1b0] sm:$0xff]   ;;  %v4385_v57 = vld [vmem:[%s5636_s5 + $0x1e8] sm:$0xff]   ;;  %v4368_v4 = vld [vmem:[%s5636_s5 + $0x160] sm:$0xff]  }
  0x5a   : > { %4689 = vmatprep.subr.mxu1 %v3163_v35  ;;  %4655 = vmatpush3.msra.mxu0 %v3067_v38  ;;  %v3080_v24 = vunpack.c.h.bf16 %v4332_v16  ;;  %v3144_v25 = vunpack.c.h.bf16 %v4348_v17  ;;  %v3048_v26 = vunpack.c.h.bf16 %v3046_v20  ;;  %v3112_v27 = vunpack.c.h.bf16 %v4340_v21  ;;  %v4363_v35 = vld [vmem:[%s5636_s5 + $0x138] sm:$0xff]   ;;  %v4361_v60 = vld [vmem:[%s5636_s5 + $0x128] sm:$0xff]   ;;  %v4384_v5 = vld [vmem:[%s5636_s5 + $0x1e0] sm:$0xff]  }
  0x5b   : > { %4690 = vmatpush3.msra.mxu1 %v3131_v39  ;;  %4656 = vmatprep.subr.mxu0 %v3096_v40  ;;  %v3079_v28 = vunpack.c.l.bf16 %v4332_v16  ;;  %v3143_v29 = vunpack.c.l.bf16 %v4348_v17  ;;  %v3047_v31 = vunpack.c.l.bf16 %v3046_v20  ;;  %v3111_v34 = vunpack.c.l.bf16 %v4340_v21  ;;  %v225_v39 = vld [vmem:[%s6108_s0 + $0x18] sm:$0xff]  ;;  %v4377_v61 = vld [vmem:[%s5636_s5 + $0x1a8] sm:$0xff]   ;;  %v4360_v8 = vld [vmem:[%s5636_s5 + $0x120] sm:$0xff]  }
  0x5c   : > { %4691 = vmatprep.subr.mxu1 %v3160_v41  ;;  %4657 = vmatpush3.msra.mxu0 %v3064_v42  ;;  %v3236_v38 = vunpack.c.h.bf16 %v4371_v30  ;;  %v3300_v40 = vunpack.c.h.bf16 %v4387_v32  ;;  %v224_v41 = vld [vmem:[%s6108_s0 + $0x10] sm:$0xff]  ;;  %v3204_v42 = vunpack.c.h.bf16 %v4363_v35  ;;  %v4376_v9 = vld [vmem:[%s5636_s5 + $0x1a0] sm:$0xff]   ;;  %v4367_v16 = vld [vmem:[%s5636_s5 + $0x158] sm:$0xff]  }
  0x5d   : > { %4692 = vmatpush3.msra.mxu1 %v3128_v43  ;;  %4658 = vmatprep.subr.mxu0 %v3095_v46  ;;  %v3268_v43 = vunpack.c.h.bf16 %v4379_v36  ;;  %v3235_v46 = vunpack.c.l.bf16 %v4371_v30  ;;  %v4383_v17 = vld [vmem:[%s5636_s5 + $0x1d8] sm:$0xff]   ;;  %v3219_v30 = vunpack.c.l.bf16 %v4367_v16 }
  0x5e   : > { %4693 = vmatprep.subr.mxu1 %v3159_v47  ;;  %4659 = vmatpush3.msra.mxu0 %v3063_v50  ;;  %v3299_v47 = vunpack.c.l.bf16 %v4387_v32  ;;  %v3203_v50 = vunpack.c.l.bf16 %v4363_v35  ;;  %v4359_v20 = vld [vmem:[%s5636_s5 + $0x118] sm:$0xff]   ;;  %v4358_v32 = vld [vmem:[%s5636_s5 + $0x110] sm:$0xff]  }
  0x5f   : > { %4694 = vmatpush3.msra.mxu1 %v3127_v51  ;;  %4660 = vmatprep.subr.mxu0 %v3092_v52  ;;  %v3267_v51 = vunpack.c.l.bf16 %v4379_v36  ;;  %v3232_v52 = vunpack.c.h.bf16 %v4370_v44  ;;  %v4375_v21 = vld [vmem:[%s5636_s5 + $0x198] sm:$0xff]  }
  0x60   : > { %4695 = vmatprep.subr.mxu1 %v3156_v53  ;;  %4661 = vmatpush3.msra.mxu0 %v3060_v54  ;;  %v3296_v53 = vunpack.c.h.bf16 %v4386_v45  ;;  %v3200_v54 = vunpack.c.h.bf16 %v4362_v48  ;;  %v3251_v35 = vunpack.c.l.bf16 %v4375_v21 }
  0x61   : > { %4696 = vmatpush3.msra.mxu1 %v3124_v55  ;;  %4662 = vmatprep.subr.mxu0 %v3091_v58  ;;  %v3264_v55 = vunpack.c.h.bf16 %v4378_v49  ;;  %v3231_v58 = vunpack.c.l.bf16 %v4370_v44  ;;  %v4357_v44 = vld [vmem:[%s5636_s5 + $0x108] sm:$0xff]  }
  0x62   : > { %4697 = vmatprep.subr.mxu1 %v3155_v59  ;;  %4663 = vmatpush3.msra.mxu0 %v3059_v62  ;;  %v3295_v59 = vunpack.c.l.bf16 %v4386_v45  ;;  %v3199_v62 = vunpack.c.l.bf16 %v4362_v48  ;;  %v4373_v45 = vld [vmem:[%s5636_s5 + $0x188] sm:$0xff]  }
  0x63   : > { %4698 = vmatpush3.msra.mxu1 %v3123_v63  ;;  %4664 = vmatprep.subr.mxu0 %v3088_v0  ;;  %v3263_v63 = vunpack.c.l.bf16 %v4378_v49  ;;  %v3228_v0 = vunpack.c.h.bf16 %v4369_v56 }
  0x64   : > { %4699 = vmatprep.subr.mxu1 %v3152_v1  ;;  %4665 = vmatpush3.msra.mxu0 %v3056_v2  ;;  %v3292_v1 = vunpack.c.h.bf16 %v4385_v57  ;;  %v3196_v2 = vunpack.c.h.bf16 %v4361_v60 }
  0x65   : > { %4700 = vmatpush3.msra.mxu1 %v3120_v3  ;;  %4666 = vmatprep.subr.mxu0 %v3087_v6  ;;  %v3260_v3 = vunpack.c.h.bf16 %v4377_v61  ;;  %v3227_v6 = vunpack.c.l.bf16 %v4369_v56  ;;  %v4356_v56 = vld [vmem:[%s5636_s5 + $0x100] sm:$0xff]  }
  0x66   : > { %4701 = vmatprep.subr.mxu1 %v3151_v7  ;;  %4667 = vmatpush3.msra.mxu0 %v3055_v10  ;;  %v3291_v7 = vunpack.c.l.bf16 %v4385_v57  ;;  %v3195_v10 = vunpack.c.l.bf16 %v4361_v60  ;;  %v4372_v57 = vld [vmem:[%s5636_s5 + $0x180] sm:$0xff]  }
  0x67   : > { %4702 = vmatpush3.msra.mxu1 %v3119_v11  ;;  %4668 = vmatprep.subr.mxu0 %v3084_v12  ;;  %v3259_v11 = vunpack.c.l.bf16 %v4377_v61  ;;  %v3224_v12 = vunpack.c.h.bf16 %v4368_v4 }
  0x68   : > { %4703 = vmatprep.subr.mxu1 %v3148_v13  ;;  %4669 = vmatpush3.msra.mxu0 %v3052_v14  ;;  %v3288_v13 = vunpack.c.h.bf16 %v4384_v5  ;;  %v3192_v14 = vunpack.c.h.bf16 %v4360_v8 }
  0x69   : > { %4704 = vmatpush3.msra.mxu1 %v3116_v15  ;;  %4670 = vmatprep.subr.mxu0 %v3083_v18  ;;  %v3256_v15 = vunpack.c.h.bf16 %v4376_v9  ;;  %v3223_v18 = vunpack.c.l.bf16 %v4368_v4  ;;  %v4419_v4 = vld [vmem:[%s5636_s5 + $0x2f8] sm:$0xff]  }
  0x6a   : > { %4705 = vmatprep.subr.mxu1 %v3147_v19  ;;  %4671 = vmatpush3.msra.mxu0 %v3051_v22  ;;  %v3287_v19 = vunpack.c.l.bf16 %v4384_v5  ;;  %v3191_v22 = vunpack.c.l.bf16 %v4360_v8  ;;  %v227_v5 = vld [vmem:[%s6108_s0 + $0x28] sm:$0xff]  ;;  %v4411_v8 = vld [vmem:[%s5636_s5 + $0x2b8] sm:$0xff]  }
  0x6b   : > { %4706 = vmatpush3.msra.mxu1 %v3115_v23  ;;  %4672 = vmatprep.subr.mxu0 %v3080_v24  ;;  %v3255_v23 = vunpack.c.l.bf16 %v4376_v9  ;;  %v3220_v24 = vunpack.c.h.bf16 %v4367_v16  ;;  %v226_v9 = vld [vmem:[%s6108_s0 + $0x20] sm:$0xff]  ;;  %v4402_v16 = vld [vmem:[%s5636_s5 + $0x270] sm:$0xff]  }
  0x6c   : > { %4707 = vmatprep.subr.mxu1 %v3144_v25  ;;  %4673 = vmatpush3.msra.mxu0 %v3048_v26  ;;  %v3284_v25 = vunpack.c.h.bf16 %v4383_v17  ;;  %v3188_v26 = vunpack.c.h.bf16 %v4359_v20 }
  0x6d   : > { %4708 = vmatpush3.msra.mxu1 %v3112_v27  ;;  %4674 = vmatprep.subr.mxu0 %v3079_v28  ;;  %v3252_v27 = vunpack.c.h.bf16 %v4375_v21  ;;  %v4366_v28 = vld [vmem:[%s5636_s5 + $0x150] sm:$0xff]  }
  0x6e   : > { %4709 = vmatprep.subr.mxu1 %v3143_v29  ;;  %4675 = vmatpush3.msra.mxu0 %v3047_v31  ;;  %v4382_v29 = vld [vmem:[%s5636_s5 + $0x1d0] sm:$0xff]   ;;  %v3283_v31 = vunpack.c.l.bf16 %v4383_v17  ;;  %v3216_v36 = vunpack.c.h.bf16 %v4366_v28 }
  0x6f   : > { %1613 = vmatprep.mubr.f32.mxu0 %v223_v33  ;;  %4710 = vmatpush3.msra.mxu1 %v3111_v34  ;;  %v4374_v33 = vld [vmem:[%s5636_s5 + $0x190] sm:$0xff]   ;;  %v3187_v34 = vunpack.c.l.bf16 %v4359_v20 }
  0x70   : > { %1614 = vmatmul.mubr.f32.vlgmr.msra.gmra.mxu0 %v222_v37  ;;  %1683 = vmatprep.mubr.f32.mxu1 %v225_v39  ;;  %v3280_v37 = vunpack.c.h.bf16 %v4382_v29  ;;  %v3248_v39 = vunpack.c.h.bf16 %v4374_v33  ;;  %v4418_v17 = vld [vmem:[%s5636_s5 + $0x2f0] sm:$0xff]  }
  0x71   : > { %4714 = vmatprep.subr.mxu0 %v3236_v38  ;;  %4749 = vmatprep.subr.mxu1 %v3300_v40  ;;  %v3184_v38 = vunpack.c.h.bf16 %v4358_v32  ;;  %v4365_v40 = vld [vmem:[%s5636_s5 + $0x148] sm:$0xff]   ;;  %v4394_v20 = vld [vmem:[%s5636_s5 + $0x230] sm:$0xff]  }
  0x72   : > { %1684 = vmatmul.mubr.f32.vlgmr.msra.gmra.mxu1 %v224_v41  ;;  %4715 = vmatpush3.msra.mxu0 %v3204_v42  ;;  %v4381_v41 = vld [vmem:[%s5636_s5 + $0x1c8] sm:$0xff]   ;;  %v3215_v42 = vunpack.c.l.bf16 %v4366_v28  ;;  %v3212_v48 = vunpack.c.h.bf16 %v4365_v40  ;;  %v4410_v21 = vld [vmem:[%s5636_s5 + $0x2b0] sm:$0xff]  }
  0x73   : > { %4750 = vmatpush3.msra.mxu1 %v3268_v43  ;;  %4716 = vmatprep.subr.mxu0 %v3235_v46  ;;  %v3279_v43 = vunpack.c.l.bf16 %v4382_v29  ;;  %v3183_v46 = vunpack.c.l.bf16 %v4358_v32  ;;  %v3276_v49 = vunpack.c.h.bf16 %v4381_v41  ;;  %v4401_v28 = vld [vmem:[%s5636_s5 + $0x268] sm:$0xff]  }
  0x74   : > { %4751 = vmatprep.subr.mxu1 %v3299_v47  ;;  %4717 = vmatpush3.msra.mxu0 %v3203_v50  ;;  %v3247_v47 = vunpack.c.l.bf16 %v4374_v33  ;;  %v3180_v50 = vunpack.c.h.bf16 %v4357_v44  ;;  %v4417_v29 = vld [vmem:[%s5636_s5 + $0x2e8] sm:$0xff]  }
  0x75   : > { %4752 = vmatpush3.msra.mxu1 %v3267_v51  ;;  %4718 = vmatprep.subr.mxu0 %v3232_v52  ;;  %v3244_v51 = vunpack.c.h.bf16 %v4373_v45  ;;  %v4364_v52 = vld [vmem:[%s5636_s5 + $0x140] sm:$0xff]   ;;  %v4393_v32 = vld [vmem:[%s5636_s5 + $0x228] sm:$0xff]  }
  0x76   : > { %4753 = vmatprep.subr.mxu1 %v3296_v53  ;;  %4719 = vmatpush3.msra.mxu0 %v3200_v54  ;;  %v4380_v53 = vld [vmem:[%s5636_s5 + $0x1c0] sm:$0xff]   ;;  %v3211_v54 = vunpack.c.l.bf16 %v4365_v40  ;;  %v3208_v60 = vunpack.c.h.bf16 %v4364_v52  ;;  %v4409_v33 = vld [vmem:[%s5636_s5 + $0x2a8] sm:$0xff]  }
  0x77   : > { %4754 = vmatpush3.msra.mxu1 %v3264_v55  ;;  %4720 = vmatprep.subr.mxu0 %v3231_v58  ;;  %v3275_v55 = vunpack.c.l.bf16 %v4381_v41  ;;  %v3179_v58 = vunpack.c.l.bf16 %v4357_v44  ;;  %v3272_v61 = vunpack.c.h.bf16 %v4380_v53  ;;  %v4400_v40 = vld [vmem:[%s5636_s5 + $0x260] sm:$0xff]  }
  0x78   : > { %4755 = vmatprep.subr.mxu1 %v3295_v59  ;;  %4721 = vmatpush3.msra.mxu0 %v3199_v62  ;;  %v3243_v59 = vunpack.c.l.bf16 %v4373_v45  ;;  %v3176_v62 = vunpack.c.h.bf16 %v4356_v56  ;;  %v4416_v41 = vld [vmem:[%s5636_s5 + $0x2e0] sm:$0xff]  }
  0x79   : > { %4756 = vmatpush3.msra.mxu1 %v3263_v63  ;;  %4722 = vmatprep.subr.mxu0 %v3228_v0  ;;  %v3240_v63 = vunpack.c.h.bf16 %v4372_v57  ;;  %v3207_v0 = vunpack.c.l.bf16 %v4364_v52  ;;  %v4392_v44 = vld [vmem:[%s5636_s5 + $0x220] sm:$0xff]   ;;  %v4399_v52 = vld [vmem:[%s5636_s5 + $0x258] sm:$0xff]  }
  0x7a   : > { %4757 = vmatprep.subr.mxu1 %v3292_v1  ;;  %4723 = vmatpush3.msra.mxu0 %v3196_v2  ;;  %v3271_v1 = vunpack.c.l.bf16 %v4380_v53  ;;  %v4403_v2 = vld [vmem:[%s5636_s5 + $0x278] sm:$0xff]   ;;  %v4408_v45 = vld [vmem:[%s5636_s5 + $0x2a0] sm:$0xff]  }
  0x7b   : > { %4758 = vmatpush3.msra.mxu1 %v3260_v3  ;;  %4724 = vmatprep.subr.mxu0 %v3227_v6  ;;  %v3175_v3 = vunpack.c.l.bf16 %v4356_v56  ;;  %v3239_v6 = vunpack.c.l.bf16 %v4372_v57  ;;  %v4415_v53 = vld [vmem:[%s5636_s5 + $0x2d8] sm:$0xff]  }
  0x7c   : > { %4759 = vmatprep.subr.mxu1 %v3291_v7  ;;  %4725 = vmatpush3.msra.mxu0 %v3195_v10  ;;  %v4395_v7 = vld [vmem:[%s5636_s5 + $0x238] sm:$0xff]   ;;  %v3364_v10 = vunpack.c.h.bf16 %v4403_v2 }
  0x7d   : > { %4760 = vmatpush3.msra.mxu1 %v3259_v11  ;;  %4726 = vmatprep.subr.mxu0 %v3224_v12  ;;  %v229_v11 = vld [vmem:[%s6108_s0 + $0x38] sm:$0xff]  ;;  %v3428_v12 = vunpack.c.h.bf16 %v4419_v4 }
  0x7e   : > { %4761 = vmatprep.subr.mxu1 %v3288_v13  ;;  %4727 = vmatpush3.msra.mxu0 %v3192_v14  ;;  %v228_v13 = vld [vmem:[%s6108_s0 + $0x30] sm:$0xff]  ;;  %v3332_v14 = vunpack.c.h.bf16 %v4395_v7  ;;  %v4391_v56 = vld [vmem:[%s5636_s5 + $0x218] sm:$0xff]  }
  0x7f   : > { %4762 = vmatpush3.msra.mxu1 %v3256_v15  ;;  %4728 = vmatprep.subr.mxu0 %v3223_v18  ;;  %v3396_v15 = vunpack.c.h.bf16 %v4411_v8  ;;  %v3363_v18 = vunpack.c.l.bf16 %v4403_v2  ;;  %v4407_v57 = vld [vmem:[%s5636_s5 + $0x298] sm:$0xff]   ;;  %v3347_v2 = vunpack.c.l.bf16 %v4399_v52 }
  0x80   : > { %4763 = vmatprep.subr.mxu1 %v3287_v19  ;;  %4729 = vmatpush3.msra.mxu0 %v3191_v22  ;;  %v3427_v19 = vunpack.c.l.bf16 %v4419_v4  ;;  %v3331_v22 = vunpack.c.l.bf16 %v4395_v7  ;;  %v4390_v4 = vld [vmem:[%s5636_s5 + $0x210] sm:$0xff]   ;;  %v3379_v7 = vunpack.c.l.bf16 %v4407_v57 }
  0x81   : > { %4764 = vmatpush3.msra.mxu1 %v3255_v23  ;;  %4730 = vmatprep.subr.mxu0 %v3220_v24  ;;  %v3395_v23 = vunpack.c.l.bf16 %v4411_v8  ;;  %v3360_v24 = vunpack.c.h.bf16 %v4402_v16 }
  0x82   : > { %4765 = vmatprep.subr.mxu1 %v3284_v25  ;;  %4731 = vmatpush3.msra.mxu0 %v3188_v26  ;;  %v3424_v25 = vunpack.c.h.bf16 %v4418_v17  ;;  %v3328_v26 = vunpack.c.h.bf16 %v4394_v20 }
  0x83   : > { %4766 = vmatpush3.msra.mxu1 %v3252_v27  ;;  %4732 = vmatprep.subr.mxu0 %v3219_v30  ;;  %v3392_v27 = vunpack.c.h.bf16 %v4410_v21  ;;  %v3359_v30 = vunpack.c.l.bf16 %v4402_v16  ;;  %v4389_v16 = vld [vmem:[%s5636_s5 + $0x208] sm:$0xff]  }
  0x84   : > { %4767 = vmatprep.subr.mxu1 %v3283_v31  ;;  %4733 = vmatpush3.msra.mxu0 %v3187_v34  ;;  %v3423_v31 = vunpack.c.l.bf16 %v4418_v17  ;;  %v3327_v34 = vunpack.c.l.bf16 %v4394_v20  ;;  %v4405_v17 = vld [vmem:[%s5636_s5 + $0x288] sm:$0xff]  }
  0x85   : > { %4768 = vmatpush3.msra.mxu1 %v3251_v35  ;;  %4734 = vmatprep.subr.mxu0 %v3216_v36  ;;  %v3391_v35 = vunpack.c.l.bf16 %v4410_v21  ;;  %v3356_v36 = vunpack.c.h.bf16 %v4401_v28 }
  0x86   : > { %4769 = vmatprep.subr.mxu1 %v3280_v37  ;;  %4735 = vmatpush3.msra.mxu0 %v3184_v38  ;;  %v3420_v37 = vunpack.c.h.bf16 %v4417_v29  ;;  %v3324_v38 = vunpack.c.h.bf16 %v4393_v32 }
  0x87   : > { %4770 = vmatpush3.msra.mxu1 %v3248_v39  ;;  %4736 = vmatprep.subr.mxu0 %v3215_v42  ;;  %v3388_v39 = vunpack.c.h.bf16 %v4409_v33  ;;  %v3355_v42 = vunpack.c.l.bf16 %v4401_v28  ;;  %v4388_v28 = vld [vmem:[%s5636_s5 + $0x200] sm:$0xff]  }
  0x88   : > { %4771 = vmatprep.subr.mxu1 %v3279_v43  ;;  %4737 = vmatpush3.msra.mxu0 %v3183_v46  ;;  %v3419_v43 = vunpack.c.l.bf16 %v4417_v29  ;;  %v3323_v46 = vunpack.c.l.bf16 %v4393_v32  ;;  %v4404_v29 = vld [vmem:[%s5636_s5 + $0x280] sm:$0xff]  }
  0x89   : > { %4772 = vmatpush3.msra.mxu1 %v3247_v47  ;;  %4738 = vmatprep.subr.mxu0 %v3212_v48  ;;  %v3387_v47 = vunpack.c.l.bf16 %v4409_v33  ;;  %v3352_v48 = vunpack.c.h.bf16 %v4400_v40 }
  0x8a   : > { %4773 = vmatprep.subr.mxu1 %v3276_v49  ;;  %4739 = vmatpush3.msra.mxu0 %v3180_v50  ;;  %v3416_v49 = vunpack.c.h.bf16 %v4416_v41  ;;  %v3320_v50 = vunpack.c.h.bf16 %v4392_v44 }
  0x8b   : > { %4774 = vmatpush3.msra.mxu1 %v3244_v51  ;;  %4740 = vmatprep.subr.mxu0 %v3211_v54  ;;  %v3384_v51 = vunpack.c.h.bf16 %v4408_v45  ;;  %v3351_v54 = vunpack.c.l.bf16 %v4400_v40  ;;  %v4451_v40 = vld [vmem:[%s5636_s5 + $0x3f8] sm:$0xff]  }
  0x8c   : > { %4775 = vmatprep.subr.mxu1 %v3275_v55  ;;  %4741 = vmatpush3.msra.mxu0 %v3179_v58  ;;  %v3415_v55 = vunpack.c.l.bf16 %v4416_v41  ;;  %v3319_v58 = vunpack.c.l.bf16 %v4392_v44  ;;  %v231_v41 = vld [vmem:[%s6108_s0 + $0x48] sm:$0xff]  ;;  %v4443_v44 = vld [vmem:[%s5636_s5 + $0x3b8] sm:$0xff]  }
  0x8d   : > { %4776 = vmatpush3.msra.mxu1 %v3243_v59  ;;  %4742 = vmatprep.subr.mxu0 %v3208_v60  ;;  %v3383_v59 = vunpack.c.l.bf16 %v4408_v45  ;;  %v3348_v60 = vunpack.c.h.bf16 %v4399_v52  ;;  %v230_v45 = vld [vmem:[%s6108_s0 + $0x40] sm:$0xff]  ;;  %v4434_v52 = vld [vmem:[%s5636_s5 + $0x370] sm:$0xff]  }
  0x8e   : > { %4777 = vmatprep.subr.mxu1 %v3272_v61  ;;  %4743 = vmatpush3.msra.mxu0 %v3176_v62  ;;  %v3412_v61 = vunpack.c.h.bf16 %v4415_v53  ;;  %v3316_v62 = vunpack.c.h.bf16 %v4391_v56 }
  0x8f   : > { %4778 = vmatpush3.msra.mxu1 %v3240_v63  ;;  %4744 = vmatprep.subr.mxu0 %v3207_v0  ;;  %v3380_v63 = vunpack.c.h.bf16 %v4407_v57  ;;  %v4398_v0 = vld [vmem:[%s5636_s5 + $0x250] sm:$0xff]  }
  0x90   : > { %4779 = vmatprep.subr.mxu1 %v3271_v1  ;;  %4745 = vmatpush3.msra.mxu0 %v3175_v3  ;;  %v4414_v1 = vld [vmem:[%s5636_s5 + $0x2d0] sm:$0xff]   ;;  %v3411_v3 = vunpack.c.l.bf16 %v4415_v53  ;;  %v3344_v8 = vunpack.c.h.bf16 %v4398_v0 }
  0x91   : > { %1753 = vmatprep.mubr.f32.mxu0 %v227_v5  ;;  %4780 = vmatpush3.msra.mxu1 %v3239_v6  ;;  %v4406_v5 = vld [vmem:[%s5636_s5 + $0x290] sm:$0xff]   ;;  %v3315_v6 = vunpack.c.l.bf16 %v4391_v56 }
  0x92   : > { %1754 = vmatmul.mubr.f32.vlgmr.msra.gmra.mxu0 %v226_v9  ;;  %1823 = vmatprep.mubr.f32.mxu1 %v229_v11  ;;  %v3408_v9 = vunpack.c.h.bf16 %v4414_v1  ;;  %v3376_v11 = vunpack.c.h.bf16 %v4406_v5  ;;  %v4450_v53 = vld [vmem:[%s5636_s5 + $0x3f0] sm:$0xff]  }
  0x93   : > { %4784 = vmatprep.subr.mxu0 %v3364_v10  ;;  %4819 = vmatprep.subr.mxu1 %v3428_v12  ;;  %v3312_v10 = vunpack.c.h.bf16 %v4390_v4  ;;  %v4397_v12 = vld [vmem:[%s5636_s5 + $0x248] sm:$0xff]   ;;  %v4426_v56 = vld [vmem:[%s5636_s5 + $0x330] sm:$0xff]  }
  0x94   : > { %1824 = vmatmul.mubr.f32.vlgmr.msra.gmra.mxu1 %v228_v13  ;;  %4785 = vmatpush3.msra.mxu0 %v3332_v14  ;;  %v4413_v13 = vld [vmem:[%s5636_s5 + $0x2c8] sm:$0xff]   ;;  %v3343_v14 = vunpack.c.l.bf16 %v4398_v0  ;;  %v3340_v20 = vunpack.c.h.bf16 %v4397_v12  ;;  %v4442_v57 = vld [vmem:[%s5636_s5 + $0x3b0] sm:$0xff]  }
  0x95   : > { %4820 = vmatpush3.msra.mxu1 %v3396_v15  ;;  %4786 = vmatprep.subr.mxu0 %v3363_v18  ;;  %v3407_v15 = vunpack.c.l.bf16 %v4414_v1  ;;  %v3311_v18 = vunpack.c.l.bf16 %v4390_v4  ;;  %v3404_v21 = vunpack.c.h.bf16 %v4413_v13  ;;  %v4433_v0 = vld [vmem:[%s5636_s5 + $0x368] sm:$0xff]  }
  0x96   : > { %4821 = vmatprep.subr.mxu1 %v3427_v19  ;;  %4787 = vmatpush3.msra.mxu0 %v3331_v22  ;;  %v3375_v19 = vunpack.c.l.bf16 %v4406_v5  ;;  %v3308_v22 = vunpack.c.h.bf16 %v4389_v16  ;;  %v4449_v1 = vld [vmem:[%s5636_s5 + $0x3e8] sm:$0xff]  }
  0x97   : > { %4822 = vmatpush3.msra.mxu1 %v3395_v23  ;;  %4788 = vmatprep.subr.mxu0 %v3360_v24  ;;  %v3372_v23 = vunpack.c.h.bf16 %v4405_v17  ;;  %v4396_v24 = vld [vmem:[%s5636_s5 + $0x240] sm:$0xff]   ;;  %v4425_v4 = vld [vmem:[%s5636_s5 + $0x328] sm:$0xff]  }
  0x98   : > { %4823 = vmatprep.subr.mxu1 %v3424_v25  ;;  %4789 = vmatpush3.msra.mxu0 %v3328_v26  ;;  %v4412_v25 = vld [vmem:[%s5636_s5 + $0x2c0] sm:$0xff]   ;;  %v3339_v26 = vunpack.c.l.bf16 %v4397_v12  ;;  %v3336_v32 = vunpack.c.h.bf16 %v4396_v24  ;;  %v4441_v5 = vld [vmem:[%s5636_s5 + $0x3a8] sm:$0xff]  }
  0x99   : > { %4824 = vmatpush3.msra.mxu1 %v3392_v27  ;;  %4790 = vmatprep.subr.mxu0 %v3359_v30  ;;  %v3403_v27 = vunpack.c.l.bf16 %v4413_v13  ;;  %v3307_v30 = vunpack.c.l.bf16 %v4389_v16  ;;  %v3400_v33 = vunpack.c.h.bf16 %v4412_v25  ;;  %v4432_v12 = vld [vmem:[%s5636_s5 + $0x360] sm:$0xff]  }
  0x9a   : > { %4825 = vmatprep.subr.mxu1 %v3423_v31  ;;  %4791 = vmatpush3.msra.mxu0 %v3327_v34  ;;  %v3371_v31 = vunpack.c.l.bf16 %v4405_v17  ;;  %v3304_v34 = vunpack.c.h.bf16 %v4388_v28  ;;  %v4448_v13 = vld [vmem:[%s5636_s5 + $0x3e0] sm:$0xff]  }
  0x9b   : > { %4826 = vmatpush3.msra.mxu1 %v3391_v35  ;;  %4792 = vmatprep.subr.mxu0 %v3356_v36  ;;  %v3368_v35 = vunpack.c.h.bf16 %v4404_v29  ;;  %v3335_v36 = vunpack.c.l.bf16 %v4396_v24  ;;  %v4424_v16 = vld [vmem:[%s5636_s5 + $0x320] sm:$0xff]   ;;  %v4431_v24 = vld [vmem:[%s5636_s5 + $0x358] sm:$0xff]  }
  0x9c   : > { %4827 = vmatprep.subr.mxu1 %v3420_v37  ;;  %4793 = vmatpush3.msra.mxu0 %v3324_v38  ;;  %v3399_v37 = vunpack.c.l.bf16 %v4412_v25  ;;  %v4435_v38 = vld [vmem:[%s5636_s5 + $0x378] sm:$0xff]   ;;  %v4440_v17 = vld [vmem:[%s5636_s5 + $0x3a0] sm:$0xff]  }
  0x9d   : > { %4828 = vmatpush3.msra.mxu1 %v3388_v39  ;;  %4794 = vmatprep.subr.mxu0 %v3355_v42  ;;  %v3303_v39 = vunpack.c.l.bf16 %v4388_v28  ;;  %v3367_v42 = vunpack.c.l.bf16 %v4404_v29  ;;  %v4447_v25 = vld [vmem:[%s5636_s5 + $0x3d8] sm:$0xff]  }
  0x9e   : > { %4829 = vmatprep.subr.mxu1 %v3419_v43  ;;  %4795 = vmatpush3.msra.mxu0 %v3323_v46  ;;  %v4427_v43 = vld [vmem:[%s5636_s5 + $0x338] sm:$0xff]   ;;  %v3492_v46 = vunpack.c.h.bf16 %v4435_v38 }
  0x9f   : > { %4830 = vmatpush3.msra.mxu1 %v3387_v47  ;;  %4796 = vmatprep.subr.mxu0 %v3352_v48  ;;  %v233_v47 = vld [vmem:[%s6108_s0 + $0x58] sm:$0xff]  ;;  %v3556_v48 = vunpack.c.h.bf16 %v4451_v40 }
  0xa0   : > { %4831 = vmatprep.subr.mxu1 %v3416_v49  ;;  %4797 = vmatpush3.msra.mxu0 %v3320_v50  ;;  %v232_v49 = vld [vmem:[%s6108_s0 + $0x50] sm:$0xff]  ;;  %v3460_v50 = vunpack.c.h.bf16 %v4427_v43  ;;  %v4423_v28 = vld [vmem:[%s5636_s5 + $0x318] sm:$0xff]  }
  0xa1   : > { %4832 = vmatpush3.msra.mxu1 %v3384_v51  ;;  %4798 = vmatprep.subr.mxu0 %v3351_v54  ;;  %v3524_v51 = vunpack.c.h.bf16 %v4443_v44  ;;  %v3491_v54 = vunpack.c.l.bf16 %v4435_v38  ;;  %v4439_v29 = vld [vmem:[%s5636_s5 + $0x398] sm:$0xff]   ;;  %v3475_v38 = vunpack.c.l.bf16 %v4431_v24 }
  0xa2   : > { %4833 = vmatprep.subr.mxu1 %v3415_v55  ;;  %4799 = vmatpush3.msra.mxu0 %v3319_v58  ;;  %v3555_v55 = vunpack.c.l.bf16 %v4451_v40  ;;  %v3459_v58 = vunpack.c.l.bf16 %v4427_v43  ;;  %v4422_v40 = vld [vmem:[%s5636_s5 + $0x310] sm:$0xff]   ;;  %v3507_v43 = vunpack.c.l.bf16 %v4439_v29 }
  0xa3   : > { %4834 = vmatpush3.msra.mxu1 %v3383_v59  ;;  %4800 = vmatprep.subr.mxu0 %v3348_v60  ;;  %v3523_v59 = vunpack.c.l.bf16 %v4443_v44  ;;  %v3488_v60 = vunpack.c.h.bf16 %v4434_v52 }
  0xa4   : > { %4835 = vmatprep.subr.mxu1 %v3412_v61  ;;  %4801 = vmatpush3.msra.mxu0 %v3316_v62  ;;  %v3552_v61 = vunpack.c.h.bf16 %v4450_v53  ;;  %v3456_v62 = vunpack.c.h.bf16 %v4426_v56 }
  0xa5   : > { %4836 = vmatpush3.msra.mxu1 %v3380_v63  ;;  %4802 = vmatprep.subr.mxu0 %v3347_v2  ;;  %v3520_v63 = vunpack.c.h.bf16 %v4442_v57  ;;  %v3487_v2 = vunpack.c.l.bf16 %v4434_v52  ;;  %v4421_v52 = vld [vmem:[%s5636_s5 + $0x308] sm:$0xff]  }
  0xa6   : > { %4837 = vmatprep.subr.mxu1 %v3411_v3  ;;  %4803 = vmatpush3.msra.mxu0 %v3315_v6  ;;  %v3551_v3 = vunpack.c.l.bf16 %v4450_v53  ;;  %v3455_v6 = vunpack.c.l.bf16 %v4426_v56  ;;  %v4437_v53 = vld [vmem:[%s5636_s5 + $0x388] sm:$0xff]  }
  0xa7   : > { %4838 = vmatpush3.msra.mxu1 %v3379_v7  ;;  %4804 = vmatprep.subr.mxu0 %v3344_v8  ;;  %v3519_v7 = vunpack.c.l.bf16 %v4442_v57  ;;  %v3484_v8 = vunpack.c.h.bf16 %v4433_v0 }
  0xa8   : > { %4839 = vmatprep.subr.mxu1 %v3408_v9  ;;  %4805 = vmatpush3.msra.mxu0 %v3312_v10  ;;  %v3548_v9 = vunpack.c.h.bf16 %v4449_v1  ;;  %v3452_v10 = vunpack.c.h.bf16 %v4425_v4 }
  0xa9   : > { %4840 = vmatpush3.msra.mxu1 %v3376_v11  ;;  %4806 = vmatprep.subr.mxu0 %v3343_v14  ;;  %v3516_v11 = vunpack.c.h.bf16 %v4441_v5  ;;  %v3483_v14 = vunpack.c.l.bf16 %v4433_v0  ;;  %v4420_v0 = vld [vmem:[%s5636_s5 + $0x300] sm:$0xff]  }
  0xaa   : > { %4841 = vmatprep.subr.mxu1 %v3407_v15  ;;  %4807 = vmatpush3.msra.mxu0 %v3311_v18  ;;  %v3547_v15 = vunpack.c.l.bf16 %v4449_v1  ;;  %v3451_v18 = vunpack.c.l.bf16 %v4425_v4  ;;  %v4436_v1 = vld [vmem:[%s5636_s5 + $0x380] sm:$0xff]  }
  0xab   : > { %4842 = vmatpush3.msra.mxu1 %v3375_v19  ;;  %4808 = vmatprep.subr.mxu0 %v3340_v20  ;;  %v3515_v19 = vunpack.c.l.bf16 %v4441_v5  ;;  %v3480_v20 = vunpack.c.h.bf16 %v4432_v12 }
  0xac   : > { %4843 = vmatprep.subr.mxu1 %v3404_v21  ;;  %4809 = vmatpush3.msra.mxu0 %v3308_v22  ;;  %v3544_v21 = vunpack.c.h.bf16 %v4448_v13  ;;  %v3448_v22 = vunpack.c.h.bf16 %v4424_v16 }
  0xad   : > { %4844 = vmatpush3.msra.mxu1 %v3372_v23  ;;  %4810 = vmatprep.subr.mxu0 %v3339_v26  ;;  %v3512_v23 = vunpack.c.h.bf16 %v4440_v17  ;;  %v3479_v26 = vunpack.c.l.bf16 %v4432_v12  ;;  %v4483_v12 = vld [vmem:[%s5636_s5 + $0x4f8] sm:$0xff]  }
  0xae   : > { %4845 = vmatprep.subr.mxu1 %v3403_v27  ;;  %4811 = vmatpush3.msra.mxu0 %v3307_v30  ;;  %v3543_v27 = vunpack.c.l.bf16 %v4448_v13  ;;  %v3447_v30 = vunpack.c.l.bf16 %v4424_v16  ;;  %v235_v13 = vld [vmem:[%s6108_s0 + $0x68] sm:$0xff]  ;;  %v4475_v16 = vld [vmem:[%s5636_s5 + $0x4b8] sm:$0xff]  }
  0xaf   : > { %4846 = vmatpush3.msra.mxu1 %v3371_v31  ;;  %4812 = vmatprep.subr.mxu0 %v3336_v32  ;;  %v3511_v31 = vunpack.c.l.bf16 %v4440_v17  ;;  %v3476_v32 = vunpack.c.h.bf16 %v4431_v24  ;;  %v234_v17 = vld [vmem:[%s6108_s0 + $0x60] sm:$0xff]  ;;  %v4466_v24 = vld [vmem:[%s5636_s5 + $0x470] sm:$0xff]  }
  0xb0   : > { %4847 = vmatprep.subr.mxu1 %v3400_v33  ;;  %4813 = vmatpush3.msra.mxu0 %v3304_v34  ;;  %v3540_v33 = vunpack.c.h.bf16 %v4447_v25  ;;  %v3444_v34 = vunpack.c.h.bf16 %v4423_v28 }
  0xb1   : > { %4848 = vmatpush3.msra.mxu1 %v3368_v35  ;;  %4814 = vmatprep.subr.mxu0 %v3335_v36  ;;  %v3508_v35 = vunpack.c.h.bf16 %v4439_v29  ;;  %v4430_v36 = vld [vmem:[%s5636_s5 + $0x350] sm:$0xff]  }
  0xb2   : > { %4849 = vmatprep.subr.mxu1 %v3399_v37  ;;  %4815 = vmatpush3.msra.mxu0 %v3303_v39  ;;  %v4446_v37 = vld [vmem:[%s5636_s5 + $0x3d0] sm:$0xff]   ;;  %v3539_v39 = vunpack.c.l.bf16 %v4447_v25  ;;  %v3472_v44 = vunpack.c.h.bf16 %v4430_v36 }
  0xb3   : > { %1893 = vmatprep.mubr.f32.mxu0 %v231_v41  ;;  %4850 = vmatpush3.msra.mxu1 %v3367_v42  ;;  %v4438_v41 = vld [vmem:[%s5636_s5 + $0x390] sm:$0xff]   ;;  %v3443_v42 = vunpack.c.l.bf16 %v4423_v28 }
  0xb4   : > { %1894 = vmatmul.mubr.f32.vlgmr.msra.gmra.mxu0 %v230_v45  ;;  %1963 = vmatprep.mubr.f32.mxu1 %v233_v47  ;;  %v3536_v45 = vunpack.c.h.bf16 %v4446_v37  ;;  %v3504_v47 = vunpack.c.h.bf16 %v4438_v41  ;;  %v4482_v25 = vld [vmem:[%s5636_s5 + $0x4f0] sm:$0xff]  }
  0xb5   : > { %4854 = vmatprep.subr.mxu0 %v3492_v46  ;;  %4889 = vmatprep.subr.mxu1 %v3556_v48  ;;  %v3440_v46 = vunpack.c.h.bf16 %v4422_v40  ;;  %v4429_v48 = vld [vmem:[%s5636_s5 + $0x348] sm:$0xff]   ;;  %v4458_v28 = vld [vmem:[%s5636_s5 + $0x430] sm:$0xff]  }
  0xb6   : > { %1964 = vmatmul.mubr.f32.vlgmr.msra.gmra.mxu1 %v232_v49  ;;  %4855 = vmatpush3.msra.mxu0 %v3460_v50  ;;  %v4445_v49 = vld [vmem:[%s5636_s5 + $0x3c8] sm:$0xff]   ;;  %v3471_v50 = vunpack.c.l.bf16 %v4430_v36  ;;  %v3468_v56 = vunpack.c.h.bf16 %v4429_v48  ;;  %v4474_v29 = vld [vmem:[%s5636_s5 + $0x4b0] sm:$0xff]  }
  0xb7   : > { %4890 = vmatpush3.msra.mxu1 %v3524_v51  ;;  %4856 = vmatprep.subr.mxu0 %v3491_v54  ;;  %v3535_v51 = vunpack.c.l.bf16 %v4446_v37  ;;  %v3439_v54 = vunpack.c.l.bf16 %v4422_v40  ;;  %v3532_v57 = vunpack.c.h.bf16 %v4445_v49  ;;  %v4465_v36 = vld [vmem:[%s5636_s5 + $0x468] sm:$0xff]  }
  0xb8   : > { %4891 = vmatprep.subr.mxu1 %v3555_v55  ;;  %4857 = vmatpush3.msra.mxu0 %v3459_v58  ;;  %v3503_v55 = vunpack.c.l.bf16 %v4438_v41  ;;  %v3436_v58 = vunpack.c.h.bf16 %v4421_v52  ;;  %v4481_v37 = vld [vmem:[%s5636_s5 + $0x4e8] sm:$0xff]  }
  0xb9   : > { %4892 = vmatpush3.msra.mxu1 %v3523_v59  ;;  %4858 = vmatprep.subr.mxu0 %v3488_v60  ;;  %v3500_v59 = vunpack.c.h.bf16 %v4437_v53  ;;  %v4428_v60 = vld [vmem:[%s5636_s5 + $0x340] sm:$0xff]   ;;  %v4457_v40 = vld [vmem:[%s5636_s5 + $0x428] sm:$0xff]  }
  0xba   : > { %4893 = vmatprep.subr.mxu1 %v3552_v61  ;;  %4859 = vmatpush3.msra.mxu0 %v3456_v62  ;;  %v4444_v61 = vld [vmem:[%s5636_s5 + $0x3c0] sm:$0xff]   ;;  %v3467_v62 = vunpack.c.l.bf16 %v4429_v48  ;;  %v3464_v4 = vunpack.c.h.bf16 %v4428_v60  ;;  %v4473_v41 = vld [vmem:[%s5636_s5 + $0x4a8] sm:$0xff]  }
  0xbb   : > { %4894 = vmatpush3.msra.mxu1 %v3520_v63  ;;  %4860 = vmatprep.subr.mxu0 %v3487_v2  ;;  %v3531_v63 = vunpack.c.l.bf16 %v4445_v49  ;;  %v3435_v2 = vunpack.c.l.bf16 %v4421_v52  ;;  %v3528_v5 = vunpack.c.h.bf16 %v4444_v61  ;;  %v4464_v48 = vld [vmem:[%s5636_s5 + $0x460] sm:$0xff]  }
  0xbc   : > { %4895 = vmatprep.subr.mxu1 %v3551_v3  ;;  %4861 = vmatpush3.msra.mxu0 %v3455_v6  ;;  %v3499_v3 = vunpack.c.l.bf16 %v4437_v53  ;;  %v3432_v6 = vunpack.c.h.bf16 %v4420_v0  ;;  %v4480_v49 = vld [vmem:[%s5636_s5 + $0x4e0] sm:$0xff]  }
  0xbd   : > { %4896 = vmatpush3.msra.mxu1 %v3519_v7  ;;  %4862 = vmatprep.subr.mxu0 %v3484_v8  ;;  %v3496_v7 = vunpack.c.h.bf16 %v4436_v1  ;;  %v3463_v8 = vunpack.c.l.bf16 %v4428_v60  ;;  %v4456_v52 = vld [vmem:[%s5636_s5 + $0x420] sm:$0xff]   ;;  %v4463_v60 = vld [vmem:[%s5636_s5 + $0x458] sm:$0xff]  }
  0xbe   : > { %4897 = vmatprep.subr.mxu1 %v3548_v9  ;;  %4863 = vmatpush3.msra.mxu0 %v3452_v10  ;;  %v3527_v9 = vunpack.c.l.bf16 %v4444_v61  ;;  %v4467_v10 = vld [vmem:[%s5636_s5 + $0x478] sm:$0xff]   ;;  %v4472_v53 = vld [vmem:[%s5636_s5 + $0x4a0] sm:$0xff]  }
  0xbf   : > { %4898 = vmatpush3.msra.mxu1 %v3516_v11  ;;  %4864 = vmatprep.subr.mxu0 %v3483_v14  ;;  %v3431_v11 = vunpack.c.l.bf16 %v4420_v0  ;;  %v3495_v14 = vunpack.c.l.bf16 %v4436_v1  ;;  %v4479_v61 = vld [vmem:[%s5636_s5 + $0x4d8] sm:$0xff]  }
  0xc0   : > { %4899 = vmatprep.subr.mxu1 %v3547_v15  ;;  %4865 = vmatpush3.msra.mxu0 %v3451_v18  ;;  %v4459_v15 = vld [vmem:[%s5636_s5 + $0x438] sm:$0xff]   ;;  %v3620_v18 = vunpack.c.h.bf16 %v4467_v10 }
  0xc1   : > { %4900 = vmatpush3.msra.mxu1 %v3515_v19  ;;  %4866 = vmatprep.subr.mxu0 %v3480_v20  ;;  %v237_v19 = vld [vmem:[%s6108_s0 + $0x78] sm:$0xff]  ;;  %v3684_v20 = vunpack.c.h.bf16 %v4483_v12 }
  0xc2   : > { %4901 = vmatprep.subr.mxu1 %v3544_v21  ;;  %4867 = vmatpush3.msra.mxu0 %v3448_v22  ;;  %v236_v21 = vld [vmem:[%s6108_s0 + $0x70] sm:$0xff]  ;;  %v3588_v22 = vunpack.c.h.bf16 %v4459_v15  ;;  %v4455_v0 = vld [vmem:[%s5636_s5 + $0x418] sm:$0xff]  }
  0xc3   : > { %4902 = vmatpush3.msra.mxu1 %v3512_v23  ;;  %4868 = vmatprep.subr.mxu0 %v3479_v26  ;;  %v3652_v23 = vunpack.c.h.bf16 %v4475_v16  ;;  %v3619_v26 = vunpack.c.l.bf16 %v4467_v10  ;;  %v4471_v1 = vld [vmem:[%s5636_s5 + $0x498] sm:$0xff]   ;;  %v3603_v10 = vunpack.c.l.bf16 %v4463_v60 }
  0xc4   : > { %4903 = vmatprep.subr.mxu1 %v3543_v27  ;;  %4869 = vmatpush3.msra.mxu0 %v3447_v30  ;;  %v3683_v27 = vunpack.c.l.bf16 %v4483_v12  ;;  %v3587_v30 = vunpack.c.l.bf16 %v4459_v15  ;;  %v4454_v12 = vld [vmem:[%s5636_s5 + $0x410] sm:$0xff]   ;;  %v3635_v15 = vunpack.c.l.bf16 %v4471_v1 }
  0xc5   : > { %4904 = vmatpush3.msra.mxu1 %v3511_v31  ;;  %4870 = vmatprep.subr.mxu0 %v3476_v32  ;;  %v3651_v31 = vunpack.c.l.bf16 %v4475_v16  ;;  %v3616_v32 = vunpack.c.h.bf16 %v4466_v24 }
  0xc6   : > { %4905 = vmatprep.subr.mxu1 %v3540_v33  ;;  %4871 = vmatpush3.msra.mxu0 %v3444_v34  ;;  %v3680_v33 = vunpack.c.h.bf16 %v4482_v25  ;;  %v3584_v34 = vunpack.c.h.bf16 %v4458_v28 }
  0xc7   : > { %4906 = vmatpush3.msra.mxu1 %v3508_v35  ;;  %4872 = vmatprep.subr.mxu0 %v3475_v38  ;;  %v3648_v35 = vunpack.c.h.bf16 %v4474_v29  ;;  %v3615_v38 = vunpack.c.l.bf16 %v4466_v24  ;;  %v4453_v24 = vld [vmem:[%s5636_s5 + $0x408] sm:$0xff]  }
  0xc8   : > { %4907 = vmatprep.subr.mxu1 %v3539_v39  ;;  %4873 = vmatpush3.msra.mxu0 %v3443_v42  ;;  %v3679_v39 = vunpack.c.l.bf16 %v4482_v25  ;;  %v3583_v42 = vunpack.c.l.bf16 %v4458_v28  ;;  %v4469_v25 = vld [vmem:[%s5636_s5 + $0x488] sm:$0xff]  }
  0xc9   : > { %4908 = vmatpush3.msra.mxu1 %v3507_v43  ;;  %4874 = vmatprep.subr.mxu0 %v3472_v44  ;;  %v3647_v43 = vunpack.c.l.bf16 %v4474_v29  ;;  %v3612_v44 = vunpack.c.h.bf16 %v4465_v36 }
  0xca   : > { %4909 = vmatprep.subr.mxu1 %v3536_v45  ;;  %4875 = vmatpush3.msra.mxu0 %v3440_v46  ;;  %v3676_v45 = vunpack.c.h.bf16 %v4481_v37  ;;  %v3580_v46 = vunpack.c.h.bf16 %v4457_v40 }
  0xcb   : > { %4910 = vmatpush3.msra.mxu1 %v3504_v47  ;;  %4876 = vmatprep.subr.mxu0 %v3471_v50  ;;  %v3644_v47 = vunpack.c.h.bf16 %v4473_v41  ;;  %v3611_v50 = vunpack.c.l.bf16 %v4465_v36  ;;  %v4452_v36 = vld [vmem:[%s5636_s5 + $0x400] sm:$0xff]  }
  0xcc   : > { %4911 = vmatprep.subr.mxu1 %v3535_v51  ;;  %4877 = vmatpush3.msra.mxu0 %v3439_v54  ;;  %v3675_v51 = vunpack.c.l.bf16 %v4481_v37  ;;  %v3579_v54 = vunpack.c.l.bf16 %v4457_v40  ;;  %v4468_v37 = vld [vmem:[%s5636_s5 + $0x480] sm:$0xff]  }
  0xcd   : > { %4912 = vmatpush3.msra.mxu1 %v3503_v55  ;;  %4878 = vmatprep.subr.mxu0 %v3468_v56  ;;  %v3643_v55 = vunpack.c.l.bf16 %v4473_v41  ;;  %v3608_v56 = vunpack.c.h.bf16 %v4464_v48 }
  0xce   : > { %4913 = vmatprep.subr.mxu1 %v3532_v57  ;;  %4879 = vmatpush3.msra.mxu0 %v3436_v58  ;;  %v3672_v57 = vunpack.c.h.bf16 %v4480_v49  ;;  %v3576_v58 = vunpack.c.h.bf16 %v4456_v52 }
  0xcf   : > { %4914 = vmatpush3.msra.mxu1 %v3500_v59  ;;  %4880 = vmatprep.subr.mxu0 %v3467_v62  ;;  %v3640_v59 = vunpack.c.h.bf16 %v4472_v53  ;;  %v3607_v62 = vunpack.c.l.bf16 %v4464_v48  ;;  %v4515_v48 = vld [vmem:[%s5636_s5 + $0x5f8] sm:$0xff]  }
  0xd0   : > { %4915 = vmatprep.subr.mxu1 %v3531_v63  ;;  %4881 = vmatpush3.msra.mxu0 %v3435_v2  ;;  %v3671_v63 = vunpack.c.l.bf16 %v4480_v49  ;;  %v3575_v2 = vunpack.c.l.bf16 %v4456_v52  ;;  %v239_v49 = vld [vmem:[%s6108_s0 + $0x88] sm:$0xff]  ;;  %v4507_v52 = vld [vmem:[%s5636_s5 + $0x5b8] sm:$0xff]  }
  0xd1   : > { %4916 = vmatpush3.msra.mxu1 %v3499_v3  ;;  %4882 = vmatprep.subr.mxu0 %v3464_v4  ;;  %v3639_v3 = vunpack.c.l.bf16 %v4472_v53  ;;  %v3604_v4 = vunpack.c.h.bf16 %v4463_v60  ;;  %v238_v53 = vld [vmem:[%s6108_s0 + $0x80] sm:$0xff]  ;;  %v4498_v60 = vld [vmem:[%s5636_s5 + $0x570] sm:$0xff]  }
  0xd2   : > { %4917 = vmatprep.subr.mxu1 %v3528_v5  ;;  %4883 = vmatpush3.msra.mxu0 %v3432_v6  ;;  %v3668_v5 = vunpack.c.h.bf16 %v4479_v61  ;;  %v3572_v6 = vunpack.c.h.bf16 %v4455_v0 }
  0xd3   : > { %4918 = vmatpush3.msra.mxu1 %v3496_v7  ;;  %4884 = vmatprep.subr.mxu0 %v3463_v8  ;;  %v3636_v7 = vunpack.c.h.bf16 %v4471_v1  ;;  %v4462_v8 = vld [vmem:[%s5636_s5 + $0x450] sm:$0xff]  }
  0xd4   : > { %4919 = vmatprep.subr.mxu1 %v3527_v9  ;;  %4885 = vmatpush3.msra.mxu0 %v3431_v11  ;;  %v4478_v9 = vld [vmem:[%s5636_s5 + $0x4d0] sm:$0xff]   ;;  %v3667_v11 = vunpack.c.l.bf16 %v4479_v61  ;;  %v3600_v16 = vunpack.c.h.bf16 %v4462_v8 }
  0xd5   : > { %2033 = vmatprep.mubr.f32.mxu0 %v235_v13  ;;  %4920 = vmatpush3.msra.mxu1 %v3495_v14  ;;  %v4470_v13 = vld [vmem:[%s5636_s5 + $0x490] sm:$0xff]   ;;  %v3571_v14 = vunpack.c.l.bf16 %v4455_v0 }
  0xd6   : > { %2034 = vmatmul.mubr.f32.vlgmr.msra.gmra.mxu0 %v234_v17  ;;  %2103 = vmatprep.mubr.f32.mxu1 %v237_v19  ;;  %v3664_v17 = vunpack.c.h.bf16 %v4478_v9  ;;  %v3632_v19 = vunpack.c.h.bf16 %v4470_v13  ;;  %v4514_v61 = vld [vmem:[%s5636_s5 + $0x5f0] sm:$0xff]  }
  0xd7   : > { %4924 = vmatprep.subr.mxu0 %v3620_v18  ;;  %4959 = vmatprep.subr.mxu1 %v3684_v20  ;;  %v3568_v18 = vunpack.c.h.bf16 %v4454_v12  ;;  %v4461_v20 = vld [vmem:[%s5636_s5 + $0x448] sm:$0xff]   ;;  %v4490_v0 = vld [vmem:[%s5636_s5 + $0x530] sm:$0xff]  }
  0xd8   : > { %2104 = vmatmul.mubr.f32.vlgmr.msra.gmra.mxu1 %v236_v21  ;;  %4925 = vmatpush3.msra.mxu0 %v3588_v22  ;;  %v4477_v21 = vld [vmem:[%s5636_s5 + $0x4c8] sm:$0xff]   ;;  %v3599_v22 = vunpack.c.l.bf16 %v4462_v8  ;;  %v3596_v28 = vunpack.c.h.bf16 %v4461_v20  ;;  %v4506_v1 = vld [vmem:[%s5636_s5 + $0x5b0] sm:$0xff]  }
  0xd9   : > { %4960 = vmatpush3.msra.mxu1 %v3652_v23  ;;  %4926 = vmatprep.subr.mxu0 %v3619_v26  ;;  %v3663_v23 = vunpack.c.l.bf16 %v4478_v9  ;;  %v3567_v26 = vunpack.c.l.bf16 %v4454_v12  ;;  %v3660_v29 = vunpack.c.h.bf16 %v4477_v21  ;;  %v4497_v8 = vld [vmem:[%s5636_s5 + $0x568] sm:$0xff]  }
  0xda   : > { %4961 = vmatprep.subr.mxu1 %v3683_v27  ;;  %4927 = vmatpush3.msra.mxu0 %v3587_v30  ;;  %v3631_v27 = vunpack.c.l.bf16 %v4470_v13  ;;  %v3564_v30 = vunpack.c.h.bf16 %v4453_v24  ;;  %v4513_v9 = vld [vmem:[%s5636_s5 + $0x5e8] sm:$0xff]  }
  0xdb   : > { %4962 = vmatpush3.msra.mxu1 %v3651_v31  ;;  %4928 = vmatprep.subr.mxu0 %v3616_v32  ;;  %v3628_v31 = vunpack.c.h.bf16 %v4469_v25  ;;  %v4460_v32 = vld [vmem:[%s5636_s5 + $0x440] sm:$0xff]   ;;  %v4489_v12 = vld [vmem:[%s5636_s5 + $0x528] sm:$0xff]  }
  0xdc   : > { %4963 = vmatprep.subr.mxu1 %v3680_v33  ;;  %4929 = vmatpush3.msra.mxu0 %v3584_v34  ;;  %v4476_v33 = vld [vmem:[%s5636_s5 + $0x4c0] sm:$0xff]   ;;  %v3595_v34 = vunpack.c.l.bf16 %v4461_v20  ;;  %v3592_v40 = vunpack.c.h.bf16 %v4460_v32  ;;  %v4505_v13 = vld [vmem:[%s5636_s5 + $0x5a8] sm:$0xff]  }
  0xdd   : > { %4964 = vmatpush3.msra.mxu1 %v3648_v35  ;;  %4930 = vmatprep.subr.mxu0 %v3615_v38  ;;  %v3659_v35 = vunpack.c.l.bf16 %v4477_v21  ;;  %v3563_v38 = vunpack.c.l.bf16 %v4453_v24  ;;  %v3656_v41 = vunpack.c.h.bf16 %v4476_v33  ;;  %v4496_v20 = vld [vmem:[%s5636_s5 + $0x560] sm:$0xff]  }
  0xde   : > { %4965 = vmatprep.subr.mxu1 %v3679_v39  ;;  %4931 = vmatpush3.msra.mxu0 %v3583_v42  ;;  %v3627_v39 = vunpack.c.l.bf16 %v4469_v25  ;;  %v3560_v42 = vunpack.c.h.bf16 %v4452_v36  ;;  %v4512_v21 = vld [vmem:[%s5636_s5 + $0x5e0] sm:$0xff]  }
  0xdf   : > { %4966 = vmatpush3.msra.mxu1 %v3647_v43  ;;  %4932 = vmatprep.subr.mxu0 %v3612_v44  ;;  %v3624_v43 = vunpack.c.h.bf16 %v4468_v37  ;;  %v3591_v44 = vunpack.c.l.bf16 %v4460_v32  ;;  %v4488_v24 = vld [vmem:[%s5636_s5 + $0x520] sm:$0xff]   ;;  %v4495_v32 = vld [vmem:[%s5636_s5 + $0x558] sm:$0xff]  }
  0xe0   : > { %4967 = vmatprep.subr.mxu1 %v3676_v45  ;;  %4933 = vmatpush3.msra.mxu0 %v3580_v46  ;;  %v3655_v45 = vunpack.c.l.bf16 %v4476_v33  ;;  %v4499_v46 = vld [vmem:[%s5636_s5 + $0x578] sm:$0xff]   ;;  %v4504_v25 = vld [vmem:[%s5636_s5 + $0x5a0] sm:$0xff]  }
  0xe1   : > { %4968 = vmatpush3.msra.mxu1 %v3644_v47  ;;  %4934 = vmatprep.subr.mxu0 %v3611_v50  ;;  %v3559_v47 = vunpack.c.l.bf16 %v4452_v36  ;;  %v3623_v50 = vunpack.c.l.bf16 %v4468_v37  ;;  %v4511_v33 = vld [vmem:[%s5636_s5 + $0x5d8] sm:$0xff]  }
  0xe2   : > { %4969 = vmatprep.subr.mxu1 %v3675_v51  ;;  %4935 = vmatpush3.msra.mxu0 %v3579_v54  ;;  %v4491_v51 = vld [vmem:[%s5636_s5 + $0x538] sm:$0xff]   ;;  %v3748_v54 = vunpack.c.h.bf16 %v4499_v46 }
  0xe3   : > { %4970 = vmatpush3.msra.mxu1 %v3643_v55  ;;  %4936 = vmatprep.subr.mxu0 %v3608_v56  ;;  %v241_v55 = vld [vmem:[%s6108_s0 + $0x98] sm:$0xff]  ;;  %v3812_v56 = vunpack.c.h.bf16 %v4515_v48 }
  0xe4   : > { %4971 = vmatprep.subr.mxu1 %v3672_v57  ;;  %4937 = vmatpush3.msra.mxu0 %v3576_v58  ;;  %v240_v57 = vld [vmem:[%s6108_s0 + $0x90] sm:$0xff]  ;;  %v3716_v58 = vunpack.c.h.bf16 %v4491_v51  ;;  %v4487_v36 = vld [vmem:[%s5636_s5 + $0x518] sm:$0xff]  }
  0xe5   : > { %4972 = vmatpush3.msra.mxu1 %v3640_v59  ;;  %4938 = vmatprep.subr.mxu0 %v3607_v62  ;;  %v3780_v59 = vunpack.c.h.bf16 %v4507_v52  ;;  %v3747_v62 = vunpack.c.l.bf16 %v4499_v46  ;;  %v4503_v37 = vld [vmem:[%s5636_s5 + $0x598] sm:$0xff]   ;;  %v3731_v46 = vunpack.c.l.bf16 %v4495_v32 }
  0xe6   : > { %4973 = vmatprep.subr.mxu1 %v3671_v63  ;;  %4939 = vmatpush3.msra.mxu0 %v3575_v2  ;;  %v3811_v63 = vunpack.c.l.bf16 %v4515_v48  ;;  %v3715_v2 = vunpack.c.l.bf16 %v4491_v51  ;;  %v4486_v48 = vld [vmem:[%s5636_s5 + $0x510] sm:$0xff]   ;;  %v3763_v51 = vunpack.c.l.bf16 %v4503_v37 }
  0xe7   : > { %4974 = vmatpush3.msra.mxu1 %v3639_v3  ;;  %4940 = vmatprep.subr.mxu0 %v3604_v4  ;;  %v3779_v3 = vunpack.c.l.bf16 %v4507_v52  ;;  %v3744_v4 = vunpack.c.h.bf16 %v4498_v60 }
  0xe8   : > { %4975 = vmatprep.subr.mxu1 %v3668_v5  ;;  %4941 = vmatpush3.msra.mxu0 %v3572_v6  ;;  %v3808_v5 = vunpack.c.h.bf16 %v4514_v61  ;;  %v3712_v6 = vunpack.c.h.bf16 %v4490_v0 }
  0xe9   : > { %4976 = vmatpush3.msra.mxu1 %v3636_v7  ;;  %4942 = vmatprep.subr.mxu0 %v3603_v10  ;;  %v3776_v7 = vunpack.c.h.bf16 %v4506_v1  ;;  %v3743_v10 = vunpack.c.l.bf16 %v4498_v60  ;;  %v4485_v60 = vld [vmem:[%s5636_s5 + $0x508] sm:$0xff]  }
  0xea   : > { %4977 = vmatprep.subr.mxu1 %v3667_v11  ;;  %4943 = vmatpush3.msra.mxu0 %v3571_v14  ;;  %v3807_v11 = vunpack.c.l.bf16 %v4514_v61  ;;  %v3711_v14 = vunpack.c.l.bf16 %v4490_v0  ;;  %v4501_v61 = vld [vmem:[%s5636_s5 + $0x588] sm:$0xff]  }
  0xeb   : > { %4978 = vmatpush3.msra.mxu1 %v3635_v15  ;;  %4944 = vmatprep.subr.mxu0 %v3600_v16  ;;  %v3775_v15 = vunpack.c.l.bf16 %v4506_v1  ;;  %v3740_v16 = vunpack.c.h.bf16 %v4497_v8 }
  0xec   : > { %4979 = vmatprep.subr.mxu1 %v3664_v17  ;;  %4945 = vmatpush3.msra.mxu0 %v3568_v18  ;;  %v3804_v17 = vunpack.c.h.bf16 %v4513_v9  ;;  %v3708_v18 = vunpack.c.h.bf16 %v4489_v12 }
  0xed   : > { %4980 = vmatpush3.msra.mxu1 %v3632_v19  ;;  %4946 = vmatprep.subr.mxu0 %v3599_v22  ;;  %v3772_v19 = vunpack.c.h.bf16 %v4505_v13  ;;  %v3739_v22 = vunpack.c.l.bf16 %v4497_v8  ;;  %v4484_v8 = vld [vmem:[%s5636_s5 + $0x500] sm:$0xff]  }
  0xee   : > { %4981 = vmatprep.subr.mxu1 %v3663_v23  ;;  %4947 = vmatpush3.msra.mxu0 %v3567_v26  ;;  %v3803_v23 = vunpack.c.l.bf16 %v4513_v9  ;;  %v3707_v26 = vunpack.c.l.bf16 %v4489_v12  ;;  %v4500_v9 = vld [vmem:[%s5636_s5 + $0x580] sm:$0xff]  }
  0xef   : > { %4982 = vmatpush3.msra.mxu1 %v3631_v27  ;;  %4948 = vmatprep.subr.mxu0 %v3596_v28  ;;  %v3771_v27 = vunpack.c.l.bf16 %v4505_v13  ;;  %v3736_v28 = vunpack.c.h.bf16 %v4496_v20 }
  0xf0   : > { %4983 = vmatprep.subr.mxu1 %v3660_v29  ;;  %4949 = vmatpush3.msra.mxu0 %v3564_v30  ;;  %v3800_v29 = vunpack.c.h.bf16 %v4512_v21  ;;  %v3704_v30 = vunpack.c.h.bf16 %v4488_v24 }
  0xf1   : > { %4984 = vmatpush3.msra.mxu1 %v3628_v31  ;;  %4950 = vmatprep.subr.mxu0 %v3595_v34  ;;  %v3768_v31 = vunpack.c.h.bf16 %v4504_v25  ;;  %v3735_v34 = vunpack.c.l.bf16 %v4496_v20  ;;  %v4547_v20 = vld [vmem:[%s5636_s5 + $0x6f8] sm:$0xff]  }
  0xf2   : > { %4985 = vmatprep.subr.mxu1 %v3659_v35  ;;  %4951 = vmatpush3.msra.mxu0 %v3563_v38  ;;  %v3799_v35 = vunpack.c.l.bf16 %v4512_v21  ;;  %v3703_v38 = vunpack.c.l.bf16 %v4488_v24  ;;  %v243_v21 = vld [vmem:[%s6108_s0 + $0xa8] sm:$0xff]  ;;  %v4539_v24 = vld [vmem:[%s5636_s5 + $0x6b8] sm:$0xff]  }
  0xf3   : > { %4986 = vmatpush3.msra.mxu1 %v3627_v39  ;;  %4952 = vmatprep.subr.mxu0 %v3592_v40  ;;  %v3767_v39 = vunpack.c.l.bf16 %v4504_v25  ;;  %v3732_v40 = vunpack.c.h.bf16 %v4495_v32  ;;  %v242_v25 = vld [vmem:[%s6108_s0 + $0xa0] sm:$0xff]  ;;  %v4530_v32 = vld [vmem:[%s5636_s5 + $0x670] sm:$0xff]  }
  0xf4   : > { %4987 = vmatprep.subr.mxu1 %v3656_v41  ;;  %4953 = vmatpush3.msra.mxu0 %v3560_v42  ;;  %v3796_v41 = vunpack.c.h.bf16 %v4511_v33  ;;  %v3700_v42 = vunpack.c.h.bf16 %v4487_v36 }
  0xf5   : > { %4988 = vmatpush3.msra.mxu1 %v3624_v43  ;;  %4954 = vmatprep.subr.mxu0 %v3591_v44  ;;  %v3764_v43 = vunpack.c.h.bf16 %v4503_v37  ;;  %v4494_v44 = vld [vmem:[%s5636_s5 + $0x550] sm:$0xff]  }
  0xf6   : > { %4989 = vmatprep.subr.mxu1 %v3655_v45  ;;  %4955 = vmatpush3.msra.mxu0 %v3559_v47  ;;  %v4510_v45 = vld [vmem:[%s5636_s5 + $0x5d0] sm:$0xff]   ;;  %v3795_v47 = vunpack.c.l.bf16 %v4511_v33  ;;  %v3728_v52 = vunpack.c.h.bf16 %v4494_v44 }
  0xf7   : > { %2173 = vmatprep.mubr.f32.mxu0 %v239_v49  ;;  %4990 = vmatpush3.msra.mxu1 %v3623_v50  ;;  %v4502_v49 = vld [vmem:[%s5636_s5 + $0x590] sm:$0xff]   ;;  %v3699_v50 = vunpack.c.l.bf16 %v4487_v36 }
  0xf8   : > { %2174 = vmatmul.mubr.f32.vlgmr.msra.gmra.mxu0 %v238_v53  ;;  %2243 = vmatprep.mubr.f32.mxu1 %v241_v55  ;;  %v3792_v53 = vunpack.c.h.bf16 %v4510_v45  ;;  %v3760_v55 = vunpack.c.h.bf16 %v4502_v49  ;;  %v4546_v33 = vld [vmem:[%s5636_s5 + $0x6f0] sm:$0xff]  }
  0xf9   : > { %4994 = vmatprep.subr.mxu0 %v3748_v54  ;;  %5029 = vmatprep.subr.mxu1 %v3812_v56  ;;  %v3696_v54 = vunpack.c.h.bf16 %v4486_v48  ;;  %v4493_v56 = vld [vmem:[%s5636_s5 + $0x548] sm:$0xff]   ;;  %v4522_v36 = vld [vmem:[%s5636_s5 + $0x630] sm:$0xff]  }
  0xfa   : > { %2244 = vmatmul.mubr.f32.vlgmr.msra.gmra.mxu1 %v240_v57  ;;  %4995 = vmatpush3.msra.mxu0 %v3716_v58  ;;  %v4509_v57 = vld [vmem:[%s5636_s5 + $0x5c8] sm:$0xff]   ;;  %v3727_v58 = vunpack.c.l.bf16 %v4494_v44  ;;  %v3724_v0 = vunpack.c.h.bf16 %v4493_v56  ;;  %v4538_v37 = vld [vmem:[%s5636_s5 + $0x6b0] sm:$0xff]  }
  0xfb   : > { %5030 = vmatpush3.msra.mxu1 %v3780_v59  ;;  %4996 = vmatprep.subr.mxu0 %v3747_v62  ;;  %v3791_v59 = vunpack.c.l.bf16 %v4510_v45  ;;  %v3695_v62 = vunpack.c.l.bf16 %v4486_v48  ;;  %v3788_v1 = vunpack.c.h.bf16 %v4509_v57  ;;  %v4529_v44 = vld [vmem:[%s5636_s5 + $0x668] sm:$0xff]  }
  0xfc   : > { %5031 = vmatprep.subr.mxu1 %v3811_v63  ;;  %4997 = vmatpush3.msra.mxu0 %v3715_v2  ;;  %v3759_v63 = vunpack.c.l.bf16 %v4502_v49  ;;  %v3692_v2 = vunpack.c.h.bf16 %v4485_v60  ;;  %v4545_v45 = vld [vmem:[%s5636_s5 + $0x6e8] sm:$0xff]  }
  0xfd   : > { %5032 = vmatpush3.msra.mxu1 %v3779_v3  ;;  %4998 = vmatprep.subr.mxu0 %v3744_v4  ;;  %v3756_v3 = vunpack.c.h.bf16 %v4501_v61  ;;  %v4492_v4 = vld [vmem:[%s5636_s5 + $0x540] sm:$0xff]   ;;  %v4521_v48 = vld [vmem:[%s5636_s5 + $0x628] sm:$0xff]  }
  0xfe   : > { %5033 = vmatprep.subr.mxu1 %v3808_v5  ;;  %4999 = vmatpush3.msra.mxu0 %v3712_v6  ;;  %v4508_v5 = vld [vmem:[%s5636_s5 + $0x5c0] sm:$0xff]   ;;  %v3723_v6 = vunpack.c.l.bf16 %v4493_v56  ;;  %v3720_v12 = vunpack.c.h.bf16 %v4492_v4  ;;  %v4537_v49 = vld [vmem:[%s5636_s5 + $0x6a8] sm:$0xff]  }
  0xff   : > { %5034 = vmatpush3.msra.mxu1 %v3776_v7  ;;  %5000 = vmatprep.subr.mxu0 %v3743_v10  ;;  %v3787_v7 = vunpack.c.l.bf16 %v4509_v57  ;;  %v3691_v10 = vunpack.c.l.bf16 %v4485_v60  ;;  %v3784_v13 = vunpack.c.h.bf16 %v4508_v5  ;;  %v4528_v56 = vld [vmem:[%s5636_s5 + $0x660] sm:$0xff]  }
 0x100   : > { %5035 = vmatprep.subr.mxu1 %v3807_v11  ;;  %5001 = vmatpush3.msra.mxu0 %v3711_v14  ;;  %v3755_v11 = vunpack.c.l.bf16 %v4501_v61  ;;  %v3688_v14 = vunpack.c.h.bf16 %v4484_v8  ;;  %v4544_v57 = vld [vmem:[%s5636_s5 + $0x6e0] sm:$0xff]  }
 0x101   : > { %5036 = vmatpush3.msra.mxu1 %v3775_v15  ;;  %5002 = vmatprep.subr.mxu0 %v3740_v16  ;;  %v3752_v15 = vunpack.c.h.bf16 %v4500_v9  ;;  %v3719_v16 = vunpack.c.l.bf16 %v4492_v4  ;;  %v4520_v60 = vld [vmem:[%s5636_s5 + $0x620] sm:$0xff]   ;;  %v4527_v4 = vld [vmem:[%s5636_s5 + $0x658] sm:$0xff]  }
 0x102   : > { %5037 = vmatprep.subr.mxu1 %v3804_v17  ;;  %5003 = vmatpush3.msra.mxu0 %v3708_v18  ;;  %v3783_v17 = vunpack.c.l.bf16 %v4508_v5  ;;  %v4531_v18 = vld [vmem:[%s5636_s5 + $0x678] sm:$0xff]   ;;  %v4536_v61 = vld [vmem:[%s5636_s5 + $0x6a0] sm:$0xff]  }
 0x103   : > { %5038 = vmatpush3.msra.mxu1 %v3772_v19  ;;  %5004 = vmatprep.subr.mxu0 %v3739_v22  ;;  %v3687_v19 = vunpack.c.l.bf16 %v4484_v8  ;;  %v3751_v22 = vunpack.c.l.bf16 %v4500_v9  ;;  %v4543_v5 = vld [vmem:[%s5636_s5 + $0x6d8] sm:$0xff]  }
 0x104   : > { %5039 = vmatprep.subr.mxu1 %v3803_v23  ;;  %5005 = vmatpush3.msra.mxu0 %v3707_v26  ;;  %v4523_v23 = vld [vmem:[%s5636_s5 + $0x638] sm:$0xff]   ;;  %v3876_v26 = vunpack.c.h.bf16 %v4531_v18 }
 0x105   : > { %5040 = vmatpush3.msra.mxu1 %v3771_v27  ;;  %5006 = vmatprep.subr.mxu0 %v3736_v28  ;;  %v245_v27 = vld [vmem:[%s6108_s0 + $0xb8] sm:$0xff]  ;;  %v3940_v28 = vunpack.c.h.bf16 %v4547_v20 }
 0x106   : > { %5041 = vmatprep.subr.mxu1 %v3800_v29  ;;  %5007 = vmatpush3.msra.mxu0 %v3704_v30  ;;  %v244_v29 = vld [vmem:[%s6108_s0 + $0xb0] sm:$0xff]  ;;  %v3844_v30 = vunpack.c.h.bf16 %v4523_v23  ;;  %v4519_v8 = vld [vmem:[%s5636_s5 + $0x618] sm:$0xff]  }
 0x107   : > { %5042 = vmatpush3.msra.mxu1 %v3768_v31  ;;  %5008 = vmatprep.subr.mxu0 %v3735_v34  ;;  %v3908_v31 = vunpack.c.h.bf16 %v4539_v24  ;;  %v3875_v34 = vunpack.c.l.bf16 %v4531_v18  ;;  %v4535_v9 = vld [vmem:[%s5636_s5 + $0x698] sm:$0xff]   ;;  %v3859_v18 = vunpack.c.l.bf16 %v4527_v4 }
 0x108   : > { %5043 = vmatprep.subr.mxu1 %v3799_v35  ;;  %5009 = vmatpush3.msra.mxu0 %v3703_v38  ;;  %v3939_v35 = vunpack.c.l.bf16 %v4547_v20  ;;  %v3843_v38 = vunpack.c.l.bf16 %v4523_v23  ;;  %v4518_v20 = vld [vmem:[%s5636_s5 + $0x610] sm:$0xff]   ;;  %v3891_v23 = vunpack.c.l.bf16 %v4535_v9 }
 0x109   : > { %5044 = vmatpush3.msra.mxu1 %v3767_v39  ;;  %5010 = vmatprep.subr.mxu0 %v3732_v40  ;;  %v3907_v39 = vunpack.c.l.bf16 %v4539_v24  ;;  %v3872_v40 = vunpack.c.h.bf16 %v4530_v32 }
 0x10a   : > { %5045 = vmatprep.subr.mxu1 %v3796_v41  ;;  %5011 = vmatpush3.msra.mxu0 %v3700_v42  ;;  %v3936_v41 = vunpack.c.h.bf16 %v4546_v33  ;;  %v3840_v42 = vunpack.c.h.bf16 %v4522_v36 }
 0x10b   : > { %5046 = vmatpush3.msra.mxu1 %v3764_v43  ;;  %5012 = vmatprep.subr.mxu0 %v3731_v46  ;;  %v3904_v43 = vunpack.c.h.bf16 %v4538_v37  ;;  %v3871_v46 = vunpack.c.l.bf16 %v4530_v32  ;;  %v4517_v32 = vld [vmem:[%s5636_s5 + $0x608] sm:$0xff]  }
 0x10c   : > { %5047 = vmatprep.subr.mxu1 %v3795_v47  ;;  %5013 = vmatpush3.msra.mxu0 %v3699_v50  ;;  %v3935_v47 = vunpack.c.l.bf16 %v4546_v33  ;;  %v3839_v50 = vunpack.c.l.bf16 %v4522_v36  ;;  %v4533_v33 = vld [vmem:[%s5636_s5 + $0x688] sm:$0xff]  }
 0x10d   : > { %5048 = vmatpush3.msra.mxu1 %v3763_v51  ;;  %5014 = vmatprep.subr.mxu0 %v3728_v52  ;;  %v3903_v51 = vunpack.c.l.bf16 %v4538_v37  ;;  %v3868_v52 = vunpack.c.h.bf16 %v4529_v44 }
 0x10e   : > { %5049 = vmatprep.subr.mxu1 %v3792_v53  ;;  %5015 = vmatpush3.msra.mxu0 %v3696_v54  ;;  %v3932_v53 = vunpack.c.h.bf16 %v4545_v45  ;;  %v3836_v54 = vunpack.c.h.bf16 %v4521_v48 }
 0x10f   : > { %5050 = vmatpush3.msra.mxu1 %v3760_v55  ;;  %5016 = vmatprep.subr.mxu0 %v3727_v58  ;;  %v3900_v55 = vunpack.c.h.bf16 %v4537_v49  ;;  %v3867_v58 = vunpack.c.l.bf16 %v4529_v44  ;;  %v4516_v44 = vld [vmem:[%s5636_s5 + $0x600] sm:$0xff]  }
 0x110   : > { %5051 = vmatprep.subr.mxu1 %v3791_v59  ;;  %5017 = vmatpush3.msra.mxu0 %v3695_v62  ;;  %v3931_v59 = vunpack.c.l.bf16 %v4545_v45  ;;  %v3835_v62 = vunpack.c.l.bf16 %v4521_v48  ;;  %v4532_v45 = vld [vmem:[%s5636_s5 + $0x680] sm:$0xff]  }
 0x111   : > { %5052 = vmatpush3.msra.mxu1 %v3759_v63  ;;  %5018 = vmatprep.subr.mxu0 %v3724_v0  ;;  %v3899_v63 = vunpack.c.l.bf16 %v4537_v49  ;;  %v3864_v0 = vunpack.c.h.bf16 %v4528_v56 }
 0x112   : > { %5053 = vmatprep.subr.mxu1 %v3788_v1  ;;  %5019 = vmatpush3.msra.mxu0 %v3692_v2  ;;  %v3928_v1 = vunpack.c.h.bf16 %v4544_v57  ;;  %v3832_v2 = vunpack.c.h.bf16 %v4520_v60 }
 0x113   : > { %5054 = vmatpush3.msra.mxu1 %v3756_v3  ;;  %5020 = vmatprep.subr.mxu0 %v3723_v6  ;;  %v3896_v3 = vunpack.c.h.bf16 %v4536_v61  ;;  %v3863_v6 = vunpack.c.l.bf16 %v4528_v56  ;;  %v4579_v56 = vld [vmem:[%s5636_s5 + $0x7f8] sm:$0xff]  }
 0x114   : > { %5055 = vmatprep.subr.mxu1 %v3787_v7  ;;  %5021 = vmatpush3.msra.mxu0 %v3691_v10  ;;  %v3927_v7 = vunpack.c.l.bf16 %v4544_v57  ;;  %v3831_v10 = vunpack.c.l.bf16 %v4520_v60  ;;  %v247_v57 = vld [vmem:[%s6108_s0 + $0xc8] sm:$0xff]  ;;  %v4571_v60 = vld [vmem:[%s5636_s5 + $0x7b8] sm:$0xff]  }
 0x115   : > { %5056 = vmatpush3.msra.mxu1 %v3755_v11  ;;  %5022 = vmatprep.subr.mxu0 %v3720_v12  ;;  %v3895_v11 = vunpack.c.l.bf16 %v4536_v61  ;;  %v3860_v12 = vunpack.c.h.bf16 %v4527_v4  ;;  %v246_v61 = vld [vmem:[%s6108_s0 + $0xc0] sm:$0xff]  ;;  %v4562_v4 = vld [vmem:[%s5636_s5 + $0x770] sm:$0xff]  }
 0x116   : > { %5057 = vmatprep.subr.mxu1 %v3784_v13  ;;  %5023 = vmatpush3.msra.mxu0 %v3688_v14  ;;  %v3924_v13 = vunpack.c.h.bf16 %v4543_v5  ;;  %v3828_v14 = vunpack.c.h.bf16 %v4519_v8 }
 0x117   : > { %5058 = vmatpush3.msra.mxu1 %v3752_v15  ;;  %5024 = vmatprep.subr.mxu0 %v3719_v16  ;;  %v3892_v15 = vunpack.c.h.bf16 %v4535_v9  ;;  %v4526_v16 = vld [vmem:[%s5636_s5 + $0x650] sm:$0xff]  }
 0x118   : > { %5059 = vmatprep.subr.mxu1 %v3783_v17  ;;  %5025 = vmatpush3.msra.mxu0 %v3687_v19  ;;  %v4542_v17 = vld [vmem:[%s5636_s5 + $0x6d0] sm:$0xff]   ;;  %v3923_v19 = vunpack.c.l.bf16 %v4543_v5  ;;  %v3856_v24 = vunpack.c.h.bf16 %v4526_v16 }
 0x119   : > { %2313 = vmatprep.mubr.f32.mxu0 %v243_v21  ;;  %5060 = vmatpush3.msra.mxu1 %v3751_v22  ;;  %v4534_v21 = vld [vmem:[%s5636_s5 + $0x690] sm:$0xff]   ;;  %v3827_v22 = vunpack.c.l.bf16 %v4519_v8 }
 0x11a   : > { %2314 = vmatmul.mubr.f32.vlgmr.msra.gmra.mxu0 %v242_v25  ;;  %2383 = vmatprep.mubr.f32.mxu1 %v245_v27  ;;  %v3920_v25 = vunpack.c.h.bf16 %v4542_v17  ;;  %v3888_v27 = vunpack.c.h.bf16 %v4534_v21  ;;  %v4578_v5 = vld [vmem:[%s5636_s5 + $0x7f0] sm:$0xff]  }
 0x11b   : > { %5064 = vmatprep.subr.mxu0 %v3876_v26  ;;  %5099 = vmatprep.subr.mxu1 %v3940_v28  ;;  %v3824_v26 = vunpack.c.h.bf16 %v4518_v20  ;;  %v4525_v28 = vld [vmem:[%s5636_s5 + $0x648] sm:$0xff]   ;;  %v4554_v8 = vld [vmem:[%s5636_s5 + $0x730] sm:$0xff]  }
 0x11c   : > { %2384 = vmatmul.mubr.f32.vlgmr.msra.gmra.mxu1 %v244_v29  ;;  %5065 = vmatpush3.msra.mxu0 %v3844_v30  ;;  %v4541_v29 = vld [vmem:[%s5636_s5 + $0x6c8] sm:$0xff]   ;;  %v3855_v30 = vunpack.c.l.bf16 %v4526_v16  ;;  %v3852_v36 = vunpack.c.h.bf16 %v4525_v28  ;;  %v4570_v9 = vld [vmem:[%s5636_s5 + $0x7b0] sm:$0xff]  }
 0x11d   : > { %5100 = vmatpush3.msra.mxu1 %v3908_v31  ;;  %5066 = vmatprep.subr.mxu0 %v3875_v34  ;;  %v3919_v31 = vunpack.c.l.bf16 %v4542_v17  ;;  %v3823_v34 = vunpack.c.l.bf16 %v4518_v20  ;;  %v3916_v37 = vunpack.c.h.bf16 %v4541_v29  ;;  %v4561_v16 = vld [vmem:[%s5636_s5 + $0x768] sm:$0xff]  }
 0x11e   : > { %5101 = vmatprep.subr.mxu1 %v3939_v35  ;;  %5067 = vmatpush3.msra.mxu0 %v3843_v38  ;;  %v3887_v35 = vunpack.c.l.bf16 %v4534_v21  ;;  %v3820_v38 = vunpack.c.h.bf16 %v4517_v32  ;;  %v4577_v17 = vld [vmem:[%s5636_s5 + $0x7e8] sm:$0xff]  }
 0x11f   : > { %5102 = vmatpush3.msra.mxu1 %v3907_v39  ;;  %5068 = vmatprep.subr.mxu0 %v3872_v40  ;;  %v3884_v39 = vunpack.c.h.bf16 %v4533_v33  ;;  %v4524_v40 = vld [vmem:[%s5636_s5 + $0x640] sm:$0xff]   ;;  %v4553_v20 = vld [vmem:[%s5636_s5 + $0x728] sm:$0xff]  }
 0x120   : > { %5103 = vmatprep.subr.mxu1 %v3936_v41  ;;  %5069 = vmatpush3.msra.mxu0 %v3840_v42  ;;  %v4540_v41 = vld [vmem:[%s5636_s5 + $0x6c0] sm:$0xff]   ;;  %v3851_v42 = vunpack.c.l.bf16 %v4525_v28  ;;  %v3848_v48 = vunpack.c.h.bf16 %v4524_v40  ;;  %v4569_v21 = vld [vmem:[%s5636_s5 + $0x7a8] sm:$0xff]  }
 0x121   : > { %5104 = vmatpush3.msra.mxu1 %v3904_v43  ;;  %5070 = vmatprep.subr.mxu0 %v3871_v46  ;;  %v3915_v43 = vunpack.c.l.bf16 %v4541_v29  ;;  %v3819_v46 = vunpack.c.l.bf16 %v4517_v32  ;;  %v3912_v49 = vunpack.c.h.bf16 %v4540_v41  ;;  %v4560_v28 = vld [vmem:[%s5636_s5 + $0x760] sm:$0xff]  }
 0x122   : > { %5105 = vmatprep.subr.mxu1 %v3935_v47  ;;  %5071 = vmatpush3.msra.mxu0 %v3839_v50  ;;  %v3883_v47 = vunpack.c.l.bf16 %v4533_v33  ;;  %v3816_v50 = vunpack.c.h.bf16 %v4516_v44  ;;  %v4576_v29 = vld [vmem:[%s5636_s5 + $0x7e0] sm:$0xff]  }
 0x123   : > { %5106 = vmatpush3.msra.mxu1 %v3903_v51  ;;  %5072 = vmatprep.subr.mxu0 %v3868_v52  ;;  %v3880_v51 = vunpack.c.h.bf16 %v4532_v45  ;;  %v3847_v52 = vunpack.c.l.bf16 %v4524_v40  ;;  %v4552_v32 = vld [vmem:[%s5636_s5 + $0x720] sm:$0xff]   ;;  %v4559_v40 = vld [vmem:[%s5636_s5 + $0x758] sm:$0xff]  }
 0x124   : > { %5107 = vmatprep.subr.mxu1 %v3932_v53  ;;  %5073 = vmatpush3.msra.mxu0 %v3836_v54  ;;  %v3911_v53 = vunpack.c.l.bf16 %v4540_v41  ;;  %v4563_v54 = vld [vmem:[%s5636_s5 + $0x778] sm:$0xff]   ;;  %v4568_v33 = vld [vmem:[%s5636_s5 + $0x7a0] sm:$0xff]  }
 0x125   : > { %5108 = vmatpush3.msra.mxu1 %v3900_v55  ;;  %5074 = vmatprep.subr.mxu0 %v3867_v58  ;;  %v3815_v55 = vunpack.c.l.bf16 %v4516_v44  ;;  %v3879_v58 = vunpack.c.l.bf16 %v4532_v45  ;;  %v4575_v41 = vld [vmem:[%s5636_s5 + $0x7d8] sm:$0xff]  }
 0x126   : > { %5109 = vmatprep.subr.mxu1 %v3931_v59  ;;  %5075 = vmatpush3.msra.mxu0 %v3835_v62  ;;  %v4555_v59 = vld [vmem:[%s5636_s5 + $0x738] sm:$0xff]   ;;  %v4004_v62 = vunpack.c.h.bf16 %v4563_v54 }
 0x127   : > { %5110 = vmatpush3.msra.mxu1 %v3899_v63  ;;  %5076 = vmatprep.subr.mxu0 %v3864_v0  ;;  %v249_v63 = vld [vmem:[%s6108_s0 + $0xd8] sm:$0xff]  ;;  %v4068_v0 = vunpack.c.h.bf16 %v4579_v56 }
 0x128   : > { %5111 = vmatprep.subr.mxu1 %v3928_v1  ;;  %5077 = vmatpush3.msra.mxu0 %v3832_v2  ;;  %v248_v1 = vld [vmem:[%s6108_s0 + $0xd0] sm:$0xff]  ;;  %v3972_v2 = vunpack.c.h.bf16 %v4555_v59  ;;  %v4551_v44 = vld [vmem:[%s5636_s5 + $0x718] sm:$0xff]  }
 0x129   : > { %5112 = vmatpush3.msra.mxu1 %v3896_v3  ;;  %5078 = vmatprep.subr.mxu0 %v3863_v6  ;;  %v4036_v3 = vunpack.c.h.bf16 %v4571_v60  ;;  %v4003_v6 = vunpack.c.l.bf16 %v4563_v54  ;;  %v4567_v45 = vld [vmem:[%s5636_s5 + $0x798] sm:$0xff]   ;;  %v3987_v54 = vunpack.c.l.bf16 %v4559_v40 }
 0x12a   : > { %5113 = vmatprep.subr.mxu1 %v3927_v7  ;;  %5079 = vmatpush3.msra.mxu0 %v3831_v10  ;;  %v4067_v7 = vunpack.c.l.bf16 %v4579_v56  ;;  %v3971_v10 = vunpack.c.l.bf16 %v4555_v59  ;;  %v4550_v56 = vld [vmem:[%s5636_s5 + $0x710] sm:$0xff]   ;;  %v4019_v59 = vunpack.c.l.bf16 %v4567_v45 }
 0x12b   : > { %5114 = vmatpush3.msra.mxu1 %v3895_v11  ;;  %5080 = vmatprep.subr.mxu0 %v3860_v12  ;;  %v4035_v11 = vunpack.c.l.bf16 %v4571_v60  ;;  %v4000_v12 = vunpack.c.h.bf16 %v4562_v4 }
 0x12c   : > { %5115 = vmatprep.subr.mxu1 %v3924_v13  ;;  %5081 = vmatpush3.msra.mxu0 %v3828_v14  ;;  %v4064_v13 = vunpack.c.h.bf16 %v4578_v5  ;;  %v3968_v14 = vunpack.c.h.bf16 %v4554_v8 }
 0x12d   : > { %5116 = vmatpush3.msra.mxu1 %v3892_v15  ;;  %5082 = vmatprep.subr.mxu0 %v3859_v18  ;;  %v4032_v15 = vunpack.c.h.bf16 %v4570_v9  ;;  %v3999_v18 = vunpack.c.l.bf16 %v4562_v4  ;;  %v4549_v4 = vld [vmem:[%s5636_s5 + $0x708] sm:$0xff]  }
 0x12e   : > { %5117 = vmatprep.subr.mxu1 %v3923_v19  ;;  %5083 = vmatpush3.msra.mxu0 %v3827_v22  ;;  %v4063_v19 = vunpack.c.l.bf16 %v4578_v5  ;;  %v3967_v22 = vunpack.c.l.bf16 %v4554_v8  ;;  %v4565_v5 = vld [vmem:[%s5636_s5 + $0x788] sm:$0xff]  }
 0x12f   : > { %5118 = vmatpush3.msra.mxu1 %v3891_v23  ;;  %5084 = vmatprep.subr.mxu0 %v3856_v24  ;;  %v4031_v23 = vunpack.c.l.bf16 %v4570_v9  ;;  %v3996_v24 = vunpack.c.h.bf16 %v4561_v16 }
 0x130   : > { %5119 = vmatprep.subr.mxu1 %v3920_v25  ;;  %5085 = vmatpush3.msra.mxu0 %v3824_v26  ;;  %v4060_v25 = vunpack.c.h.bf16 %v4577_v17  ;;  %v3964_v26 = vunpack.c.h.bf16 %v4553_v20 }
 0x131   : > { %5120 = vmatpush3.msra.mxu1 %v3888_v27  ;;  %5086 = vmatprep.subr.mxu0 %v3855_v30  ;;  %v4028_v27 = vunpack.c.h.bf16 %v4569_v21  ;;  %v3995_v30 = vunpack.c.l.bf16 %v4561_v16  ;;  %v4548_v16 = vld [vmem:[%s5636_s5 + $0x700] sm:$0xff]  }
 0x132   : > { %5121 = vmatprep.subr.mxu1 %v3919_v31  ;;  %5087 = vmatpush3.msra.mxu0 %v3823_v34  ;;  %v4059_v31 = vunpack.c.l.bf16 %v4577_v17  ;;  %v3963_v34 = vunpack.c.l.bf16 %v4553_v20  ;;  %v4564_v17 = vld [vmem:[%s5636_s5 + $0x780] sm:$0xff]  }
 0x133   : > { %5122 = vmatpush3.msra.mxu1 %v3887_v35  ;;  %5088 = vmatprep.subr.mxu0 %v3852_v36  ;;  %v4027_v35 = vunpack.c.l.bf16 %v4569_v21  ;;  %v3992_v36 = vunpack.c.h.bf16 %v4560_v28 }
 0x134   : > { %5123 = vmatprep.subr.mxu1 %v3916_v37  ;;  %5089 = vmatpush3.msra.mxu0 %v3820_v38  ;;  %v4056_v37 = vunpack.c.h.bf16 %v4576_v29  ;;  %v3960_v38 = vunpack.c.h.bf16 %v4552_v32 }
 0x135   : > { %5124 = vmatpush3.msra.mxu1 %v3884_v39  ;;  %5090 = vmatprep.subr.mxu0 %v3851_v42  ;;  %v4024_v39 = vunpack.c.h.bf16 %v4568_v33  ;;  %v3991_v42 = vunpack.c.l.bf16 %v4560_v28  ;;  %v4611_v28 = vld [vmem:[%s5636_s5 + $0x8f8] sm:$0xff]  }
 0x136   : > { %5125 = vmatprep.subr.mxu1 %v3915_v43  ;;  %5091 = vmatpush3.msra.mxu0 %v3819_v46  ;;  %v4055_v43 = vunpack.c.l.bf16 %v4576_v29  ;;  %v3959_v46 = vunpack.c.l.bf16 %v4552_v32  ;;  %v251_v29 = vld [vmem:[%s6108_s0 + $0xe8] sm:$0xff]  ;;  %v4603_v32 = vld [vmem:[%s5636_s5 + $0x8b8] sm:$0xff]  }
 0x137   : > { %5126 = vmatpush3.msra.mxu1 %v3883_v47  ;;  %5092 = vmatprep.subr.mxu0 %v3848_v48  ;;  %v4023_v47 = vunpack.c.l.bf16 %v4568_v33  ;;  %v3988_v48 = vunpack.c.h.bf16 %v4559_v40  ;;  %v250_v33 = vld [vmem:[%s6108_s0 + $0xe0] sm:$0xff]  ;;  %v4594_v40 = vld [vmem:[%s5636_s5 + $0x870] sm:$0xff]  }
 0x138   : > { %5127 = vmatprep.subr.mxu1 %v3912_v49  ;;  %5093 = vmatpush3.msra.mxu0 %v3816_v50  ;;  %v4052_v49 = vunpack.c.h.bf16 %v4575_v41  ;;  %v3956_v50 = vunpack.c.h.bf16 %v4551_v44 }
 0x139   : > { %5128 = vmatpush3.msra.mxu1 %v3880_v51  ;;  %5094 = vmatprep.subr.mxu0 %v3847_v52  ;;  %v4020_v51 = vunpack.c.h.bf16 %v4567_v45  ;;  %v4558_v52 = vld [vmem:[%s5636_s5 + $0x750] sm:$0xff]  }
 0x13a   : > { %5129 = vmatprep.subr.mxu1 %v3911_v53  ;;  %5095 = vmatpush3.msra.mxu0 %v3815_v55  ;;  %v4574_v53 = vld [vmem:[%s5636_s5 + $0x7d0] sm:$0xff]   ;;  %v4051_v55 = vunpack.c.l.bf16 %v4575_v41  ;;  %v3984_v60 = vunpack.c.h.bf16 %v4558_v52 }
 0x13b   : > { %2453 = vmatprep.mubr.f32.mxu0 %v247_v57  ;;  %5130 = vmatpush3.msra.mxu1 %v3879_v58  ;;  %v4566_v57 = vld [vmem:[%s5636_s5 + $0x790] sm:$0xff]   ;;  %v3955_v58 = vunpack.c.l.bf16 %v4551_v44 }
 0x13c   : > { %2454 = vmatmul.mubr.f32.vlgmr.msra.gmra.mxu0 %v246_v61  ;;  %2523 = vmatprep.mubr.f32.mxu1 %v249_v63  ;;  %v4048_v61 = vunpack.c.h.bf16 %v4574_v53  ;;  %v4016_v63 = vunpack.c.h.bf16 %v4566_v57  ;;  %v4610_v41 = vld [vmem:[%s5636_s5 + $0x8f0] sm:$0xff]  }
 0x13d   : > { %5134 = vmatprep.subr.mxu0 %v4004_v62  ;;  %5169 = vmatprep.subr.mxu1 %v4068_v0  ;;  %v3952_v62 = vunpack.c.h.bf16 %v4550_v56  ;;  %v4557_v0 = vld [vmem:[%s5636_s5 + $0x748] sm:$0xff]   ;;  %v4586_v44 = vld [vmem:[%s5636_s5 + $0x830] sm:$0xff]  }
 0x13e   : > { %2524 = vmatmul.mubr.f32.vlgmr.msra.gmra.mxu1 %v248_v1  ;;  %5135 = vmatpush3.msra.mxu0 %v3972_v2  ;;  %v4573_v1 = vld [vmem:[%s5636_s5 + $0x7c8] sm:$0xff]   ;;  %v3983_v2 = vunpack.c.l.bf16 %v4558_v52  ;;  %v3980_v8 = vunpack.c.h.bf16 %v4557_v0  ;;  %v4602_v45 = vld [vmem:[%s5636_s5 + $0x8b0] sm:$0xff]  }
 0x13f   : > { %5170 = vmatpush3.msra.mxu1 %v4036_v3  ;;  %5136 = vmatprep.subr.mxu0 %v4003_v6  ;;  %v4047_v3 = vunpack.c.l.bf16 %v4574_v53  ;;  %v3951_v6 = vunpack.c.l.bf16 %v4550_v56  ;;  %v4044_v9 = vunpack.c.h.bf16 %v4573_v1  ;;  %v4593_v52 = vld [vmem:[%s5636_s5 + $0x868] sm:$0xff]  }
 0x140   : > { %5171 = vmatprep.subr.mxu1 %v4067_v7  ;;  %5137 = vmatpush3.msra.mxu0 %v3971_v10  ;;  %v4015_v7 = vunpack.c.l.bf16 %v4566_v57  ;;  %v3948_v10 = vunpack.c.h.bf16 %v4549_v4  ;;  %v4609_v53 = vld [vmem:[%s5636_s5 + $0x8e8] sm:$0xff]  }
 0x141   : > { %5172 = vmatpush3.msra.mxu1 %v4035_v11  ;;  %5138 = vmatprep.subr.mxu0 %v4000_v12  ;;  %v4012_v11 = vunpack.c.h.bf16 %v4565_v5  ;;  %v4556_v12 = vld [vmem:[%s5636_s5 + $0x740] sm:$0xff]   ;;  %v4585_v56 = vld [vmem:[%s5636_s5 + $0x828] sm:$0xff]  }
 0x142   : > { %5173 = vmatprep.subr.mxu1 %v4064_v13  ;;  %5139 = vmatpush3.msra.mxu0 %v3968_v14  ;;  %v4572_v13 = vld [vmem:[%s5636_s5 + $0x7c0] sm:$0xff]   ;;  %v3979_v14 = vunpack.c.l.bf16 %v4557_v0  ;;  %v3976_v20 = vunpack.c.h.bf16 %v4556_v12  ;;  %v4601_v57 = vld [vmem:[%s5636_s5 + $0x8a8] sm:$0xff]  }
 0x143   : > { %5174 = vmatpush3.msra.mxu1 %v4032_v15  ;;  %5140 = vmatprep.subr.mxu0 %v3999_v18  ;;  %v4043_v15 = vunpack.c.l.bf16 %v4573_v1  ;;  %v3947_v18 = vunpack.c.l.bf16 %v4549_v4  ;;  %v4040_v21 = vunpack.c.h.bf16 %v4572_v13  ;;  %v4592_v0 = vld [vmem:[%s5636_s5 + $0x860] sm:$0xff]  }
 0x144   : > { %5175 = vmatprep.subr.mxu1 %v4063_v19  ;;  %5141 = vmatpush3.msra.mxu0 %v3967_v22  ;;  %v4011_v19 = vunpack.c.l.bf16 %v4565_v5  ;;  %v3944_v22 = vunpack.c.h.bf16 %v4548_v16  ;;  %v4608_v1 = vld [vmem:[%s5636_s5 + $0x8e0] sm:$0xff]  }
 0x145   : > { %5176 = vmatpush3.msra.mxu1 %v4031_v23  ;;  %5142 = vmatprep.subr.mxu0 %v3996_v24  ;;  %v4008_v23 = vunpack.c.h.bf16 %v4564_v17  ;;  %v3975_v24 = vunpack.c.l.bf16 %v4556_v12  ;;  %v4584_v4 = vld [vmem:[%s5636_s5 + $0x820] sm:$0xff]   ;;  %v4591_v12 = vld [vmem:[%s5636_s5 + $0x858] sm:$0xff]  }
 0x146   : > { %5177 = vmatprep.subr.mxu1 %v4060_v25  ;;  %5143 = vmatpush3.msra.mxu0 %v3964_v26  ;;  %v4039_v25 = vunpack.c.l.bf16 %v4572_v13  ;;  %v4595_v26 = vld [vmem:[%s5636_s5 + $0x878] sm:$0xff]   ;;  %v4600_v5 = vld [vmem:[%s5636_s5 + $0x8a0] sm:$0xff]  }
 0x147   : > { %5178 = vmatpush3.msra.mxu1 %v4028_v27  ;;  %5144 = vmatprep.subr.mxu0 %v3995_v30  ;;  %v3943_v27 = vunpack.c.l.bf16 %v4548_v16  ;;  %v4007_v30 = vunpack.c.l.bf16 %v4564_v17  ;;  %v4607_v13 = vld [vmem:[%s5636_s5 + $0x8d8] sm:$0xff]  }
 0x148   : > { %5179 = vmatprep.subr.mxu1 %v4059_v31  ;;  %5145 = vmatpush3.msra.mxu0 %v3963_v34  ;;  %v4587_v31 = vld [vmem:[%s5636_s5 + $0x838] sm:$0xff]   ;;  %v4132_v34 = vunpack.c.h.bf16 %v4595_v26 }
 0x149   : > { %5180 = vmatpush3.msra.mxu1 %v4027_v35  ;;  %5146 = vmatprep.subr.mxu0 %v3992_v36  ;;  %v253_v35 = vld [vmem:[%s6108_s0 + $0xf8] sm:$0xff]  ;;  %v4196_v36 = vunpack.c.h.bf16 %v4611_v28 }
 0x14a   : > { %5181 = vmatprep.subr.mxu1 %v4056_v37  ;;  %5147 = vmatpush3.msra.mxu0 %v3960_v38  ;;  %v252_v37 = vld [vmem:[%s6108_s0 + $0xf0] sm:$0xff]  ;;  %v4100_v38 = vunpack.c.h.bf16 %v4587_v31  ;;  %v4583_v16 = vld [vmem:[%s5636_s5 + $0x818] sm:$0xff]  }
 0x14b   : > { %5182 = vmatpush3.msra.mxu1 %v4024_v39  ;;  %5148 = vmatprep.subr.mxu0 %v3991_v42  ;;  %v4164_v39 = vunpack.c.h.bf16 %v4603_v32  ;;  %v4131_v42 = vunpack.c.l.bf16 %v4595_v26  ;;  %v4599_v17 = vld [vmem:[%s5636_s5 + $0x898] sm:$0xff]   ;;  %v4115_v26 = vunpack.c.l.bf16 %v4591_v12 }
 0x14c   : > { %5183 = vmatprep.subr.mxu1 %v4055_v43  ;;  %5149 = vmatpush3.msra.mxu0 %v3959_v46  ;;  %v4195_v43 = vunpack.c.l.bf16 %v4611_v28  ;;  %v4099_v46 = vunpack.c.l.bf16 %v4587_v31  ;;  %v4582_v28 = vld [vmem:[%s5636_s5 + $0x810] sm:$0xff]   ;;  %v4147_v31 = vunpack.c.l.bf16 %v4599_v17 }
 0x14d   : > { %5184 = vmatpush3.msra.mxu1 %v4023_v47  ;;  %5150 = vmatprep.subr.mxu0 %v3988_v48  ;;  %v4163_v47 = vunpack.c.l.bf16 %v4603_v32  ;;  %v4128_v48 = vunpack.c.h.bf16 %v4594_v40 }
 0x14e   : > { %5185 = vmatprep.subr.mxu1 %v4052_v49  ;;  %5151 = vmatpush3.msra.mxu0 %v3956_v50  ;;  %v4192_v49 = vunpack.c.h.bf16 %v4610_v41  ;;  %v4096_v50 = vunpack.c.h.bf16 %v4586_v44 }
 0x14f   : > { %5186 = vmatpush3.msra.mxu1 %v4020_v51  ;;  %5152 = vmatprep.subr.mxu0 %v3987_v54  ;;  %v4160_v51 = vunpack.c.h.bf16 %v4602_v45  ;;  %v4127_v54 = vunpack.c.l.bf16 %v4594_v40  ;;  %v4581_v40 = vld [vmem:[%s5636_s5 + $0x808] sm:$0xff]  }
 0x150   : > { %5187 = vmatprep.subr.mxu1 %v4051_v55  ;;  %5153 = vmatpush3.msra.mxu0 %v3955_v58  ;;  %v4191_v55 = vunpack.c.l.bf16 %v4610_v41  ;;  %v4095_v58 = vunpack.c.l.bf16 %v4586_v44  ;;  %v4597_v41 = vld [vmem:[%s5636_s5 + $0x888] sm:$0xff]  }
 0x151   : > { %5188 = vmatpush3.msra.mxu1 %v4019_v59  ;;  %5154 = vmatprep.subr.mxu0 %v3984_v60  ;;  %v4159_v59 = vunpack.c.l.bf16 %v4602_v45  ;;  %v4124_v60 = vunpack.c.h.bf16 %v4593_v52 }
 0x152   : > { %5189 = vmatprep.subr.mxu1 %v4048_v61  ;;  %5155 = vmatpush3.msra.mxu0 %v3952_v62  ;;  %v4188_v61 = vunpack.c.h.bf16 %v4609_v53  ;;  %v4092_v62 = vunpack.c.h.bf16 %v4585_v56 }
 0x153   : > { %5190 = vmatpush3.msra.mxu1 %v4016_v63  ;;  %5156 = vmatprep.subr.mxu0 %v3983_v2  ;;  %v4156_v63 = vunpack.c.h.bf16 %v4601_v57  ;;  %v4123_v2 = vunpack.c.l.bf16 %v4593_v52  ;;  %v4580_v52 = vld [vmem:[%s5636_s5 + $0x800] sm:$0xff]  }
 0x154   : > { %5191 = vmatprep.subr.mxu1 %v4047_v3  ;;  %5157 = vmatpush3.msra.mxu0 %v3951_v6  ;;  %v4187_v3 = vunpack.c.l.bf16 %v4609_v53  ;;  %v4091_v6 = vunpack.c.l.bf16 %v4585_v56  ;;  %v4596_v53 = vld [vmem:[%s5636_s5 + $0x880] sm:$0xff]  }
 0x155   : > { %5192 = vmatpush3.msra.mxu1 %v4015_v7  ;;  %5158 = vmatprep.subr.mxu0 %v3980_v8  ;;  %v4155_v7 = vunpack.c.l.bf16 %v4601_v57  ;;  %v4120_v8 = vunpack.c.h.bf16 %v4592_v0 }
 0x156   : > { %5193 = vmatprep.subr.mxu1 %v4044_v9  ;;  %5159 = vmatpush3.msra.mxu0 %v3948_v10  ;;  %v4184_v9 = vunpack.c.h.bf16 %v4608_v1  ;;  %v4088_v10 = vunpack.c.h.bf16 %v4584_v4 }
 0x157   : > { %5194 = vmatpush3.msra.mxu1 %v4012_v11  ;;  %5160 = vmatprep.subr.mxu0 %v3979_v14  ;;  %v4152_v11 = vunpack.c.h.bf16 %v4600_v5  ;;  %v4119_v14 = vunpack.c.l.bf16 %v4592_v0  ;;  %v4643_v0 = vld [vmem:[%s5636_s5 + $0x9f8] sm:$0xff]  }
 0x158   : > { %5195 = vmatprep.subr.mxu1 %v4043_v15  ;;  %5161 = vmatpush3.msra.mxu0 %v3947_v18  ;;  %v4183_v15 = vunpack.c.l.bf16 %v4608_v1  ;;  %v4087_v18 = vunpack.c.l.bf16 %v4584_v4  ;;  %v255_v1 = vld [vmem:[%s6108_s0 + $0x108] sm:$0xff]  ;;  %v4635_v4 = vld [vmem:[%s5636_s5 + $0x9b8] sm:$0xff]  }
 0x159   : > { %5196 = vmatpush3.msra.mxu1 %v4011_v19  ;;  %5162 = vmatprep.subr.mxu0 %v3976_v20  ;;  %v4151_v19 = vunpack.c.l.bf16 %v4600_v5  ;;  %v4116_v20 = vunpack.c.h.bf16 %v4591_v12  ;;  %v254_v5 = vld [vmem:[%s6108_s0 + $0x100] sm:$0xff]  ;;  %v4626_v12 = vld [vmem:[%s5636_s5 + $0x970] sm:$0xff]  }
 0x15a   : > { %5197 = vmatprep.subr.mxu1 %v4040_v21  ;;  %5163 = vmatpush3.msra.mxu0 %v3944_v22  ;;  %v4180_v21 = vunpack.c.h.bf16 %v4607_v13  ;;  %v4084_v22 = vunpack.c.h.bf16 %v4583_v16 }
 0x15b   : > { %5198 = vmatpush3.msra.mxu1 %v4008_v23  ;;  %5164 = vmatprep.subr.mxu0 %v3975_v24  ;;  %v4148_v23 = vunpack.c.h.bf16 %v4599_v17  ;;  %v4590_v24 = vld [vmem:[%s5636_s5 + $0x850] sm:$0xff]  }
 0x15c   : > { %5199 = vmatprep.subr.mxu1 %v4039_v25  ;;  %5165 = vmatpush3.msra.mxu0 %v3943_v27  ;;  %v4606_v25 = vld [vmem:[%s5636_s5 + $0x8d0] sm:$0xff]   ;;  %v4179_v27 = vunpack.c.l.bf16 %v4607_v13  ;;  %v4112_v32 = vunpack.c.h.bf16 %v4590_v24 }
 0x15d   : > { %2593 = vmatprep.mubr.f32.mxu0 %v251_v29  ;;  %5200 = vmatpush3.msra.mxu1 %v4007_v30  ;;  %v4598_v29 = vld [vmem:[%s5636_s5 + $0x890] sm:$0xff]   ;;  %v4083_v30 = vunpack.c.l.bf16 %v4583_v16 }
 0x15e   : > { %2594 = vmatmul.mubr.f32.vlgmr.msra.gmra.mxu0 %v250_v33  ;;  %2663 = vmatprep.mubr.f32.mxu1 %v253_v35  ;;  %v4176_v33 = vunpack.c.h.bf16 %v4606_v25  ;;  %v4144_v35 = vunpack.c.h.bf16 %v4598_v29  ;;  %v4642_v13 = vld [vmem:[%s5636_s5 + $0x9f0] sm:$0xff]  }
 0x15f   : > { %5204 = vmatprep.subr.mxu0 %v4132_v34  ;;  %5239 = vmatprep.subr.mxu1 %v4196_v36  ;;  %v4080_v34 = vunpack.c.h.bf16 %v4582_v28  ;;  %v4589_v36 = vld [vmem:[%s5636_s5 + $0x848] sm:$0xff]   ;;  %v4618_v16 = vld [vmem:[%s5636_s5 + $0x930] sm:$0xff]  }
 0x160   : > { %2664 = vmatmul.mubr.f32.vlgmr.msra.gmra.mxu1 %v252_v37  ;;  %5205 = vmatpush3.msra.mxu0 %v4100_v38  ;;  %v4605_v37 = vld [vmem:[%s5636_s5 + $0x8c8] sm:$0xff]   ;;  %v4111_v38 = vunpack.c.l.bf16 %v4590_v24  ;;  %v4108_v44 = vunpack.c.h.bf16 %v4589_v36  ;;  %v4634_v17 = vld [vmem:[%s5636_s5 + $0x9b0] sm:$0xff]  }
 0x161   : > { %5240 = vmatpush3.msra.mxu1 %v4164_v39  ;;  %5206 = vmatprep.subr.mxu0 %v4131_v42  ;;  %v4175_v39 = vunpack.c.l.bf16 %v4606_v25  ;;  %v4079_v42 = vunpack.c.l.bf16 %v4582_v28  ;;  %v4172_v45 = vunpack.c.h.bf16 %v4605_v37  ;;  %v4625_v24 = vld [vmem:[%s5636_s5 + $0x968] sm:$0xff]  }
 0x162   : > { %5241 = vmatprep.subr.mxu1 %v4195_v43  ;;  %5207 = vmatpush3.msra.mxu0 %v4099_v46  ;;  %v4143_v43 = vunpack.c.l.bf16 %v4598_v29  ;;  %v4076_v46 = vunpack.c.h.bf16 %v4581_v40  ;;  %v4641_v25 = vld [vmem:[%s5636_s5 + $0x9e8] sm:$0xff]  }
 0x163   : > { %5242 = vmatpush3.msra.mxu1 %v4163_v47  ;;  %5208 = vmatprep.subr.mxu0 %v4128_v48  ;;  %v4140_v47 = vunpack.c.h.bf16 %v4597_v41  ;;  %v4588_v48 = vld [vmem:[%s5636_s5 + $0x840] sm:$0xff]   ;;  %v4617_v28 = vld [vmem:[%s5636_s5 + $0x928] sm:$0xff]  }
 0x164   : > { %5243 = vmatprep.subr.mxu1 %v4192_v49  ;;  %5209 = vmatpush3.msra.mxu0 %v4096_v50  ;;  %v4604_v49 = vld [vmem:[%s5636_s5 + $0x8c0] sm:$0xff]   ;;  %v4107_v50 = vunpack.c.l.bf16 %v4589_v36  ;;  %v4104_v56 = vunpack.c.h.bf16 %v4588_v48  ;;  %v4633_v29 = vld [vmem:[%s5636_s5 + $0x9a8] sm:$0xff]  }
 0x165   : > { %5244 = vmatpush3.msra.mxu1 %v4160_v51  ;;  %5210 = vmatprep.subr.mxu0 %v4127_v54  ;;  %v4171_v51 = vunpack.c.l.bf16 %v4605_v37  ;;  %v4075_v54 = vunpack.c.l.bf16 %v4581_v40  ;;  %v4168_v57 = vunpack.c.h.bf16 %v4604_v49  ;;  %v4624_v36 = vld [vmem:[%s5636_s5 + $0x960] sm:$0xff]  }
 0x166   : > { %5245 = vmatprep.subr.mxu1 %v4191_v55  ;;  %5211 = vmatpush3.msra.mxu0 %v4095_v58  ;;  %v4139_v55 = vunpack.c.l.bf16 %v4597_v41  ;;  %v4072_v58 = vunpack.c.h.bf16 %v4580_v52  ;;  %v4640_v37 = vld [vmem:[%s5636_s5 + $0x9e0] sm:$0xff]  }
 0x167   : > { %5246 = vmatpush3.msra.mxu1 %v4159_v59  ;;  %5212 = vmatprep.subr.mxu0 %v4124_v60  ;;  %v4136_v59 = vunpack.c.h.bf16 %v4596_v53  ;;  %v4103_v60 = vunpack.c.l.bf16 %v4588_v48  ;;  %v4616_v40 = vld [vmem:[%s5636_s5 + $0x920] sm:$0xff]   ;;  %v4623_v48 = vld [vmem:[%s5636_s5 + $0x958] sm:$0xff]  }
 0x168   : > { %5247 = vmatprep.subr.mxu1 %v4188_v61  ;;  %5213 = vmatpush3.msra.mxu0 %v4092_v62  ;;  %v4167_v61 = vunpack.c.l.bf16 %v4604_v49  ;;  %v4627_v62 = vld [vmem:[%s5636_s5 + $0x978] sm:$0xff]   ;;  %v4632_v41 = vld [vmem:[%s5636_s5 + $0x9a0] sm:$0xff]  }
 0x169   : > { %5248 = vmatpush3.msra.mxu1 %v4156_v63  ;;  %5214 = vmatprep.subr.mxu0 %v4123_v2  ;;  %v4071_v63 = vunpack.c.l.bf16 %v4580_v52  ;;  %v4135_v2 = vunpack.c.l.bf16 %v4596_v53  ;;  %v4639_v49 = vld [vmem:[%s5636_s5 + $0x9d8] sm:$0xff]  }
 0x16a   : > { %5249 = vmatprep.subr.mxu1 %v4187_v3  ;;  %5215 = vmatpush3.msra.mxu0 %v4091_v6  ;;  %v4619_v3 = vld [vmem:[%s5636_s5 + $0x938] sm:$0xff]   ;;  %v4260_v6 = vunpack.c.h.bf16 %v4627_v62 }
 0x16b   : > { %5250 = vmatpush3.msra.mxu1 %v4155_v7  ;;  %5216 = vmatprep.subr.mxu0 %v4120_v8  ;;  %v257_v7 = vld [vmem:[%s6108_s0 + $0x118] sm:$0xff]  ;;  %v4324_v8 = vunpack.c.h.bf16 %v4643_v0 }
 0x16c   : > { %5251 = vmatprep.subr.mxu1 %v4184_v9  ;;  %5217 = vmatpush3.msra.mxu0 %v4088_v10  ;;  %v256_v9 = vld [vmem:[%s6108_s0 + $0x110] sm:$0xff]  ;;  %v4228_v10 = vunpack.c.h.bf16 %v4619_v3  ;;  %v4615_v52 = vld [vmem:[%s5636_s5 + $0x918] sm:$0xff]  }
 0x16d   : > { %5252 = vmatpush3.msra.mxu1 %v4152_v11  ;;  %5218 = vmatprep.subr.mxu0 %v4119_v14  ;;  %v4292_v11 = vunpack.c.h.bf16 %v4635_v4  ;;  %v4259_v14 = vunpack.c.l.bf16 %v4627_v62  ;;  %v4631_v53 = vld [vmem:[%s5636_s5 + $0x998] sm:$0xff]   ;;  %v4243_v62 = vunpack.c.l.bf16 %v4623_v48 }
 0x16e   : > { %5253 = vmatprep.subr.mxu1 %v4183_v15  ;;  %5219 = vmatpush3.msra.mxu0 %v4087_v18  ;;  %v4323_v15 = vunpack.c.l.bf16 %v4643_v0  ;;  %v4227_v18 = vunpack.c.l.bf16 %v4619_v3  ;;  %v4614_v0 = vld [vmem:[%s5636_s5 + $0x910] sm:$0xff]   ;;  %v4275_v3 = vunpack.c.l.bf16 %v4631_v53 }
 0x16f   : > { %5254 = vmatpush3.msra.mxu1 %v4151_v19  ;;  %5220 = vmatprep.subr.mxu0 %v4116_v20  ;;  %v4291_v19 = vunpack.c.l.bf16 %v4635_v4  ;;  %v4256_v20 = vunpack.c.h.bf16 %v4626_v12 }
 0x170   : > { %5255 = vmatprep.subr.mxu1 %v4180_v21  ;;  %5221 = vmatpush3.msra.mxu0 %v4084_v22  ;;  %v4320_v21 = vunpack.c.h.bf16 %v4642_v13  ;;  %v4224_v22 = vunpack.c.h.bf16 %v4618_v16 }
 0x171   : > { %5256 = vmatpush3.msra.mxu1 %v4148_v23  ;;  %5222 = vmatprep.subr.mxu0 %v4115_v26  ;;  %v4288_v23 = vunpack.c.h.bf16 %v4634_v17  ;;  %v4255_v26 = vunpack.c.l.bf16 %v4626_v12  ;;  %v4613_v12 = vld [vmem:[%s5636_s5 + $0x908] sm:$0xff]  }
 0x172   : > { %5257 = vmatprep.subr.mxu1 %v4179_v27  ;;  %5223 = vmatpush3.msra.mxu0 %v4083_v30  ;;  %v4319_v27 = vunpack.c.l.bf16 %v4642_v13  ;;  %v4223_v30 = vunpack.c.l.bf16 %v4618_v16  ;;  %v4629_v13 = vld [vmem:[%s5636_s5 + $0x988] sm:$0xff]  }
 0x173   : > { %5258 = vmatpush3.msra.mxu1 %v4147_v31  ;;  %5224 = vmatprep.subr.mxu0 %v4112_v32  ;;  %v4287_v31 = vunpack.c.l.bf16 %v4634_v17  ;;  %v4252_v32 = vunpack.c.h.bf16 %v4625_v24 }
 0x174   : > { %5259 = vmatprep.subr.mxu1 %v4176_v33  ;;  %5225 = vmatpush3.msra.mxu0 %v4080_v34  ;;  %v4316_v33 = vunpack.c.h.bf16 %v4641_v25  ;;  %v4220_v34 = vunpack.c.h.bf16 %v4617_v28 }
 0x175   : > { %5260 = vmatpush3.msra.mxu1 %v4144_v35  ;;  %5226 = vmatprep.subr.mxu0 %v4111_v38  ;;  %v4284_v35 = vunpack.c.h.bf16 %v4633_v29  ;;  %v4251_v38 = vunpack.c.l.bf16 %v4625_v24  ;;  %v4612_v24 = vld [vmem:[%s5636_s5 + $0x900] sm:$0xff]  }
 0x176   : > { %5261 = vmatprep.subr.mxu1 %v4175_v39  ;;  %5227 = vmatpush3.msra.mxu0 %v4079_v42  ;;  %v4315_v39 = vunpack.c.l.bf16 %v4641_v25  ;;  %v4219_v42 = vunpack.c.l.bf16 %v4617_v28  ;;  %v4628_v25 = vld [vmem:[%s5636_s5 + $0x980] sm:$0xff]  }
 0x177   : > { %5262 = vmatpush3.msra.mxu1 %v4143_v43  ;;  %5228 = vmatprep.subr.mxu0 %v4108_v44  ;;  %v4283_v43 = vunpack.c.l.bf16 %v4633_v29  ;;  %v4248_v44 = vunpack.c.h.bf16 %v4624_v36 }
 0x178   : > { %5263 = vmatprep.subr.mxu1 %v4172_v45  ;;  %5229 = vmatpush3.msra.mxu0 %v4076_v46  ;;  %v4312_v45 = vunpack.c.h.bf16 %v4640_v37  ;;  %v4216_v46 = vunpack.c.h.bf16 %v4616_v40 }
 0x179   : > { %5264 = vmatpush3.msra.mxu1 %v4140_v47  ;;  %5230 = vmatprep.subr.mxu0 %v4107_v50  ;;  %v4280_v47 = vunpack.c.h.bf16 %v4632_v41  ;;  %v4247_v50 = vunpack.c.l.bf16 %v4624_v36  ;;  %v4263_v36 = vunpack.c.l.bf16 %v4628_v25 }
 0x17a   : > { %5265 = vmatprep.subr.mxu1 %v4171_v51  ;;  %5231 = vmatpush3.msra.mxu0 %v4075_v54  ;;  %v4311_v51 = vunpack.c.l.bf16 %v4640_v37  ;;  %v4215_v54 = vunpack.c.l.bf16 %v4616_v40  ;;  %v261_v37 = vld [vmem:[%s6108_s0 + $0x138] sm:$0xff]  ;;  %v4676_v40 = vpop.f32.mrf.mxu0 }
 0x17b   : > { %5266 = vmatpush3.msra.mxu1 %v4139_v55  ;;  %5232 = vmatprep.subr.mxu0 %v4104_v56  ;;  %v4279_v55 = vunpack.c.l.bf16 %v4632_v41  ;;  %v4244_v56 = vunpack.c.h.bf16 %v4623_v48  ;;  %v4711_v41 = vpop.f32.mrf.mxu1 }
 0x17c   : > { %5267 = vmatprep.subr.mxu1 %v4168_v57  ;;  %5233 = vmatpush3.msra.mxu0 %v4072_v58  ;;  %v4308_v57 = vunpack.c.h.bf16 %v4639_v49  ;;  %v4212_v58 = vunpack.c.h.bf16 %v4615_v52 }
 0x17d   : > { %5268 = vmatpush3.msra.mxu1 %v4136_v59  ;;  %5234 = vmatprep.subr.mxu0 %v4103_v60  ;;  %v4276_v59 = vunpack.c.h.bf16 %v4631_v53  ;;  %v4622_v60 = vld [vmem:[%s5636_s5 + $0x950] sm:$0xff]  }
 0x17e   : > { %5269 = vmatprep.subr.mxu1 %v4167_v61  ;;  %5235 = vmatpush3.msra.mxu0 %v4071_v63  ;;  %v4638_v61 = vld [vmem:[%s5636_s5 + $0x9d0] sm:$0xff]   ;;  %v4307_v63 = vunpack.c.l.bf16 %v4639_v49  ;;  %v4240_v4 = vunpack.c.h.bf16 %v4622_v60 }
 0x17f   : > { %2733 = vmatprep.mubr.f32.mxu0 %v255_v1  ;;  %5270 = vmatpush3.msra.mxu1 %v4135_v2  ;;  %v4630_v1 = vld [vmem:[%s5636_s5 + $0x990] sm:$0xff]   ;;  %v4211_v2 = vunpack.c.l.bf16 %v4615_v52 }
 0x180   : > { %2734 = vmatmul.mubr.f32.vlgmr.msra.gmra.mxu0 %v254_v5  ;;  %2803 = vmatprep.mubr.f32.mxu1 %v257_v7  ;;  %v4304_v5 = vunpack.c.h.bf16 %v4638_v61  ;;  %v4272_v7 = vunpack.c.h.bf16 %v4630_v1 }
 0x181   : > { %5274 = vmatprep.subr.mxu0 %v4260_v6  ;;  %5309 = vmatprep.subr.mxu1 %v4324_v8  ;;  %v4208_v6 = vunpack.c.h.bf16 %v4614_v0  ;;  %v4621_v8 = vld [vmem:[%s5636_s5 + $0x948] sm:$0xff]  }
 0x182   : > { %2804 = vmatmul.mubr.f32.vlgmr.msra.gmra.mxu1 %v256_v9  ;;  %5275 = vmatpush3.msra.mxu0 %v4228_v10  ;;  %v4637_v9 = vld [vmem:[%s5636_s5 + $0x9c8] sm:$0xff]   ;;  %v4239_v10 = vunpack.c.l.bf16 %v4622_v60  ;;  %v4236_v16 = vunpack.c.h.bf16 %v4621_v8 }
 0x183   : > { %5310 = vmatpush3.msra.mxu1 %v4292_v11  ;;  %5276 = vmatprep.subr.mxu0 %v4259_v14  ;;  %v4303_v11 = vunpack.c.l.bf16 %v4638_v61  ;;  %v4207_v14 = vunpack.c.l.bf16 %v4614_v0  ;;  %v4300_v17 = vunpack.c.h.bf16 %v4637_v9 }
 0x184   : > { %5311 = vmatprep.subr.mxu1 %v4323_v15  ;;  %5277 = vmatpush3.msra.mxu0 %v4227_v18  ;;  %v4271_v15 = vunpack.c.l.bf16 %v4630_v1  ;;  %v4204_v18 = vunpack.c.h.bf16 %v4613_v12 }
 0x185   : > { %5312 = vmatpush3.msra.mxu1 %v4291_v19  ;;  %5278 = vmatprep.subr.mxu0 %v4256_v20  ;;  %v4268_v19 = vunpack.c.h.bf16 %v4629_v13  ;;  %v4620_v20 = vld [vmem:[%s5636_s5 + $0x940] sm:$0xff]  }
 0x186   : > { %5313 = vmatprep.subr.mxu1 %v4320_v21  ;;  %5279 = vmatpush3.msra.mxu0 %v4224_v22  ;;  %v4636_v21 = vld [vmem:[%s5636_s5 + $0x9c0] sm:$0xff]   ;;  %v4235_v22 = vunpack.c.l.bf16 %v4621_v8  ;;  %v4232_v28 = vunpack.c.h.bf16 %v4620_v20 }
 0x187   : > { %5314 = vmatpush3.msra.mxu1 %v4288_v23  ;;  %5280 = vmatprep.subr.mxu0 %v4255_v26  ;;  %v4299_v23 = vunpack.c.l.bf16 %v4637_v9  ;;  %v4203_v26 = vunpack.c.l.bf16 %v4613_v12  ;;  %v4296_v29 = vunpack.c.h.bf16 %v4636_v21 }
 0x188   : > { %5315 = vmatprep.subr.mxu1 %v4319_v27  ;;  %5281 = vmatpush3.msra.mxu0 %v4223_v30  ;;  %v4267_v27 = vunpack.c.l.bf16 %v4629_v13  ;;  %v4200_v30 = vunpack.c.h.bf16 %v4612_v24 }
 0x189   : > { %5316 = vmatpush3.msra.mxu1 %v4287_v31  ;;  %5282 = vmatprep.subr.mxu0 %v4252_v32  ;;  %v4264_v31 = vunpack.c.h.bf16 %v4628_v25  ;;  %v4231_v32 = vunpack.c.l.bf16 %v4620_v20 }
 0x18a   : > { %5317 = vmatprep.subr.mxu1 %v4316_v33  ;;  %5283 = vmatpush3.msra.mxu0 %v4220_v34  ;;  %v4295_v33 = vunpack.c.l.bf16 %v4636_v21  ;;  %v4199_v34 = vunpack.c.l.bf16 %v4612_v24 }
 0x18b   : > { %5318 = vmatpush3.msra.mxu1 %v4284_v35  ;;  %5284 = vmatprep.subr.mxu0 %v4251_v38  ;;  %v259_v35 = vld [vmem:[%s6108_s0 + $0x128] sm:$0xff]  ;;  %v258_v38 = vld [vmem:[%s6108_s0 + $0x120] sm:$0xff] }
 0x18c   : > { %5319 = vmatprep.subr.mxu1 %v4315_v39  ;;  %5285 = vmatpush3.msra.mxu0 %v4219_v42  ;;  %v260_v39 = vld [vmem:[%s6108_s0 + $0x130] sm:$0xff]  ;;  %v4677_v42 = vpop.f32.mrf.mxu0 }
 0x18d   : > { %5320 = vmatpush3.msra.mxu1 %v4283_v43  ;;  %5286 = vmatprep.subr.mxu0 %v4248_v44  ;;  %v4678_v44 = vadd.f32 %v4677_v42, %v4676_v40 }
 0x18e   : > { %5321 = vmatprep.subr.mxu1 %v4312_v45  ;;  %5287 = vmatpush3.msra.mxu0 %v4216_v46  ;;  %v4746_v43 = vpop.f32.mrf.mxu0  ;;  %v3042_v45 = vld [vmem:[%s192_s27] ss:$0 sm:$0xff]  ;;  %v4712_v46 = vpop.f32.mrf.mxu1 }
 0x18f   : > { %5322 = vmatpush3.msra.mxu1 %v4280_v47  ;;  %5288 = vmatprep.subr.mxu0 %v4247_v50  ;;  %v1616_v49 = vadd.f32 %v4678_v44, %v3042_v45  ;;  %v4713_v50 = vadd.f32 %v4712_v46, %v4711_v41 }
 0x190   : > { %5323 = vmatprep.subr.mxu1 %v4311_v51  ;;  %5289 = vmatpush3.msra.mxu0 %v4215_v54  ;;  %v4781_v47 = vpop.f32.mrf.mxu1  ;;  %v4747_v48 = vpop.f32.mrf.mxu0 }
 0x191   : > { %5324 = vmatpush3.msra.mxu1 %v4279_v55  ;;  %5290 = vmatprep.subr.mxu0 %v4244_v56  ;;  %v4748_v52 = vadd.f32 %v4747_v48, %v4746_v43  ;;  %v1686_v54 = vadd.f32 %v4713_v50, %v1616_v49 }
 0x192   : > { %5325 = vmatprep.subr.mxu1 %v4308_v57  ;;  %5291 = vmatpush3.msra.mxu0 %v4212_v58  ;;  %v4816_v51 = vpop.f32.mrf.mxu0  ;;  %v4782_v53 = vpop.f32.mrf.mxu1 }
 0x193   : > { %5326 = vmatpush3.msra.mxu1 %v4276_v59  ;;  %5292 = vmatprep.subr.mxu0 %v4243_v62  ;;  %v1756_v57 = vadd.f32 %v4748_v52, %v1686_v54  ;;  %v4783_v58 = vadd.f32 %v4782_v53, %v4781_v47 }
 0x194   : > { %5327 = vmatprep.subr.mxu1 %v4307_v63  ;;  %5293 = vmatpush3.msra.mxu0 %v4211_v2  ;;  %v4851_v55 = vpop.f32.mrf.mxu1  ;;  %v4817_v56 = vpop.f32.mrf.mxu0 }
 0x195   : > { %5328 = vmatpush3.msra.mxu1 %v4275_v3  ;;  %5294 = vmatprep.subr.mxu0 %v4240_v4  ;;  %v4818_v60 = vadd.f32 %v4817_v56, %v4816_v51  ;;  %v1826_v62 = vadd.f32 %v4783_v58, %v1756_v57 }
 0x196   : > { %5329 = vmatprep.subr.mxu1 %v4304_v5  ;;  %5295 = vmatpush3.msra.mxu0 %v4208_v6  ;;  %v4886_v59 = vpop.f32.mrf.mxu0  ;;  %v4852_v61 = vpop.f32.mrf.mxu1 }
 0x197   : > { %5330 = vmatpush3.msra.mxu1 %v4272_v7  ;;  %5296 = vmatprep.subr.mxu0 %v4239_v10  ;;  %v1896_v1 = vadd.f32 %v4818_v60, %v1826_v62  ;;  %v4853_v2 = vadd.f32 %v4852_v61, %v4851_v55 }
 0x198   : > { %5331 = vmatprep.subr.mxu1 %v4303_v11  ;;  %5297 = vmatpush3.msra.mxu0 %v4207_v14  ;;  %v4921_v63 = vpop.f32.mrf.mxu1  ;;  %v4887_v0 = vpop.f32.mrf.mxu0 }
 0x199   : > { %5332 = vmatpush3.msra.mxu1 %v4271_v15  ;;  %5298 = vmatprep.subr.mxu0 %v4236_v16  ;;  %v4888_v4 = vadd.f32 %v4887_v0, %v4886_v59  ;;  %v1966_v6 = vadd.f32 %v4853_v2, %v1896_v1 }
 0x19a   : > { %5333 = vmatprep.subr.mxu1 %v4300_v17  ;;  %5299 = vmatpush3.msra.mxu0 %v4204_v18  ;;  %v4922_v5 = vpop.f32.mrf.mxu1 }
 0x19b   : > { %5334 = vmatpush3.msra.mxu1 %v4268_v19  ;;  %5300 = vmatprep.subr.mxu0 %v4235_v22  ;;  %v2036_v9 = vadd.f32 %v4888_v4, %v1966_v6  ;;  %v4923_v10 = vadd.f32 %v4922_v5, %v4921_v63 }
 0x19c   : > { %5335 = vmatprep.subr.mxu1 %v4299_v23  ;;  %5301 = vmatpush3.msra.mxu0 %v4203_v26 }
 0x19d   : > { %5336 = vmatpush3.msra.mxu1 %v4267_v27  ;;  %5302 = vmatprep.subr.mxu0 %v4232_v28  ;;  %v2106_v14 = vadd.f32 %v4923_v10, %v2036_v9 }
 0x19e   : > { %5337 = vmatprep.subr.mxu1 %v4296_v29  ;;  %5303 = vmatpush3.msra.mxu0 %v4200_v30 }
 0x19f   : > { %5338 = vmatpush3.msra.mxu1 %v4264_v31  ;;  %5304 = vmatprep.subr.mxu0 %v4231_v32 }
 0x1a0   : > { %5339 = vmatprep.subr.mxu1 %v4295_v33  ;;  %5305 = vmatpush3.msra.mxu0 %v4199_v34 }
 0x1a1   : > { %2873 = vmatprep.mubr.f32.mxu0 %v259_v35  ;;  %5340 = vmatpush3.msra.mxu1 %v4263_v36 }
 0x1a2   : > { %2943 = vmatprep.mubr.f32.mxu1 %v261_v37  ;;  %2874 = vmatmul.mubr.f32.vlgmr.msra.gmra.mxu0 %v258_v38 }
 0x1a3   : > { %2944 = vmatmul.mubr.f32.vlgmr.msra.gmra.mxu1 %v260_v39 }
 0x1b8   : > { %v4956_v3 = vpop.f32.mrf.mxu0 }
 0x1ba   : > { %v4991_v7 = vpop.f32.mrf.mxu1  ;;  %v4957_v8 = vpop.f32.mrf.mxu0 }
 0x1bb   : > { %v4958_v12 = vadd.f32 %v4957_v8, %v4956_v3 }
 0x1bc   : > { %v4992_v13 = vpop.f32.mrf.mxu1 }
 0x1bd   : > { %v2176_v17 = vadd.f32 %v4958_v12, %v2106_v14  ;;  %v4993_v18 = vadd.f32 %v4992_v13, %v4991_v7 }
 0x1bf   : > { %v2246_v22 = vadd.f32 %v4993_v18, %v2176_v17 }
 0x1da   : > { %v5026_v11 = vpop.f32.mrf.mxu0 }
 0x1dc   : > { %v5061_v15 = vpop.f32.mrf.mxu1  ;;  %v5027_v16 = vpop.f32.mrf.mxu0 }
 0x1dd   : > { %v5028_v20 = vadd.f32 %v5027_v16, %v5026_v11 }
 0x1de   : > { %v5062_v21 = vpop.f32.mrf.mxu1 }
 0x1df   : > { %v2316_v25 = vadd.f32 %v5028_v20, %v2246_v22  ;;  %v5063_v26 = vadd.f32 %v5062_v21, %v5061_v15 }
 0x1e1   : > { %v2386_v30 = vadd.f32 %v5063_v26, %v2316_v25 }
 0x1fc   : > { %v5096_v19 = vpop.f32.mrf.mxu0 }
 0x1fe   : > { %v5131_v23 = vpop.f32.mrf.mxu1  ;;  %v5097_v24 = vpop.f32.mrf.mxu0 }
 0x1ff   : > { %v5098_v28 = vadd.f32 %v5097_v24, %v5096_v19 }
 0x200   : > { %v5132_v29 = vpop.f32.mrf.mxu1 }
 0x201   : > { %v2456_v33 = vadd.f32 %v5098_v28, %v2386_v30  ;;  %v5133_v34 = vadd.f32 %v5132_v29, %v5131_v23 }
 0x203   : > { %v2526_v38 = vadd.f32 %v5133_v34, %v2456_v33 }
 0x21e   : > { %v5166_v27 = vpop.f32.mrf.mxu0 }
 0x220   : > { %v5201_v31 = vpop.f32.mrf.mxu1  ;;  %v5167_v32 = vpop.f32.mrf.mxu0 }
 0x221   : > { %v5168_v36 = vadd.f32 %v5167_v32, %v5166_v27 }
 0x222   : > { %v5202_v37 = vpop.f32.mrf.mxu1 }
 0x223   : > { %v2596_v41 = vadd.f32 %v5168_v36, %v2526_v38  ;;  %v5203_v42 = vadd.f32 %v5202_v37, %v5201_v31 }
 0x225   : > { %v2666_v45 = vadd.f32 %v5203_v42, %v2596_v41 }
 0x240   : > { %v5236_v35 = vpop.f32.mrf.mxu0 }
 0x242   : > { %v5271_v39 = vpop.f32.mrf.mxu1  ;;  %v5237_v40 = vpop.f32.mrf.mxu0 }
 0x243   : > { %v5238_v43 = vadd.f32 %v5237_v40, %v5236_v35 }
 0x244   : > { %v5272_v44 = vpop.f32.mrf.mxu1 }
 0x245   : > { %v2736_v46 = vadd.f32 %v5238_v43, %v2666_v45  ;;  %v5273_v47 = vadd.f32 %v5272_v44, %v5271_v39 }
 0x247   : > { %v2806_v52 = vadd.f32 %v5273_v47, %v2736_v46 }
 0x262   : > { %v5306_v48 = vpop.f32.mrf.mxu0 }
 0x263   : > { %v5341_v49 = vpop.f32.mrf.mxu1 }
 0x264   : > { %v5307_v50 = vpop.f32.mrf.mxu0 }
 0x265   : > { %v5342_v51 = vpop.f32.mrf.mxu1  ;;  %v5308_v53 = vadd.f32 %v5307_v50, %v5306_v48 }
 0x266   : > { %v5343_v55 = vadd.f32 %v5342_v51, %v5341_v49 }
 0x267   : > { %v2876_v54 = vadd.f32 %v5308_v53, %v2806_v52 }
 0x269   : > { %v2946_v56 = vadd.f32 %v5343_v55, %v2876_v54 }
 0x26b   : > { %2949 = vst [vmem:[%s221_s9] sm:$0xff] %v2946_v56 }
 0x26c PF: > { %p16_p8 = scmp.ge.s32.totalorder %s5536_s17, 7   ;;  %s6118_s12 = smov %s5479_s13 }
 0x26d   : > { %s6119_s13 = smov %s5483_s14  ;;  %s6120_s14 = smov %s5546_s20 }
 0x26e   : > { %s6121_s15 = smov %s5536_s17  ;;  %18 = sbr.rel (!%p16_p8) target bundleno = 5 (0x5), region = 85 }
 0x273   :  { %2969 = vsyncpa [#allocation3], 1 }
 0x274   :  { %2971 = vsyncpa [#allocation3 + $0x1], 1 }
 0x275   :  { %2972 = vsyncpa [#allocation5], 1 }
 0x276   :  { %2974 = vsyncpa [#allocation5 + $0x1], 1 }

// kernel: generator_forward.3
= control target key start
LH: loop header
LB: loop body
LE: loop exit
PB: predicated region body
PF: predicated region fallthrough
CT: control target
= control target key end

     0   :  { %s8252_s18 = smov 0   ;;  %s14017_s0 = inlined_call_operand.vmem [shape: f32[80,64], index: 0, kind: input, shape index: {}]   ;;  %s14018_s1 = inlined_call_operand.vmem [shape: f32[6,3,64,64], index: 1, kind: input, shape index: {}]   ;;  %s14019_s2 = inlined_call_operand.vmem [shape: f32[6,1,64], index: 2, kind: input, shape index: {}]   ;;  %s14020_s3 = inlined_call_operand.vmem [shape: f32[64,5120], index: 3, kind: input, shape index: {}]   ;;  %s14021_s4 = inlined_call_operand.vmem [shape: f32[1,5120], index: 4, kind: input, shape index: {}]   ;;  %s14022_s5 = inlined_call_operand.vmem [shape: f32[80,5000], index: 5, kind: output, shape index: {}]  }
   0x1 LB: > { %s6659_s19 = sadd.s32 4294967295, %s8218_s18   ;;  %p6663_p0 = scmp.ge.s32.totalorder %s8218_s18, 1  ;;  %s8218_s18 = sphi %s8252_s18, %s15_s18  }
   0x2   : > { %p188_p1 = scmp.lt.s32.totalorder %s8218_s18, 3 }
   0x4   : > { %p189_p2 = pnand %p6663_p0, %p188_p1 }
   0x6   : > { %192 = sbr.rel (%p189_p2) target bundleno = 2368 (0x940), region = 40 }
   0xb   : > { %v351_v0 = vld [vmem:[%s14018_s1 + $0x78] sm:$0xff]  ;;  %s217_s24 = smul.u32 5, %s6659_s19  ;;  %v235_v2 = vlaneseq  ;;  %v8220_v3 = vmov 0.0   ;;  %v350_v4 = vld [vmem:[%s14018_s1 + $0x70] sm:$0xff]  ;;  %v349_v7 = vld [vmem:[%s14018_s1 + $0x68] sm:$0xff]  ;;  %vm413_vm1 = vcmask 523264  }
   0xc   : > { %v343_v1 = vld [vmem:[%s14018_s1 + $0x38] sm:$0xff]  ;;  %7223 = vmatprep.subr.mxu0 %v8220_v3  ;;  %7254 = vmatprep.subr.mxu1 %v8220_v3  ;;  %v342_v5 = vld [vmem:[%s14018_s1 + $0x30] sm:$0xff]  ;;  %v341_v8 = vld [vmem:[%s14018_s1 + $0x28] sm:$0xff]  ;;  %vm8221_vm2 = vmmov 0  }
   0xd   : > { %7224 = vmatpush3.msra.mxu0 %v351_v0  ;;  %7255 = vmatpush3.msra.mxu1 %v343_v1  ;;  %p218_p3 = scmp.lt.s32.totalorder %s217_s24, 9  ;;  %v8274_v6 = vshrl.u32 %v235_v2, 7  ;;  %v348_v11 = vld [vmem:[%s14018_s1 + $0x60] sm:$0xff]  ;;  %v347_v15 = vld [vmem:[%s14018_s1 + $0x58] sm:$0xff]  ;;  %v346_v17 = vld [vmem:[%s14018_s1 + $0x50] sm:$0xff] }
   0xe   : > { %7225 = vmatprep.subr.mxu0 %v8220_v3  ;;  %7256 = vmatprep.subr.mxu1 %v8220_v3  ;;  %v340_v12 = vld [vmem:[%s14018_s1 + $0x20] sm:$0xff]  ;;  %v339_v18 = vld [vmem:[%s14018_s1 + $0x18] sm:$0xff]  ;;  %v338_v29 = vld [vmem:[%s14018_s1 + $0x10] sm:$0xff] }
   0xf   : > { %7226 = vmatpush3.msra.mxu0 %v350_v4  ;;  %7257 = vmatpush3.msra.mxu1 %v342_v5  ;;  %s15081_s24 = smov (!%p218_p3, %s217_s24), 9  ;;  %v8287_v9 = vmul.u32.u64.low 3435973837, %v8274_v6  ;;  %v8288_v10 = vmul.u32.u64.high 3435973837, %v8274_v6, %v8287_v9  ;;  %v8299_v13 = vadd.s32 8, %v8274_v6  ;;  %v8302_v14 = vadd.s32 16, %v8274_v6  ;;  %v345_v36 = vld [vmem:[%s14018_s1 + $0x48] sm:$0xff] }
  0x10   : > { %7227 = vmatprep.subr.mxu0 %v8220_v3  ;;  %7258 = vmatprep.subr.mxu1 %v8220_v3  ;;  %s6664_s14 = sshll.u32 %s15081_s24, 3  ;;  %v8309_v16 = vadd.s32 24, %v8274_v6  ;;  %vm366_vm0 = vcmp.lt.s32.totalorder %v8274_v6, 1  ;;  %v337_v40 = vld [vmem:[%s14018_s1 + $0x8] sm:$0xff]  ;;  %v344_v45 = vld [vmem:[%s14018_s1 + $0x40] sm:$0xff]  ;;  %v8397_v54 = vadd.s32 32, %v8274_v6 }
  0x11   : > { %7228 = vmatpush3.msra.mxu0 %v349_v7  ;;  %7259 = vmatpush3.msra.mxu1 %v341_v8  ;;  %s221_s22 = scalar_lea.vmem %s14017_s0, %s6664_s14  ;;  %v8323_v19 = vmul.u32.u64.low 3435973837, %v8299_v13  ;;  %v8324_v20 = vmul.u32.u64.high 3435973837, %v8299_v13, %v8323_v19  ;;  %v8327_v21 = vmul.u32.u64.low 3435973837, %v8302_v14  ;;  %v8328_v22 = vmul.u32.u64.high 3435973837, %v8302_v14, %v8327_v21  ;;  %v336_v50 = vld [vmem:[%s14018_s1] sm:$0xff]  ;;  %v359_v55 = vld [vmem:[%s14018_s1 + $0xb8] sm:$0xff] }
  0x12   : > { %7229 = vmatprep.subr.mxu0 %v8220_v3  ;;  %7260 = vmatprep.subr.mxu1 %v8220_v3  ;;  %v8330_v23 = vld [vmem:[%s221_s22] sm:$0xff]  ;;  %v247_v25 = vshrl.u32 %v8288_v10, 3  ;;  %v8335_v26 = vld [vmem:[%s221_s22 + $0x8] sm:$0xff]  ;;  %v8338_v27 = vmul.u32.u64.low 3435973837, %v8309_v16  ;;  %v8339_v28 = vmul.u32.u64.high 3435973837, %v8309_v16, %v8338_v27  ;;  %v8355_v33 = vld [vmem:[%s221_s22 + $0x10] sm:$0xff] }
  0x13   : > { %7230 = vmatpush3.msra.mxu0 %v348_v11  ;;  %7261 = vmatpush3.msra.mxu1 %v340_v12  ;;  %v8332_v24 = vld [vmem:[%s221_s22 + $0x20] sm:$0xff]  ;;  %v8347_v30 = vmax.f32 %v8330_v23, 0.0  ;;  %v8353_v32 = vmax.f32 %v8335_v26, 0.0  ;;  %v8357_v34 = vld [vmem:[%s221_s22 + $0x18] sm:$0xff]  ;;  %v8368_v39 = vmax.f32 %v8355_v33, 0.0  ;;  %v258_v42 = vshrl.u32 %v8324_v20, 3 }
  0x14   : > { %7231 = vmatprep.subr.mxu0 %v8220_v3  ;;  %7262 = vmatprep.subr.mxu1 %v8220_v3  ;;  %v8350_v31 = vmax.f32 %v8332_v24, 0.0  ;;  %v248_v35 = vmul.u32 10, %v247_v25  ;;  %v269_v43 = vshrl.u32 %v8328_v22, 3  ;;  %v8377_v44 = vmax.f32 %v8357_v34, 0.0  ;;  %v358_v1 = vld [vmem:[%s14018_s1 + $0xb0] sm:$0xff]  ;;  %v357_v8 = vld [vmem:[%s14018_s1 + $0xa8] sm:$0xff] }
  0x15   : > { %7232 = vmatpush3.msra.mxu0 %v347_v15  ;;  %7263 = vmatpush3.msra.mxu1 %v339_v18  ;;  %v361_v37 = vrot.slane %v8347_v30, 7  ;;  %v362_v46 = vrot.slane %v8353_v32, 7  ;;  %v280_v47 = vshrl.u32 %v8339_v28, 3  ;;  %v259_v49 = vmul.u32 10, %v258_v42  ;;  %v354_v21 = vld [vmem:[%s14018_s1 + $0x90] sm:$0xff]  ;;  %v353_v27 = vld [vmem:[%s14018_s1 + $0x88] sm:$0xff] }
  0x16   : > { %7233 = vmatprep.subr.mxu0 %v8220_v3  ;;  %7264 = vmatprep.subr.mxu1 %v8220_v3  ;;  %v365_v38 = vrot.slane %v8350_v31, 7  ;;  %v249_v41 = vsub.s32 %v8274_v6, %v248_v35  ;;  %v270_v52 = vmul.u32 10, %v269_v43  ;;  %v363_v58 = vrot.slane %v8368_v39, 7  ;;  %s7781_s7 = smul.u32 320, %s15081_s24 }
  0x17   : > { %7234 = vmatpush3.msra.mxu0 %v346_v17  ;;  %7265 = vmatpush3.msra.mxu1 %v338_v29  ;;  %v281_v53 = vmul.u32 10, %v280_v47  ;;  %v260_v57 = vsub.s32 %v8299_v13, %v259_v49  ;;  %v364_v59 = vrot.slane %v8377_v44, 7  ;;  %v370_v60 = vsel %vm366_vm0, %v361_v37, %v362_v46  ;;  %v6697_v49 = vld [vmem:[%s14018_s1 + $0x138] sm:$0xff] }
  0x18   : > { %7235 = vmatprep.subr.mxu0 %v8220_v3  ;;  %7266 = vmatprep.subr.mxu1 %v8220_v3  ;;  %vm296_vm3 = vcmp.ne.s32.totalorder %v249_v41, 0  ;;  %vm301_vm4 = vcmp.lt.s32.totalorder %v249_v41, 0  ;;  %v311_v48 = vadd.s32 10, %v249_v41  ;;  %v371_v51 = vsel %vm366_vm0, %v365_v38, %v361_v37  ;;  %s13389_s10 = scalar_lea.vmem %s14022_s5, %s7781_s7 }
  0x19   : > { %7236 = vmatpush3.msra.mxu0 %v345_v36  ;;  %7239 = vmatprep.mubr.msk.f32.mxu0 %vm8221_vm2, %v8220_v3  ;;  %vm306_vm5 = vmand %vm301_vm4, %vm296_vm3  ;;  %v271_v61 = vsub.s32 %v8302_v14, %v270_v52  ;;  %v282_v62 = vsub.s32 %v8309_v16, %v281_v53  ;;  %vm297_vm7 = vcmp.ne.s32.totalorder %v260_v57, 0  ;;  %vm302_vm8 = vcmp.lt.s32.totalorder %v260_v57, 0  ;;  %v356_v14 = vld [vmem:[%s14018_s1 + $0xa0] sm:$0xff]  ;;  %v355_v16 = vld [vmem:[%s14018_s1 + $0x98] sm:$0xff] }
  0x1a   : > { %7237 = vmatprep.subr.mxu0 %v8220_v3  ;;  %7267 = vmatpush3.msra.mxu1 %v337_v40  ;;  %v8403_v56 = vsel %vm306_vm5, %v311_v48, %v249_v41  ;;  %v312_v0 = vadd.s32 10, %v260_v57  ;;  %vm307_vm9 = vmand %vm302_vm8, %vm297_vm7  ;;  %v369_v5 = vsel %vm366_vm0, %v362_v46, %v363_v58  ;;  %v368_v17 = vsel %vm366_vm0, %v363_v58, %v364_v59  ;;  %v6694_v52 = vld [vmem:[%s14018_s1 + $0x120] sm:$0xff]  ;;  %v6693_v53 = vld [vmem:[%s14018_s1 + $0x118] sm:$0xff] }
  0x1b   : > { %7238 = vmatpush3.msra.mxu0 %v344_v45  ;;  %7268 = vmatprep.subr.mxu1 %v8220_v3  ;;  %vm321_vm6 = vcmp.ne.s32.totalorder %v8403_v56, 0  ;;  %vm298_vm10 = vcmp.ne.s32.totalorder %v271_v61, 0  ;;  %vm303_vm11 = vcmp.lt.s32.totalorder %v271_v61, 0  ;;  %v313_v2 = vadd.s32 10, %v271_v61  ;;  %v6689_v58 = vld [vmem:[%s14018_s1 + $0xf8] sm:$0xff] }
  0x1c   : > { %7240 = vmatmul.mubr.msk.f32.vlgmr.msra.gmra.mxu0 %vm413_vm1, %v8347_v30  ;;  %7285 = vmatprep.subr.mxu0 %v8220_v3  ;;  %v382_v63 = vsel %vm321_vm6, %v371_v51, 0.0  ;;  %vm299_vm12 = vcmp.ne.s32.totalorder %v282_v62, 0  ;;  %v8427_v4 = vsel %vm307_vm9, %v312_v0, %v260_v57  ;;  %vm308_vm13 = vmand %vm303_vm11, %vm298_vm10  ;;  %vm304_vm14 = vcmp.lt.s32.totalorder %v282_v62, 0  ;;  %v6695_v51 = vld [vmem:[%s14018_s1 + $0x128] sm:$0xff]  ;;  %v6690_v57 = vld [vmem:[%s14018_s1 + $0x100] sm:$0xff] }
  0x1d   : > { %7269 = vmatpush3.msra.mxu1 %v336_v50  ;;  %7270 = vmatprep.mubr.msk.f32.mxu1 %vm8221_vm2, %v8220_v3  ;;  %v314_v7 = vadd.s32 10, %v282_v62  ;;  %vm322_vm15 = vcmp.ne.s32.totalorder %v8427_v4, 0  ;;  %v8439_v9 = vsel %vm308_vm13, %v313_v2, %v271_v61  ;;  %vm309_vm3 = vmand %vm304_vm14, %vm299_vm12  ;;  %v387_v19 = vrot.slane %v8347_v30, 1  ;;  %v6696_v50 = vld [vmem:[%s14018_s1 + $0x130] sm:$0xff]  ;;  %v6686_v61 = vld [vmem:[%s14018_s1 + $0xe0] sm:$0xff] }
  0x1e   : > { %7286 = vmatpush3.msra.mxu0 %v359_v55  ;;  %7271 = vmatmul.mubr.msk.f32.vlgmr.msra.gmra.mxu1 %vm413_vm1, %v382_v63  ;;  %v8442_v10 = vmul.u32.u64.low 3435973837, %v8397_v54  ;;  %v8443_v11 = vmul.u32.u64.high 3435973837, %v8397_v54, %v8442_v10  ;;  %v383_v12 = vsel %vm322_vm15, %v370_v60, 0.0  ;;  %vm323_vm4 = vcmp.ne.s32.totalorder %v8439_v9, 0  ;;  %v6691_v55 = vld [vmem:[%s14018_s1 + $0x108] sm:$0xff]  ;;  %v6684_v63 = vld [vmem:[%s14018_s1 + $0xd0] sm:$0xff] }
  0x1f   : > { %7242 = vmatprep.mubr.msk.f32.mxu0 %vm8221_vm2, %v8220_v3  ;;  %7287 = vmatprep.subr.mxu0 %v8220_v3  ;;  %v8450_v13 = vsel %vm309_vm3, %v314_v7, %v282_v62  ;;  %v384_v15 = vsel %vm323_vm4, %v369_v5, 0.0  ;;  %v388_v20 = vrot.slane %v8353_v32, 1  ;;  %vm392_vm7 = vcmp.lt.s32.totalorder %v8274_v6, 7  ;;  %v6687_v60 = vld [vmem:[%s14018_s1 + $0xe8] sm:$0xff]  ;;  %v6685_v62 = vld [vmem:[%s14018_s1 + $0xd8] sm:$0xff] }
  0x20   : > { %7243 = vmatmul.mubr.msk.f32.gmra.mxu0 %vm413_vm1, %v8353_v32  ;;  %7273 = vmatprep.mubr.msk.f32.mxu1 %vm8221_vm2, %v8220_v3  ;;  %vm324_vm5 = vcmp.ne.s32.totalorder %v8450_v13, 0  ;;  %v291_v18 = vshrl.u32 %v8443_v11, 3  ;;  %vm326_vm8 = vcmp.ne.s32.totalorder %v8403_v56, 9  ;;  %v389_v29 = vrot.slane %v8368_v39, 1  ;;  %v352_v32 = vld [vmem:[%s14018_s1 + $0x80] sm:$0xff]  ;;  %v6683_v0 = vld [vmem:[%s14018_s1 + $0xc8] sm:$0xff] }
  0x21   : > { %7288 = vmatpush3.msra.mxu0 %v358_v1  ;;  %7245 = vmatprep.mubr.msk.f32.mxu0 %vm8221_vm2, %v8220_v3  ;;  %v385_v25 = vsel %vm324_vm5, %v368_v17, 0.0  ;;  %v396_v35 = vsel %vm392_vm7, %v387_v19, %v388_v20  ;;  %v367_v36 = vsel %vm366_vm0, %v364_v59, %v365_v38  ;;  %vm327_vm13 = vcmp.ne.s32.totalorder %v8427_v4, 9  ;;  %v6688_v59 = vld [vmem:[%s14018_s1 + $0xf0] sm:$0xff]  ;;  %v6682_v1 = vld [vmem:[%s14018_s1 + $0xc0] sm:$0xff] }
  0x22   : > { %7289 = vmatprep.subr.mxu0 %v8220_v3  ;;  %7274 = vmatmul.mubr.msk.f32.gmra.mxu1 %vm413_vm1, %v383_v12  ;;  %v292_v22 = vmul.u32 10, %v291_v18  ;;  %v395_v38 = vsel %vm392_vm7, %v388_v20, %v389_v29  ;;  %v390_v41 = vrot.slane %v8377_v44, 1  ;;  %vm328_vm14 = vcmp.ne.s32.totalorder %v8439_v9, 9 }
  0x23   : > { %7290 = vmatpush3.msra.mxu0 %v357_v8  ;;  %7276 = vmatprep.mubr.msk.f32.mxu1 %vm8221_vm2, %v8220_v3  ;;  %v409_v42 = vsel %vm327_vm13, %v395_v38, 0.0  ;;  %vm329_vm3 = vcmp.ne.s32.totalorder %v8450_v13, 9 }
  0x24   : > { %7246 = vmatmul.mubr.msk.f32.gmra.mxu0 %vm413_vm1, %v8368_v39  ;;  %7291 = vmatprep.subr.mxu0 %v8220_v3  ;;  %v293_v28 = vsub.s32 %v8397_v54, %v292_v22  ;;  %v408_v39 = vsel %vm326_vm8, %v396_v35, 0.0  ;;  %v394_v43 = vsel %vm392_vm7, %v389_v29, %v390_v41  ;;  %v6692_v54 = vld [vmem:[%s14018_s1 + $0x110] sm:$0xff] }
  0x25   : > { %7292 = vmatpush3.msra.mxu0 %v356_v14  ;;  %7248 = vmatprep.mubr.msk.f32.mxu0 %vm8221_vm2, %v8220_v3  ;;  %v410_v45 = vsel %vm328_vm14, %v394_v43, 0.0 }
  0x26   : > { %7277 = vmatmul.mubr.msk.f32.gmra.mxu1 %vm413_vm1, %v384_v15  ;;  %7293 = vmatprep.subr.mxu0 %v8220_v3  ;;  %vm300_vm9 = vcmp.ne.s32.totalorder %v293_v28, 0  ;;  %vm305_vm10 = vcmp.lt.s32.totalorder %v293_v28, 0  ;;  %v315_v30 = vadd.s32 10, %v293_v28 }
  0x27   : > { %7294 = vmatpush3.msra.mxu0 %v355_v16  ;;  %7279 = vmatprep.mubr.msk.f32.mxu1 %vm8221_vm2, %v8220_v3  ;;  %vm310_vm11 = vmand %vm305_vm10, %vm300_vm9 }
  0x28   : > { %7249 = vmatmul.mubr.msk.f32.gmra.mxu0 %vm413_vm1, %v8377_v44  ;;  %7295 = vmatprep.subr.mxu0 %v8220_v3  ;;  %v8515_v37 = vsel %vm310_vm11, %v315_v30, %v293_v28  ;;  %v391_v44 = vrot.slane %v8350_v31, 1  ;;  %v6681_v30 = vld [vmem:[%s14019_s2] ss:$0 sm:$0xff] }
  0x29   : > { %7296 = vmatpush3.msra.mxu0 %v354_v21  ;;  %7251 = vmatprep.mubr.msk.f32.mxu0 %vm8221_vm2, %v8220_v3  ;;  %vm325_vm12 = vcmp.ne.s32.totalorder %v8515_v37, 0  ;;  %vm330_vm9 = vcmp.ne.s32.totalorder %v8515_v37, 9  ;;  %v2981_v37 = vld [vmem:[%s14020_s3 + $0x788] sm:$0xff] }
  0x2a   : > { %7280 = vmatmul.mubr.msk.f32.gmra.mxu1 %vm413_vm1, %v385_v25  ;;  %7297 = vmatprep.subr.mxu0 %v8220_v3  ;;  %v386_v40 = vsel %vm325_vm12, %v367_v36, 0.0  ;;  %v393_v46 = vsel %vm392_vm7, %v390_v41, %v391_v44  ;;  %v397_v47 = vsel %vm392_vm7, %v391_v44, %v387_v19  ;;  %v6705_v44 = vld [vmem:[%s14018_s1 + $0x178] sm:$0xff] }
  0x2b   : > { %7298 = vmatpush3.msra.mxu0 %v353_v27  ;;  %7282 = vmatprep.mubr.msk.f32.mxu1 %vm8221_vm2, %v8220_v3  ;;  %v412_v48 = vsel %vm330_vm9, %v397_v47, 0.0  ;;  %v6704_v47 = vld [vmem:[%s14018_s1 + $0x170] sm:$0xff] }
  0x2c   : > { %7252 = vmatmul.mubr.msk.f32.gmra.mxu0 %vm413_vm1, %v8350_v31  ;;  %7299 = vmatprep.subr.mxu0 %v8220_v3  ;;  %v411_v31 = vsel %vm329_vm3, %v393_v46, 0.0 }
  0x2d   : > { %7300 = vmatpush3.msra.mxu0 %v352_v32  ;;  %7301 = vmatprep.mubr.msk.f32.mxu0 %vm8221_vm2, %v8220_v3 }
  0x2e   : > { %7316 = vmatprep.subr.mxu1 %v8220_v3  ;;  %7347 = vmatprep.subr.mxu0 %v8220_v3 }
  0x2f   : > { %7283 = vmatmul.mubr.msk.f32.gmra.mxu1 %vm413_vm1, %v386_v40 }
  0x30   : > { %7302 = vmatmul.mubr.msk.f32.vlgmr.msra.gmra.mxu0 %vm413_vm1, %v408_v39  ;;  %7332 = vmatprep.mubr.msk.f32.mxu1 %vm8221_vm2, %v8220_v3 }
  0x31   : > { %7304 = vmatprep.mubr.msk.f32.mxu0 %vm8221_vm2, %v8220_v3  ;;  %7317 = vmatpush3.msra.mxu1 %v6697_v49 }
  0x32   : > { %7318 = vmatprep.subr.mxu1 %v8220_v3  ;;  %7348 = vmatpush3.msra.mxu0 %v6689_v58 }
  0x33   : > { %7319 = vmatpush3.msra.mxu1 %v6696_v50  ;;  %7349 = vmatprep.subr.mxu0 %v8220_v3 }
  0x34   : > { %7305 = vmatmul.mubr.msk.f32.gmra.mxu0 %vm413_vm1, %v409_v42  ;;  %7320 = vmatprep.subr.mxu1 %v8220_v3 }
  0x35   : > { %7307 = vmatprep.mubr.msk.f32.mxu0 %vm8221_vm2, %v8220_v3  ;;  %7321 = vmatpush3.msra.mxu1 %v6695_v51  ;;  %v6703_v51 = vld [vmem:[%s14018_s1 + $0x168] sm:$0xff] }
  0x36   : > { %7322 = vmatprep.subr.mxu1 %v8220_v3  ;;  %7350 = vmatpush3.msra.mxu0 %v6688_v59 }
  0x37   : > { %7323 = vmatpush3.msra.mxu1 %v6694_v52  ;;  %7351 = vmatprep.subr.mxu0 %v8220_v3 }
  0x38   : > { %7308 = vmatmul.mubr.msk.f32.gmra.mxu0 %vm413_vm1, %v410_v45  ;;  %7324 = vmatprep.subr.mxu1 %v8220_v3 }
  0x39   : > { %7310 = vmatprep.mubr.msk.f32.mxu0 %vm8221_vm2, %v8220_v3  ;;  %7325 = vmatpush3.msra.mxu1 %v6693_v53 }
  0x3a   : > { %7326 = vmatprep.subr.mxu1 %v8220_v3  ;;  %7352 = vmatpush3.msra.mxu0 %v6687_v60  ;;  %v6701_v60 = vld [vmem:[%s14018_s1 + $0x158] sm:$0xff] }
  0x3b   : > { %7327 = vmatpush3.msra.mxu1 %v6692_v54  ;;  %7353 = vmatprep.subr.mxu0 %v8220_v3 }
  0x3c   : > { %7311 = vmatmul.mubr.msk.f32.gmra.mxu0 %vm413_vm1, %v411_v31  ;;  %7328 = vmatprep.subr.mxu1 %v8220_v3 }
  0x3d   : > { %7313 = vmatprep.mubr.msk.f32.mxu0 %vm8221_vm2, %v8220_v3  ;;  %7329 = vmatpush3.msra.mxu1 %v6691_v55  ;;  %v6702_v55 = vld [vmem:[%s14018_s1 + $0x160] sm:$0xff] }
  0x3e   : > { %7330 = vmatprep.subr.mxu1 %v8220_v3  ;;  %7354 = vmatpush3.msra.mxu0 %v6686_v61 }
  0x3f   : > { %7331 = vmatpush3.msra.mxu1 %v6690_v57  ;;  %7355 = vmatprep.subr.mxu0 %v8220_v3 }
  0x40   : > { %7314 = vmatmul.mubr.msk.f32.gmra.mxu0 %vm413_vm1, %v412_v48  ;;  %7378 = vmatprep.subr.mxu1 %v8220_v3 }
  0x41   : > { %7363 = vmatprep.mubr.msk.f32.mxu0 %vm8221_vm2, %v8220_v3  ;;  %7356 = vmatpush3.msra.mxu0 %v6685_v62 }
  0x42   : > { %7357 = vmatprep.subr.mxu0 %v8220_v3 }
  0x43   : > { %7358 = vmatpush3.msra.mxu0 %v6684_v63 }
  0x44   : > { %7359 = vmatprep.subr.mxu0 %v8220_v3 }
  0x45   : > { %7360 = vmatpush3.msra.mxu0 %v6683_v0  ;;  %v6700_v0 = vld [vmem:[%s14018_s1 + $0x150] sm:$0xff] }
  0x46   : > { %7361 = vmatprep.subr.mxu0 %v8220_v3 }
  0x47   : > { %7362 = vmatpush3.msra.mxu0 %v6682_v1 }
  0x48   : > { %7409 = vmatprep.subr.mxu0 %v8220_v3 }
  0xdc   : > { %v495_v2 = vpop.f32.mrf.mxu0 }
  0xde   : > { %v7241_v5 = vpop.f32.mrf.mxu0  ;;  %v600_v7 = vpop.f32.mrf.mxu1 }
  0xdf   : > { %v601_v28 = vadd.f32 %v600_v7, %v495_v2  ;;  %v6699_v7 = vld [vmem:[%s14018_s1 + $0x148] sm:$0xff] }
  0xe0   : > { %v500_v8 = vpop.f32.mrf.mxu0  ;;  %v7272_v10 = vpop.f32.mrf.mxu1 }
  0xe2   : > { %v7244_v11 = vpop.f32.mrf.mxu0  ;;  %v605_v12 = vpop.f32.mrf.mxu1 }
  0xe3   : > { %v606_v40 = vadd.f32 %v605_v12, %v500_v8  ;;  %v6698_v12 = vld [vmem:[%s14018_s1 + $0x140] sm:$0xff] }
  0xe4   : > { %v505_v14 = vpop.f32.mrf.mxu0  ;;  %v7275_v15 = vpop.f32.mrf.mxu1 }
  0xe6   : > { %v7247_v16 = vpop.f32.mrf.mxu0  ;;  %v610_v17 = vpop.f32.mrf.mxu1 }
  0xe7   : > { %v611_v46 = vadd.f32 %v610_v17, %v505_v14 }
  0xe8   : > { %v510_v18 = vpop.f32.mrf.mxu0  ;;  %v7278_v19 = vpop.f32.mrf.mxu1 }
  0xea   : > { %v7250_v20 = vpop.f32.mrf.mxu0  ;;  %v615_v21 = vpop.f32.mrf.mxu1 }
  0xeb   : > { %v616_v53 = vadd.f32 %v615_v21, %v510_v18 }
  0xec   : > { %v515_v22 = vpop.f32.mrf.mxu0  ;;  %v7281_v25 = vpop.f32.mrf.mxu1 }
  0xee   : > { %v7253_v27 = vpop.f32.mrf.mxu0 }
  0xef   : > { %v620_v29 = vpop.f32.mrf.mxu1 }
  0xf0   : > { %v705_v32 = vpop.f32.mrf.mxu0  ;;  %v621_v62 = vadd.f32 %v620_v29, %v515_v22 }
  0xf1   : > { %v729_v35 = vadd.f32 %v705_v32, %v601_v28  ;;  %v7284_v36 = vpop.f32.mrf.mxu1 }
  0xf2   : > { %v7303_v39 = vpop.f32.mrf.mxu0 }
  0xf3   : > { %v740_v38 = vadd.f32 %v6681_v30, %v729_v35 }
  0xf4   : > { %v710_v41 = vpop.f32.mrf.mxu0 }
  0xf5   : > { %v8634_v42 = vmax.f32 %v740_v38, 0.0  ;;  %v730_v43 = vadd.f32 %v710_v41, %v606_v40 }
  0xf6   : > { %v7306_v45 = vpop.f32.mrf.mxu0 }
  0xf7   : > { %v741_v31 = vadd.f32 %v6681_v30, %v730_v43  ;;  %7333 = vmatmul.mubr.msk.f32.vlgmr.msra.gmra.mxu1 %vm413_vm1, %v8634_v42  ;;  %v792_v14 = vrot.slane %v8634_v42, 1  ;;  %v777_v16 = vrot.slane %v8634_v42, 7 }
  0xf8   : > { %v715_v48 = vpop.f32.mrf.mxu0  ;;  %7335 = vmatprep.mubr.msk.f32.mxu1 %vm8221_vm2, %v8220_v3  ;;  %7379 = vmatpush3.msra.mxu1 %v6705_v44 }
  0xf9   : > { %v8646_v49 = vmax.f32 %v741_v31, 0.0  ;;  %v731_v50 = vadd.f32 %v715_v48, %v611_v46  ;;  %7380 = vmatprep.subr.mxu1 %v8220_v3 }
  0xfa   : > { %v7309_v52 = vpop.f32.mrf.mxu0  ;;  %7381 = vmatpush3.msra.mxu1 %v6704_v47 }
  0xfb   : > { %v742_v54 = vadd.f32 %v6681_v30, %v731_v50  ;;  %7336 = vmatmul.mubr.msk.f32.gmra.mxu1 %vm413_vm1, %v8646_v49  ;;  %7382 = vmatprep.subr.mxu1 %v8220_v3  ;;  %v793_v10 = vrot.slane %v8646_v49, 1  ;;  %v778_v17 = vrot.slane %v8646_v49, 7  ;;  %v6738_v50 = vld [vmem:[%s14018_s1 + $0x1f8] sm:$0xff]  ;;  %v6736_v52 = vld [vmem:[%s14018_s1 + $0x1e8] sm:$0xff] }
  0xfc   : > { %v720_v57 = vpop.f32.mrf.mxu0  ;;  %7338 = vmatprep.mubr.msk.f32.mxu1 %vm8221_vm2, %v8220_v3  ;;  %7383 = vmatpush3.msra.mxu1 %v6703_v51  ;;  %v6737_v51 = vld [vmem:[%s14018_s1 + $0x1f0] sm:$0xff] }
  0xfd   : > { %v8660_v58 = vmax.f32 %v742_v54, 0.0  ;;  %v732_v59 = vadd.f32 %v720_v57, %v616_v53  ;;  %7384 = vmatprep.subr.mxu1 %v8220_v3  ;;  %v800_v20 = vsel %vm392_vm7, %v792_v14, %v793_v10  ;;  %v785_v29 = vsel %vm366_vm0, %v777_v16, %v778_v17  ;;  %v6735_v53 = vld [vmem:[%s14018_s1 + $0x1e0] sm:$0xff]  ;;  %v6734_v54 = vld [vmem:[%s14018_s1 + $0x1d8] sm:$0xff]  ;;  %v6732_v57 = vld [vmem:[%s14018_s1 + $0x1c8] sm:$0xff] }
  0xfe   : > { %v7312_v61 = vpop.f32.mrf.mxu0  ;;  %7385 = vmatpush3.msra.mxu1 %v6702_v55  ;;  %v802_v25 = vsel %vm326_vm8, %v800_v20, 0.0  ;;  %v788_v32 = vsel %vm322_vm15, %v785_v29, 0.0  ;;  %v6733_v55 = vld [vmem:[%s14018_s1 + $0x1d0] sm:$0xff] }
  0xff   : > { %v743_v63 = vadd.f32 %v6681_v30, %v732_v59  ;;  %7339 = vmatmul.mubr.msk.f32.gmra.mxu1 %vm413_vm1, %v8660_v58  ;;  %7386 = vmatprep.subr.mxu1 %v8220_v3  ;;  %v794_v18 = vrot.slane %v8660_v58, 1  ;;  %v779_v27 = vrot.slane %v8660_v58, 7  ;;  %v6731_v58 = vld [vmem:[%s14018_s1 + $0x1c0] sm:$0xff]  ;;  %v6730_v59 = vld [vmem:[%s14018_s1 + $0x1b8] sm:$0xff]  ;;  %v6728_v61 = vld [vmem:[%s14018_s1 + $0x1a8] sm:$0xff] }
 0x100   : > { %v725_v1 = vpop.f32.mrf.mxu0  ;;  %7341 = vmatprep.mubr.msk.f32.mxu1 %vm8221_vm2, %v8220_v3  ;;  %7387 = vmatpush3.msra.mxu1 %v6701_v60  ;;  %v6729_v60 = vld [vmem:[%s14018_s1 + $0x1b0] sm:$0xff] }
 0x101   : > { %v748_v2 = vmax.f32 %v743_v63, 0.0  ;;  %v733_v5 = vadd.f32 %v725_v1, %v621_v62  ;;  %7388 = vmatprep.subr.mxu1 %v8220_v3  ;;  %v784_v40 = vsel %vm366_vm0, %v778_v17, %v779_v27  ;;  %v6727_v62 = vld [vmem:[%s14018_s1 + $0x1a0] sm:$0xff]  ;;  %v6726_v63 = vld [vmem:[%s14018_s1 + $0x198] sm:$0xff]  ;;  %v6724_v1 = vld [vmem:[%s14018_s1 + $0x188] sm:$0xff] }
 0x102   : > { %v7315_v8 = vpop.f32.mrf.mxu0  ;;  %7389 = vmatpush3.msra.mxu1 %v6700_v0  ;;  %v789_v41 = vsel %vm323_vm4, %v784_v40, 0.0  ;;  %v6725_v0 = vld [vmem:[%s14018_s1 + $0x190] sm:$0xff] }
 0x103   : > { %v744_v11 = vadd.f32 %v6681_v30, %v733_v5  ;;  %7342 = vmatmul.mubr.msk.f32.gmra.mxu1 %vm413_vm1, %v748_v2  ;;  %7390 = vmatprep.subr.mxu1 %v8220_v3  ;;  %v795_v28 = vrot.slane %v748_v2, 1  ;;  %v799_v30 = vsel %vm392_vm7, %v793_v10, %v794_v18  ;;  %v780_v36 = vrot.slane %v748_v2, 7  ;;  %v6723_v2 = vld [vmem:[%s14018_s1 + $0x180] sm:$0xff] }
 0x104   : > { %7344 = vmatprep.mubr.msk.f32.mxu1 %vm8221_vm2, %v8220_v3  ;;  %7391 = vmatpush3.msra.mxu1 %v6699_v7  ;;  %v803_v35 = vsel %vm327_vm13, %v799_v30, 0.0 }
 0x105   : > { %v749_v15 = vmax.f32 %v744_v11, 0.0  ;;  %7392 = vmatprep.subr.mxu1 %v8220_v3  ;;  %v798_v38 = vsel %vm392_vm7, %v794_v18, %v795_v28  ;;  %v783_v43 = vsel %vm366_vm0, %v779_v27, %v780_v36 }
 0x106   : > { %7393 = vmatpush3.msra.mxu1 %v6698_v12  ;;  %v804_v42 = vsel %vm328_vm14, %v798_v38, 0.0  ;;  %v790_v45 = vsel %vm324_vm5, %v783_v43, 0.0 }
 0x107   : > { %v781_v19 = vrot.slane %v749_v15, 7  ;;  %7345 = vmatmul.mubr.msk.f32.gmra.mxu1 %vm413_vm1, %v749_v15  ;;  %7440 = vmatprep.subr.mxu1 %v8220_v3  ;;  %v796_v39 = vrot.slane %v749_v15, 1 }
 0x108   : > { %7394 = vmatprep.mubr.msk.f32.mxu1 %vm8221_vm2, %v8220_v3 }
 0x109   : > { %v786_v21 = vsel %vm366_vm0, %v781_v19, %v777_v16  ;;  %v797_v44 = vsel %vm392_vm7, %v795_v28, %v796_v39  ;;  %v782_v31 = vsel %vm366_vm0, %v780_v36, %v781_v19  ;;  %v801_v47 = vsel %vm392_vm7, %v796_v39, %v792_v14 }
 0x10a   : > { %v787_v22 = vsel %vm321_vm6, %v786_v21, 0.0  ;;  %v805_v46 = vsel %vm329_vm3, %v797_v44, 0.0  ;;  %v791_v48 = vsel %vm325_vm12, %v782_v31, 0.0  ;;  %v806_v49 = vsel %vm330_vm9, %v801_v47, 0.0  ;;  %v6722_v21 = vld [vmem:[%s14019_s2 + $0x1] ss:$0 sm:$0xff] }
 0x10b   : > { %7364 = vmatmul.mubr.msk.f32.vlgmr.msra.gmra.mxu0 %vm413_vm1, %v787_v22  ;;  %7395 = vmatmul.mubr.msk.f32.vlgmr.msra.gmra.mxu1 %vm413_vm1, %v802_v25 }
 0x10c   : > { %7366 = vmatprep.mubr.msk.f32.mxu0 %vm8221_vm2, %v8220_v3  ;;  %7397 = vmatprep.mubr.msk.f32.mxu1 %vm8221_vm2, %v8220_v3 }
 0x10d   : > { %7410 = vmatpush3.msra.mxu0 %v6738_v50  ;;  %7441 = vmatpush3.msra.mxu1 %v6730_v59  ;;  %v6744_v59 = vld [vmem:[%s14018_s1 + $0x228] sm:$0xff] }
 0x10e   : > { %7411 = vmatprep.subr.mxu0 %v8220_v3  ;;  %7442 = vmatprep.subr.mxu1 %v8220_v3 }
 0x10f   : > { %7367 = vmatmul.mubr.msk.f32.gmra.mxu0 %vm413_vm1, %v788_v32  ;;  %7398 = vmatmul.mubr.msk.f32.gmra.mxu1 %vm413_vm1, %v803_v35 }
 0x110   : > { %7369 = vmatprep.mubr.msk.f32.mxu0 %vm8221_vm2, %v8220_v3  ;;  %7400 = vmatprep.mubr.msk.f32.mxu1 %vm8221_vm2, %v8220_v3 }
 0x111   : > { %7412 = vmatpush3.msra.mxu0 %v6737_v51  ;;  %7443 = vmatpush3.msra.mxu1 %v6729_v60 }
 0x112   : > { %7413 = vmatprep.subr.mxu0 %v8220_v3  ;;  %7444 = vmatprep.subr.mxu1 %v8220_v3 }
 0x113   : > { %7370 = vmatmul.mubr.msk.f32.gmra.mxu0 %vm413_vm1, %v789_v41  ;;  %7401 = vmatmul.mubr.msk.f32.gmra.mxu1 %vm413_vm1, %v804_v42 }
 0x114   : > { %7372 = vmatprep.mubr.msk.f32.mxu0 %vm8221_vm2, %v8220_v3  ;;  %7403 = vmatprep.mubr.msk.f32.mxu1 %vm8221_vm2, %v8220_v3 }
 0x115   : > { %7414 = vmatpush3.msra.mxu0 %v6736_v52  ;;  %7445 = vmatpush3.msra.mxu1 %v6728_v61 }
 0x116   : > { %7415 = vmatprep.subr.mxu0 %v8220_v3  ;;  %7446 = vmatprep.subr.mxu1 %v8220_v3 }
 0x117   : > { %7373 = vmatmul.mubr.msk.f32.gmra.mxu0 %vm413_vm1, %v790_v45  ;;  %7404 = vmatmul.mubr.msk.f32.gmra.mxu1 %vm413_vm1, %v805_v46 }
 0x118   : > { %7375 = vmatprep.mubr.msk.f32.mxu0 %vm8221_vm2, %v8220_v3  ;;  %7406 = vmatprep.mubr.msk.f32.mxu1 %vm8221_vm2, %v8220_v3 }
 0x119   : > { %7416 = vmatpush3.msra.mxu0 %v6735_v53  ;;  %7447 = vmatpush3.msra.mxu1 %v6727_v62  ;;  %v6745_v53 = vld [vmem:[%s14018_s1 + $0x230] sm:$0xff] }
 0x11a   : > { %7417 = vmatprep.subr.mxu0 %v8220_v3  ;;  %7448 = vmatprep.subr.mxu1 %v8220_v3 }
 0x11b   : > { %7376 = vmatmul.mubr.msk.f32.gmra.mxu0 %vm413_vm1, %v791_v48  ;;  %7407 = vmatmul.mubr.msk.f32.gmra.mxu1 %vm413_vm1, %v806_v49  ;;  %v6746_v49 = vld [vmem:[%s14018_s1 + $0x238] sm:$0xff] }
 0x11c   : > { %7425 = vmatprep.mubr.msk.f32.mxu0 %vm8221_vm2, %v8220_v3  ;;  %7456 = vmatprep.mubr.msk.f32.mxu1 %vm8221_vm2, %v8220_v3 }
 0x11d   : > { %7418 = vmatpush3.msra.mxu0 %v6734_v54  ;;  %7449 = vmatpush3.msra.mxu1 %v6726_v63 }
 0x11e   : > { %7419 = vmatprep.subr.mxu0 %v8220_v3  ;;  %7450 = vmatprep.subr.mxu1 %v8220_v3 }
 0x11f   : > { %7420 = vmatpush3.msra.mxu0 %v6733_v55  ;;  %7451 = vmatpush3.msra.mxu1 %v6725_v0 }
 0x120   : > { %7421 = vmatprep.subr.mxu0 %v8220_v3  ;;  %7452 = vmatprep.subr.mxu1 %v8220_v3 }
 0x121   : > { %7422 = vmatpush3.msra.mxu0 %v6732_v57  ;;  %7453 = vmatpush3.msra.mxu1 %v6724_v1  ;;  %v6743_v1 = vld [vmem:[%s14018_s1 + $0x220] sm:$0xff] }
 0x122   : > { %7423 = vmatprep.subr.mxu0 %v8220_v3  ;;  %7454 = vmatprep.subr.mxu1 %v8220_v3 }
 0x123   : > { %7424 = vmatpush3.msra.mxu0 %v6731_v58  ;;  %7455 = vmatpush3.msra.mxu1 %v6723_v2 }
 0x124   : > { %7471 = vmatprep.subr.mxu0 %v8220_v3  ;;  %7502 = vmatprep.subr.mxu1 %v8220_v3 }
 0x1b7   : > { %v888_v5 = vpop.f32.mrf.mxu1 }
 0x1b9   : > { %v7334_v7 = vpop.f32.mrf.mxu1 }
 0x1bb   : > { %v893_v8 = vpop.f32.mrf.mxu1 }
 0x1bd   : > { %v7337_v10 = vpop.f32.mrf.mxu1 }
 0x1be   : > { %v6742_v10 = vld [vmem:[%s14018_s1 + $0x218] sm:$0xff] }
 0x1bf   : > { %v898_v11 = vpop.f32.mrf.mxu1 }
 0x1c1   : > { %v7340_v12 = vpop.f32.mrf.mxu1 }
 0x1c3   : > { %v903_v14 = vpop.f32.mrf.mxu1 }
 0x1c5   : > { %v7343_v15 = vpop.f32.mrf.mxu1 }
 0x1c7   : > { %v908_v16 = vpop.f32.mrf.mxu1 }
 0x1c9   : > { %v7346_v17 = vpop.f32.mrf.mxu1 }
 0x1cb   : > { %v993_v18 = vpop.f32.mrf.mxu0  ;;  %v1098_v19 = vpop.f32.mrf.mxu1 }
 0x1cc   : > { %v994_v20 = vadd.f32 %v993_v18, %v888_v5  ;;  %v6740_v18 = vld [vmem:[%s14018_s1 + $0x208] sm:$0xff] }
 0x1cd   : > { %v7365_v22 = vpop.f32.mrf.mxu0  ;;  %v7396_v25 = vpop.f32.mrf.mxu1 }
 0x1ce   : > { %v1122_v27 = vadd.f32 %v1098_v19, %v994_v20  ;;  %v6739_v20 = vld [vmem:[%s14018_s1 + $0x200] sm:$0xff] }
 0x1cf   : > { %v998_v28 = vpop.f32.mrf.mxu0  ;;  %v1103_v29 = vpop.f32.mrf.mxu1 }
 0x1d0   : > { %v1133_v30 = vadd.f32 %v6722_v21, %v1122_v27  ;;  %v999_v32 = vadd.f32 %v998_v28, %v893_v8 }
 0x1d1   : > { %v7368_v35 = vpop.f32.mrf.mxu0  ;;  %v7399_v36 = vpop.f32.mrf.mxu1 }
 0x1d2   : > { %v1138_v39 = vmul.f32 0.3, %v1133_v30  ;;  %v1123_v40 = vadd.f32 %v1103_v29, %v999_v32 }
 0x1d3   : > { %v1003_v38 = vpop.f32.mrf.mxu0  ;;  %v1108_v41 = vpop.f32.mrf.mxu1 }
 0x1d4   : > { %v8834_v42 = vadd.f32 %v1138_v39, %v8330_v23  ;;  %v1134_v43 = vadd.f32 %v6722_v21, %v1123_v40  ;;  %v1004_v44 = vadd.f32 %v1003_v38, %v898_v11 }
 0x1d5   : > { %v7371_v45 = vpop.f32.mrf.mxu0  ;;  %v7402_v46 = vpop.f32.mrf.mxu1 }
 0x1d6   : > { %v8837_v31 = vmax.f32 %v8834_v42, 0.0  ;;  %v1139_v47 = vmul.f32 0.3, %v1134_v43  ;;  %v1124_v48 = vadd.f32 %v1108_v41, %v1004_v44 }
 0x1d7   : > { %v1008_v50 = vpop.f32.mrf.mxu0  ;;  %v1113_v51 = vpop.f32.mrf.mxu1 }
 0x1d8   : > { %v8843_v52 = vadd.f32 %v1139_v47, %v8335_v26  ;;  %v1135_v23 = vadd.f32 %v6722_v21, %v1124_v48  ;;  %7426 = vmatmul.mubr.msk.f32.vlgmr.msra.gmra.mxu0 %vm413_vm1, %v8837_v31  ;;  %v1009_v54 = vadd.f32 %v1008_v50, %v903_v14  ;;  %v6741_v14 = vld [vmem:[%s14018_s1 + $0x210] sm:$0xff]  ;;  %v1195_v22 = vrot.slane %v8837_v31, 1 }
 0x1d9   : > { %v7374_v55 = vpop.f32.mrf.mxu0  ;;  %v7405_v57 = vpop.f32.mrf.mxu1  ;;  %7428 = vmatprep.mubr.msk.f32.mxu0 %vm8221_vm2, %v8220_v3  ;;  %7472 = vmatpush3.msra.mxu0 %v6746_v49 }
 0x1da   : > { %v8853_v58 = vmax.f32 %v8843_v52, 0.0  ;;  %v1140_v26 = vmul.f32 0.3, %v1135_v23  ;;  %7473 = vmatprep.subr.mxu0 %v8220_v3  ;;  %v1125_v60 = vadd.f32 %v1113_v51, %v1009_v54 }
 0x1db   : > { %v1013_v61 = vpop.f32.mrf.mxu0  ;;  %v1118_v62 = vpop.f32.mrf.mxu1  ;;  %7474 = vmatpush3.msra.mxu0 %v6745_v53 }
 0x1dc   : > { %v8860_v63 = vadd.f32 %v1140_v26, %v8355_v33  ;;  %v1014_v0 = vadd.f32 %v1013_v61, %v908_v16  ;;  %7429 = vmatmul.mubr.msk.f32.gmra.mxu0 %vm413_vm1, %v8853_v58  ;;  %7475 = vmatprep.subr.mxu0 %v8220_v3  ;;  %v1136_v2 = vadd.f32 %v6722_v21, %v1125_v60  ;;  %v1181_v27 = vrot.slane %v8853_v58, 7  ;;  %v6778_v26 = vld [vmem:[%s14018_s1 + $0x2b0] sm:$0xff]  ;;  %v6776_v60 = vld [vmem:[%s14018_s1 + $0x2a0] sm:$0xff]  ;;  %v6775_v61 = vld [vmem:[%s14018_s1 + $0x298] sm:$0xff] }
 0x1dd   : > { %v7377_v5 = vpop.f32.mrf.mxu0  ;;  %v7408_v7 = vpop.f32.mrf.mxu1  ;;  %7431 = vmatprep.mubr.msk.f32.mxu0 %vm8221_vm2, %v8220_v3  ;;  %7476 = vmatpush3.msra.mxu0 %v6744_v59  ;;  %v6777_v59 = vld [vmem:[%s14018_s1 + $0x2a8] sm:$0xff] }
 0x1de   : > { %v8871_v33 = vmax.f32 %v8860_v63, 0.0  ;;  %v1126_v8 = vadd.f32 %v1118_v62, %v1014_v0  ;;  %7477 = vmatprep.subr.mxu0 %v8220_v3  ;;  %v1141_v11 = vmul.f32 0.3, %v1136_v2  ;;  %v6774_v62 = vld [vmem:[%s14018_s1 + $0x290] sm:$0xff]  ;;  %v6773_v0 = vld [vmem:[%s14018_s1 + $0x288] sm:$0xff]  ;;  %v6771_v2 = vld [vmem:[%s14018_s1 + $0x278] sm:$0xff] }
 0x1df   : > { %7478 = vmatpush3.msra.mxu0 %v6743_v1  ;;  %v6772_v1 = vld [vmem:[%s14018_s1 + $0x280] sm:$0xff]  ;;  %v6770_v5 = vld [vmem:[%s14018_s1 + $0x270] sm:$0xff]  ;;  %v6769_v7 = vld [vmem:[%s14018_s1 + $0x268] sm:$0xff] }
 0x1e0   : > { %v1137_v12 = vadd.f32 %v6722_v21, %v1126_v8  ;;  %7432 = vmatmul.mubr.msk.f32.gmra.mxu0 %vm413_vm1, %v8871_v33  ;;  %7479 = vmatprep.subr.mxu0 %v8220_v3  ;;  %v8884_v15 = vadd.f32 %v1141_v11, %v8357_v34  ;;  %v1196_v34 = vrot.slane %v8853_v58, 1  ;;  %v1197_v29 = vrot.slane %v8871_v33, 1  ;;  %v6779_v58 = vld [vmem:[%s14018_s1 + $0x2b8] sm:$0xff]  ;;  %v6765_v11 = vld [vmem:[%s14018_s1 + $0x248] sm:$0xff] }
 0x1e1   : > { %7434 = vmatprep.mubr.msk.f32.mxu0 %vm8221_vm2, %v8220_v3  ;;  %7480 = vmatpush3.msra.mxu0 %v6742_v10  ;;  %v1182_v39 = vrot.slane %v8871_v33, 7  ;;  %v6768_v33 = vld [vmem:[%s14018_s1 + $0x260] sm:$0xff]  ;;  %v6767_v8 = vld [vmem:[%s14018_s1 + $0x258] sm:$0xff]  ;;  %v6766_v10 = vld [vmem:[%s14018_s1 + $0x250] sm:$0xff] }
 0x1e2   : > { %v1142_v16 = vmul.f32 0.3, %v1137_v12  ;;  %7481 = vmatprep.subr.mxu0 %v8220_v3  ;;  %v1151_v17 = vmax.f32 %v8884_v15, 0.0  ;;  %v1203_v28 = vsel %vm392_vm7, %v1195_v22, %v1196_v34  ;;  %v1202_v40 = vsel %vm392_vm7, %v1196_v34, %v1197_v29  ;;  %v6764_v12 = vld [vmem:[%s14018_s1 + $0x240] sm:$0xff] }
 0x1e3   : > { %7482 = vmatpush3.msra.mxu0 %v6741_v14  ;;  %v1205_v35 = vsel %vm326_vm8, %v1203_v28, 0.0  ;;  %v1206_v43 = vsel %vm327_vm13, %v1202_v40, 0.0  ;;  %v1187_v44 = vsel %vm366_vm0, %v1181_v27, %v1182_v39 }
 0x1e4   : > { %v8894_v19 = vadd.f32 %v1142_v16, %v8332_v24  ;;  %7483 = vmatprep.subr.mxu0 %v8220_v3  ;;  %7435 = vmatmul.mubr.msk.f32.gmra.mxu0 %vm413_vm1, %v1151_v17  ;;  %v1180_v24 = vrot.slane %v8837_v31, 7  ;;  %v1198_v38 = vrot.slane %v1151_v17, 1  ;;  %v1183_v45 = vrot.slane %v1151_v17, 7 }
 0x1e5   : > { %7437 = vmatprep.mubr.msk.f32.mxu0 %vm8221_vm2, %v8220_v3  ;;  %7484 = vmatpush3.msra.mxu0 %v6740_v18  ;;  %v1192_v47 = vsel %vm323_vm4, %v1187_v44, 0.0 }
 0x1e6   : > { %v1152_v21 = vmax.f32 %v8894_v19, 0.0  ;;  %7485 = vmatprep.subr.mxu0 %v8220_v3  ;;  %v1188_v36 = vsel %vm366_vm0, %v1180_v24, %v1181_v27  ;;  %v1201_v46 = vsel %vm392_vm7, %v1197_v29, %v1198_v38  ;;  %v1186_v49 = vsel %vm366_vm0, %v1182_v39, %v1183_v45 }
 0x1e7   : > { %7486 = vmatpush3.msra.mxu0 %v6739_v20  ;;  %v1191_v41 = vsel %vm322_vm15, %v1188_v36, 0.0  ;;  %v1207_v48 = vsel %vm328_vm14, %v1201_v46, 0.0  ;;  %v1193_v51 = vsel %vm324_vm5, %v1186_v49, 0.0 }
 0x1e8   : > { %v1184_v25 = vrot.slane %v1152_v21, 7  ;;  %7438 = vmatmul.mubr.msk.f32.gmra.mxu0 %vm413_vm1, %v1152_v21  ;;  %7533 = vmatprep.subr.mxu0 %v8220_v3  ;;  %v1199_v31 = vrot.slane %v1152_v21, 1 }
 0x1e9   : > { %7487 = vmatprep.mubr.msk.f32.mxu0 %vm8221_vm2, %v8220_v3 }
 0x1ea   : > { %v1189_v30 = vsel %vm366_vm0, %v1184_v25, %v1180_v24  ;;  %v1200_v50 = vsel %vm392_vm7, %v1198_v38, %v1199_v31  ;;  %v1185_v53 = vsel %vm366_vm0, %v1183_v45, %v1184_v25  ;;  %v1204_v54 = vsel %vm392_vm7, %v1199_v31, %v1195_v22  ;;  %v6787_v31 = vld [vmem:[%s14018_s1 + $0x2f8] sm:$0xff] }
 0x1eb   : > { %v1190_v32 = vsel %vm321_vm6, %v1189_v30, 0.0  ;;  %v1208_v23 = vsel %vm329_vm3, %v1200_v50, 0.0  ;;  %v1194_v55 = vsel %vm325_vm12, %v1185_v53, 0.0  ;;  %v1209_v57 = vsel %vm330_vm9, %v1204_v54, 0.0  ;;  %v6763_v30 = vld [vmem:[%s14019_s2 + $0x2] ss:$0 sm:$0xff] }
 0x1ec   : > { %7457 = vmatmul.mubr.msk.f32.vlgmr.msra.gmra.mxu1 %vm413_vm1, %v1190_v32  ;;  %7488 = vmatmul.mubr.msk.f32.vlgmr.msra.gmra.mxu0 %vm413_vm1, %v1205_v35 }
 0x1ed   : > { %7459 = vmatprep.mubr.msk.f32.mxu1 %vm8221_vm2, %v8220_v3  ;;  %7490 = vmatprep.mubr.msk.f32.mxu0 %vm8221_vm2, %v8220_v3 }
 0x1ee   : > { %7503 = vmatpush3.msra.mxu1 %v6779_v58  ;;  %7534 = vmatpush3.msra.mxu0 %v6771_v2 }
 0x1ef   : > { %7504 = vmatprep.subr.mxu1 %v8220_v3  ;;  %7535 = vmatprep.subr.mxu0 %v8220_v3 }
 0x1f0   : > { %7460 = vmatmul.mubr.msk.f32.gmra.mxu1 %vm413_vm1, %v1191_v41  ;;  %7491 = vmatmul.mubr.msk.f32.gmra.mxu0 %vm413_vm1, %v1206_v43 }
 0x1f1   : > { %7462 = vmatprep.mubr.msk.f32.mxu1 %vm8221_vm2, %v8220_v3  ;;  %7493 = vmatprep.mubr.msk.f32.mxu0 %vm8221_vm2, %v8220_v3 }
 0x1f2   : > { %7505 = vmatpush3.msra.mxu1 %v6778_v26  ;;  %7536 = vmatpush3.msra.mxu0 %v6770_v5  ;;  %v6783_v5 = vld [vmem:[%s14018_s1 + $0x2d8] sm:$0xff] }
 0x1f3   : > { %7506 = vmatprep.subr.mxu1 %v8220_v3  ;;  %7537 = vmatprep.subr.mxu0 %v8220_v3 }
 0x1f4   : > { %7463 = vmatmul.mubr.msk.f32.gmra.mxu1 %vm413_vm1, %v1192_v47  ;;  %7494 = vmatmul.mubr.msk.f32.gmra.mxu0 %vm413_vm1, %v1207_v48 }
 0x1f5   : > { %7465 = vmatprep.mubr.msk.f32.mxu1 %vm8221_vm2, %v8220_v3  ;;  %7496 = vmatprep.mubr.msk.f32.mxu0 %vm8221_vm2, %v8220_v3 }
 0x1f6   : > { %7507 = vmatpush3.msra.mxu1 %v6777_v59  ;;  %7538 = vmatpush3.msra.mxu0 %v6769_v7 }
 0x1f7   : > { %7508 = vmatprep.subr.mxu1 %v8220_v3  ;;  %7539 = vmatprep.subr.mxu0 %v8220_v3 }
 0x1f8   : > { %7466 = vmatmul.mubr.msk.f32.gmra.mxu1 %vm413_vm1, %v1193_v51  ;;  %7497 = vmatmul.mubr.msk.f32.gmra.mxu0 %vm413_vm1, %v1208_v23  ;;  %v6786_v51 = vld [vmem:[%s14018_s1 + $0x2f0] sm:$0xff] }
 0x1f9   : > { %7468 = vmatprep.mubr.msk.f32.mxu1 %vm8221_vm2, %v8220_v3  ;;  %7499 = vmatprep.mubr.msk.f32.mxu0 %vm8221_vm2, %v8220_v3 }
 0x1fa   : > { %7509 = vmatpush3.msra.mxu1 %v6776_v60  ;;  %7540 = vmatpush3.msra.mxu0 %v6768_v33 }
 0x1fb   : > { %7510 = vmatprep.subr.mxu1 %v8220_v3  ;;  %7541 = vmatprep.subr.mxu0 %v8220_v3 }
 0x1fc   : > { %7469 = vmatmul.mubr.msk.f32.gmra.mxu1 %vm413_vm1, %v1194_v55  ;;  %7500 = vmatmul.mubr.msk.f32.gmra.mxu0 %vm413_vm1, %v1209_v57  ;;  %v6785_v57 = vld [vmem:[%s14018_s1 + $0x2e8] sm:$0xff] }
 0x1fd   : > { %7518 = vmatprep.mubr.msk.f32.mxu1 %vm8221_vm2, %v8220_v3  ;;  %7549 = vmatprep.mubr.msk.f32.mxu0 %vm8221_vm2, %v8220_v3 }
 0x1fe   : > { %7511 = vmatpush3.msra.mxu1 %v6775_v61  ;;  %7542 = vmatpush3.msra.mxu0 %v6767_v8  ;;  %v6784_v61 = vld [vmem:[%s14018_s1 + $0x2e0] sm:$0xff] }
 0x1ff   : > { %7512 = vmatprep.subr.mxu1 %v8220_v3  ;;  %7543 = vmatprep.subr.mxu0 %v8220_v3 }
 0x200   : > { %7513 = vmatpush3.msra.mxu1 %v6774_v62  ;;  %7544 = vmatpush3.msra.mxu0 %v6766_v10 }
 0x201   : > { %7514 = vmatprep.subr.mxu1 %v8220_v3  ;;  %7545 = vmatprep.subr.mxu0 %v8220_v3 }
 0x202   : > { %7515 = vmatpush3.msra.mxu1 %v6773_v0  ;;  %7546 = vmatpush3.msra.mxu0 %v6765_v11  ;;  %v6782_v11 = vld [vmem:[%s14018_s1 + $0x2d0] sm:$0xff] }
 0x203   : > { %7516 = vmatprep.subr.mxu1 %v8220_v3  ;;  %7547 = vmatprep.subr.mxu0 %v8220_v3 }
 0x204   : > { %7517 = vmatpush3.msra.mxu1 %v6772_v1  ;;  %7548 = vmatpush3.msra.mxu0 %v6764_v12 }
 0x205   : > { %7564 = vmatprep.subr.mxu1 %v8220_v3  ;;  %7595 = vmatprep.subr.mxu0 %v8220_v3 }
 0x298   : > { %v1291_v14 = vpop.f32.mrf.mxu0 }
 0x29a   : > { %v7427_v16 = vpop.f32.mrf.mxu0 }
 0x29c   : > { %v1296_v17 = vpop.f32.mrf.mxu0 }
 0x29e   : > { %v7430_v18 = vpop.f32.mrf.mxu0 }
 0x29f   : > { %v6781_v18 = vld [vmem:[%s14018_s1 + $0x2c8] sm:$0xff] }
 0x2a0   : > { %v1301_v34 = vpop.f32.mrf.mxu0 }
 0x2a2   : > { %v7433_v20 = vpop.f32.mrf.mxu0 }
 0x2a4   : > { %v1306_v21 = vpop.f32.mrf.mxu0 }
 0x2a6   : > { %v7436_v22 = vpop.f32.mrf.mxu0 }
 0x2a8   : > { %v1311_v24 = vpop.f32.mrf.mxu0 }
 0x2aa   : > { %v7439_v25 = vpop.f32.mrf.mxu0 }
 0x2ac   : > { %v1396_v27 = vpop.f32.mrf.mxu1  ;;  %v1501_v29 = vpop.f32.mrf.mxu0 }
 0x2ad   : > { %v1397_v28 = vadd.f32 %v1396_v27, %v1291_v14 }
 0x2ae   : > { %v7458_v32 = vpop.f32.mrf.mxu1  ;;  %v7489_v36 = vpop.f32.mrf.mxu0 }
 0x2af   : > { %v1525_v35 = vadd.f32 %v1501_v29, %v1397_v28 }
 0x2b0   : > { %v1401_v39 = vpop.f32.mrf.mxu1  ;;  %v1506_v41 = vpop.f32.mrf.mxu0 }
 0x2b1   : > { %v1536_v40 = vadd.f32 %v6763_v30, %v1525_v35  ;;  %v1402_v38 = vadd.f32 %v1401_v39, %v1296_v17 }
 0x2b2   : > { %v7461_v43 = vpop.f32.mrf.mxu1  ;;  %v7492_v46 = vpop.f32.mrf.mxu0 }
 0x2b3   : > { %v9052_v44 = vmax.f32 %v1536_v40, 0.0  ;;  %v1526_v45 = vadd.f32 %v1506_v41, %v1402_v38 }
 0x2b4   : > { %v1406_v47 = vpop.f32.mrf.mxu1  ;;  %v1511_v50 = vpop.f32.mrf.mxu0 }
 0x2b5   : > { %v1537_v48 = vadd.f32 %v6763_v30, %v1526_v45  ;;  %v1407_v49 = vadd.f32 %v1406_v47, %v1301_v34  ;;  %7519 = vmatmul.mubr.msk.f32.vlgmr.msra.gmra.mxu1 %vm413_vm1, %v9052_v44  ;;  %v1588_v22 = vrot.slane %v9052_v44, 1  ;;  %v1573_v25 = vrot.slane %v9052_v44, 7 }
 0x2b6   : > { %v7464_v23 = vpop.f32.mrf.mxu1  ;;  %7521 = vmatprep.mubr.msk.f32.mxu1 %vm8221_vm2, %v8220_v3  ;;  %7565 = vmatpush3.msra.mxu1 %v6787_v31  ;;  %v7495_v55 = vpop.f32.mrf.mxu0 }
 0x2b7   : > { %v9064_v53 = vmax.f32 %v1537_v48, 0.0  ;;  %v1527_v54 = vadd.f32 %v1511_v50, %v1407_v49  ;;  %7566 = vmatprep.subr.mxu1 %v8220_v3 }
 0x2b8   : > { %v1411_v58 = vpop.f32.mrf.mxu1  ;;  %7567 = vmatpush3.msra.mxu1 %v6786_v51  ;;  %v1516_v60 = vpop.f32.mrf.mxu0 }
 0x2b9   : > { %v1538_v26 = vadd.f32 %v6763_v30, %v1527_v54  ;;  %v1412_v59 = vadd.f32 %v1411_v58, %v1306_v21  ;;  %7522 = vmatmul.mubr.msk.f32.gmra.mxu1 %vm413_vm1, %v9064_v53  ;;  %7568 = vmatprep.subr.mxu1 %v8220_v3  ;;  %v1589_v34 = vrot.slane %v9064_v53, 1  ;;  %v6780_v21 = vld [vmem:[%s14018_s1 + $0x2c0] sm:$0xff]  ;;  %v1574_v27 = vrot.slane %v9064_v53, 7 }
 0x2ba   : > { %v7467_v62 = vpop.f32.mrf.mxu1  ;;  %7524 = vmatprep.mubr.msk.f32.mxu1 %vm8221_vm2, %v8220_v3  ;;  %7569 = vmatpush3.msra.mxu1 %v6785_v57  ;;  %v7498_v2 = vpop.f32.mrf.mxu0 }
 0x2bb   : > { %v9078_v0 = vmax.f32 %v1538_v26, 0.0  ;;  %v1528_v1 = vadd.f32 %v1516_v60, %v1412_v59  ;;  %7570 = vmatprep.subr.mxu1 %v8220_v3  ;;  %v1581_v38 = vsel %vm366_vm0, %v1573_v25, %v1574_v27  ;;  %v6820_v26 = vld [vmem:[%s14018_s1 + $0x378] sm:$0xff]  ;;  %v6819_v59 = vld [vmem:[%s14018_s1 + $0x370] sm:$0xff]  ;;  %v6818_v60 = vld [vmem:[%s14018_s1 + $0x368] sm:$0xff] }
 0x2bc   : > { %v1416_v7 = vpop.f32.mrf.mxu1  ;;  %7571 = vmatpush3.msra.mxu1 %v6784_v61  ;;  %v1521_v10 = vpop.f32.mrf.mxu0  ;;  %v1584_v43 = vsel %vm322_vm15, %v1581_v38, 0.0  ;;  %v6817_v61 = vld [vmem:[%s14018_s1 + $0x360] sm:$0xff]  ;;  %v6816_v62 = vld [vmem:[%s14018_s1 + $0x358] sm:$0xff] }
 0x2bd   : > { %v1539_v33 = vadd.f32 %v6763_v30, %v1528_v1  ;;  %v1417_v8 = vadd.f32 %v1416_v7, %v1311_v24  ;;  %7525 = vmatmul.mubr.msk.f32.gmra.mxu1 %vm413_vm1, %v9078_v0  ;;  %7572 = vmatprep.subr.mxu1 %v8220_v3  ;;  %v1590_v28 = vrot.slane %v9078_v0, 1  ;;  %v1575_v39 = vrot.slane %v9078_v0, 7  ;;  %v6815_v0 = vld [vmem:[%s14018_s1 + $0x350] sm:$0xff]  ;;  %v6814_v1 = vld [vmem:[%s14018_s1 + $0x348] sm:$0xff]  ;;  %v6813_v2 = vld [vmem:[%s14018_s1 + $0x340] sm:$0xff] }
 0x2be   : > { %v7470_v12 = vpop.f32.mrf.mxu1  ;;  %7527 = vmatprep.mubr.msk.f32.mxu1 %vm8221_vm2, %v8220_v3  ;;  %7573 = vmatpush3.msra.mxu1 %v6783_v5  ;;  %v7501_v17 = vpop.f32.mrf.mxu0  ;;  %v6812_v5 = vld [vmem:[%s14018_s1 + $0x338] sm:$0xff]  ;;  %v6811_v7 = vld [vmem:[%s14018_s1 + $0x330] sm:$0xff] }
 0x2bf   : > { %v1544_v14 = vmax.f32 %v1539_v33, 0.0  ;;  %v1529_v16 = vadd.f32 %v1521_v10, %v1417_v8  ;;  %7574 = vmatprep.subr.mxu1 %v8220_v3  ;;  %v1595_v41 = vsel %vm392_vm7, %v1589_v34, %v1590_v28  ;;  %v1580_v31 = vsel %vm366_vm0, %v1574_v27, %v1575_v39  ;;  %v6810_v33 = vld [vmem:[%s14018_s1 + $0x328] sm:$0xff]  ;;  %v6809_v8 = vld [vmem:[%s14018_s1 + $0x320] sm:$0xff]  ;;  %v6808_v10 = vld [vmem:[%s14018_s1 + $0x318] sm:$0xff] }
 0x2c0   : > { %7575 = vmatpush3.msra.mxu1 %v6782_v11  ;;  %v1599_v44 = vsel %vm327_vm13, %v1595_v41, 0.0  ;;  %v1585_v48 = vsel %vm323_vm4, %v1580_v31, 0.0  ;;  %v6807_v11 = vld [vmem:[%s14018_s1 + $0x310] sm:$0xff]  ;;  %v6806_v12 = vld [vmem:[%s14018_s1 + $0x308] sm:$0xff] }
 0x2c1   : > { %v1540_v20 = vadd.f32 %v6763_v30, %v1529_v16  ;;  %7528 = vmatmul.mubr.msk.f32.gmra.mxu1 %vm413_vm1, %v1544_v14  ;;  %7576 = vmatprep.subr.mxu1 %v8220_v3  ;;  %v1596_v30 = vsel %vm392_vm7, %v1588_v22, %v1589_v34  ;;  %v1591_v40 = vrot.slane %v1544_v14, 1  ;;  %v1576_v45 = vrot.slane %v1544_v14, 7  ;;  %v6805_v14 = vld [vmem:[%s14018_s1 + $0x300] sm:$0xff] }
 0x2c2   : > { %7530 = vmatprep.mubr.msk.f32.mxu1 %vm8221_vm2, %v8220_v3  ;;  %7577 = vmatpush3.msra.mxu1 %v6781_v18  ;;  %v1598_v36 = vsel %vm326_vm8, %v1596_v30, 0.0 }
 0x2c3   : > { %v1545_v24 = vmax.f32 %v1540_v20, 0.0  ;;  %7578 = vmatprep.subr.mxu1 %v8220_v3  ;;  %v1594_v47 = vsel %vm392_vm7, %v1590_v28, %v1591_v40  ;;  %v1579_v50 = vsel %vm366_vm0, %v1575_v39, %v1576_v45 }
 0x2c4   : > { %7579 = vmatpush3.msra.mxu1 %v6780_v21  ;;  %v1600_v49 = vsel %vm328_vm14, %v1594_v47, 0.0  ;;  %v1586_v23 = vsel %vm324_vm5, %v1579_v50, 0.0 }
 0x2c5   : > { %v1577_v29 = vrot.slane %v1545_v24, 7  ;;  %7531 = vmatmul.mubr.msk.f32.gmra.mxu1 %vm413_vm1, %v1545_v24  ;;  %7626 = vmatprep.subr.mxu1 %v8220_v3  ;;  %v1592_v46 = vrot.slane %v1545_v24, 1 }
 0x2c6   : > { %7580 = vmatprep.mubr.msk.f32.mxu1 %vm8221_vm2, %v8220_v3 }
 0x2c7   : > { %v1582_v32 = vsel %vm366_vm0, %v1577_v29, %v1573_v25  ;;  %v1593_v51 = vsel %vm392_vm7, %v1591_v40, %v1592_v46  ;;  %v1578_v54 = vsel %vm366_vm0, %v1576_v45, %v1577_v29  ;;  %v1597_v55 = vsel %vm392_vm7, %v1592_v46, %v1588_v22 }
 0x2c8   : > { %v1583_v35 = vsel %vm321_vm6, %v1582_v32, 0.0  ;;  %v1601_v53 = vsel %vm329_vm3, %v1593_v51, 0.0  ;;  %v1587_v57 = vsel %vm325_vm12, %v1578_v54, 0.0  ;;  %v1602_v58 = vsel %vm330_vm9, %v1597_v55, 0.0  ;;  %v6804_v32 = vld [vmem:[%s14019_s2 + $0x3] ss:$0 sm:$0xff] }
 0x2c9   : > { %7550 = vmatmul.mubr.msk.f32.vlgmr.msra.gmra.mxu0 %vm413_vm1, %v1583_v35  ;;  %7581 = vmatmul.mubr.msk.f32.vlgmr.msra.gmra.mxu1 %vm413_vm1, %v1598_v36 }
 0x2ca   : > { %7552 = vmatprep.mubr.msk.f32.mxu0 %vm8221_vm2, %v8220_v3  ;;  %7583 = vmatprep.mubr.msk.f32.mxu1 %vm8221_vm2, %v8220_v3 }
 0x2cb   : > { %7596 = vmatpush3.msra.mxu0 %v6820_v26  ;;  %7627 = vmatpush3.msra.mxu1 %v6812_v5  ;;  %v6826_v5 = vld [vmem:[%s14018_s1 + $0x3a8] sm:$0xff] }
 0x2cc   : > { %7597 = vmatprep.subr.mxu0 %v8220_v3  ;;  %7628 = vmatprep.subr.mxu1 %v8220_v3 }
 0x2cd   : > { %7553 = vmatmul.mubr.msk.f32.gmra.mxu0 %vm413_vm1, %v1584_v43  ;;  %7584 = vmatmul.mubr.msk.f32.gmra.mxu1 %vm413_vm1, %v1599_v44 }
 0x2ce   : > { %7555 = vmatprep.mubr.msk.f32.mxu0 %vm8221_vm2, %v8220_v3  ;;  %7586 = vmatprep.mubr.msk.f32.mxu1 %vm8221_vm2, %v8220_v3 }
 0x2cf   : > { %7598 = vmatpush3.msra.mxu0 %v6819_v59  ;;  %7629 = vmatpush3.msra.mxu1 %v6811_v7 }
 0x2d0   : > { %7599 = vmatprep.subr.mxu0 %v8220_v3  ;;  %7630 = vmatprep.subr.mxu1 %v8220_v3 }
 0x2d1   : > { %7556 = vmatmul.mubr.msk.f32.gmra.mxu0 %vm413_vm1, %v1585_v48  ;;  %7587 = vmatmul.mubr.msk.f32.gmra.mxu1 %vm413_vm1, %v1600_v49 }
 0x2d2   : > { %7558 = vmatprep.mubr.msk.f32.mxu0 %vm8221_vm2, %v8220_v3  ;;  %7589 = vmatprep.mubr.msk.f32.mxu1 %vm8221_vm2, %v8220_v3 }
 0x2d3   : > { %7600 = vmatpush3.msra.mxu0 %v6818_v60  ;;  %7631 = vmatpush3.msra.mxu1 %v6810_v33 }
 0x2d4   : > { %7601 = vmatprep.subr.mxu0 %v8220_v3  ;;  %7632 = vmatprep.subr.mxu1 %v8220_v3 }
 0x2d5   : > { %7559 = vmatmul.mubr.msk.f32.gmra.mxu0 %vm413_vm1, %v1586_v23  ;;  %7590 = vmatmul.mubr.msk.f32.gmra.mxu1 %vm413_vm1, %v1601_v53 }
 0x2d6   : > { %7561 = vmatprep.mubr.msk.f32.mxu0 %vm8221_vm2, %v8220_v3  ;;  %7592 = vmatprep.mubr.msk.f32.mxu1 %vm8221_vm2, %v8220_v3 }
 0x2d7   : > { %7602 = vmatpush3.msra.mxu0 %v6817_v61  ;;  %7633 = vmatpush3.msra.mxu1 %v6809_v8  ;;  %v6827_v61 = vld [vmem:[%s14018_s1 + $0x3b0] sm:$0xff] }
 0x2d8   : > { %7603 = vmatprep.subr.mxu0 %v8220_v3  ;;  %7634 = vmatprep.subr.mxu1 %v8220_v3 }
 0x2d9   : > { %7562 = vmatmul.mubr.msk.f32.gmra.mxu0 %vm413_vm1, %v1587_v57  ;;  %7593 = vmatmul.mubr.msk.f32.gmra.mxu1 %vm413_vm1, %v1602_v58  ;;  %v6828_v58 = vld [vmem:[%s14018_s1 + $0x3b8] sm:$0xff] }
 0x2da   : > { %7611 = vmatprep.mubr.msk.f32.mxu0 %vm8221_vm2, %v8220_v3  ;;  %7642 = vmatprep.mubr.msk.f32.mxu1 %vm8221_vm2, %v8220_v3 }
 0x2db   : > { %7604 = vmatpush3.msra.mxu0 %v6816_v62  ;;  %7635 = vmatpush3.msra.mxu1 %v6808_v10 }
 0x2dc   : > { %7605 = vmatprep.subr.mxu0 %v8220_v3  ;;  %7636 = vmatprep.subr.mxu1 %v8220_v3 }
 0x2dd   : > { %7606 = vmatpush3.msra.mxu0 %v6815_v0  ;;  %7637 = vmatpush3.msra.mxu1 %v6807_v11 }
 0x2de   : > { %7607 = vmatprep.subr.mxu0 %v8220_v3  ;;  %7638 = vmatprep.subr.mxu1 %v8220_v3 }
 0x2df   : > { %7608 = vmatpush3.msra.mxu0 %v6814_v1  ;;  %7639 = vmatpush3.msra.mxu1 %v6806_v12  ;;  %v6825_v12 = vld [vmem:[%s14018_s1 + $0x3a0] sm:$0xff] }
 0x2e0   : > { %7609 = vmatprep.subr.mxu0 %v8220_v3  ;;  %7640 = vmatprep.subr.mxu1 %v8220_v3 }
 0x2e1   : > { %7610 = vmatpush3.msra.mxu0 %v6813_v2  ;;  %7641 = vmatpush3.msra.mxu1 %v6805_v14 }
 0x2e2   : > { %7657 = vmatprep.subr.mxu0 %v8220_v3  ;;  %7688 = vmatprep.subr.mxu1 %v8220_v3 }
 0x375   : > { %v1684_v16 = vpop.f32.mrf.mxu1 }
 0x377   : > { %v7520_v17 = vpop.f32.mrf.mxu1 }
 0x379   : > { %v1689_v18 = vpop.f32.mrf.mxu1 }
 0x37b   : > { %v7523_v34 = vpop.f32.mrf.mxu1 }
 0x37c   : > { %v6824_v34 = vld [vmem:[%s14018_s1 + $0x398] sm:$0xff] }
 0x37d   : > { %v1694_v20 = vpop.f32.mrf.mxu1 }
 0x37f   : > { %v7526_v21 = vpop.f32.mrf.mxu1 }
 0x381   : > { %v1699_v22 = vpop.f32.mrf.mxu1 }
 0x383   : > { %v7529_v24 = vpop.f32.mrf.mxu1 }
 0x385   : > { %v1704_v25 = vpop.f32.mrf.mxu1 }
 0x387   : > { %v7532_v27 = vpop.f32.mrf.mxu1 }
 0x389   : > { %v1789_v28 = vpop.f32.mrf.mxu0  ;;  %v1894_v29 = vpop.f32.mrf.mxu1 }
 0x38a   : > { %v1790_v30 = vadd.f32 %v1789_v28, %v1684_v16  ;;  %v6822_v28 = vld [vmem:[%s14018_s1 + $0x388] sm:$0xff] }
 0x38b   : > { %v7551_v35 = vpop.f32.mrf.mxu0  ;;  %v7582_v36 = vpop.f32.mrf.mxu1 }
 0x38c   : > { %v1918_v39 = vadd.f32 %v1894_v29, %v1790_v30  ;;  %v6821_v30 = vld [vmem:[%s14018_s1 + $0x380] sm:$0xff] }
 0x38d   : > { %v1794_v40 = vpop.f32.mrf.mxu0  ;;  %v1899_v38 = vpop.f32.mrf.mxu1 }
 0x38e   : > { %v1929_v41 = vadd.f32 %v6804_v32, %v1918_v39  ;;  %v1795_v43 = vadd.f32 %v1794_v40, %v1689_v18 }
 0x38f   : > { %v7554_v44 = vpop.f32.mrf.mxu0  ;;  %v7585_v45 = vpop.f32.mrf.mxu1 }
 0x390   : > { %v1934_v46 = vmul.f32 0.3, %v1929_v41  ;;  %v1919_v31 = vadd.f32 %v1899_v38, %v1795_v43 }
 0x391   : > { %v1799_v47 = vpop.f32.mrf.mxu0  ;;  %v1904_v48 = vpop.f32.mrf.mxu1 }
 0x392   : > { %v9252_v49 = vadd.f32 %v1934_v46, %v8834_v42  ;;  %v1930_v50 = vadd.f32 %v6804_v32, %v1919_v31  ;;  %v1800_v51 = vadd.f32 %v1799_v47, %v1694_v20 }
 0x393   : > { %v7557_v23 = vpop.f32.mrf.mxu0  ;;  %v7588_v53 = vpop.f32.mrf.mxu1 }
 0x394   : > { %v9255_v54 = vmax.f32 %v9252_v49, 0.0  ;;  %v1935_v55 = vmul.f32 0.3, %v1930_v50  ;;  %v1920_v57 = vadd.f32 %v1904_v48, %v1800_v51 }
 0x395   : > { %v1804_v26 = vpop.f32.mrf.mxu0  ;;  %v1909_v59 = vpop.f32.mrf.mxu1 }
 0x396   : > { %v9261_v60 = vadd.f32 %v1935_v55, %v8843_v52  ;;  %v1931_v42 = vadd.f32 %v6804_v32, %v1920_v57  ;;  %7612 = vmatmul.mubr.msk.f32.vlgmr.msra.gmra.mxu0 %vm413_vm1, %v9255_v54  ;;  %v1805_v62 = vadd.f32 %v1804_v26, %v1699_v22  ;;  %v6823_v22 = vld [vmem:[%s14018_s1 + $0x390] sm:$0xff]  ;;  %v1991_v35 = vrot.slane %v9255_v54, 1 }
 0x397   : > { %v7560_v0 = vpop.f32.mrf.mxu0  ;;  %v7591_v1 = vpop.f32.mrf.mxu1  ;;  %7614 = vmatprep.mubr.msk.f32.mxu0 %vm8221_vm2, %v8220_v3  ;;  %7658 = vmatpush3.msra.mxu0 %v6828_v58 }
 0x398   : > { %v9271_v2 = vmax.f32 %v9261_v60, 0.0  ;;  %v1936_v52 = vmul.f32 0.3, %v1931_v42  ;;  %7659 = vmatprep.subr.mxu0 %v8220_v3  ;;  %v1921_v7 = vadd.f32 %v1909_v59, %v1805_v62 }
 0x399   : > { %v1809_v33 = vpop.f32.mrf.mxu0  ;;  %v1914_v8 = vpop.f32.mrf.mxu1  ;;  %7660 = vmatpush3.msra.mxu0 %v6827_v61 }
 0x39a   : > { %v9278_v10 = vadd.f32 %v1936_v52, %v8860_v63  ;;  %v1810_v11 = vadd.f32 %v1809_v33, %v1704_v25  ;;  %7615 = vmatmul.mubr.msk.f32.gmra.mxu0 %vm413_vm1, %v9271_v2  ;;  %7661 = vmatprep.subr.mxu0 %v8220_v3  ;;  %v1932_v14 = vadd.f32 %v6804_v32, %v1921_v7  ;;  %v1977_v39 = vrot.slane %v9271_v2, 7  ;;  %v6860_v52 = vld [vmem:[%s14018_s1 + $0x430] sm:$0xff]  ;;  %v6858_v7 = vld [vmem:[%s14018_s1 + $0x420] sm:$0xff]  ;;  %v6857_v33 = vld [vmem:[%s14018_s1 + $0x418] sm:$0xff] }
 0x39b   : > { %v7563_v16 = vpop.f32.mrf.mxu0  ;;  %v7594_v17 = vpop.f32.mrf.mxu1  ;;  %7617 = vmatprep.mubr.msk.f32.mxu0 %vm8221_vm2, %v8220_v3  ;;  %7662 = vmatpush3.msra.mxu0 %v6826_v5  ;;  %v6859_v5 = vld [vmem:[%s14018_s1 + $0x428] sm:$0xff] }
 0x39c   : > { %v9289_v63 = vmax.f32 %v9278_v10, 0.0  ;;  %v1922_v18 = vadd.f32 %v1914_v8, %v1810_v11  ;;  %7663 = vmatprep.subr.mxu0 %v8220_v3  ;;  %v1937_v20 = vmul.f32 0.3, %v1932_v14  ;;  %v6856_v8 = vld [vmem:[%s14018_s1 + $0x410] sm:$0xff]  ;;  %v6855_v11 = vld [vmem:[%s14018_s1 + $0x408] sm:$0xff]  ;;  %v6853_v14 = vld [vmem:[%s14018_s1 + $0x3f8] sm:$0xff] }
 0x39d   : > { %7664 = vmatpush3.msra.mxu0 %v6825_v12  ;;  %v6854_v12 = vld [vmem:[%s14018_s1 + $0x400] sm:$0xff]  ;;  %v6852_v16 = vld [vmem:[%s14018_s1 + $0x3f0] sm:$0xff]  ;;  %v6851_v17 = vld [vmem:[%s14018_s1 + $0x3e8] sm:$0xff] }
 0x39e   : > { %v1933_v21 = vadd.f32 %v6804_v32, %v1922_v18  ;;  %7618 = vmatmul.mubr.msk.f32.gmra.mxu0 %vm413_vm1, %v9289_v63  ;;  %7665 = vmatprep.subr.mxu0 %v8220_v3  ;;  %v9302_v24 = vadd.f32 %v1937_v20, %v8884_v15  ;;  %v1992_v15 = vrot.slane %v9271_v2, 1  ;;  %v1993_v38 = vrot.slane %v9289_v63, 1  ;;  %v6861_v2 = vld [vmem:[%s14018_s1 + $0x438] sm:$0xff]  ;;  %v6847_v20 = vld [vmem:[%s14018_s1 + $0x3c8] sm:$0xff] }
 0x39f   : > { %7620 = vmatprep.mubr.msk.f32.mxu0 %vm8221_vm2, %v8220_v3  ;;  %7666 = vmatpush3.msra.mxu0 %v6824_v34  ;;  %v1978_v46 = vrot.slane %v9289_v63, 7  ;;  %v6850_v63 = vld [vmem:[%s14018_s1 + $0x3e0] sm:$0xff]  ;;  %v6849_v18 = vld [vmem:[%s14018_s1 + $0x3d8] sm:$0xff]  ;;  %v6848_v34 = vld [vmem:[%s14018_s1 + $0x3d0] sm:$0xff] }
 0x3a0   : > { %v1938_v25 = vmul.f32 0.3, %v1933_v21  ;;  %7667 = vmatprep.subr.mxu0 %v8220_v3  ;;  %v1947_v27 = vmax.f32 %v9302_v24, 0.0  ;;  %v1999_v40 = vsel %vm392_vm7, %v1991_v35, %v1992_v15  ;;  %v1998_v31 = vsel %vm392_vm7, %v1992_v15, %v1993_v38  ;;  %v6846_v21 = vld [vmem:[%s14018_s1 + $0x3c0] sm:$0xff] }
 0x3a1   : > { %7668 = vmatpush3.msra.mxu0 %v6823_v22  ;;  %v2001_v44 = vsel %vm326_vm8, %v1999_v40, 0.0  ;;  %v2002_v50 = vsel %vm327_vm13, %v1998_v31, 0.0  ;;  %v1983_v51 = vsel %vm366_vm0, %v1977_v39, %v1978_v46 }
 0x3a2   : > { %v9312_v29 = vadd.f32 %v1938_v25, %v8894_v19  ;;  %7669 = vmatprep.subr.mxu0 %v8220_v3  ;;  %7621 = vmatmul.mubr.msk.f32.gmra.mxu0 %vm413_vm1, %v1947_v27  ;;  %v1976_v19 = vrot.slane %v9255_v54, 7  ;;  %v1994_v47 = vrot.slane %v1947_v27, 1  ;;  %v1979_v23 = vrot.slane %v1947_v27, 7 }
 0x3a3   : > { %7623 = vmatprep.mubr.msk.f32.mxu0 %vm8221_vm2, %v8220_v3  ;;  %7670 = vmatpush3.msra.mxu0 %v6822_v28  ;;  %v1988_v55 = vsel %vm323_vm4, %v1983_v51, 0.0 }
 0x3a4   : > { %v1948_v32 = vmax.f32 %v9312_v29, 0.0  ;;  %7671 = vmatprep.subr.mxu0 %v8220_v3  ;;  %v1984_v45 = vsel %vm366_vm0, %v1976_v19, %v1977_v39  ;;  %v1997_v53 = vsel %vm392_vm7, %v1993_v38, %v1994_v47  ;;  %v1982_v58 = vsel %vm366_vm0, %v1978_v46, %v1979_v23 }
 0x3a5   : > { %7672 = vmatpush3.msra.mxu0 %v6821_v30  ;;  %v1987_v48 = vsel %vm322_vm15, %v1984_v45, 0.0  ;;  %v2003_v57 = vsel %vm328_vm14, %v1997_v53, 0.0  ;;  %v1989_v59 = vsel %vm324_vm5, %v1982_v58, 0.0 }
 0x3a6   : > { %v1980_v36 = vrot.slane %v1948_v32, 7  ;;  %7624 = vmatmul.mubr.msk.f32.gmra.mxu0 %vm413_vm1, %v1948_v32  ;;  %7719 = vmatprep.subr.mxu0 %v8220_v3  ;;  %v1995_v54 = vrot.slane %v1948_v32, 1 }
 0x3a7   : > { %7673 = vmatprep.mubr.msk.f32.mxu0 %vm8221_vm2, %v8220_v3 }
 0x3a8   : > { %v1985_v41 = vsel %vm366_vm0, %v1980_v36, %v1976_v19  ;;  %v1996_v26 = vsel %vm392_vm7, %v1994_v47, %v1995_v54  ;;  %v1981_v61 = vsel %vm366_vm0, %v1979_v23, %v1980_v36  ;;  %v2000_v62 = vsel %vm392_vm7, %v1995_v54, %v1991_v35  ;;  %v6869_v54 = vld [vmem:[%s14018_s1 + $0x478] sm:$0xff] }
 0x3a9   : > { %v1986_v43 = vsel %vm321_vm6, %v1985_v41, 0.0  ;;  %v2004_v42 = vsel %vm329_vm3, %v1996_v26, 0.0  ;;  %v1990_v0 = vsel %vm325_vm12, %v1981_v61, 0.0  ;;  %v2005_v1 = vsel %vm330_vm9, %v2000_v62, 0.0  ;;  %v6845_v41 = vld [vmem:[%s14019_s2 + $0x4] ss:$0 sm:$0xff] }
 0x3aa   : > { %7643 = vmatmul.mubr.msk.f32.vlgmr.msra.gmra.mxu1 %vm413_vm1, %v1986_v43  ;;  %7674 = vmatmul.mubr.msk.f32.vlgmr.msra.gmra.mxu0 %vm413_vm1, %v2001_v44 }
 0x3ab   : > { %7645 = vmatprep.mubr.msk.f32.mxu1 %vm8221_vm2, %v8220_v3  ;;  %7676 = vmatprep.mubr.msk.f32.mxu0 %vm8221_vm2, %v8220_v3 }
 0x3ac   : > { %7689 = vmatpush3.msra.mxu1 %v6861_v2  ;;  %7720 = vmatpush3.msra.mxu0 %v6853_v14 }
 0x3ad   : > { %7690 = vmatprep.subr.mxu1 %v8220_v3  ;;  %7721 = vmatprep.subr.mxu0 %v8220_v3 }
 0x3ae   : > { %7646 = vmatmul.mubr.msk.f32.gmra.mxu1 %vm413_vm1, %v1987_v48  ;;  %7677 = vmatmul.mubr.msk.f32.gmra.mxu0 %vm413_vm1, %v2002_v50 }
 0x3af   : > { %7648 = vmatprep.mubr.msk.f32.mxu1 %vm8221_vm2, %v8220_v3  ;;  %7679 = vmatprep.mubr.msk.f32.mxu0 %vm8221_vm2, %v8220_v3 }
 0x3b0   : > { %7691 = vmatpush3.msra.mxu1 %v6860_v52  ;;  %7722 = vmatpush3.msra.mxu0 %v6852_v16  ;;  %v6865_v16 = vld [vmem:[%s14018_s1 + $0x458] sm:$0xff] }
 0x3b1   : > { %7692 = vmatprep.subr.mxu1 %v8220_v3  ;;  %7723 = vmatprep.subr.mxu0 %v8220_v3 }
 0x3b2   : > { %7649 = vmatmul.mubr.msk.f32.gmra.mxu1 %vm413_vm1, %v1988_v55  ;;  %7680 = vmatmul.mubr.msk.f32.gmra.mxu0 %vm413_vm1, %v2003_v57 }
 0x3b3   : > { %7651 = vmatprep.mubr.msk.f32.mxu1 %vm8221_vm2, %v8220_v3  ;;  %7682 = vmatprep.mubr.msk.f32.mxu0 %vm8221_vm2, %v8220_v3 }
 0x3b4   : > { %7693 = vmatpush3.msra.mxu1 %v6859_v5  ;;  %7724 = vmatpush3.msra.mxu0 %v6851_v17 }
 0x3b5   : > { %7694 = vmatprep.subr.mxu1 %v8220_v3  ;;  %7725 = vmatprep.subr.mxu0 %v8220_v3 }
 0x3b6   : > { %7652 = vmatmul.mubr.msk.f32.gmra.mxu1 %vm413_vm1, %v1989_v59  ;;  %7683 = vmatmul.mubr.msk.f32.gmra.mxu0 %vm413_vm1, %v2004_v42  ;;  %v6868_v59 = vld [vmem:[%s14018_s1 + $0x470] sm:$0xff] }
 0x3b7   : > { %7654 = vmatprep.mubr.msk.f32.mxu1 %vm8221_vm2, %v8220_v3  ;;  %7685 = vmatprep.mubr.msk.f32.mxu0 %vm8221_vm2, %v8220_v3 }
 0x3b8   : > { %7695 = vmatpush3.msra.mxu1 %v6858_v7  ;;  %7726 = vmatpush3.msra.mxu0 %v6850_v63 }
 0x3b9   : > { %7696 = vmatprep.subr.mxu1 %v8220_v3  ;;  %7727 = vmatprep.subr.mxu0 %v8220_v3 }
 0x3ba   : > { %7655 = vmatmul.mubr.msk.f32.gmra.mxu1 %vm413_vm1, %v1990_v0  ;;  %7686 = vmatmul.mubr.msk.f32.gmra.mxu0 %vm413_vm1, %v2005_v1  ;;  %v6867_v1 = vld [vmem:[%s14018_s1 + $0x468] sm:$0xff] }
 0x3bb   : > { %7704 = vmatprep.mubr.msk.f32.mxu1 %vm8221_vm2, %v8220_v3  ;;  %7735 = vmatprep.mubr.msk.f32.mxu0 %vm8221_vm2, %v8220_v3 }
 0x3bc   : > { %7697 = vmatpush3.msra.mxu1 %v6857_v33  ;;  %7728 = vmatpush3.msra.mxu0 %v6849_v18  ;;  %v6866_v33 = vld [vmem:[%s14018_s1 + $0x460] sm:$0xff] }
 0x3bd   : > { %7698 = vmatprep.subr.mxu1 %v8220_v3  ;;  %7729 = vmatprep.subr.mxu0 %v8220_v3 }
 0x3be   : > { %7699 = vmatpush3.msra.mxu1 %v6856_v8  ;;  %7730 = vmatpush3.msra.mxu0 %v6848_v34 }
 0x3bf   : > { %7700 = vmatprep.subr.mxu1 %v8220_v3  ;;  %7731 = vmatprep.subr.mxu0 %v8220_v3 }
 0x3c0   : > { %7701 = vmatpush3.msra.mxu1 %v6855_v11  ;;  %7732 = vmatpush3.msra.mxu0 %v6847_v20  ;;  %v6864_v20 = vld [vmem:[%s14018_s1 + $0x450] sm:$0xff] }
 0x3c1   : > { %7702 = vmatprep.subr.mxu1 %v8220_v3  ;;  %7733 = vmatprep.subr.mxu0 %v8220_v3 }
 0x3c2   : > { %7703 = vmatpush3.msra.mxu1 %v6854_v12  ;;  %7734 = vmatpush3.msra.mxu0 %v6846_v21 }
 0x3c3   : > { %7750 = vmatprep.subr.mxu1 %v8220_v3 }
 0x456   : > { %v2087_v22 = vpop.f32.mrf.mxu0 }
 0x458   : > { %v7613_v25 = vpop.f32.mrf.mxu0 }
 0x45a   : > { %v2092_v27 = vpop.f32.mrf.mxu0 }
 0x45c   : > { %v7616_v28 = vpop.f32.mrf.mxu0 }
 0x45d   : > { %v6863_v28 = vld [vmem:[%s14018_s1 + $0x448] sm:$0xff] }
 0x45e   : > { %v2097_v15 = vpop.f32.mrf.mxu0 }
 0x460   : > { %v7619_v30 = vpop.f32.mrf.mxu0 }
 0x462   : > { %v2102_v32 = vpop.f32.mrf.mxu0 }
 0x464   : > { %v7622_v35 = vpop.f32.mrf.mxu0 }
 0x466   : > { %v2107_v19 = vpop.f32.mrf.mxu0 }
 0x468   : > { %v7625_v36 = vpop.f32.mrf.mxu0 }
 0x46a   : > { %v2192_v39 = vpop.f32.mrf.mxu1  ;;  %v2297_v38 = vpop.f32.mrf.mxu0 }
 0x46b   : > { %v2193_v40 = vadd.f32 %v2192_v39, %v2087_v22 }
 0x46c   : > { %v7644_v43 = vpop.f32.mrf.mxu1  ;;  %v7675_v45 = vpop.f32.mrf.mxu0 }
 0x46d   : > { %v2321_v44 = vadd.f32 %v2297_v38, %v2193_v40 }
 0x46e   : > { %v2197_v46 = vpop.f32.mrf.mxu1  ;;  %v2302_v48 = vpop.f32.mrf.mxu0 }
 0x46f   : > { %v2332_v31 = vadd.f32 %v6845_v41, %v2321_v44  ;;  %v2198_v47 = vadd.f32 %v2197_v46, %v2092_v27 }
 0x470   : > { %v7647_v50 = vpop.f32.mrf.mxu1  ;;  %v7678_v53 = vpop.f32.mrf.mxu0 }
 0x471   : > { %v9469_v51 = vmax.f32 %v2332_v31, 0.0  ;;  %v2322_v23 = vadd.f32 %v2302_v48, %v2198_v47 }
 0x472   : > { %v2202_v55 = vpop.f32.mrf.mxu1  ;;  %v2307_v26 = vpop.f32.mrf.mxu0 }
 0x473   : > { %v2333_v57 = vadd.f32 %v6845_v41, %v2322_v23  ;;  %v2203_v58 = vadd.f32 %v2202_v55, %v2097_v15  ;;  %7705 = vmatmul.mubr.msk.f32.vlgmr.msra.gmra.mxu1 %vm413_vm1, %v9469_v51  ;;  %v2384_v35 = vrot.slane %v9469_v51, 1  ;;  %v2369_v36 = vrot.slane %v9469_v51, 7 }
 0x474   : > { %v7650_v42 = vpop.f32.mrf.mxu1  ;;  %7707 = vmatprep.mubr.msk.f32.mxu1 %vm8221_vm2, %v8220_v3  ;;  %7751 = vmatpush3.msra.mxu1 %v6869_v54  ;;  %v7681_v0 = vpop.f32.mrf.mxu0 }
 0x475   : > { %v9481_v61 = vmax.f32 %v2333_v57, 0.0  ;;  %v2323_v62 = vadd.f32 %v2307_v26, %v2203_v58  ;;  %7752 = vmatprep.subr.mxu1 %v8220_v3  ;;  %v3020_v0 = vld [vmem:[%s14020_s3 + $0x8c0] sm:$0xff] }
 0x476   : > { %v2207_v2 = vpop.f32.mrf.mxu1  ;;  %7753 = vmatpush3.msra.mxu1 %v6868_v59  ;;  %v2312_v7 = vpop.f32.mrf.mxu0 }
 0x477   : > { %v2334_v52 = vadd.f32 %v6845_v41, %v2323_v62  ;;  %v2208_v5 = vadd.f32 %v2207_v2, %v2102_v32  ;;  %7708 = vmatmul.mubr.msk.f32.gmra.mxu1 %vm413_vm1, %v9481_v61  ;;  %7754 = vmatprep.subr.mxu1 %v8220_v3  ;;  %v2385_v15 = vrot.slane %v9481_v61, 1  ;;  %v6862_v32 = vld [vmem:[%s14018_s1 + $0x440] sm:$0xff]  ;;  %v2370_v39 = vrot.slane %v9481_v61, 7  ;;  %v3021_v62 = vld [vmem:[%s14020_s3 + $0x8c8] sm:$0xff]  ;;  %v3023_v2 = vld [vmem:[%s14020_s3 + $0x8d8] sm:$0xff] }
 0x478   : > { %v7653_v8 = vpop.f32.mrf.mxu1  ;;  %7710 = vmatprep.mubr.msk.f32.mxu1 %vm8221_vm2, %v8220_v3  ;;  %7755 = vmatpush3.msra.mxu1 %v6867_v1  ;;  %v7684_v14 = vpop.f32.mrf.mxu0  ;;  %v2980_v1 = vld [vmem:[%s14020_s3 + $0x780] sm:$0xff] }
 0x479   : > { %v9495_v11 = vmax.f32 %v2334_v52, 0.0  ;;  %v2324_v12 = vadd.f32 %v2312_v7, %v2208_v5  ;;  %7756 = vmatprep.subr.mxu1 %v8220_v3  ;;  %v2377_v47 = vsel %vm366_vm0, %v2369_v36, %v2370_v39  ;;  %3301 = vmatprep.subr.mxu0 %v3021_v62  ;;  %v2941_v52 = vld [vmem:[%s14020_s3 + $0x648] sm:$0xff]  ;;  %v3022_v5 = vld [vmem:[%s14020_s3 + $0x8d0] sm:$0xff]  ;;  %v2940_v7 = vld [vmem:[%s14020_s3 + $0x640] sm:$0xff] }
 0x47a   : > { %v2212_v17 = vpop.f32.mrf.mxu1  ;;  %7757 = vmatpush3.msra.mxu1 %v6866_v33  ;;  %v2317_v34 = vpop.f32.mrf.mxu0  ;;  %v2380_v56 = vsel %vm322_vm15, %v2377_v47, 0.0  ;;  %v2983_v33 = vld [vmem:[%s14020_s3 + $0x798] sm:$0xff]  ;;  %v2982_v8 = vld [vmem:[%s14020_s3 + $0x790] sm:$0xff] }
 0x47b   : > { %v2335_v63 = vadd.f32 %v6845_v41, %v2324_v12  ;;  %v2213_v18 = vadd.f32 %v2212_v17, %v2107_v19  ;;  %7711 = vmatmul.mubr.msk.f32.gmra.mxu1 %vm413_vm1, %v9495_v11  ;;  %7758 = vmatprep.subr.mxu1 %v8220_v3  ;;  %v2386_v40 = vrot.slane %v9495_v11, 1  ;;  %v2371_v46 = vrot.slane %v9495_v11, 7  ;;  %v2901_v11 = vld [vmem:[%s14020_s3 + $0x508] sm:$0xff]  ;;  %v2943_v12 = vld [vmem:[%s14020_s3 + $0x658] sm:$0xff]  ;;  %v2942_v14 = vld [vmem:[%s14020_s3 + $0x650] sm:$0xff] }
 0x47c   : > { %v7656_v21 = vpop.f32.mrf.mxu1  ;;  %7713 = vmatprep.mubr.msk.f32.mxu1 %vm8221_vm2, %v8220_v3  ;;  %7759 = vmatpush3.msra.mxu1 %v6865_v16  ;;  %v7687_v27 = vpop.f32.mrf.mxu0  ;;  %v2903_v16 = vld [vmem:[%s14020_s3 + $0x518] sm:$0xff]  ;;  %v2900_v17 = vld [vmem:[%s14020_s3 + $0x500] sm:$0xff] }
 0x47d   : > { %v2340_v22 = vmax.f32 %v2335_v63, 0.0  ;;  %v2325_v25 = vadd.f32 %v2317_v34, %v2213_v18  ;;  %7760 = vmatprep.subr.mxu1 %v8220_v3  ;;  %v2391_v48 = vsel %vm392_vm7, %v2385_v15, %v2386_v40  ;;  %v2376_v53 = vsel %vm366_vm0, %v2370_v39, %v2371_v46  ;;  %v2902_v63 = vld [vmem:[%s14020_s3 + $0x510] sm:$0xff]  ;;  %v2861_v18 = vld [vmem:[%s14020_s3 + $0x3c8] sm:$0xff]  ;;  %v2863_v34 = vld [vmem:[%s14020_s3 + $0x3d8] sm:$0xff] }
 0x47e   : > { %7761 = vmatpush3.msra.mxu1 %v6864_v20  ;;  %v2395_v50 = vsel %vm327_vm13, %v2391_v48, 0.0  ;;  %v2381_v4 = vsel %vm323_vm4, %v2376_v53, 0.0  ;;  %v2860_v20 = vld [vmem:[%s14020_s3 + $0x3c0] sm:$0xff]  ;;  %v2862_v21 = vld [vmem:[%s14020_s3 + $0x3d0] sm:$0xff] }
 0x47f   : > { %v2336_v30 = vadd.f32 %v6845_v41, %v2325_v25  ;;  %7714 = vmatmul.mubr.msk.f32.gmra.mxu1 %vm413_vm1, %v2340_v22  ;;  %7762 = vmatprep.subr.mxu1 %v8220_v3  ;;  %v2392_v41 = vsel %vm392_vm7, %v2384_v35, %v2385_v15  ;;  %v2387_v31 = vrot.slane %v2340_v22, 1  ;;  %v2372_v51 = vrot.slane %v2340_v22, 7  ;;  %v2821_v22 = vld [vmem:[%s14020_s3 + $0x288] sm:$0xff]  ;;  %v2823_v25 = vld [vmem:[%s14020_s3 + $0x298] sm:$0xff]  ;;  %v2820_v27 = vld [vmem:[%s14020_s3 + $0x280] sm:$0xff] }
 0x480   : > { %7716 = vmatprep.mubr.msk.f32.mxu1 %vm8221_vm2, %v8220_v3  ;;  %7763 = vmatpush3.msra.mxu1 %v6863_v28  ;;  %v2394_v45 = vsel %vm326_vm8, %v2392_v41, 0.0  ;;  %v2822_v28 = vld [vmem:[%s14020_s3 + $0x290] sm:$0xff]  ;;  %v2781_v15 = vld [vmem:[%s14020_s3 + $0x148] sm:$0xff]  ;;  %v2740_v39 = vld [vmem:[%s14020_s3] sm:$0xff] }
 0x481   : > { %v2341_v19 = vmax.f32 %v2336_v30, 0.0  ;;  %7764 = vmatprep.subr.mxu1 %v8220_v3  ;;  %v2390_v54 = vsel %vm392_vm7, %v2386_v40, %v2387_v31  ;;  %v2375_v57 = vsel %vm366_vm0, %v2371_v46, %v2372_v51  ;;  %v2783_v30 = vld [vmem:[%s14020_s3 + $0x158] sm:$0xff]  ;;  %v2742_v40 = vld [vmem:[%s14020_s3 + $0x10] sm:$0xff] }
 0x482   : > { %7765 = vmatpush3.msra.mxu1 %v6862_v32  ;;  %v2396_v55 = vsel %vm328_vm14, %v2390_v54, 0.0  ;;  %v2382_v9 = vsel %vm324_vm5, %v2375_v57, 0.0  ;;  %v2780_v32 = vld [vmem:[%s14020_s3 + $0x140] sm:$0xff]  ;;  %v3027_v41 = vld [vmem:[%s14020_s3 + $0x8f8] sm:$0xff] }
 0x483   : > { %v2373_v38 = vrot.slane %v2341_v19, 7  ;;  %7717 = vmatmul.mubr.msk.f32.gmra.mxu1 %vm413_vm1, %v2341_v19  ;;  %v2388_v23 = vrot.slane %v2341_v19, 1  ;;  %3396 = vmatprep.subr.mxu1 %v3023_v2  ;;  %v2741_v19 = vld [vmem:[%s14020_s3 + $0x8] sm:$0xff] }
 0x484   : > { %7766 = vmatprep.mubr.msk.f32.mxu1 %vm8221_vm2, %v8220_v3 }
 0x485   : > { %v2378_v43 = vsel %vm366_vm0, %v2373_v38, %v2369_v36  ;;  %v2389_v58 = vsel %vm392_vm7, %v2387_v31, %v2388_v23  ;;  %v2374_v59 = vsel %vm366_vm0, %v2372_v51, %v2373_v38  ;;  %v2393_v42 = vsel %vm392_vm7, %v2388_v23, %v2384_v35  ;;  %v2782_v35 = vld [vmem:[%s14020_s3 + $0x150] sm:$0xff]  ;;  %v2743_v36 = vld [vmem:[%s14020_s3 + $0x18] sm:$0xff]  ;;  %v3025_v38 = vld [vmem:[%s14020_s3 + $0x8e8] sm:$0xff] }
 0x486   : > { %v2379_v44 = vsel %vm321_vm6, %v2378_v43, 0.0  ;;  %v2397_v26 = vsel %vm329_vm3, %v2389_v58, 0.0  ;;  %v2383_v13 = vsel %vm325_vm12, %v2374_v59, 0.0  ;;  %v2398_v61 = vsel %vm330_vm9, %v2393_v42, 0.0 }
 0x487   : > { %7736 = vmatmul.mubr.msk.f32.vlgmr.msra.gmra.mxu0 %vm413_vm1, %v2379_v44  ;;  %7767 = vmatmul.mubr.msk.f32.vlgmr.msra.gmra.mxu1 %vm413_vm1, %v2394_v45  ;;  %vm6439_vm0 = vcmask 64512  }
 0x488   : > { %7738 = vmatprep.mubr.msk.f32.mxu0 %vm8221_vm2, %v8220_v3  ;;  %7769 = vmatprep.mubr.msk.f32.mxu1 %vm8221_vm2, %v8220_v3 }
 0x489   : > { %3302 = vmatpush1.msra.mxu0 %v3020_v0  ;;  %3397 = vmatpush1.msra.mxu1 %v3022_v5 }
 0x48a   : > { %3303 = vmatprep.subr.mxu0 %v2981_v37  ;;  %3398 = vmatprep.subr.mxu1 %v2983_v33 }
 0x48b   : > { %7739 = vmatmul.mubr.msk.f32.gmra.mxu0 %vm413_vm1, %v2380_v56  ;;  %7770 = vmatmul.mubr.msk.f32.gmra.mxu1 %vm413_vm1, %v2395_v50 }
 0x48c   : > { %7741 = vmatprep.mubr.msk.f32.mxu0 %vm8221_vm2, %v8220_v3  ;;  %7772 = vmatprep.mubr.msk.f32.mxu1 %vm8221_vm2, %v8220_v3 }
 0x48d   : > { %3304 = vmatpush1.msra.mxu0 %v2980_v1  ;;  %3399 = vmatpush1.msra.mxu1 %v2982_v8 }
 0x48e   : > { %3305 = vmatprep.subr.mxu0 %v2941_v52  ;;  %3400 = vmatprep.subr.mxu1 %v2943_v12 }
 0x48f   : > { %7742 = vmatmul.mubr.msk.f32.gmra.mxu0 %vm413_vm1, %v2381_v4  ;;  %7773 = vmatmul.mubr.msk.f32.gmra.mxu1 %vm413_vm1, %v2396_v55  ;;  %v9703_v4 = vld [vmem:[%s14019_s2 + $0x5] ss:$0 sm:$0xff] }
 0x490   : > { %7744 = vmatprep.mubr.msk.f32.mxu0 %vm8221_vm2, %v8220_v3  ;;  %7775 = vmatprep.mubr.msk.f32.mxu1 %vm8221_vm2, %v8220_v3 }
 0x491   : > { %3306 = vmatpush1.msra.mxu0 %v2940_v7  ;;  %3401 = vmatpush1.msra.mxu1 %v2942_v14  ;;  %v3024_v7 = vld [vmem:[%s14020_s3 + $0x8e0] sm:$0xff] }
 0x492   : > { %3307 = vmatprep.subr.mxu0 %v2901_v11  ;;  %3402 = vmatprep.subr.mxu1 %v2903_v16  ;;  %v2985_v11 = vld [vmem:[%s14020_s3 + $0x7a8] sm:$0xff]  ;;  %v3026_v16 = vld [vmem:[%s14020_s3 + $0x8f0] sm:$0xff] }
 0x493   : > { %7745 = vmatmul.mubr.msk.f32.gmra.mxu0 %vm413_vm1, %v2382_v9  ;;  %7776 = vmatmul.mubr.msk.f32.gmra.mxu1 %vm413_vm1, %v2397_v26 }
 0x494   : > { %7747 = vmatprep.mubr.msk.f32.mxu0 %vm8221_vm2, %v8220_v3  ;;  %7778 = vmatprep.mubr.msk.f32.mxu1 %vm8221_vm2, %v8220_v3 }
 0x495   : > { %3308 = vmatpush1.msra.mxu0 %v2900_v17  ;;  %3403 = vmatpush1.msra.mxu1 %v2902_v63 }
 0x496   : > { %3309 = vmatprep.subr.mxu0 %v2861_v18  ;;  %3404 = vmatprep.subr.mxu1 %v2863_v34 }
 0x497   : > { %7748 = vmatmul.mubr.msk.f32.gmra.mxu0 %vm413_vm1, %v2383_v13  ;;  %7779 = vmatmul.mubr.msk.f32.gmra.mxu1 %vm413_vm1, %v2398_v61 }
 0x498   : > { %3349 = vmatprep.mubr.f32.mxu0 %v8220_v3  ;;  %3444 = vmatprep.mubr.f32.mxu1 %v8220_v3 }
 0x499   : > { %3310 = vmatpush1.msra.mxu0 %v2860_v20  ;;  %3405 = vmatpush1.msra.mxu1 %v2862_v21  ;;  %v2945_v21 = vld [vmem:[%s14020_s3 + $0x668] sm:$0xff] }
 0x49a   : > { %3311 = vmatprep.subr.mxu0 %v2821_v22  ;;  %3406 = vmatprep.subr.mxu1 %v2823_v25  ;;  %v2987_v22 = vld [vmem:[%s14020_s3 + $0x7b8] sm:$0xff] }
 0x49b   : > { %3312 = vmatpush1.msra.mxu0 %v2820_v27  ;;  %3407 = vmatpush1.msra.mxu1 %v2822_v28 }
 0x49c   : > { %3313 = vmatprep.subr.mxu0 %v2781_v15  ;;  %3408 = vmatprep.subr.mxu1 %v2783_v30  ;;  %v2986_v30 = vld [vmem:[%s14020_s3 + $0x7b0] sm:$0xff] }
 0x49d   : > { %3314 = vmatpush1.msra.mxu0 %v2780_v32  ;;  %3409 = vmatpush1.msra.mxu1 %v2782_v35 }
 0x49e   : > { %3315 = vmatprep.subr.mxu0 %v2741_v19  ;;  %3410 = vmatprep.subr.mxu1 %v2743_v36 }
 0x49f   : > { %3316 = vmatpush1.msra.mxu0 %v2740_v39  ;;  %3411 = vmatpush1.msra.mxu1 %v2742_v40  ;;  %v2905_v40 = vld [vmem:[%s14020_s3 + $0x528] sm:$0xff] }
 0x4a0   : > { %3491 = vmatprep.subr.mxu0 %v3025_v38  ;;  %3586 = vmatprep.subr.mxu1 %v3027_v41  ;;  %v2947_v38 = vld [vmem:[%s14020_s3 + $0x678] sm:$0xff] }
 0x533   : > { %v2480_v43 = vpop.f32.mrf.mxu1 }
 0x535   : > { %v7706_v44 = vpop.f32.mrf.mxu1 }
 0x536   : > { %v2946_v44 = vld [vmem:[%s14020_s3 + $0x670] sm:$0xff] }
 0x537   : > { %v2485_v45 = vpop.f32.mrf.mxu1 }
 0x539   : > { %v7709_v46 = vpop.f32.mrf.mxu1 }
 0x53b   : > { %v2490_v31 = vpop.f32.mrf.mxu1 }
 0x53d   : > { %v7712_v47 = vpop.f32.mrf.mxu1 }
 0x53e   : > { %v2907_v47 = vld [vmem:[%s14020_s3 + $0x538] sm:$0xff] }
 0x53f   : > { %v2495_v48 = vpop.f32.mrf.mxu1 }
 0x541   : > { %v7715_v56 = vpop.f32.mrf.mxu1 }
 0x543   : > { %v2500_v50 = vpop.f32.mrf.mxu1 }
 0x545   : > { %v7718_v51 = vpop.f32.mrf.mxu1 }
 0x546   : > { %v2906_v51 = vld [vmem:[%s14020_s3 + $0x530] sm:$0xff] }
 0x547   : > { %v2585_v23 = vpop.f32.mrf.mxu0  ;;  %v2690_v53 = vpop.f32.mrf.mxu1 }
 0x548   : > { %v2586_v54 = vadd.f32 %v2585_v23, %v2480_v43 }
 0x549   : > { %v7737_v55 = vpop.f32.mrf.mxu0  ;;  %v7768_v57 = vpop.f32.mrf.mxu1 }
 0x54a   : > { %v2714_v58 = vadd.f32 %v2690_v53, %v2586_v54  ;;  %v2825_v53 = vld [vmem:[%s14020_s3 + $0x2a8] sm:$0xff]  ;;  %v2866_v54 = vld [vmem:[%s14020_s3 + $0x3f0] sm:$0xff]  ;;  %v2827_v55 = vld [vmem:[%s14020_s3 + $0x2b8] sm:$0xff] }
 0x54b   : > { %v2590_v9 = vpop.f32.mrf.mxu0  ;;  %v2695_v26 = vpop.f32.mrf.mxu1 }
 0x54c   : > { %v2725_v59 = vadd.f32 %v9703_v4, %v2714_v58  ;;  %v2591_v42 = vadd.f32 %v2590_v9, %v2485_v45  ;;  %v2785_v58 = vld [vmem:[%s14020_s3 + $0x168] sm:$0xff]  ;;  %v2826_v9 = vld [vmem:[%s14020_s3 + $0x2b0] sm:$0xff] }
 0x54d   : > { %v7740_v13 = vpop.f32.mrf.mxu0  ;;  %v7771_v61 = vpop.f32.mrf.mxu1 }
 0x54e   : > { %v2730_v62 = vmul.f32 0.3, %v2725_v59  ;;  %v2715_v0 = vadd.f32 %v2695_v26, %v2591_v42  ;;  %v2787_v26 = vld [vmem:[%s14020_s3 + $0x178] sm:$0xff]  ;;  %v2745_v59 = vld [vmem:[%s14020_s3 + $0x28] sm:$0xff]  ;;  %v2786_v42 = vld [vmem:[%s14020_s3 + $0x170] sm:$0xff] }
 0x54f   : > { %v2595_v37 = vpop.f32.mrf.mxu0  ;;  %v2700_v1 = vpop.f32.mrf.mxu1  ;;  %v2744_v13 = vld [vmem:[%s14020_s3 + $0x20] sm:$0xff]  ;;  %v2747_v61 = vld [vmem:[%s14020_s3 + $0x38] sm:$0xff] }
 0x550   : > { %v9707_v2 = vadd.f32 %v2730_v62, %v9252_v49  ;;  %v2726_v52 = vadd.f32 %v9703_v4, %v2715_v0  ;;  %v2596_v5 = vadd.f32 %v2595_v37, %v2490_v31  ;;  %v2984_v49 = vld [vmem:[%s14020_s3 + $0x7a0] sm:$0xff]  ;;  %v2865_v31 = vld [vmem:[%s14020_s3 + $0x3e8] sm:$0xff]  ;;  %v2746_v62 = vld [vmem:[%s14020_s3 + $0x30] sm:$0xff] }
 0x551   : > { %v7743_v33 = vpop.f32.mrf.mxu0  ;;  %v7774_v8 = vpop.f32.mrf.mxu1  ;;  %v3029_v0 = vld [vmem:[%s14020_s3 + $0x908] sm:$0xff]  ;;  %v3028_v37 = vld [vmem:[%s14020_s3 + $0x900] sm:$0xff] }
 0x552   : > { %v2731_v12 = vmul.f32 0.3, %v2726_v52  ;;  %v2716_v14 = vadd.f32 %v2700_v1, %v2596_v5  ;;  %6887 = vmatmul.mubr.msk.f32.vlgmr.msra.gmra.mxu0 %vm413_vm1, %v9707_v2  ;;  %6892 = vmatmul.mubr.msk.f32.vlgmr.msra.gmra.mxu1 %vm413_vm1, %v9707_v2  ;;  %v2989_v1 = vld [vmem:[%s14020_s3 + $0x7c8] sm:$0xff]  ;;  %v3031_v52 = vld [vmem:[%s14020_s3 + $0x918] sm:$0xff]  ;;  %v2988_v5 = vld [vmem:[%s14020_s3 + $0x7c0] sm:$0xff] }
 0x553   : > { %v2600_v17 = vpop.f32.mrf.mxu0  ;;  %v2705_v63 = vpop.f32.mrf.mxu1  ;;  %3492 = vmatpush1.msra.mxu0 %v3024_v7  ;;  %3355 = vmatprep.mubr.f32.mxu0 %v8220_v3  ;;  %v3030_v7 = vld [vmem:[%s14020_s3 + $0x910] sm:$0xff]  ;;  %v2949_v33 = vld [vmem:[%s14020_s3 + $0x688] sm:$0xff]  ;;  %v2991_v8 = vld [vmem:[%s14020_s3 + $0x7d8] sm:$0xff] }
 0x554   : > { %v9728_v18 = vadd.f32 %v2731_v12, %v9261_v60  ;;  %v2727_v34 = vadd.f32 %v9703_v4, %v2716_v14  ;;  %v2601_v20 = vadd.f32 %v2600_v17, %v2495_v48  ;;  %3450 = vmatprep.mubr.f32.mxu1 %v8220_v3  ;;  %3493 = vmatprep.subr.mxu0 %v2985_v11  ;;  %v2944_v60 = vld [vmem:[%s14020_s3 + $0x660] sm:$0xff]  ;;  %v2990_v12 = vld [vmem:[%s14020_s3 + $0x7d0] sm:$0xff]  ;;  %v2909_v14 = vld [vmem:[%s14020_s3 + $0x548] sm:$0xff] }
 0x555   : > { %v7746_v25 = vpop.f32.mrf.mxu0  ;;  %v7777_v27 = vpop.f32.mrf.mxu1  ;;  %3494 = vmatpush1.msra.mxu0 %v2984_v49  ;;  %3587 = vmatpush1.msra.mxu1 %v3026_v16  ;;  %v2948_v11 = vld [vmem:[%s14020_s3 + $0x680] sm:$0xff]  ;;  %v2951_v49 = vld [vmem:[%s14020_s3 + $0x698] sm:$0xff]  ;;  %v2950_v17 = vld [vmem:[%s14020_s3 + $0x690] sm:$0xff] }
 0x556   : > { %v2732_v28 = vmul.f32 0.3, %v2727_v34  ;;  %v2717_v15 = vadd.f32 %v2705_v63, %v2601_v20  ;;  %6888 = vmatmul.mubr.msk.f32.gmra.mxu0 %vm413_vm1, %v9728_v18  ;;  %6893 = vmatmul.mubr.msk.f32.gmra.mxu1 %vm413_vm1, %v9728_v18  ;;  %v2908_v16 = vld [vmem:[%s14020_s3 + $0x540] sm:$0xff]  ;;  %v2869_v63 = vld [vmem:[%s14020_s3 + $0x408] sm:$0xff]  ;;  %v2911_v34 = vld [vmem:[%s14020_s3 + $0x558] sm:$0xff] }
 0x557   : > { %v2605_v32 = vpop.f32.mrf.mxu0  ;;  %v2710_v35 = vpop.f32.mrf.mxu1  ;;  %3495 = vmatprep.subr.mxu0 %v2945_v21  ;;  %3588 = vmatprep.subr.mxu1 %v2987_v22  ;;  %v2868_v20 = vld [vmem:[%s14020_s3 + $0x400] sm:$0xff]  ;;  %v2910_v21 = vld [vmem:[%s14020_s3 + $0x550] sm:$0xff]  ;;  %v2871_v22 = vld [vmem:[%s14020_s3 + $0x418] sm:$0xff] }
 0x558   : > { %v9749_v19 = vadd.f32 %v2732_v28, %v9278_v10  ;;  %v2728_v36 = vadd.f32 %v9703_v4, %v2717_v15  ;;  %v2606_v39 = vadd.f32 %v2605_v32, %v2500_v50  ;;  %3496 = vmatpush1.msra.mxu0 %v2944_v60  ;;  %3361 = vmatprep.mubr.f32.mxu0 %v8220_v3  ;;  %v2904_v10 = vld [vmem:[%s14020_s3 + $0x520] sm:$0xff]  ;;  %v2829_v25 = vld [vmem:[%s14020_s3 + $0x2c8] sm:$0xff]  ;;  %v2870_v27 = vld [vmem:[%s14020_s3 + $0x410] sm:$0xff] }
 0x559   : > { %v7749_v41 = vpop.f32.mrf.mxu0  ;;  %v7780_v43 = vpop.f32.mrf.mxu1  ;;  %3456 = vmatprep.mubr.f32.mxu1 %v8220_v3  ;;  %3589 = vmatpush1.msra.mxu1 %v2986_v30  ;;  %v2864_v50 = vld [vmem:[%s14020_s3 + $0x3e0] sm:$0xff]  ;;  %v2831_v28 = vld [vmem:[%s14020_s3 + $0x2d8] sm:$0xff]  ;;  %v2789_v15 = vld [vmem:[%s14020_s3 + $0x188] sm:$0xff] }
 0x55a   : > { %v2733_v45 = vmul.f32 0.3, %v2728_v36  ;;  %v2718_v46 = vadd.f32 %v2710_v35, %v2606_v39  ;;  %6889 = vmatmul.mubr.msk.f32.gmra.mxu0 %vm413_vm1, %v9749_v19  ;;  %6894 = vmatmul.mubr.msk.f32.gmra.mxu1 %vm413_vm1, %v9749_v19  ;;  %v2828_v60 = vld [vmem:[%s14020_s3 + $0x2c0] sm:$0xff]  ;;  %v2830_v30 = vld [vmem:[%s14020_s3 + $0x2d0] sm:$0xff]  ;;  %v2791_v35 = vld [vmem:[%s14020_s3 + $0x198] sm:$0xff] }
 0x55b   : > { %3497 = vmatprep.subr.mxu0 %v2905_v40  ;;  %3590 = vmatprep.subr.mxu1 %v2947_v38  ;;  %v2788_v32 = vld [vmem:[%s14020_s3 + $0x180] sm:$0xff]  ;;  %v2749_v36 = vld [vmem:[%s14020_s3 + $0x48] sm:$0xff]  ;;  %v2790_v39 = vld [vmem:[%s14020_s3 + $0x190] sm:$0xff] }
 0x55c   : > { %v9777_v48 = vadd.f32 %v2733_v45, %v9302_v24  ;;  %v2729_v56 = vadd.f32 %v9703_v4, %v2718_v46  ;;  %3498 = vmatpush1.msra.mxu0 %v2904_v10  ;;  %3591 = vmatpush1.msra.mxu1 %v2946_v44  ;;  %v2867_v24 = vld [vmem:[%s14020_s3 + $0x3f8] sm:$0xff]  ;;  %v2824_v4 = vld [vmem:[%s14020_s3 + $0x2a0] sm:$0xff]  ;;  %v2750_v41 = vld [vmem:[%s14020_s3 + $0x50] sm:$0xff] }
 0x55d   : > { %3499 = vmatprep.subr.mxu0 %v2865_v31  ;;  %3592 = vmatprep.subr.mxu1 %v2907_v47  ;;  %v2748_v40 = vld [vmem:[%s14020_s3 + $0x40] sm:$0xff]  ;;  %v2751_v38 = vld [vmem:[%s14020_s3 + $0x58] sm:$0xff]  ;;  %v3033_v43 = vld [vmem:[%s14020_s3 + $0x928] sm:$0xff] }
 0x55e   : > { %v2734_v23 = vmul.f32 0.3, %v2729_v56  ;;  %3367 = vmatprep.mubr.f32.mxu0 %v8220_v3  ;;  %3462 = vmatprep.mubr.f32.mxu1 %v8220_v3  ;;  %v3032_v10 = vld [vmem:[%s14020_s3 + $0x920] sm:$0xff]  ;;  %v2993_v44 = vld [vmem:[%s14020_s3 + $0x7e8] sm:$0xff]  ;;  %v3035_v45 = vld [vmem:[%s14020_s3 + $0x938] sm:$0xff] }
 0x55f   : > { %3500 = vmatpush1.msra.mxu0 %v2864_v50  ;;  %3593 = vmatpush1.msra.mxu1 %v2906_v51  ;;  %v2992_v46 = vld [vmem:[%s14020_s3 + $0x7e0] sm:$0xff]  ;;  %v3034_v31 = vld [vmem:[%s14020_s3 + $0x930] sm:$0xff]  ;;  %v2953_v47 = vld [vmem:[%s14020_s3 + $0x6a8] sm:$0xff] }
 0x560   : > { %6890 = vmatmul.mubr.msk.f32.gmra.mxu0 %vm413_vm1, %v9777_v48  ;;  %6895 = vmatmul.mubr.msk.f32.gmra.mxu1 %vm413_vm1, %v9777_v48  ;;  %v9808_v57 = vadd.f32 %v2734_v23, %v9312_v29  ;;  %v2784_v29 = vld [vmem:[%s14020_s3 + $0x160] sm:$0xff]  ;;  %v2995_v56 = vld [vmem:[%s14020_s3 + $0x7f8] sm:$0xff]  ;;  %v2994_v51 = vld [vmem:[%s14020_s3 + $0x7f0] sm:$0xff] }
 0x561   : > { %3594 = vmatprep.subr.mxu1 %v2867_v24  ;;  %3501 = vmatprep.subr.mxu0 %v2825_v53  ;;  %v2952_v50 = vld [vmem:[%s14020_s3 + $0x6a0] sm:$0xff]  ;;  %v2913_v23 = vld [vmem:[%s14020_s3 + $0x568] sm:$0xff]  ;;  %v2955_v24 = vld [vmem:[%s14020_s3 + $0x6b8] sm:$0xff] }
 0x562   : > { %3595 = vmatpush1.msra.mxu1 %v2866_v54  ;;  %3502 = vmatpush1.msra.mxu0 %v2824_v4  ;;  %v2912_v53 = vld [vmem:[%s14020_s3 + $0x560] sm:$0xff]  ;;  %v2954_v54 = vld [vmem:[%s14020_s3 + $0x6b0] sm:$0xff]  ;;  %v2873_v4 = vld [vmem:[%s14020_s3 + $0x428] sm:$0xff] }
 0x563   : > { %3596 = vmatprep.subr.mxu1 %v2827_v55  ;;  %3373 = vmatprep.mubr.f32.mxu0 %v8220_v3  ;;  %v2915_v55 = vld [vmem:[%s14020_s3 + $0x578] sm:$0xff] }
 0x564   : > { %3468 = vmatprep.mubr.f32.mxu1 %v8220_v3  ;;  %3503 = vmatprep.subr.mxu0 %v2785_v58  ;;  %v2872_v58 = vld [vmem:[%s14020_s3 + $0x420] sm:$0xff] }
 0x565   : > { %3597 = vmatpush1.msra.mxu1 %v2826_v9  ;;  %6891 = vmatmul.mubr.msk.f32.gmra.mxu0 %vm413_vm1, %v9808_v57  ;;  %v2914_v9 = vld [vmem:[%s14020_s3 + $0x570] sm:$0xff] }
 0x566   : > { %6896 = vmatmul.mubr.msk.f32.gmra.mxu1 %vm413_vm1, %v9808_v57  ;;  %3504 = vmatpush1.msra.mxu0 %v2784_v29  ;;  %v2875_v29 = vld [vmem:[%s14020_s3 + $0x438] sm:$0xff] }
 0x567   : > { %3598 = vmatprep.subr.mxu1 %v2787_v26  ;;  %3505 = vmatprep.subr.mxu0 %v2745_v59  ;;  %v2833_v26 = vld [vmem:[%s14020_s3 + $0x2e8] sm:$0xff]  ;;  %v2874_v59 = vld [vmem:[%s14020_s3 + $0x430] sm:$0xff] }
 0x568   : > { %3599 = vmatpush1.msra.mxu1 %v2786_v42  ;;  %3506 = vmatpush1.msra.mxu0 %v2744_v13  ;;  %v2832_v42 = vld [vmem:[%s14020_s3 + $0x2e0] sm:$0xff]  ;;  %v2835_v13 = vld [vmem:[%s14020_s3 + $0x2f8] sm:$0xff] }
 0x569   : > { %3600 = vmatprep.subr.mxu1 %v2747_v61  ;;  %3539 = vmatprep.mubr.f32.mxu0 %v8220_v3  ;;  %v2793_v61 = vld [vmem:[%s14020_s3 + $0x1a8] sm:$0xff] }
 0x56a   : > { %3601 = vmatpush1.msra.mxu1 %v2746_v62  ;;  %3634 = vmatprep.mubr.f32.mxu1 %v8220_v3  ;;  %v2834_v62 = vld [vmem:[%s14020_s3 + $0x2f0] sm:$0xff] }
 0x56b   : > { %6897 = vmatmul.mubr.msk.f32.vlgmr.msra.gmra.mxu0 %vm413_vm1, %v9707_v2  ;;  %6902 = vmatmul.mubr.msk.f32.vlgmr.msra.gmra.mxu1 %vm413_vm1, %v9707_v2 }
 0x56c   : > { %3681 = vmatprep.subr.mxu0 %v3029_v0  ;;  %3545 = vmatprep.mubr.f32.mxu0 %v8220_v3  ;;  %v2792_v0 = vld [vmem:[%s14020_s3 + $0x1a0] sm:$0xff] }
 0x56d   : > { %3682 = vmatpush1.msra.mxu0 %v3028_v37  ;;  %3640 = vmatprep.mubr.f32.mxu1 %v8220_v3  ;;  %v2795_v37 = vld [vmem:[%s14020_s3 + $0x1b8] sm:$0xff] }
 0x56e   : > { %3683 = vmatprep.subr.mxu0 %v2989_v1  ;;  %3776 = vmatprep.subr.mxu1 %v3031_v52  ;;  %v2753_v1 = vld [vmem:[%s14020_s3 + $0x68] sm:$0xff]  ;;  %v2794_v52 = vld [vmem:[%s14020_s3 + $0x1b0] sm:$0xff] }
 0x56f   : > { %6898 = vmatmul.mubr.msk.f32.gmra.mxu0 %vm413_vm1, %v9728_v18  ;;  %6903 = vmatmul.mubr.msk.f32.gmra.mxu1 %vm413_vm1, %v9728_v18 }
 0x570   : > { %3684 = vmatpush1.msra.mxu0 %v2988_v5  ;;  %3777 = vmatpush1.msra.mxu1 %v3030_v7  ;;  %v2752_v5 = vld [vmem:[%s14020_s3 + $0x60] sm:$0xff]  ;;  %v2755_v7 = vld [vmem:[%s14020_s3 + $0x78] sm:$0xff] }
 0x571   : > { %3685 = vmatprep.subr.mxu0 %v2949_v33  ;;  %3778 = vmatprep.subr.mxu1 %v2991_v8  ;;  %v2754_v33 = vld [vmem:[%s14020_s3 + $0x70] sm:$0xff]  ;;  %v3037_v8 = vld [vmem:[%s14020_s3 + $0x948] sm:$0xff] }
 0x572   : > { %3686 = vmatpush1.msra.mxu0 %v2948_v11  ;;  %3551 = vmatprep.mubr.f32.mxu0 %v8220_v3  ;;  %v3036_v11 = vld [vmem:[%s14020_s3 + $0x940] sm:$0xff] }
 0x573   : > { %3646 = vmatprep.mubr.f32.mxu1 %v8220_v3  ;;  %3779 = vmatpush1.msra.mxu1 %v2990_v12  ;;  %v2997_v12 = vld [vmem:[%s14020_s3 + $0x808] sm:$0xff] }
 0x574   : > { %6899 = vmatmul.mubr.msk.f32.gmra.mxu0 %vm413_vm1, %v9749_v19  ;;  %6904 = vmatmul.mubr.msk.f32.gmra.mxu1 %vm413_vm1, %v9749_v19 }
 0x575   : > { %3687 = vmatprep.subr.mxu0 %v2909_v14  ;;  %3780 = vmatprep.subr.mxu1 %v2951_v49  ;;  %v3039_v14 = vld [vmem:[%s14020_s3 + $0x958] sm:$0xff]  ;;  %v2996_v49 = vld [vmem:[%s14020_s3 + $0x800] sm:$0xff] }
 0x576   : > { %3688 = vmatpush1.msra.mxu0 %v2908_v16  ;;  %3781 = vmatpush1.msra.mxu1 %v2950_v17  ;;  %v3038_v16 = vld [vmem:[%s14020_s3 + $0x950] sm:$0xff]  ;;  %v2957_v17 = vld [vmem:[%s14020_s3 + $0x6c8] sm:$0xff] }
 0x577   : > { %3689 = vmatprep.subr.mxu0 %v2869_v63  ;;  %3782 = vmatprep.subr.mxu1 %v2911_v34  ;;  %v2999_v63 = vld [vmem:[%s14020_s3 + $0x818] sm:$0xff]  ;;  %v2956_v34 = vld [vmem:[%s14020_s3 + $0x6c0] sm:$0xff] }
 0x578   : > { %3557 = vmatprep.mubr.f32.mxu0 %v8220_v3  ;;  %3652 = vmatprep.mubr.f32.mxu1 %v8220_v3 }
 0x579   : > { %3690 = vmatpush1.msra.mxu0 %v2868_v20  ;;  %3783 = vmatpush1.msra.mxu1 %v2910_v21  ;;  %v2998_v20 = vld [vmem:[%s14020_s3 + $0x810] sm:$0xff]  ;;  %v2917_v21 = vld [vmem:[%s14020_s3 + $0x588] sm:$0xff] }
 0x57a   : > { %6900 = vmatmul.mubr.msk.f32.gmra.mxu0 %vm413_vm1, %v9777_v48  ;;  %6905 = vmatmul.mubr.msk.f32.gmra.mxu1 %vm413_vm1, %v9777_v48 }
 0x57b   : > { %3784 = vmatprep.subr.mxu1 %v2871_v22  ;;  %3691 = vmatprep.subr.mxu0 %v2829_v25  ;;  %v2959_v22 = vld [vmem:[%s14020_s3 + $0x6d8] sm:$0xff]  ;;  %v2916_v25 = vld [vmem:[%s14020_s3 + $0x580] sm:$0xff] }
 0x57c   : > { %3785 = vmatpush1.msra.mxu1 %v2870_v27  ;;  %3692 = vmatpush1.msra.mxu0 %v2828_v60  ;;  %v2958_v27 = vld [vmem:[%s14020_s3 + $0x6d0] sm:$0xff]  ;;  %v2877_v60 = vld [vmem:[%s14020_s3 + $0x448] sm:$0xff] }
 0x57d   : > { %3786 = vmatprep.subr.mxu1 %v2831_v28  ;;  %3563 = vmatprep.mubr.f32.mxu0 %v8220_v3  ;;  %v2919_v28 = vld [vmem:[%s14020_s3 + $0x598] sm:$0xff] }
 0x57e   : > { %3658 = vmatprep.mubr.f32.mxu1 %v8220_v3  ;;  %3693 = vmatprep.subr.mxu0 %v2789_v15  ;;  %v2876_v15 = vld [vmem:[%s14020_s3 + $0x440] sm:$0xff] }
 0x57f   : > { %3787 = vmatpush1.msra.mxu1 %v2830_v30  ;;  %6901 = vmatmul.mubr.msk.f32.gmra.mxu0 %vm413_vm1, %v9808_v57  ;;  %v2918_v30 = vld [vmem:[%s14020_s3 + $0x590] sm:$0xff] }
 0x580   : > { %6906 = vmatmul.mubr.msk.f32.gmra.mxu1 %vm413_vm1, %v9808_v57  ;;  %3694 = vmatpush1.msra.mxu0 %v2788_v32  ;;  %v2879_v32 = vld [vmem:[%s14020_s3 + $0x458] sm:$0xff] }
 0x581   : > { %3788 = vmatprep.subr.mxu1 %v2791_v35  ;;  %3695 = vmatprep.subr.mxu0 %v2749_v36  ;;  %v2837_v35 = vld [vmem:[%s14020_s3 + $0x308] sm:$0xff]  ;;  %v2878_v36 = vld [vmem:[%s14020_s3 + $0x450] sm:$0xff] }
 0x582   : > { %3789 = vmatpush1.msra.mxu1 %v2790_v39  ;;  %3696 = vmatpush1.msra.mxu0 %v2748_v40  ;;  %v2836_v39 = vld [vmem:[%s14020_s3 + $0x300] sm:$0xff]  ;;  %v2839_v40 = vld [vmem:[%s14020_s3 + $0x318] sm:$0xff] }
 0x583   : > { %3790 = vmatprep.subr.mxu1 %v2751_v38  ;;  %3729 = vmatprep.mubr.f32.mxu0 %v8220_v3  ;;  %v2797_v38 = vld [vmem:[%s14020_s3 + $0x1c8] sm:$0xff] }
 0x584   : > { %3791 = vmatpush1.msra.mxu1 %v2750_v41  ;;  %3824 = vmatprep.mubr.f32.mxu1 %v8220_v3  ;;  %v2838_v41 = vld [vmem:[%s14020_s3 + $0x310] sm:$0xff] }
 0x585   : > { %6907 = vmatmul.mubr.msk.f32.vlgmr.msra.gmra.mxu0 %vm413_vm1, %v9707_v2  ;;  %6912 = vmatmul.mubr.msk.f32.vlgmr.msra.gmra.mxu1 %vm413_vm1, %v9707_v2 }
 0x586   : > { %3871 = vmatprep.subr.mxu0 %v3033_v43  ;;  %3735 = vmatprep.mubr.f32.mxu0 %v8220_v3  ;;  %v2796_v43 = vld [vmem:[%s14020_s3 + $0x1c0] sm:$0xff] }
 0x587   : > { %3872 = vmatpush1.msra.mxu0 %v3032_v10  ;;  %3830 = vmatprep.mubr.f32.mxu1 %v8220_v3  ;;  %v2799_v10 = vld [vmem:[%s14020_s3 + $0x1d8] sm:$0xff] }
 0x588   : > { %3873 = vmatprep.subr.mxu0 %v2993_v44  ;;  %3966 = vmatprep.subr.mxu1 %v3035_v45  ;;  %v2757_v44 = vld [vmem:[%s14020_s3 + $0x88] sm:$0xff]  ;;  %v2798_v45 = vld [vmem:[%s14020_s3 + $0x1d0] sm:$0xff] }
 0x589   : > { %6908 = vmatmul.mubr.msk.f32.gmra.mxu0 %vm413_vm1, %v9728_v18  ;;  %6913 = vmatmul.mubr.msk.f32.gmra.mxu1 %vm413_vm1, %v9728_v18 }
 0x58a   : > { %3874 = vmatpush1.msra.mxu0 %v2992_v46  ;;  %3967 = vmatpush1.msra.mxu1 %v3034_v31  ;;  %v2756_v46 = vld [vmem:[%s14020_s3 + $0x80] sm:$0xff]  ;;  %v2759_v31 = vld [vmem:[%s14020_s3 + $0x98] sm:$0xff] }
 0x58b   : > { %3875 = vmatprep.subr.mxu0 %v2953_v47  ;;  %3968 = vmatprep.subr.mxu1 %v2995_v56  ;;  %v2758_v47 = vld [vmem:[%s14020_s3 + $0x90] sm:$0xff]  ;;  %v3041_v56 = vld [vmem:[%s14020_s3 + $0x968] sm:$0xff] }
 0x58c   : > { %3876 = vmatpush1.msra.mxu0 %v2952_v50  ;;  %3741 = vmatprep.mubr.f32.mxu0 %v8220_v3  ;;  %v3040_v50 = vld [vmem:[%s14020_s3 + $0x960] sm:$0xff] }
 0x58d   : > { %3836 = vmatprep.mubr.f32.mxu1 %v8220_v3  ;;  %3969 = vmatpush1.msra.mxu1 %v2994_v51  ;;  %v3001_v51 = vld [vmem:[%s14020_s3 + $0x828] sm:$0xff] }
 0x58e   : > { %6909 = vmatmul.mubr.msk.f32.gmra.mxu0 %vm413_vm1, %v9749_v19  ;;  %6914 = vmatmul.mubr.msk.f32.gmra.mxu1 %vm413_vm1, %v9749_v19 }
 0x58f   : > { %3877 = vmatprep.subr.mxu0 %v2913_v23  ;;  %3970 = vmatprep.subr.mxu1 %v2955_v24  ;;  %v3043_v23 = vld [vmem:[%s14020_s3 + $0x978] sm:$0xff]  ;;  %v3000_v24 = vld [vmem:[%s14020_s3 + $0x820] sm:$0xff] }
 0x590   : > { %3878 = vmatpush1.msra.mxu0 %v2912_v53  ;;  %3971 = vmatpush1.msra.mxu1 %v2954_v54  ;;  %v3042_v53 = vld [vmem:[%s14020_s3 + $0x970] sm:$0xff]  ;;  %v2961_v54 = vld [vmem:[%s14020_s3 + $0x6e8] sm:$0xff] }
 0x591   : > { %3879 = vmatprep.subr.mxu0 %v2873_v4  ;;  %3972 = vmatprep.subr.mxu1 %v2915_v55  ;;  %v3003_v4 = vld [vmem:[%s14020_s3 + $0x838] sm:$0xff]  ;;  %v2960_v55 = vld [vmem:[%s14020_s3 + $0x6e0] sm:$0xff] }
 0x592   : > { %3747 = vmatprep.mubr.f32.mxu0 %v8220_v3  ;;  %3842 = vmatprep.mubr.f32.mxu1 %v8220_v3 }
 0x593   : > { %3880 = vmatpush1.msra.mxu0 %v2872_v58  ;;  %3973 = vmatpush1.msra.mxu1 %v2914_v9  ;;  %v3002_v58 = vld [vmem:[%s14020_s3 + $0x830] sm:$0xff]  ;;  %v2921_v9 = vld [vmem:[%s14020_s3 + $0x5a8] sm:$0xff] }
 0x594   : > { %6910 = vmatmul.mubr.msk.f32.gmra.mxu0 %vm413_vm1, %v9777_v48  ;;  %6915 = vmatmul.mubr.msk.f32.gmra.mxu1 %vm413_vm1, %v9777_v48 }
 0x595   : > { %3974 = vmatprep.subr.mxu1 %v2875_v29  ;;  %3881 = vmatprep.subr.mxu0 %v2833_v26  ;;  %v2963_v29 = vld [vmem:[%s14020_s3 + $0x6f8] sm:$0xff]  ;;  %v2920_v26 = vld [vmem:[%s14020_s3 + $0x5a0] sm:$0xff] }
 0x596   : > { %3975 = vmatpush1.msra.mxu1 %v2874_v59  ;;  %3882 = vmatpush1.msra.mxu0 %v2832_v42  ;;  %v2962_v59 = vld [vmem:[%s14020_s3 + $0x6f0] sm:$0xff]  ;;  %v2881_v42 = vld [vmem:[%s14020_s3 + $0x468] sm:$0xff] }
 0x597   : > { %3976 = vmatprep.subr.mxu1 %v2835_v13  ;;  %3753 = vmatprep.mubr.f32.mxu0 %v8220_v3  ;;  %v2923_v13 = vld [vmem:[%s14020_s3 + $0x5b8] sm:$0xff] }
 0x598   : > { %3848 = vmatprep.mubr.f32.mxu1 %v8220_v3  ;;  %3883 = vmatprep.subr.mxu0 %v2793_v61  ;;  %v2880_v61 = vld [vmem:[%s14020_s3 + $0x460] sm:$0xff] }
 0x599   : > { %3977 = vmatpush1.msra.mxu1 %v2834_v62  ;;  %6911 = vmatmul.mubr.msk.f32.gmra.mxu0 %vm413_vm1, %v9808_v57  ;;  %v2922_v62 = vld [vmem:[%s14020_s3 + $0x5b0] sm:$0xff] }
 0x59a   : > { %6916 = vmatmul.mubr.msk.f32.gmra.mxu1 %vm413_vm1, %v9808_v57  ;;  %3884 = vmatpush1.msra.mxu0 %v2792_v0  ;;  %v2883_v0 = vld [vmem:[%s14020_s3 + $0x478] sm:$0xff] }
 0x59b   : > { %3978 = vmatprep.subr.mxu1 %v2795_v37  ;;  %3885 = vmatprep.subr.mxu0 %v2753_v1  ;;  %v2841_v37 = vld [vmem:[%s14020_s3 + $0x328] sm:$0xff]  ;;  %v2882_v1 = vld [vmem:[%s14020_s3 + $0x470] sm:$0xff] }
 0x59c   : > { %3979 = vmatpush1.msra.mxu1 %v2794_v52  ;;  %3886 = vmatpush1.msra.mxu0 %v2752_v5  ;;  %v2840_v52 = vld [vmem:[%s14020_s3 + $0x320] sm:$0xff]  ;;  %v2843_v5 = vld [vmem:[%s14020_s3 + $0x338] sm:$0xff] }
 0x59d   : > { %3980 = vmatprep.subr.mxu1 %v2755_v7  ;;  %3919 = vmatprep.mubr.f32.mxu0 %v8220_v3  ;;  %v2801_v7 = vld [vmem:[%s14020_s3 + $0x1e8] sm:$0xff] }
 0x59e   : > { %3981 = vmatpush1.msra.mxu1 %v2754_v33  ;;  %4014 = vmatprep.mubr.f32.mxu1 %v8220_v3  ;;  %v2842_v33 = vld [vmem:[%s14020_s3 + $0x330] sm:$0xff] }
 0x59f   : > { %6917 = vmatmul.mubr.msk.f32.vlgmr.msra.gmra.mxu0 %vm413_vm1, %v9707_v2  ;;  %6922 = vmatmul.mubr.msk.f32.vlgmr.msra.gmra.mxu1 %vm413_vm1, %v9707_v2 }
 0x5a0   : > { %4061 = vmatprep.subr.mxu0 %v3037_v8  ;;  %3925 = vmatprep.mubr.f32.mxu0 %v8220_v3  ;;  %v2800_v8 = vld [vmem:[%s14020_s3 + $0x1e0] sm:$0xff] }
 0x5a1   : > { %4062 = vmatpush1.msra.mxu0 %v3036_v11  ;;  %4020 = vmatprep.mubr.f32.mxu1 %v8220_v3  ;;  %v2803_v11 = vld [vmem:[%s14020_s3 + $0x1f8] sm:$0xff] }
 0x5a2   : > { %4063 = vmatprep.subr.mxu0 %v2997_v12  ;;  %4156 = vmatprep.subr.mxu1 %v3039_v14  ;;  %v2761_v12 = vld [vmem:[%s14020_s3 + $0xa8] sm:$0xff]  ;;  %v2802_v14 = vld [vmem:[%s14020_s3 + $0x1f0] sm:$0xff] }
 0x5a3   : > { %6918 = vmatmul.mubr.msk.f32.gmra.mxu0 %vm413_vm1, %v9728_v18  ;;  %6923 = vmatmul.mubr.msk.f32.gmra.mxu1 %vm413_vm1, %v9728_v18 }
 0x5a4   : > { %4064 = vmatpush1.msra.mxu0 %v2996_v49  ;;  %4157 = vmatpush1.msra.mxu1 %v3038_v16  ;;  %v2760_v49 = vld [vmem:[%s14020_s3 + $0xa0] sm:$0xff]  ;;  %v2763_v16 = vld [vmem:[%s14020_s3 + $0xb8] sm:$0xff] }
 0x5a5   : > { %4065 = vmatprep.subr.mxu0 %v2957_v17  ;;  %4158 = vmatprep.subr.mxu1 %v2999_v63  ;;  %v2762_v17 = vld [vmem:[%s14020_s3 + $0xb0] sm:$0xff]  ;;  %v3045_v63 = vld [vmem:[%s14020_s3 + $0x988] sm:$0xff] }
 0x5a6   : > { %4066 = vmatpush1.msra.mxu0 %v2956_v34  ;;  %3931 = vmatprep.mubr.f32.mxu0 %v8220_v3  ;;  %v3044_v34 = vld [vmem:[%s14020_s3 + $0x980] sm:$0xff] }
 0x5a7   : > { %4026 = vmatprep.mubr.f32.mxu1 %v8220_v3  ;;  %4159 = vmatpush1.msra.mxu1 %v2998_v20  ;;  %v3005_v20 = vld [vmem:[%s14020_s3 + $0x848] sm:$0xff] }
 0x5a8   : > { %6919 = vmatmul.mubr.msk.f32.gmra.mxu0 %vm413_vm1, %v9749_v19  ;;  %6924 = vmatmul.mubr.msk.f32.gmra.mxu1 %vm413_vm1, %v9749_v19 }
 0x5a9   : > { %4067 = vmatprep.subr.mxu0 %v2917_v21  ;;  %4160 = vmatprep.subr.mxu1 %v2959_v22  ;;  %v3047_v21 = vld [vmem:[%s14020_s3 + $0x998] sm:$0xff]  ;;  %v3004_v22 = vld [vmem:[%s14020_s3 + $0x840] sm:$0xff] }
 0x5aa   : > { %4068 = vmatpush1.msra.mxu0 %v2916_v25  ;;  %4161 = vmatpush1.msra.mxu1 %v2958_v27  ;;  %v3046_v25 = vld [vmem:[%s14020_s3 + $0x990] sm:$0xff]  ;;  %v2965_v27 = vld [vmem:[%s14020_s3 + $0x708] sm:$0xff] }
 0x5ab   : > { %4069 = vmatprep.subr.mxu0 %v2877_v60  ;;  %4162 = vmatprep.subr.mxu1 %v2919_v28  ;;  %v3007_v60 = vld [vmem:[%s14020_s3 + $0x858] sm:$0xff]  ;;  %v2964_v28 = vld [vmem:[%s14020_s3 + $0x700] sm:$0xff] }
 0x5ac   : > { %3937 = vmatprep.mubr.f32.mxu0 %v8220_v3  ;;  %4032 = vmatprep.mubr.f32.mxu1 %v8220_v3 }
 0x5ad   : > { %4070 = vmatpush1.msra.mxu0 %v2876_v15  ;;  %4163 = vmatpush1.msra.mxu1 %v2918_v30  ;;  %v3006_v15 = vld [vmem:[%s14020_s3 + $0x850] sm:$0xff]  ;;  %v2925_v30 = vld [vmem:[%s14020_s3 + $0x5c8] sm:$0xff] }
 0x5ae   : > { %6920 = vmatmul.mubr.msk.f32.gmra.mxu0 %vm413_vm1, %v9777_v48  ;;  %6925 = vmatmul.mubr.msk.f32.gmra.mxu1 %vm413_vm1, %v9777_v48 }
 0x5af   : > { %4164 = vmatprep.subr.mxu1 %v2879_v32  ;;  %4071 = vmatprep.subr.mxu0 %v2837_v35  ;;  %v2967_v32 = vld [vmem:[%s14020_s3 + $0x718] sm:$0xff]  ;;  %v2924_v35 = vld [vmem:[%s14020_s3 + $0x5c0] sm:$0xff] }
 0x5b0   : > { %4165 = vmatpush1.msra.mxu1 %v2878_v36  ;;  %4072 = vmatpush1.msra.mxu0 %v2836_v39  ;;  %v2966_v36 = vld [vmem:[%s14020_s3 + $0x710] sm:$0xff]  ;;  %v2885_v39 = vld [vmem:[%s14020_s3 + $0x488] sm:$0xff] }
 0x5b1   : > { %4166 = vmatprep.subr.mxu1 %v2839_v40  ;;  %3943 = vmatprep.mubr.f32.mxu0 %v8220_v3  ;;  %v2927_v40 = vld [vmem:[%s14020_s3 + $0x5d8] sm:$0xff] }
 0x5b2   : > { %4038 = vmatprep.mubr.f32.mxu1 %v8220_v3  ;;  %4073 = vmatprep.subr.mxu0 %v2797_v38  ;;  %v2884_v38 = vld [vmem:[%s14020_s3 + $0x480] sm:$0xff] }
 0x5b3   : > { %4167 = vmatpush1.msra.mxu1 %v2838_v41  ;;  %6921 = vmatmul.mubr.msk.f32.gmra.mxu0 %vm413_vm1, %v9808_v57  ;;  %v2926_v41 = vld [vmem:[%s14020_s3 + $0x5d0] sm:$0xff] }
 0x5b4   : > { %6926 = vmatmul.mubr.msk.f32.gmra.mxu1 %vm413_vm1, %v9808_v57  ;;  %4074 = vmatpush1.msra.mxu0 %v2796_v43  ;;  %v2887_v43 = vld [vmem:[%s14020_s3 + $0x498] sm:$0xff] }
 0x5b5   : > { %4168 = vmatprep.subr.mxu1 %v2799_v10  ;;  %4075 = vmatprep.subr.mxu0 %v2757_v44  ;;  %v2845_v10 = vld [vmem:[%s14020_s3 + $0x348] sm:$0xff]  ;;  %v2886_v44 = vld [vmem:[%s14020_s3 + $0x490] sm:$0xff] }
 0x5b6   : > { %4169 = vmatpush1.msra.mxu1 %v2798_v45  ;;  %4076 = vmatpush1.msra.mxu0 %v2756_v46  ;;  %v2844_v45 = vld [vmem:[%s14020_s3 + $0x340] sm:$0xff]  ;;  %v2847_v46 = vld [vmem:[%s14020_s3 + $0x358] sm:$0xff] }
 0x5b7   : > { %4170 = vmatprep.subr.mxu1 %v2759_v31  ;;  %4109 = vmatprep.mubr.f32.mxu0 %v8220_v3  ;;  %v2805_v31 = vld [vmem:[%s14020_s3 + $0x208] sm:$0xff] }
 0x5b8   : > { %4171 = vmatpush1.msra.mxu1 %v2758_v47  ;;  %4204 = vmatprep.mubr.f32.mxu1 %v8220_v3  ;;  %v2846_v47 = vld [vmem:[%s14020_s3 + $0x350] sm:$0xff] }
 0x5b9   : > { %6927 = vmatmul.mubr.msk.f32.vlgmr.msra.gmra.mxu0 %vm413_vm1, %v9707_v2  ;;  %6932 = vmatmul.mubr.msk.f32.vlgmr.msra.gmra.mxu1 %vm413_vm1, %v9707_v2 }
 0x5ba   : > { %4251 = vmatprep.subr.mxu0 %v3041_v56  ;;  %4115 = vmatprep.mubr.f32.mxu0 %v8220_v3  ;;  %v2804_v56 = vld [vmem:[%s14020_s3 + $0x200] sm:$0xff] }
 0x5bb   : > { %4252 = vmatpush1.msra.mxu0 %v3040_v50  ;;  %4210 = vmatprep.mubr.f32.mxu1 %v8220_v3  ;;  %v2807_v50 = vld [vmem:[%s14020_s3 + $0x218] sm:$0xff] }
 0x5bc   : > { %4253 = vmatprep.subr.mxu0 %v3001_v51  ;;  %4346 = vmatprep.subr.mxu1 %v3043_v23  ;;  %v2765_v51 = vld [vmem:[%s14020_s3 + $0xc8] sm:$0xff]  ;;  %v2806_v23 = vld [vmem:[%s14020_s3 + $0x210] sm:$0xff] }
 0x5bd   : > { %6928 = vmatmul.mubr.msk.f32.gmra.mxu0 %vm413_vm1, %v9728_v18  ;;  %6933 = vmatmul.mubr.msk.f32.gmra.mxu1 %vm413_vm1, %v9728_v18 }
 0x5be   : > { %4254 = vmatpush1.msra.mxu0 %v3000_v24  ;;  %4347 = vmatpush1.msra.mxu1 %v3042_v53  ;;  %v2764_v24 = vld [vmem:[%s14020_s3 + $0xc0] sm:$0xff]  ;;  %v2767_v53 = vld [vmem:[%s14020_s3 + $0xd8] sm:$0xff] }
 0x5bf   : > { %4255 = vmatprep.subr.mxu0 %v2961_v54  ;;  %4348 = vmatprep.subr.mxu1 %v3003_v4  ;;  %v2766_v54 = vld [vmem:[%s14020_s3 + $0xd0] sm:$0xff]  ;;  %v3049_v4 = vld [vmem:[%s14020_s3 + $0x9a8] sm:$0xff] }
 0x5c0   : > { %4256 = vmatpush1.msra.mxu0 %v2960_v55  ;;  %4121 = vmatprep.mubr.f32.mxu0 %v8220_v3  ;;  %v3048_v55 = vld [vmem:[%s14020_s3 + $0x9a0] sm:$0xff] }
 0x5c1   : > { %4216 = vmatprep.mubr.f32.mxu1 %v8220_v3  ;;  %4349 = vmatpush1.msra.mxu1 %v3002_v58  ;;  %v3009_v58 = vld [vmem:[%s14020_s3 + $0x868] sm:$0xff] }
 0x5c2   : > { %6929 = vmatmul.mubr.msk.f32.gmra.mxu0 %vm413_vm1, %v9749_v19  ;;  %6934 = vmatmul.mubr.msk.f32.gmra.mxu1 %vm413_vm1, %v9749_v19 }
 0x5c3   : > { %4257 = vmatprep.subr.mxu0 %v2921_v9  ;;  %4350 = vmatprep.subr.mxu1 %v2963_v29  ;;  %v3051_v9 = vld [vmem:[%s14020_s3 + $0x9b8] sm:$0xff]  ;;  %v3008_v29 = vld [vmem:[%s14020_s3 + $0x860] sm:$0xff] }
 0x5c4   : > { %4258 = vmatpush1.msra.mxu0 %v2920_v26  ;;  %4351 = vmatpush1.msra.mxu1 %v2962_v59  ;;  %v3050_v26 = vld [vmem:[%s14020_s3 + $0x9b0] sm:$0xff]  ;;  %v2969_v59 = vld [vmem:[%s14020_s3 + $0x728] sm:$0xff] }
 0x5c5   : > { %4259 = vmatprep.subr.mxu0 %v2881_v42  ;;  %4352 = vmatprep.subr.mxu1 %v2923_v13  ;;  %v3011_v42 = vld [vmem:[%s14020_s3 + $0x878] sm:$0xff]  ;;  %v2968_v13 = vld [vmem:[%s14020_s3 + $0x720] sm:$0xff] }
 0x5c6   : > { %4127 = vmatprep.mubr.f32.mxu0 %v8220_v3  ;;  %4222 = vmatprep.mubr.f32.mxu1 %v8220_v3 }
 0x5c7   : > { %4260 = vmatpush1.msra.mxu0 %v2880_v61  ;;  %4353 = vmatpush1.msra.mxu1 %v2922_v62  ;;  %v3010_v61 = vld [vmem:[%s14020_s3 + $0x870] sm:$0xff]  ;;  %v2929_v62 = vld [vmem:[%s14020_s3 + $0x5e8] sm:$0xff] }
 0x5c8   : > { %6930 = vmatmul.mubr.msk.f32.gmra.mxu0 %vm413_vm1, %v9777_v48  ;;  %6935 = vmatmul.mubr.msk.f32.gmra.mxu1 %vm413_vm1, %v9777_v48 }
 0x5c9   : > { %4354 = vmatprep.subr.mxu1 %v2883_v0  ;;  %4261 = vmatprep.subr.mxu0 %v2841_v37  ;;  %v2971_v0 = vld [vmem:[%s14020_s3 + $0x738] sm:$0xff]  ;;  %v2928_v37 = vld [vmem:[%s14020_s3 + $0x5e0] sm:$0xff] }
 0x5ca   : > { %4355 = vmatpush1.msra.mxu1 %v2882_v1  ;;  %4262 = vmatpush1.msra.mxu0 %v2840_v52  ;;  %v2970_v1 = vld [vmem:[%s14020_s3 + $0x730] sm:$0xff]  ;;  %v2889_v52 = vld [vmem:[%s14020_s3 + $0x4a8] sm:$0xff] }
 0x5cb   : > { %4356 = vmatprep.subr.mxu1 %v2843_v5  ;;  %4133 = vmatprep.mubr.f32.mxu0 %v8220_v3  ;;  %v2931_v5 = vld [vmem:[%s14020_s3 + $0x5f8] sm:$0xff] }
 0x5cc   : > { %4228 = vmatprep.mubr.f32.mxu1 %v8220_v3  ;;  %4263 = vmatprep.subr.mxu0 %v2801_v7  ;;  %v2888_v7 = vld [vmem:[%s14020_s3 + $0x4a0] sm:$0xff] }
 0x5cd   : > { %4357 = vmatpush1.msra.mxu1 %v2842_v33  ;;  %6931 = vmatmul.mubr.msk.f32.gmra.mxu0 %vm413_vm1, %v9808_v57  ;;  %v2930_v33 = vld [vmem:[%s14020_s3 + $0x5f0] sm:$0xff] }
 0x5ce   : > { %6936 = vmatmul.mubr.msk.f32.gmra.mxu1 %vm413_vm1, %v9808_v57  ;;  %4264 = vmatpush1.msra.mxu0 %v2800_v8  ;;  %v2891_v8 = vld [vmem:[%s14020_s3 + $0x4b8] sm:$0xff] }
 0x5cf   : > { %4358 = vmatprep.subr.mxu1 %v2803_v11  ;;  %4265 = vmatprep.subr.mxu0 %v2761_v12  ;;  %v2849_v11 = vld [vmem:[%s14020_s3 + $0x368] sm:$0xff]  ;;  %v2890_v12 = vld [vmem:[%s14020_s3 + $0x4b0] sm:$0xff] }
 0x5d0   : > { %4359 = vmatpush1.msra.mxu1 %v2802_v14  ;;  %4266 = vmatpush1.msra.mxu0 %v2760_v49  ;;  %v2848_v14 = vld [vmem:[%s14020_s3 + $0x360] sm:$0xff]  ;;  %v2851_v49 = vld [vmem:[%s14020_s3 + $0x378] sm:$0xff] }
 0x5d1   : > { %4360 = vmatprep.subr.mxu1 %v2763_v16  ;;  %4299 = vmatprep.mubr.f32.mxu0 %v8220_v3  ;;  %v2809_v16 = vld [vmem:[%s14020_s3 + $0x228] sm:$0xff] }
 0x5d2   : > { %4361 = vmatpush1.msra.mxu1 %v2762_v17  ;;  %4394 = vmatprep.mubr.f32.mxu1 %v8220_v3  ;;  %v2850_v17 = vld [vmem:[%s14020_s3 + $0x370] sm:$0xff] }
 0x5d3   : > { %6937 = vmatmul.mubr.msk.f32.vlgmr.msra.gmra.mxu0 %vm413_vm1, %v9707_v2  ;;  %6942 = vmatmul.mubr.msk.f32.vlgmr.msra.gmra.mxu1 %vm413_vm1, %v9707_v2 }
 0x5d4   : > { %4441 = vmatprep.subr.mxu0 %v3045_v63  ;;  %4305 = vmatprep.mubr.f32.mxu0 %v8220_v3  ;;  %v2808_v63 = vld [vmem:[%s14020_s3 + $0x220] sm:$0xff] }
 0x5d5   : > { %4442 = vmatpush1.msra.mxu0 %v3044_v34  ;;  %4400 = vmatprep.mubr.f32.mxu1 %v8220_v3  ;;  %v2811_v34 = vld [vmem:[%s14020_s3 + $0x238] sm:$0xff] }
 0x5d6   : > { %4443 = vmatprep.subr.mxu0 %v3005_v20  ;;  %4536 = vmatprep.subr.mxu1 %v3047_v21  ;;  %v2769_v20 = vld [vmem:[%s14020_s3 + $0xe8] sm:$0xff]  ;;  %v2810_v21 = vld [vmem:[%s14020_s3 + $0x230] sm:$0xff] }
 0x5d7   : > { %6938 = vmatmul.mubr.msk.f32.gmra.mxu0 %vm413_vm1, %v9728_v18  ;;  %6943 = vmatmul.mubr.msk.f32.gmra.mxu1 %vm413_vm1, %v9728_v18 }
 0x5d8   : > { %4444 = vmatpush1.msra.mxu0 %v3004_v22  ;;  %4537 = vmatpush1.msra.mxu1 %v3046_v25  ;;  %v2768_v22 = vld [vmem:[%s14020_s3 + $0xe0] sm:$0xff]  ;;  %v2771_v25 = vld [vmem:[%s14020_s3 + $0xf8] sm:$0xff] }
 0x5d9   : > { %4445 = vmatprep.subr.mxu0 %v2965_v27  ;;  %4538 = vmatprep.subr.mxu1 %v3007_v60  ;;  %v2770_v27 = vld [vmem:[%s14020_s3 + $0xf0] sm:$0xff]  ;;  %v3053_v60 = vld [vmem:[%s14020_s3 + $0x9c8] sm:$0xff] }
 0x5da   : > { %4446 = vmatpush1.msra.mxu0 %v2964_v28  ;;  %4311 = vmatprep.mubr.f32.mxu0 %v8220_v3  ;;  %v3052_v28 = vld [vmem:[%s14020_s3 + $0x9c0] sm:$0xff] }
 0x5db   : > { %4406 = vmatprep.mubr.f32.mxu1 %v8220_v3  ;;  %4539 = vmatpush1.msra.mxu1 %v3006_v15  ;;  %v3013_v15 = vld [vmem:[%s14020_s3 + $0x888] sm:$0xff] }
 0x5dc   : > { %6939 = vmatmul.mubr.msk.f32.gmra.mxu0 %vm413_vm1, %v9749_v19  ;;  %6944 = vmatmul.mubr.msk.f32.gmra.mxu1 %vm413_vm1, %v9749_v19 }
 0x5dd   : > { %4447 = vmatprep.subr.mxu0 %v2925_v30  ;;  %4540 = vmatprep.subr.mxu1 %v2967_v32  ;;  %v3055_v30 = vld [vmem:[%s14020_s3 + $0x9d8] sm:$0xff]  ;;  %v3012_v32 = vld [vmem:[%s14020_s3 + $0x880] sm:$0xff] }
 0x5de   : > { %4448 = vmatpush1.msra.mxu0 %v2924_v35  ;;  %4541 = vmatpush1.msra.mxu1 %v2966_v36  ;;  %v3054_v35 = vld [vmem:[%s14020_s3 + $0x9d0] sm:$0xff]  ;;  %v2973_v36 = vld [vmem:[%s14020_s3 + $0x748] sm:$0xff] }
 0x5df   : > { %4449 = vmatprep.subr.mxu0 %v2885_v39  ;;  %4542 = vmatprep.subr.mxu1 %v2927_v40  ;;  %v3015_v39 = vld [vmem:[%s14020_s3 + $0x898] sm:$0xff]  ;;  %v2972_v40 = vld [vmem:[%s14020_s3 + $0x740] sm:$0xff] }
 0x5e0   : > { %4317 = vmatprep.mubr.f32.mxu0 %v8220_v3  ;;  %4412 = vmatprep.mubr.f32.mxu1 %v8220_v3 }
 0x5e1   : > { %4450 = vmatpush1.msra.mxu0 %v2884_v38  ;;  %4543 = vmatpush1.msra.mxu1 %v2926_v41  ;;  %v3014_v38 = vld [vmem:[%s14020_s3 + $0x890] sm:$0xff]  ;;  %v2933_v41 = vld [vmem:[%s14020_s3 + $0x608] sm:$0xff] }
 0x5e2   : > { %6940 = vmatmul.mubr.msk.f32.gmra.mxu0 %vm413_vm1, %v9777_v48  ;;  %6945 = vmatmul.mubr.msk.f32.gmra.mxu1 %vm413_vm1, %v9777_v48 }
 0x5e3   : > { %4544 = vmatprep.subr.mxu1 %v2887_v43  ;;  %4451 = vmatprep.subr.mxu0 %v2845_v10  ;;  %v2975_v43 = vld [vmem:[%s14020_s3 + $0x758] sm:$0xff]  ;;  %v2932_v10 = vld [vmem:[%s14020_s3 + $0x600] sm:$0xff] }
 0x5e4   : > { %4545 = vmatpush1.msra.mxu1 %v2886_v44  ;;  %4452 = vmatpush1.msra.mxu0 %v2844_v45  ;;  %v2974_v44 = vld [vmem:[%s14020_s3 + $0x750] sm:$0xff]  ;;  %v2893_v45 = vld [vmem:[%s14020_s3 + $0x4c8] sm:$0xff] }
 0x5e5   : > { %4546 = vmatprep.subr.mxu1 %v2847_v46  ;;  %4323 = vmatprep.mubr.f32.mxu0 %v8220_v3  ;;  %v2935_v46 = vld [vmem:[%s14020_s3 + $0x618] sm:$0xff] }
 0x5e6   : > { %4418 = vmatprep.mubr.f32.mxu1 %v8220_v3  ;;  %4453 = vmatprep.subr.mxu0 %v2805_v31  ;;  %v2892_v31 = vld [vmem:[%s14020_s3 + $0x4c0] sm:$0xff] }
 0x5e7   : > { %4547 = vmatpush1.msra.mxu1 %v2846_v47  ;;  %6941 = vmatmul.mubr.msk.f32.gmra.mxu0 %vm413_vm1, %v9808_v57  ;;  %v2934_v47 = vld [vmem:[%s14020_s3 + $0x610] sm:$0xff] }
 0x5e8   : > { %6946 = vmatmul.mubr.msk.f32.gmra.mxu1 %vm413_vm1, %v9808_v57  ;;  %4454 = vmatpush1.msra.mxu0 %v2804_v56 }
 0x5e9   : > { %4548 = vmatprep.subr.mxu1 %v2807_v50  ;;  %4455 = vmatprep.subr.mxu0 %v2765_v51  ;;  %v2895_v51 = vld [vmem:[%s14020_s3 + $0x4d8] sm:$0xff] }
 0x5ea   : > { %4549 = vmatpush1.msra.mxu1 %v2806_v23  ;;  %4456 = vmatpush1.msra.mxu0 %v2764_v24  ;;  %v2853_v23 = vld [vmem:[%s14020_s3 + $0x388] sm:$0xff] }
 0x5eb   : > { %4550 = vmatprep.subr.mxu1 %v2767_v53  ;;  %4489 = vmatprep.mubr.f32.mxu0 %v8220_v3 }
 0x5ec   : > { %4551 = vmatpush1.msra.mxu1 %v2766_v54  ;;  %4584 = vmatprep.mubr.f32.mxu1 %v8220_v3  ;;  %v2894_v54 = vld [vmem:[%s14020_s3 + $0x4d0] sm:$0xff] }
 0x5ed   : > { %6947 = vmatmul.mubr.msk.f32.vlgmr.msra.gmra.mxu0 %vm413_vm1, %v9707_v2  ;;  %6952 = vmatmul.mubr.msk.f32.vlgmr.msra.gmra.mxu1 %vm413_vm1, %v9707_v2 }
 0x5ee   : > { %4631 = vmatprep.subr.mxu0 %v3049_v4  ;;  %4495 = vmatprep.mubr.f32.mxu0 %v8220_v3  ;;  %v2852_v4 = vld [vmem:[%s14020_s3 + $0x380] sm:$0xff] }
 0x5ef   : > { %4632 = vmatpush1.msra.mxu0 %v3048_v55  ;;  %4590 = vmatprep.mubr.f32.mxu1 %v8220_v3  ;;  %v2855_v55 = vld [vmem:[%s14020_s3 + $0x398] sm:$0xff] }
 0x5f0   : > { %4633 = vmatprep.subr.mxu0 %v3009_v58  ;;  %4726 = vmatprep.subr.mxu1 %v3051_v9 }
 0x5f1   : > { %6948 = vmatmul.mubr.msk.f32.gmra.mxu0 %vm413_vm1, %v9728_v18  ;;  %6953 = vmatmul.mubr.msk.f32.gmra.mxu1 %vm413_vm1, %v9728_v18 }
 0x5f2   : > { %4634 = vmatpush1.msra.mxu0 %v3008_v29  ;;  %4727 = vmatpush1.msra.mxu1 %v3050_v26  ;;  %v2813_v29 = vld [vmem:[%s14020_s3 + $0x248] sm:$0xff]  ;;  %v2854_v26 = vld [vmem:[%s14020_s3 + $0x390] sm:$0xff] }
 0x5f3   : > { %4635 = vmatprep.subr.mxu0 %v2969_v59  ;;  %4728 = vmatprep.subr.mxu1 %v3011_v42 }
 0x5f4   : > { %4636 = vmatpush1.msra.mxu0 %v2968_v13  ;;  %4501 = vmatprep.mubr.f32.mxu0 %v8220_v3  ;;  %v2812_v13 = vld [vmem:[%s14020_s3 + $0x240] sm:$0xff] }
 0x5f5   : > { %4596 = vmatprep.mubr.f32.mxu1 %v8220_v3  ;;  %4729 = vmatpush1.msra.mxu1 %v3010_v61  ;;  %v2815_v61 = vld [vmem:[%s14020_s3 + $0x258] sm:$0xff] }
 0x5f6   : > { %6949 = vmatmul.mubr.msk.f32.gmra.mxu0 %vm413_vm1, %v9749_v19  ;;  %6954 = vmatmul.mubr.msk.f32.gmra.mxu1 %vm413_vm1, %v9749_v19 }
 0x5f7   : > { %4637 = vmatprep.subr.mxu0 %v2929_v62  ;;  %4730 = vmatprep.subr.mxu1 %v2971_v0  ;;  %v2773_v62 = vld [vmem:[%s14020_s3 + $0x108] sm:$0xff] }
 0x5f8   : > { %4638 = vmatpush1.msra.mxu0 %v2928_v37  ;;  %4731 = vmatpush1.msra.mxu1 %v2970_v1  ;;  %v2814_v1 = vld [vmem:[%s14020_s3 + $0x250] sm:$0xff] }
 0x5f9   : > { %4639 = vmatprep.subr.mxu0 %v2889_v52  ;;  %4732 = vmatprep.subr.mxu1 %v2931_v5  ;;  %v2772_v52 = vld [vmem:[%s14020_s3 + $0x100] sm:$0xff]  ;;  %v2775_v5 = vld [vmem:[%s14020_s3 + $0x118] sm:$0xff] }
 0x5fa   : > { %4507 = vmatprep.mubr.f32.mxu0 %v8220_v3  ;;  %4602 = vmatprep.mubr.f32.mxu1 %v8220_v3 }
 0x5fb   : > { %4640 = vmatpush1.msra.mxu0 %v2888_v7  ;;  %4733 = vmatpush1.msra.mxu1 %v2930_v33 }
 0x5fc   : > { %6950 = vmatmul.mubr.msk.f32.gmra.mxu0 %vm413_vm1, %v9777_v48  ;;  %6955 = vmatmul.mubr.msk.f32.gmra.mxu1 %vm413_vm1, %v9777_v48 }
 0x5fd   : > { %4734 = vmatprep.subr.mxu1 %v2891_v8  ;;  %4641 = vmatprep.subr.mxu0 %v2849_v11  ;;  %v2774_v8 = vld [vmem:[%s14020_s3 + $0x110] sm:$0xff]  ;;  %v3057_v11 = vld [vmem:[%s14020_s3 + $0x9e8] sm:$0xff] }
 0x5fe   : > { %4735 = vmatpush1.msra.mxu1 %v2890_v12  ;;  %4642 = vmatpush1.msra.mxu0 %v2848_v14  ;;  %v3056_v12 = vld [vmem:[%s14020_s3 + $0x9e0] sm:$0xff] }
 0x5ff   : > { %4736 = vmatprep.subr.mxu1 %v2851_v49  ;;  %4513 = vmatprep.mubr.f32.mxu0 %v8220_v3 }
 0x600   : > { %4608 = vmatprep.mubr.f32.mxu1 %v8220_v3  ;;  %4643 = vmatprep.subr.mxu0 %v2809_v16  ;;  %v3017_v16 = vld [vmem:[%s14020_s3 + $0x8a8] sm:$0xff] }
 0x601   : > { %4737 = vmatpush1.msra.mxu1 %v2850_v17  ;;  %6951 = vmatmul.mubr.msk.f32.gmra.mxu0 %vm413_vm1, %v9808_v57  ;;  %v3059_v17 = vld [vmem:[%s14020_s3 + $0x9f8] sm:$0xff] }
 0x602   : > { %6956 = vmatmul.mubr.msk.f32.gmra.mxu1 %vm413_vm1, %v9808_v57  ;;  %4644 = vmatpush1.msra.mxu0 %v2808_v63 }
 0x603   : > { %4738 = vmatprep.subr.mxu1 %v2811_v34  ;;  %4645 = vmatprep.subr.mxu0 %v2769_v20  ;;  %v3016_v20 = vld [vmem:[%s14020_s3 + $0x8a0] sm:$0xff] }
 0x604   : > { %4739 = vmatpush1.msra.mxu1 %v2810_v21  ;;  %4646 = vmatpush1.msra.mxu0 %v2768_v22  ;;  %v3058_v21 = vld [vmem:[%s14020_s3 + $0x9f0] sm:$0xff]  ;;  %v2977_v22 = vld [vmem:[%s14020_s3 + $0x768] sm:$0xff] }
 0x605   : > { %4740 = vmatprep.subr.mxu1 %v2771_v25  ;;  %4679 = vmatprep.mubr.f32.mxu0 %v8220_v3  ;;  %v3019_v25 = vld [vmem:[%s14020_s3 + $0x8b8] sm:$0xff] }
 0x606   : > { %4741 = vmatpush1.msra.mxu1 %v2770_v27  ;;  %4774 = vmatprep.mubr.f32.mxu1 %v8220_v3  ;;  %v2976_v27 = vld [vmem:[%s14020_s3 + $0x760] sm:$0xff] }
 0x607   : > { %6957 = vmatmul.mubr.msk.f32.vlgmr.msra.gmra.mxu0 %vm413_vm1, %v9707_v2  ;;  %6962 = vmatmul.mubr.msk.f32.vlgmr.msra.gmra.mxu1 %vm413_vm1, %v9707_v2 }
 0x608   : > { %4821 = vmatprep.subr.mxu0 %v3053_v60  ;;  %4685 = vmatprep.mubr.f32.mxu0 %v8220_v3 }
 0x609   : > { %4822 = vmatpush1.msra.mxu0 %v3052_v28  ;;  %4780 = vmatprep.mubr.f32.mxu1 %v8220_v3  ;;  %v3018_v28 = vld [vmem:[%s14020_s3 + $0x8b0] sm:$0xff] }
 0x60a   : > { %4823 = vmatprep.subr.mxu0 %v3013_v15  ;;  %4916 = vmatprep.subr.mxu1 %v3055_v30 }
 0x60b   : > { %6958 = vmatmul.mubr.msk.f32.gmra.mxu0 %vm413_vm1, %v9728_v18  ;;  %6963 = vmatmul.mubr.msk.f32.gmra.mxu1 %vm413_vm1, %v9728_v18 }
 0x60c   : > { %4824 = vmatpush1.msra.mxu0 %v3012_v32  ;;  %4917 = vmatpush1.msra.mxu1 %v3054_v35  ;;  %v2937_v32 = vld [vmem:[%s14020_s3 + $0x628] sm:$0xff]  ;;  %v2979_v35 = vld [vmem:[%s14020_s3 + $0x778] sm:$0xff] }
 0x60d   : > { %4825 = vmatprep.subr.mxu0 %v2973_v36  ;;  %4918 = vmatprep.subr.mxu1 %v3015_v39  ;;  %v2936_v39 = vld [vmem:[%s14020_s3 + $0x620] sm:$0xff] }
 0x60e   : > { %4826 = vmatpush1.msra.mxu0 %v2972_v40  ;;  %4691 = vmatprep.mubr.f32.mxu0 %v8220_v3  ;;  %v2978_v40 = vld [vmem:[%s14020_s3 + $0x770] sm:$0xff] }
 0x60f   : > { %4786 = vmatprep.mubr.f32.mxu1 %v8220_v3  ;;  %4919 = vmatpush1.msra.mxu1 %v3014_v38  ;;  %v2897_v38 = vld [vmem:[%s14020_s3 + $0x4e8] sm:$0xff] }
 0x610   : > { %6959 = vmatmul.mubr.msk.f32.gmra.mxu0 %vm413_vm1, %v9749_v19  ;;  %6964 = vmatmul.mubr.msk.f32.gmra.mxu1 %vm413_vm1, %v9749_v19 }
 0x611   : > { %4827 = vmatprep.subr.mxu0 %v2933_v41  ;;  %4920 = vmatprep.subr.mxu1 %v2975_v43  ;;  %v2939_v41 = vld [vmem:[%s14020_s3 + $0x638] sm:$0xff] }
 0x612   : > { %4828 = vmatpush1.msra.mxu0 %v2932_v10  ;;  %4921 = vmatpush1.msra.mxu1 %v2974_v44  ;;  %v10671_v56 = vpop.f32.mrf.mxu0  ;;  %v10673_v50 = vpop.f32.mrf.mxu1  ;;  %v2896_v44 = vld [vmem:[%s14020_s3 + $0x4e0] sm:$0xff] }
 0x613   : > { %4829 = vmatprep.subr.mxu0 %v2893_v45  ;;  %4922 = vmatprep.subr.mxu1 %v2935_v46  ;;  %v2938_v45 = vld [vmem:[%s14020_s3 + $0x630] sm:$0xff] }
 0x614   : > { %4697 = vmatprep.mubr.f32.mxu0 %v8220_v3  ;;  %4792 = vmatprep.mubr.f32.mxu1 %v8220_v3  ;;  %v10683_v24 = vpop.f32.mrf.mxu0  ;;  %v10685_v53 = vpop.f32.mrf.mxu1 }
 0x615   : > { %4830 = vmatpush1.msra.mxu0 %v2892_v31  ;;  %4923 = vmatpush1.msra.mxu1 %v2934_v47  ;;  %v2899_v47 = vld [vmem:[%s14020_s3 + $0x4f8] sm:$0xff] }
 0x616   : > { %6960 = vmatmul.mubr.msk.f32.gmra.mxu0 %vm413_vm1, %v9777_v48  ;;  %6965 = vmatmul.mubr.msk.f32.gmra.mxu1 %vm413_vm1, %v9777_v48  ;;  %v10700_v58 = vpop.f32.mrf.mxu0  ;;  %v10702_v9 = vpop.f32.mrf.mxu1 }
 0x617   : > { %4924 = vmatprep.subr.mxu1 %v2895_v51  ;;  %4831 = vmatprep.subr.mxu0 %v2853_v23  ;;  %v2857_v51 = vld [vmem:[%s14020_s3 + $0x3a8] sm:$0xff]  ;;  %v2898_v23 = vld [vmem:[%s14020_s3 + $0x4f0] sm:$0xff] }
 0x618   : > { %4925 = vmatpush1.msra.mxu1 %v2894_v54  ;;  %4832 = vmatpush1.msra.mxu0 %v2852_v4  ;;  %v10710_v59 = vpop.f32.mrf.mxu0  ;;  %v10712_v42 = vpop.f32.mrf.mxu1  ;;  %v2856_v54 = vld [vmem:[%s14020_s3 + $0x3a0] sm:$0xff] }
 0x619   : > { %4926 = vmatprep.subr.mxu1 %v2855_v55  ;;  %4703 = vmatprep.mubr.f32.mxu0 %v8220_v3 }
 0x61a   : > { %4798 = vmatprep.mubr.f32.mxu1 %v8220_v3  ;;  %4833 = vmatprep.subr.mxu0 %v2813_v29  ;;  %v10725_v0 = vpop.f32.mrf.mxu0  ;;  %v10727_v37 = vpop.f32.mrf.mxu1  ;;  %v2859_v29 = vld [vmem:[%s14020_s3 + $0x3b8] sm:$0xff] }
 0x61b   : > { %4927 = vmatpush1.msra.mxu1 %v2854_v26  ;;  %6961 = vmatmul.mubr.msk.f32.gmra.mxu0 %vm413_vm1, %v9808_v57  ;;  %v2817_v26 = vld [vmem:[%s14020_s3 + $0x268] sm:$0xff] }
 0x61c   : > { %6966 = vmatmul.mubr.msk.f32.gmra.mxu1 %vm413_vm1, %v9808_v57  ;;  %4834 = vmatpush1.msra.mxu0 %v2812_v13  ;;  %v10742_v7 = vpop.f32.mrf.mxu0  ;;  %v10744_v33 = vpop.f32.mrf.mxu1 }
 0x61d   : > { %4928 = vmatprep.subr.mxu1 %v2815_v61  ;;  %4835 = vmatprep.subr.mxu0 %v2773_v62  ;;  %v2858_v62 = vld [vmem:[%s14020_s3 + $0x3b0] sm:$0xff] }
 0x61e   : > { %4929 = vmatpush1.msra.mxu1 %v2814_v1  ;;  %4836 = vmatpush1.msra.mxu0 %v2772_v52  ;;  %v2816_v1 = vld [vmem:[%s14020_s3 + $0x260] sm:$0xff]  ;;  %v2819_v52 = vld [vmem:[%s14020_s3 + $0x278] sm:$0xff] }
 0x61f   : > { %4930 = vmatprep.subr.mxu1 %v2775_v5  ;;  %4869 = vmatprep.mubr.f32.mxu0 %v8220_v3  ;;  %v2777_v5 = vld [vmem:[%s14020_s3 + $0x128] sm:$0xff] }
 0x620   : > { %4931 = vmatpush1.msra.mxu1 %v2774_v8  ;;  %4964 = vmatprep.mubr.f32.mxu1 %v8220_v3  ;;  %v10757_v14 = vpop.f32.mrf.mxu0  ;;  %v10759_v49 = vpop.f32.mrf.mxu1 }
 0x621   : > { %6967 = vmatmul.mubr.msk.f32.vlgmr.msra.gmra.mxu0 %vm413_vm1, %v9707_v2  ;;  %6972 = vmatmul.mubr.msk.f32.vlgmr.msra.gmra.mxu1 %vm413_vm1, %v9707_v2 }
 0x622   : > { %5011 = vmatprep.subr.mxu0 %v3057_v11  ;;  %4875 = vmatprep.mubr.f32.mxu0 %v8220_v3  ;;  %v10772_v63 = vpop.f32.mrf.mxu0  ;;  %v10774_v34 = vpop.f32.mrf.mxu1 }
 0x623   : > { %5012 = vmatpush1.msra.mxu0 %v3056_v12  ;;  %4970 = vmatprep.mubr.f32.mxu1 %v8220_v3  ;;  %v2818_v12 = vld [vmem:[%s14020_s3 + $0x270] sm:$0xff] }
 0x624   : > { %5013 = vmatprep.subr.mxu0 %v3017_v16  ;;  %5106 = vmatprep.subr.mxu1 %v3059_v17  ;;  %v2776_v16 = vld [vmem:[%s14020_s3 + $0x120] sm:$0xff]  ;;  %v2779_v17 = vld [vmem:[%s14020_s3 + $0x138] sm:$0xff] }
 0x625   : > { %6968 = vmatmul.mubr.msk.f32.gmra.mxu0 %vm413_vm1, %v9728_v18  ;;  %6973 = vmatmul.mubr.msk.f32.gmra.mxu1 %vm413_vm1, %v9728_v18  ;;  %v10796_v60 = vpop.f32.mrf.mxu0 }
 0x626   : > { %5014 = vmatpush1.msra.mxu0 %v3016_v20  ;;  %5107 = vmatpush1.msra.mxu1 %v3058_v21  ;;  %v10801_v15 = vpop.f32.mrf.mxu1 }
 0x627   : > { %5015 = vmatprep.subr.mxu0 %v2977_v22  ;;  %5108 = vmatprep.subr.mxu1 %v3019_v25  ;;  %v10803_v30 = vpop.f32.mrf.mxu0  ;;  %v2778_v22 = vld [vmem:[%s14020_s3 + $0x130] sm:$0xff] }
 0x628   : > { %5016 = vmatpush1.msra.mxu0 %v2976_v27  ;;  %4881 = vmatprep.mubr.f32.mxu0 %v8220_v3  ;;  %v10812_v36 = vpop.f32.mrf.mxu1 }
 0x629   : > { %4976 = vmatprep.mubr.f32.mxu1 %v8220_v3  ;;  %5109 = vmatpush1.msra.mxu1 %v3018_v28 }
 0x62a   : > { %6969 = vmatmul.mubr.msk.f32.gmra.mxu0 %vm413_vm1, %v9749_v19  ;;  %6974 = vmatmul.mubr.msk.f32.gmra.mxu1 %vm413_vm1, %v9749_v19 }
 0x62b   : > { %5017 = vmatprep.subr.mxu0 %v2937_v32  ;;  %5110 = vmatprep.subr.mxu1 %v2979_v35  ;;  %v10831_v43 = vpop.f32.mrf.mxu0  ;;  %v10833_v10 = vpop.f32.mrf.mxu1 }
 0x62c   : > { %5018 = vmatpush1.msra.mxu0 %v2936_v39  ;;  %5111 = vmatpush1.msra.mxu1 %v2978_v40 }
 0x62d   : > { %5019 = vmatprep.subr.mxu0 %v2897_v38  ;;  %5112 = vmatprep.subr.mxu1 %v2939_v41  ;;  %v10841_v46 = vpop.f32.mrf.mxu0  ;;  %v10843_v31 = vpop.f32.mrf.mxu1 }
 0x62e   : > { %4887 = vmatprep.mubr.f32.mxu0 %v8220_v3  ;;  %4982 = vmatprep.mubr.f32.mxu1 %v8220_v3 }
 0x62f   : > { %5020 = vmatpush1.msra.mxu0 %v2896_v44  ;;  %5113 = vmatpush1.msra.mxu1 %v2938_v45  ;;  %v10859_v4 = vpop.f32.mrf.mxu0  ;;  %v10861_v55 = vpop.f32.mrf.mxu1 }
 0x630   : > { %6970 = vmatmul.mubr.msk.f32.gmra.mxu0 %vm413_vm1, %v9777_v48  ;;  %6975 = vmatmul.mubr.msk.f32.gmra.mxu1 %vm413_vm1, %v9777_v48 }
 0x631   : > { %5114 = vmatprep.subr.mxu1 %v2899_v47  ;;  %5021 = vmatprep.subr.mxu0 %v2857_v51  ;;  %v10873_v13 = vpop.f32.mrf.mxu0  ;;  %v10875_v61 = vpop.f32.mrf.mxu1 }
 0x632   : > { %5115 = vmatpush1.msra.mxu1 %v2898_v23  ;;  %5022 = vmatpush1.msra.mxu0 %v2856_v54 }
 0x633   : > { %5116 = vmatprep.subr.mxu1 %v2859_v29  ;;  %4893 = vmatprep.mubr.f32.mxu0 %v8220_v3 }
 0x634   : > { %4988 = vmatprep.mubr.f32.mxu1 %v8220_v3  ;;  %5023 = vmatprep.subr.mxu0 %v2817_v26  ;;  %v10891_v8 = vpop.f32.mrf.mxu0  ;;  %v10893_v11 = vpop.f32.mrf.mxu1 }
 0x635   : > { %5117 = vmatpush1.msra.mxu1 %v2858_v62  ;;  %6971 = vmatmul.mubr.msk.f32.gmra.mxu0 %vm413_vm1, %v9808_v57 }
 0x636   : > { %6976 = vmatmul.mubr.msk.f32.gmra.mxu1 %vm413_vm1, %v9808_v57  ;;  %5024 = vmatpush1.msra.mxu0 %v2816_v1  ;;  %v10908_v20 = vpop.f32.mrf.mxu0  ;;  %v10910_v21 = vpop.f32.mrf.mxu1 }
 0x637   : > { %5118 = vmatprep.subr.mxu1 %v2819_v52  ;;  %5025 = vmatprep.subr.mxu0 %v2777_v5 }
 0x638   : > { %5119 = vmatpush1.msra.mxu1 %v2818_v12  ;;  %5026 = vmatpush1.msra.mxu0 %v2776_v16 }
 0x639   : > { %5120 = vmatprep.subr.mxu1 %v2779_v17  ;;  %5059 = vmatprep.mubr.f32.mxu0 %v8220_v3 }
 0x63a   : > { %5121 = vmatpush1.msra.mxu1 %v2778_v22  ;;  %5154 = vmatprep.mubr.f32.mxu1 %v8220_v3  ;;  %v10917_v25 = vpop.f32.mrf.mxu0  ;;  %v10919_v27 = vpop.f32.mrf.mxu1 }
 0x63b   : > { %6977 = vmatmul.mubr.msk.f32.vlgmr.msra.gmra.mxu0 %vm413_vm1, %v9707_v2  ;;  %6982 = vmatmul.mubr.msk.f32.vlgmr.msra.gmra.mxu1 %vm413_vm1, %v9707_v2 }
 0x63c   : > { %5065 = vmatprep.mubr.f32.mxu0 %v8220_v3  ;;  %5160 = vmatprep.mubr.f32.mxu1 %v8220_v3  ;;  %v10927_v28 = vpop.f32.mrf.mxu0  ;;  %v10929_v32 = vpop.f32.mrf.mxu1 }
 0x63f   : > { %6978 = vmatmul.mubr.msk.f32.gmra.mxu0 %vm413_vm1, %v9728_v18  ;;  %6983 = vmatmul.mubr.msk.f32.gmra.mxu1 %vm413_vm1, %v9728_v18  ;;  %v10935_v35 = vpop.f32.mrf.mxu0 }
 0x640   : > { %5071 = vmatprep.mubr.f32.mxu0 %v8220_v3  ;;  %5166 = vmatprep.mubr.f32.mxu1 %v8220_v3  ;;  %v10939_v2 = vpop.f32.mrf.mxu1 }
 0x641   : > { %v10941_v39 = vpop.f32.mrf.mxu0 }
 0x642   : > { %v10943_v40 = vpop.f32.mrf.mxu1 }
 0x643   : > { %14332 = vst [vmem:[#allocation2_spill] sm:$0xff] %v10943_v40  ;;  %6979 = vmatmul.mubr.msk.f32.gmra.mxu0 %vm413_vm1, %v9749_v19  ;;  %6984 = vmatmul.mubr.msk.f32.gmra.mxu1 %vm413_vm1, %v9749_v19 }
 0x644   : > { %5077 = vmatprep.mubr.f32.mxu0 %v8220_v3  ;;  %5172 = vmatprep.mubr.f32.mxu1 %v8220_v3 }
 0x645   : > { %v10951_v18 = vpop.f32.mrf.mxu0  ;;  %v10953_v38 = vpop.f32.mrf.mxu1 }
 0x647   : > { %6980 = vmatmul.mubr.msk.f32.gmra.mxu0 %vm413_vm1, %v9777_v48  ;;  %6985 = vmatmul.mubr.msk.f32.gmra.mxu1 %vm413_vm1, %v9777_v48  ;;  %v10959_v41 = vpop.f32.mrf.mxu0  ;;  %v10961_v44 = vpop.f32.mrf.mxu1 }
 0x648   : > { %14333 = vst [vmem:[#allocation3_spill] sm:$0xff] %v10961_v44  ;;  %5083 = vmatprep.mubr.f32.mxu0 %v8220_v3  ;;  %5178 = vmatprep.mubr.f32.mxu1 %v8220_v3 }
 0x649   : > { %v10965_v19 = vpop.f32.mrf.mxu0  ;;  %v10967_v45 = vpop.f32.mrf.mxu1 }
 0x64a   : > { %14334 = vst [vmem:[#allocation4_spill] sm:$0xff] %v10967_v45 }
 0x64b   : > { %6981 = vmatmul.mubr.msk.f32.gmra.mxu0 %vm413_vm1, %v9808_v57  ;;  %6986 = vmatmul.mubr.msk.f32.gmra.mxu1 %vm413_vm1, %v9808_v57  ;;  %v10973_v47 = vpop.f32.mrf.mxu0  ;;  %v10975_v48 = vpop.f32.mrf.mxu1 }
 0x64c   : > { %14335 = vst [vmem:[#allocation5_spill] sm:$0xff] %v10975_v48 }
 0x64e   : > { %v10977_v51 = vpop.f32.mrf.mxu0  ;;  %v10979_v23 = vpop.f32.mrf.mxu1 }
 0x64f   : > { %14336 = vst [vmem:[#allocation6_spill] sm:$0xff] %v10979_v23 }
 0x650   : > { %v10981_v54 = vpop.f32.mrf.mxu0  ;;  %v10983_v3 = vpop.f32.mrf.mxu1 }
 0x651   : > { %14337 = vst [vmem:[#allocation7_spill] sm:$0xff] %v10981_v54  ;;  %14338 = vst [vmem:[#allocation8_spill] sm:$0xff] %v10983_v3 }
 0x654   : > { %v10985_v29 = vpop.f32.mrf.mxu0  ;;  %v10987_v26 = vpop.f32.mrf.mxu1 }
 0x655   : > { %14339 = vst [vmem:[#allocation9_spill] sm:$0xff] %v10985_v29  ;;  %14340 = vst [vmem:[#allocation10_spill] sm:$0xff] %v10987_v26 }
 0x656   : > { %v10989_v62 = vpop.f32.mrf.mxu0  ;;  %v10991_v1 = vpop.f32.mrf.mxu1 }
 0x657   : > { %14341 = vst [vmem:[#allocation11_spill] sm:$0xff] %v10989_v62  ;;  %14342 = vst [vmem:[#allocation12_spill] sm:$0xff] %v10991_v1 }
 0x659   : > { %v10993_v57 = vpop.f32.mrf.mxu0 }
 0x65a   : > { %14343 = vst [vmem:[#allocation13_spill] sm:$0xff] %v10993_v57  ;;  %v10995_v52 = vpop.f32.mrf.mxu1 }
 0x65b   : > { %14344 = vst [vmem:[#allocation14_spill] sm:$0xff] %v10995_v52  ;;  %v10997_v5 = vpop.f32.mrf.mxu0 }
 0x65c   : > { %14345 = vst [vmem:[#allocation15_spill] sm:$0xff] %v10997_v5  ;;  %v10999_v12 = vpop.f32.mrf.mxu1 }
 0x65d   : > { %14346 = vst [vmem:[#allocation16_spill] sm:$0xff] %v10999_v12 }
 0x65f   : > { %v11001_v16 = vpop.f32.mrf.mxu0  ;;  %v11003_v17 = vpop.f32.mrf.mxu1 }
 0x660   : > { %14347 = vst [vmem:[#allocation17_spill] sm:$0xff] %v11001_v16  ;;  %14348 = vst [vmem:[#allocation18_spill] sm:$0xff] %v11003_v17  ;;  %v11089_v16 = vsub.s32 4, %v8274_v6 }
 0x661   : > { %v11005_v22 = vpop.f32.mrf.mxu0  ;;  %v11007_v3 = vpop.f32.mrf.mxu1 }
 0x662   : > { %14349 = vst [vmem:[#allocation19_spill] sm:$0xff] %v11005_v22  ;;  %14350 = vst [vmem:[#allocation20_spill] sm:$0xff] %v11007_v3 }
 0x663   : > { %v11009_v26 = vpop.f32.mrf.mxu0  ;;  %v11011_v48 = vpop.f32.mrf.mxu1 }
 0x664   : > { %14351 = vst [vmem:[#allocation21_spill] sm:$0xff] %v11009_v26  ;;  %14352 = vst [vmem:[#allocation22_spill] sm:$0xff] %v11011_v48 }
 0x665   : > { %v11013_v1 = vpop.f32.mrf.mxu0  ;;  %v11015_v23 = vpop.f32.mrf.mxu1 }
 0x666   : > { %14353 = vst [vmem:[#allocation23_spill] sm:$0xff] %v11013_v1  ;;  %14354 = vst [vmem:[#allocation24_spill] sm:$0xff] %v11015_v23 }
 0x668   : > { %v11017_v52 = vpop.f32.mrf.mxu0  ;;  %v11019_v5 = vpop.f32.mrf.mxu1 }
 0x669   : > { %14355 = vst [vmem:[#allocation25_spill] sm:$0xff] %v11017_v52  ;;  %14356 = vst [vmem:[#allocation26_spill] sm:$0xff] %v11019_v5  ;;  %v11042_v5 = vsub.s32 1, %v8274_v6 }
 0x66a   : > { %v11021_v12 = vpop.f32.mrf.mxu0  ;;  %v11023_v57 = vpop.f32.mrf.mxu1 }
 0x66b   : > { %14357 = vst [vmem:[#allocation27_spill] sm:$0xff] %v11021_v12  ;;  %14358 = vst [vmem:[#allocation28_spill] sm:$0xff] %v11023_v57 }
 0x66e   : > { %v11025_v17 = vpop.f32.mrf.mxu0  ;;  %v11027_v22 = vpop.f32.mrf.mxu1 }
 0x66f   : > { %14359 = vst [vmem:[#allocation29_spill] sm:$0xff] %v11025_v17  ;;  %14360 = vst [vmem:[#allocation30_spill] sm:$0xff] %v11027_v22  ;;  %v11049_v22 = vsub.s32 0, %v8274_v6 }
 0x670   : > { %v11029_v3 = vpop.f32.mrf.mxu0  ;;  %v11031_v26 = vpop.f32.mrf.mxu1 }
 0x671   : > { %14361 = vst [vmem:[#allocation31_spill] sm:$0xff] %v11029_v3  ;;  %14362 = vst [vmem:[#allocation32_spill] sm:$0xff] %v11031_v26  ;;  %v11054_v26 = vld [vmem:[%s14021_s4] sm:$0xff] }
 0x673   : > { %v11033_v48 = vpop.f32.mrf.mxu0 }
 0x674   : > { %14363 = vst [vmem:[#allocation33_spill] sm:$0xff] %v11033_v48  ;;  %v11035_v1 = vpop.f32.mrf.mxu1 }
 0x675   : > { %14364 = vst [vmem:[#allocation34_spill] sm:$0xff] %v11035_v1  ;;  %v11037_v23 = vpop.f32.mrf.mxu0 }
 0x676   : > { %14365 = vst [vmem:[#allocation35_spill] sm:$0xff] %v11037_v23  ;;  %v11039_v52 = vpop.f32.mrf.mxu1 }
 0x677   : > { %14366 = vst [vmem:[#allocation36_spill] sm:$0xff] %v11039_v52  ;;  %v3077_v52 = vrot.slane %v11054_v26, %v11042_v5 }
 0x679   : > { %v11044_v57 = vpop.f32.mrf.mxu0  ;;  %v11046_v17 = vpop.f32.mrf.mxu1 }
 0x67a   : > { %14367 = vst [vmem:[#allocation37_spill] sm:$0xff] %v11044_v57  ;;  %14368 = vst [vmem:[#allocation38_spill] sm:$0xff] %v11046_v17  ;;  %v3073_v17 = vrot.slane %v11054_v26, %v11049_v22  ;;  %v11069_v57 = vsub.s32 2, %v8274_v6 }
 0x67b   : > { %v11056_v1 = vpop.f32.mrf.mxu0  ;;  %v11058_v23 = vpop.f32.mrf.mxu1 }
 0x67c   : > { %14369 = vst [vmem:[#allocation39_spill] sm:$0xff] %v11056_v1  ;;  %14370 = vst [vmem:[#allocation40_spill] sm:$0xff] %v11058_v23  ;;  %v11076_v1 = vadd.f32 %v10683_v24, %v3077_v52  ;;  %v11079_v23 = vsub.s32 3, %v8274_v6 }
 0x67d   : > { %v11062_v48 = vpop.f32.mrf.mxu0  ;;  %v11064_v3 = vpop.f32.mrf.mxu1 }
 0x67e   : > { %14371 = vst [vmem:[#allocation41_spill] sm:$0xff] %v11062_v48  ;;  %14372 = vst [vmem:[#allocation42_spill] sm:$0xff] %v11064_v3  ;;  %v11082_v48 = vadd.f32 %v10671_v56, %v3073_v17  ;;  %v11086_v3 = vrot.slane %v11054_v26, %v11069_v57  ;;  %v11106_v40 = vrot.slane %v11054_v26, %v11079_v23 }
 0x67f   : > { %v11071_v12 = vpop.f32.mrf.mxu0  ;;  %v11073_v62 = vpop.f32.mrf.mxu1  ;;  %14375 = vst [vmem:[#allocation45_spill] sm:$0xff] %v11076_v1 }
 0x680   : > { %14373 = vst [vmem:[#allocation43_spill] sm:$0xff] %v11071_v12  ;;  %14374 = vst [vmem:[#allocation44_spill] sm:$0xff] %v11073_v62  ;;  %v5185_v24 = vmax.f32 %v11082_v48, %v11076_v1  ;;  %v11098_v62 = vadd.f32 %v10710_v59, %v3077_v52  ;;  %v11110_v29 = vadd.f32 %v10673_v50, %v11086_v3  ;;  %v11120_v59 = vsub.s32 5, %v8274_v6 }
 0x681   : > { %14376 = vst [vmem:[#allocation46_spill] sm:$0xff] %v11082_v48  ;;  %v11117_v1 = vrot.slane %v11054_v26, %v11089_v16  ;;  %v11123_v48 = vadd.f32 %v10742_v7, %v3077_v52  ;;  %v11137_v54 = vadd.f32 %v10685_v53, %v11106_v40  ;;  %v11141_v7 = vadd.f32 %v10702_v9, %v11086_v3 }
 0x682   : > { %v11091_v45 = vpop.f32.mrf.mxu0  ;;  %v11093_v12 = vpop.f32.mrf.mxu1  ;;  %14379 = vst [vmem:[#allocation49_spill] sm:$0xff] %v11098_v62  ;;  %14382 = vst [vmem:[#allocation52_spill] sm:$0xff] %v11110_v29 }
 0x683   : > { %14377 = vst [vmem:[#allocation47_spill] sm:$0xff] %v11091_v45  ;;  %14378 = vst [vmem:[#allocation48_spill] sm:$0xff] %v11093_v12  ;;  %v11113_v12 = vadd.f32 %v10700_v58, %v3073_v17  ;;  %v11133_v58 = vadd.f32 %v10725_v0, %v3073_v17 }
 0x684   : > { %v11100_v44 = vpop.f32.mrf.mxu0  ;;  %v11102_v56 = vpop.f32.mrf.mxu1  ;;  %14384 = vst [vmem:[#allocation54_spill] sm:$0xff] %v11123_v48  ;;  %14388 = vst [vmem:[#allocation58_spill] sm:$0xff] %v11137_v54 }
 0x685   : > { %14380 = vst [vmem:[#allocation50_spill] sm:$0xff] %v11100_v44  ;;  %14381 = vst [vmem:[#allocation51_spill] sm:$0xff] %v11102_v56  ;;  %v5186_v56 = vmax.f32 %v5185_v24, %v11110_v29  ;;  %v5226_v44 = vmax.f32 %v11113_v12, %v11098_v62  ;;  %v11145_v24 = vadd.f32 %v10831_v43, %v11117_v1  ;;  %v11163_v43 = vsub.s32 6, %v8274_v6 }
 0x686   : > { %14383 = vst [vmem:[#allocation53_spill] sm:$0xff] %v11113_v12  ;;  %14387 = vst [vmem:[#allocation57_spill] sm:$0xff] %v11133_v58  ;;  %v11149_v62 = vrot.slane %v11054_v26, %v11120_v59  ;;  %v5267_v53 = vmax.f32 %v11133_v58, %v11123_v48  ;;  %v11158_v29 = vadd.f32 %v10772_v63, %v3077_v52 }
 0x687   : > { %14389 = vst [vmem:[#allocation59_spill] sm:$0xff] %v11141_v7  ;;  %14390 = vst [vmem:[#allocation60_spill] sm:$0xff] %v11145_v24  ;;  %v5187_v9 = vmax.f32 %v5186_v56, %v11137_v54  ;;  %v11176_v63 = vadd.f32 %v10712_v42, %v11106_v40  ;;  %v11185_v48 = vadd.f32 %v10859_v4, %v11117_v1  ;;  %v11203_v4 = vsub.s32 7, %v8274_v6  ;;  %v11225_v6 = vld [vmem:[%s14021_s4 + $0x8] sm:$0xff] }
 0x688   : > { %v11128_v50 = vpop.f32.mrf.mxu0  ;;  %v11130_v45 = vpop.f32.mrf.mxu1  ;;  %14393 = vst [vmem:[#allocation63_spill] sm:$0xff] %v11158_v29  ;;  %v11193_v42 = vadd.f32 %v10803_v30, %v3077_v52  ;;  %v11213_v30 = vadd.f32 %v10759_v49, %v11086_v3  ;;  %v11216_v52 = vadd.f32 %v10796_v60, %v3073_v17  ;;  %v11231_v49 = vadd.f32 %v10873_v13, %v11149_v62 }
 0x689   : > { %14385 = vst [vmem:[#allocation55_spill] sm:$0xff] %v11128_v50  ;;  %14386 = vst [vmem:[#allocation56_spill] sm:$0xff] %v11130_v45  ;;  %v5227_v45 = vmax.f32 %v5226_v44, %v11141_v7  ;;  %v11167_v50 = vadd.f32 %v10727_v37, %v11086_v3  ;;  %v5188_v56 = vmax.f32 %v5187_v9, %v11145_v24 }
 0x68a   : > { %v11151_v12 = vpop.f32.mrf.mxu0  ;;  %v11153_v0 = vpop.f32.mrf.mxu1  ;;  %14396 = vst [vmem:[#allocation66_spill] sm:$0xff] %v11176_v63  ;;  %v11181_v44 = vadd.f32 %v10841_v46, %v11149_v62  ;;  %14398 = vst [vmem:[#allocation68_spill] sm:$0xff] %v11185_v48  ;;  %v11200_v46 = vrot.slane %v11054_v26, %v11163_v43  ;;  %v11251_v13 = vrot.slane %v11054_v26, %v11203_v4 }
 0x68b   : > { %14391 = vst [vmem:[#allocation61_spill] sm:$0xff] %v11151_v12  ;;  %14392 = vst [vmem:[#allocation62_spill] sm:$0xff] %v11153_v0  ;;  %v11170_v12 = vadd.f32 %v10757_v14, %v3073_v17  ;;  %v5268_v14 = vmax.f32 %v5267_v53, %v11167_v50  ;;  %v5228_v9 = vmax.f32 %v5227_v45, %v11176_v63 }
 0x68c   : > { %14394 = vst [vmem:[#allocation64_spill] sm:$0xff] %v11167_v50  ;;  %14397 = vst [vmem:[#allocation67_spill] sm:$0xff] %v11181_v44  ;;  %v11209_v53 = vadd.f32 %v10744_v33, %v11106_v40  ;;  %v11220_v45 = vadd.f32 %v10891_v8, %v11117_v1  ;;  %v5349_v8 = vmax.f32 %v11216_v52, %v11193_v42 }
 0x68d   : > { %14395 = vst [vmem:[#allocation65_spill] sm:$0xff] %v11170_v12  ;;  %v11172_v0 = vpop.f32.mrf.mxu0  ;;  %v5308_v58 = vmax.f32 %v11170_v12, %v11158_v29  ;;  %14399 = vst [vmem:[#allocation69_spill] sm:$0xff] %v11193_v42  ;;  %v5189_v29 = vmax.f32 %v5188_v56, %v11181_v44  ;;  %v5229_v33 = vmax.f32 %v5228_v9, %v11185_v48 }
 0x68e   : > { %v11187_v37 = vpop.f32.mrf.mxu1  ;;  %14400 = vst [vmem:[#allocation70_spill] sm:$0xff] %v11209_v53  ;;  %14401 = vst [vmem:[#allocation71_spill] sm:$0xff] %v11213_v30  ;;  %v5269_v60 = vmax.f32 %v5268_v14, %v11209_v53  ;;  %v11243_v56 = vadd.f32 %v10774_v34, %v11106_v40  ;;  %v11247_v9 = vadd.f32 %v10833_v10, %v11200_v46 }
 0x68f   : > { %v11195_v7 = vpop.f32.mrf.mxu0  ;;  %14402 = vst [vmem:[#allocation72_spill] sm:$0xff] %v11216_v52  ;;  %14403 = vst [vmem:[#allocation73_spill] sm:$0xff] %v11220_v45  ;;  %v5309_v17 = vmax.f32 %v5308_v58, %v11213_v30  ;;  %v11255_v58 = vrot.slane %v11225_v6, %v11049_v22  ;;  %v11259_v14 = vadd.f32 %v10801_v15, %v11086_v3 }
 0x690   : > { %v11205_v24 = vpop.f32.mrf.mxu1  ;;  %14404 = vst [vmem:[#allocation74_spill] sm:$0xff] %v11231_v49  ;;  %14405 = vst [vmem:[#allocation75_spill] sm:$0xff] %v11243_v56  ;;  %v5270_v42 = vmax.f32 %v5269_v60, %v11220_v45  ;;  %v11264_v34 = vadd.f32 %v10908_v20, %v11149_v62  ;;  %v11268_v10 = vadd.f32 %v10917_v25, %v11117_v1 }
 0x691   : > { %14406 = vst [vmem:[#allocation76_spill] sm:$0xff] %v11247_v9  ;;  %14407 = vst [vmem:[#allocation77_spill] sm:$0xff] %v11259_v14  ;;  %v5190_v30 = vmax.f32 %v5189_v29, %v11247_v9  ;;  %v5230_v53 = vmax.f32 %v5229_v33, %v11231_v49  ;;  %v5310_v15 = vmax.f32 %v5309_v17, %v11243_v56  ;;  %v14465_v9 = vld [vmem:[#allocation12_spill] sm:$0xff] }
 0x692   : > { %14408 = vst [vmem:[#allocation78_spill] sm:$0xff] %v11264_v34  ;;  %14409 = vst [vmem:[#allocation79_spill] sm:$0xff] %v11268_v10  ;;  %v5350_v3 = vmax.f32 %v5349_v8, %v11259_v14  ;;  %v11280_v20 = vrot.slane %v11225_v6, %v11042_v5  ;;  %v11288_v45 = vadd.f32 %v10812_v36, %v11106_v40 }
 0x693   : > { %v11237_v12 = vpop.f32.mrf.mxu0  ;;  %v11239_v50 = vpop.f32.mrf.mxu1  ;;  %v11292_v29 = vadd.f32 %v10843_v31, %v11251_v13  ;;  %v11296_v33 = vadd.f32 %v10861_v55, %v11200_v46  ;;  %v11300_v17 = vadd.f32 %v10951_v18, %v11255_v58  ;;  %v5271_v8 = vmax.f32 %v5270_v42, %v11264_v34 }
 0x694   : > { %14410 = vst [vmem:[#allocation80_spill] sm:$0xff] %v11288_v45  ;;  %v5311_v14 = vmax.f32 %v5310_v15, %v11268_v10  ;;  %v11306_v36 = vadd.f32 %v10927_v28, %v11149_v62  ;;  %v11310_v31 = vadd.f32 %v10935_v35, %v11117_v1  ;;  %v5351_v42 = vmax.f32 %v5350_v3, %v11288_v45 }
 0x695   : > { %v11270_v26 = vpop.f32.mrf.mxu0  ;;  %v11272_v52 = vpop.f32.mrf.mxu1  ;;  %14411 = vst [vmem:[#allocation81_spill] sm:$0xff] %v11292_v29  ;;  %14412 = vst [vmem:[#allocation82_spill] sm:$0xff] %v11296_v33  ;;  %v5191_v56 = vmax.f32 %v5190_v30, %v11292_v29  ;;  %v5231_v18 = vmax.f32 %v5230_v53, %v11296_v33  ;;  %v11321_v15 = vadd.f32 %v10893_v11, %v11200_v46  ;;  %v14440_v33 = vld [vmem:[#allocation11_spill] sm:$0xff] }
 0x696   : > { %14413 = vst [vmem:[#allocation83_spill] sm:$0xff] %v11300_v17  ;;  %14414 = vst [vmem:[#allocation84_spill] sm:$0xff] %v11306_v36  ;;  %v11325_v28 = vadd.f32 %v10875_v61, %v11251_v13  ;;  %v11330_v1 = vadd.f32 %v10959_v41, %v11280_v20  ;;  %v11334_v30 = vadd.f32 %v10965_v19, %v11255_v58 }
 0x697   : > { %v11282_v60 = vpop.f32.mrf.mxu0  ;;  %v11284_v25 = vpop.f32.mrf.mxu1  ;;  %14415 = vst [vmem:[#allocation85_spill] sm:$0xff] %v11310_v31  ;;  %14416 = vst [vmem:[#allocation86_spill] sm:$0xff] %v11321_v15  ;;  %v5192_v35 = vmax.f32 %v5191_v56, %v11300_v17  ;;  %v5272_v11 = vmax.f32 %v5271_v8, %v11321_v15  ;;  %v5312_v45 = vmax.f32 %v5311_v14, %v11306_v36 }
 0x698   : > { %14417 = vst [vmem:[#allocation87_spill] sm:$0xff] %v11325_v28  ;;  %14418 = vst [vmem:[#allocation88_spill] sm:$0xff] %v11330_v1  ;;  %v5352_v61 = vmax.f32 %v5351_v42, %v11310_v31  ;;  %v11345_v56 = vadd.f32 %v10941_v39, %v11149_v62  ;;  %v5232_v41 = vmax.f32 %v5231_v18, %v11325_v28 }
 0x699   : > { %v11312_v40 = vpop.f32.mrf.mxu0  ;;  %v11314_v55 = vpop.f32.mrf.mxu1  ;;  %14419 = vst [vmem:[#allocation89_spill] sm:$0xff] %v11334_v30  ;;  %v11350_v19 = vrot.slane %v11225_v6, %v11069_v57  ;;  %v11358_v8 = vadd.f32 %v10910_v21, %v11251_v13  ;;  %v11362_v14 = vadd.f32 %v10919_v27, %v11200_v46  ;;  %v11366_v39 = vadd.f32 %v10977_v51, %v11255_v58 }
 0x69a   : > { %14420 = vst [vmem:[#allocation90_spill] sm:$0xff] %v11345_v56  ;;  %v5193_v62 = vmax.f32 %v5192_v35, %v11330_v1  ;;  %v5233_v18 = vmax.f32 %v5232_v41, %v11334_v30  ;;  %v11372_v42 = vadd.f32 %v10973_v47, %v11280_v20  ;;  %v5353_v36 = vmax.f32 %v5352_v61, %v11345_v56  ;;  %v14430_v56 = vld [vmem:[#allocation9_spill] sm:$0xff] }
 0x69b   : > { %14421 = vst [vmem:[#allocation91_spill] sm:$0xff] %v11358_v8  ;;  %14422 = vst [vmem:[#allocation92_spill] sm:$0xff] %v11362_v14  ;;  %v5273_v31 = vmax.f32 %v5272_v11, %v11358_v8  ;;  %v5313_v21 = vmax.f32 %v5312_v45, %v11362_v14  ;;  %v11379_v27 = vadd.f32 %v10929_v32, %v11251_v13 }
 0x69c   : > { %v11336_v53 = vpop.f32.mrf.mxu0  ;;  %v11338_v3 = vpop.f32.mrf.mxu1  ;;  %14423 = vst [vmem:[#allocation93_spill] sm:$0xff] %v11366_v39  ;;  %14424 = vst [vmem:[#allocation94_spill] sm:$0xff] %v11372_v42  ;;  %v11383_v51 = vadd.f32 %v10953_v38, %v11350_v19  ;;  %v11387_v35 = vrot.slane %v11225_v6, %v11079_v23  ;;  %v11391_v47 = vrot.slane %v11225_v6, %v11089_v16  ;;  %v14428_v38 = vld [vmem:[#allocation7_spill] sm:$0xff] }
 0x69d   : > { %14425 = vst [vmem:[#allocation95_spill] sm:$0xff] %v11379_v27  ;;  %v11399_v32 = vadd.f32 %v10939_v2, %v11200_v46  ;;  %v5274_v61 = vmax.f32 %v5273_v31, %v11366_v39  ;;  %v11404_v41 = vadd.f32 %v14428_v38, %v11280_v20  ;;  %v11408_v14 = vadd.f32 %v14430_v56, %v11255_v58  ;;  %v14432_v38 = vld [vmem:[#allocation2_spill] sm:$0xff] }
 0x69e   : > { %v11352_v10 = vpop.f32.mrf.mxu0  ;;  %v11354_v34 = vpop.f32.mrf.mxu1  ;;  %14426 = vst [vmem:[#allocation96_spill] sm:$0xff] %v11383_v51  ;;  %v5194_v8 = vmax.f32 %v5193_v62, %v11383_v51  ;;  %v5234_v15 = vmax.f32 %v5233_v18, %v11372_v42  ;;  %v5314_v2 = vmax.f32 %v5313_v21, %v11379_v27  ;;  %v11420_v31 = vrot.slane %v11225_v6, %v11120_v59  ;;  %v14434_v62 = vld [vmem:[#allocation3_spill] sm:$0xff]  ;;  %v14436_v18 = vld [vmem:[#allocation4_spill] sm:$0xff]  ;;  %v14438_v21 = vld [vmem:[#allocation17_spill] sm:$0xff] }
 0x69f   : > { %14427 = vst [vmem:[#allocation97_spill] sm:$0xff] %v11399_v32  ;;  %14429 = vst [vmem:[#allocation7_spill] sm:$0xff] %v11404_v41  ;;  %v5354_v46 = vmax.f32 %v5353_v36, %v11399_v32  ;;  %v11424_v56 = vadd.f32 %v14432_v38, %v11251_v13  ;;  %v11428_v39 = vadd.f32 %v14434_v62, %v11387_v35  ;;  %v14442_v38 = vld [vmem:[#allocation13_spill] sm:$0xff] }
 0x6a0   : > { %14431 = vst [vmem:[#allocation9_spill] sm:$0xff] %v11408_v14  ;;  %v11432_v42 = vadd.f32 %v14436_v18, %v11350_v19  ;;  %v11436_v27 = vadd.f32 %v14438_v21, %v11391_v47  ;;  %v5275_v36 = vmax.f32 %v5274_v61, %v11404_v41  ;;  %v5315_v32 = vmax.f32 %v5314_v2, %v11408_v14  ;;  %v14445_v2 = vld [vmem:[#allocation6_spill] sm:$0xff]  ;;  %v14447_v41 = vld [vmem:[#allocation5_spill] sm:$0xff] }
 0x6a1   : > { %14433 = vst [vmem:[#allocation2_spill] sm:$0xff] %v11424_v56  ;;  %14435 = vst [vmem:[#allocation3_spill] sm:$0xff] %v11428_v39  ;;  %v11442_v13 = vadd.f32 %v14440_v33, %v11280_v20  ;;  %v11446_v62 = vadd.f32 %v14442_v38, %v11255_v58  ;;  %v5195_v18 = vmax.f32 %v5194_v8, %v11428_v39  ;;  %v14449_v8 = vld [vmem:[#allocation19_spill] sm:$0xff] }
 0x6a2   : > { %v11393_v11 = vpop.f32.mrf.mxu0  ;;  %v11395_v45 = vpop.f32.mrf.mxu1  ;;  %14437 = vst [vmem:[#allocation4_spill] sm:$0xff] %v11432_v42  ;;  %14439 = vst [vmem:[#allocation17_spill] sm:$0xff] %v11436_v27  ;;  %v5235_v48 = vmax.f32 %v5234_v15, %v11432_v42  ;;  %v5355_v61 = vmax.f32 %v5354_v46, %v11424_v56  ;;  %v11457_v14 = vadd.f32 %v14445_v2, %v11350_v19  ;;  %v14451_v15 = vld [vmem:[#allocation21_spill] sm:$0xff] }
 0x6a3   : > { %14441 = vst [vmem:[#allocation11_spill] sm:$0xff] %v11442_v13  ;;  %14443 = vst [vmem:[#allocation13_spill] sm:$0xff] %v11446_v62  ;;  %v11463_v58 = vadd.f32 %v14447_v41, %v11387_v35  ;;  %v5196_v38 = vmax.f32 %v5195_v18, %v11436_v27  ;;  %v11468_v63 = vadd.f32 %v14449_v8, %v11420_v31  ;;  %v14454_v41 = vld [vmem:[#allocation15_spill] sm:$0xff] }
 0x6a4   : > { %v11412_v30 = vpop.f32.mrf.mxu0  ;;  %v11414_v28 = vpop.f32.mrf.mxu1  ;;  %14446 = vst [vmem:[#allocation6_spill] sm:$0xff] %v11457_v14  ;;  %v11472_v42 = vadd.f32 %v14451_v15, %v11391_v47  ;;  %v5276_v2 = vmax.f32 %v5275_v36, %v11457_v14  ;;  %v5316_v56 = vmax.f32 %v5315_v32, %v11442_v13  ;;  %v5356_v39 = vmax.f32 %v5355_v61, %v11446_v62  ;;  %v14456_v15 = vld [vmem:[#allocation8_spill] sm:$0xff]  ;;  %v14458_v36 = vld [vmem:[#allocation10_spill] sm:$0xff]  ;;  %v14460_v32 = vld [vmem:[#allocation25_spill] sm:$0xff] }
 0x6a5   : > { %14448 = vst [vmem:[#allocation5_spill] sm:$0xff] %v11463_v58  ;;  %14450 = vst [vmem:[#allocation19_spill] sm:$0xff] %v11468_v63  ;;  %v11481_v51 = vadd.f32 %v14454_v41, %v11280_v20  ;;  %v5236_v18 = vmax.f32 %v5235_v48, %v11463_v58  ;;  %v11486_v8 = vrot.slane %v11225_v6, %v11163_v43  ;;  %v11503_v48 = vld [vmem:[%s14021_s4 + $0x10] sm:$0xff] }
 0x6a6   : > { %14452 = vst [vmem:[#allocation21_spill] sm:$0xff] %v11472_v42  ;;  %v11490_v27 = vadd.f32 %v14456_v15, %v11387_v35  ;;  %v11494_v14 = vadd.f32 %v14458_v36, %v11350_v19  ;;  %v11498_v61 = vadd.f32 %v14460_v32, %v11391_v47  ;;  %v5197_v15 = vmax.f32 %v5196_v38, %v11468_v63  ;;  %v14462_v36 = vld [vmem:[#allocation23_spill] sm:$0xff]  ;;  %v14467_v38 = vld [vmem:[#allocation18_spill] sm:$0xff] }
 0x6a7   : > { %v11448_v49 = vpop.f32.mrf.mxu0  ;;  %14455 = vst [vmem:[#allocation15_spill] sm:$0xff] %v11481_v51  ;;  %v5237_v62 = vmax.f32 %v5236_v18, %v11472_v42  ;;  %v11513_v13 = vadd.f32 %v14462_v36, %v11420_v31  ;;  %v5357_v1 = vmax.f32 %v5356_v39, %v11481_v51  ;;  %v11524_v44 = vadd.f32 %v14465_v9, %v11387_v35  ;;  %v14469_v39 = vld [vmem:[#allocation14_spill] sm:$0xff]  ;;  %v14471_v9 = vld [vmem:[#allocation27_spill] sm:$0xff] }
 0x6a8   : > { %v11452_v21 = vpop.f32.mrf.mxu1  ;;  %14457 = vst [vmem:[#allocation8_spill] sm:$0xff] %v11490_v27  ;;  %14459 = vst [vmem:[#allocation10_spill] sm:$0xff] %v11494_v14  ;;  %v5277_v32 = vmax.f32 %v5276_v2, %v11490_v27  ;;  %v5317_v58 = vmax.f32 %v5316_v56, %v11494_v14  ;;  %v11528_v18 = vadd.f32 %v14467_v38, %v11486_v8  ;;  %v14473_v38 = vld [vmem:[#allocation29_spill] sm:$0xff] }
 0x6a9   : > { %14444 = vst [vmem:[#allocation98_spill] sm:$0xff] %v11452_v21  ;;  %v11459_v33 = vpop.f32.mrf.mxu0  ;;  %14461 = vst [vmem:[#allocation25_spill] sm:$0xff] %v11498_v61  ;;  %v11532_v36 = vrot.slane %v11225_v6, %v11203_v4  ;;  %v11536_v56 = vrot.slane %v11503_v48, %v11049_v22  ;;  %v11540_v2 = vadd.f32 %v14469_v39, %v11350_v19 }
 0x6aa   : > { %v11474_v46 = vpop.f32.mrf.mxu1  ;;  %14463 = vst [vmem:[#allocation23_spill] sm:$0xff] %v11513_v13  ;;  %14466 = vst [vmem:[#allocation12_spill] sm:$0xff] %v11524_v44  ;;  %v5278_v51 = vmax.f32 %v5277_v32, %v11498_v61  ;;  %v11545_v14 = vadd.f32 %v14471_v9, %v11420_v31  ;;  %v11549_v27 = vadd.f32 %v14473_v38, %v11391_v47  ;;  %v14477_v61 = vld [vmem:[#allocation16_spill] sm:$0xff] }
 0x6ab   : > { %14453 = vst [vmem:[#allocation99_spill] sm:$0xff] %v11474_v46  ;;  %14468 = vst [vmem:[#allocation18_spill] sm:$0xff] %v11528_v18  ;;  %v5198_v63 = vmax.f32 %v5197_v15, %v11528_v18  ;;  %v5238_v54 = vmax.f32 %v5237_v62, %v11513_v13  ;;  %v5318_v19 = vmax.f32 %v5317_v58, %v11524_v44  ;;  %v14479_v15 = vld [vmem:[#allocation20_spill] sm:$0xff]  ;;  %v14481_v62 = vld [vmem:[#allocation22_spill] sm:$0xff] }
 0x6ac   : > { %14470 = vst [vmem:[#allocation14_spill] sm:$0xff] %v11540_v2  ;;  %14472 = vst [vmem:[#allocation27_spill] sm:$0xff] %v11545_v14  ;;  %v5358_v32 = vmax.f32 %v5357_v1, %v11540_v2  ;;  %v11561_v39 = vrot.slane %v11503_v48, %v11042_v5  ;;  %v11573_v18 = vadd.f32 %v14479_v15, %v11532_v36  ;;  %v14483_v1 = vld [vmem:[#allocation37_spill] sm:$0xff] }
 0x6ad   : > { %v11505_v20 = vpop.f32.mrf.mxu0  ;;  %v11507_v41 = vpop.f32.mrf.mxu1  ;;  %14474 = vst [vmem:[#allocation29_spill] sm:$0xff] %v11549_v27  ;;  %v11577_v58 = vadd.f32 %v14481_v62, %v11486_v8  ;;  %v11581_v2 = vadd.f32 %v14483_v1, %v11536_v56  ;;  %v5279_v44 = vmax.f32 %v5278_v51, %v11545_v14  ;;  %v5319_v13 = vmax.f32 %v5318_v19, %v11549_v27  ;;  %v14490_v19 = vld [vmem:[#allocation26_spill] sm:$0xff] }
 0x6ae   : > { %14480 = vst [vmem:[#allocation20_spill] sm:$0xff] %v11573_v18  ;;  %v11602_v27 = vadd.f32 %v14490_v19, %v11486_v8 }
 0x6af   : > { %v11518_v17 = vpop.f32.mrf.mxu0  ;;  %v11520_v29 = vpop.f32.mrf.mxu1  ;;  %14482 = vst [vmem:[#allocation22_spill] sm:$0xff] %v11577_v58  ;;  %14484 = vst [vmem:[#allocation37_spill] sm:$0xff] %v11581_v2  ;;  %v5239_v62 = vmax.f32 %v5238_v54, %v11577_v58  ;;  %v14496_v54 = vld [vmem:[#allocation41_spill] sm:$0xff] }
 0x6b0   : > { %14464 = vst [vmem:[#allocation100_spill] sm:$0xff] %v11520_v29  ;;  %v11569_v29 = vadd.f32 %v14477_v61, %v11387_v35  ;;  %v14487_v61 = vld [vmem:[#allocation33_spill] sm:$0xff]  ;;  %14491 = vst [vmem:[#allocation26_spill] sm:$0xff] %v11602_v27  ;;  %v11615_v58 = vadd.f32 %v14496_v54, %v11536_v56  ;;  %v5280_v19 = vmax.f32 %v5279_v44, %v11602_v27  ;;  %v14504_v44 = vld [vmem:[#allocation30_spill] sm:$0xff] }
 0x6b1   : > { %v11551_v6 = vpop.f32.mrf.mxu0  ;;  %v11553_v42 = vpop.f32.mrf.mxu1  ;;  %v11591_v15 = vadd.f32 %v14487_v61, %v11391_v47  ;;  %v11631_v54 = vrot.slane %v11503_v48, %v11069_v57  ;;  %v11639_v27 = vadd.f32 %v14504_v44, %v11486_v8 }
 0x6b2   : > { %14475 = vst [vmem:[#allocation101_spill] sm:$0xff] %v11553_v42  ;;  %14478 = vst [vmem:[#allocation16_spill] sm:$0xff] %v11569_v29  ;;  %v5199_v42 = vmax.f32 %v5198_v63, %v11573_v18  ;;  %v5359_v51 = vmax.f32 %v5358_v32, %v11569_v29  ;;  %v14494_v63 = vld [vmem:[#allocation39_spill] sm:$0xff] }
 0x6b3   : > { %v11563_v9 = vpop.f32.mrf.mxu0  ;;  %v11565_v38 = vpop.f32.mrf.mxu1  ;;  %14488 = vst [vmem:[#allocation33_spill] sm:$0xff] %v11591_v15  ;;  %v11611_v61 = vadd.f32 %v14494_v63, %v11561_v39  ;;  %14497 = vst [vmem:[#allocation41_spill] sm:$0xff] %v11615_v58 }
 0x6b4   : > { %14476 = vst [vmem:[#allocation102_spill] sm:$0xff] %v11565_v38  ;;  %v14485_v38 = vld [vmem:[#allocation31_spill] sm:$0xff]  ;;  %v5200_v47 = vmax.f32 %v5199_v42, %v11581_v2  ;;  %14505 = vst [vmem:[#allocation30_spill] sm:$0xff] %v11639_v27 }
 0x6b5   : > { %v11587_v35 = vadd.f32 %v14485_v38, %v11420_v31  ;;  %v14492_v38 = vld [vmem:[#allocation24_spill] sm:$0xff]  ;;  %14495 = vst [vmem:[#allocation39_spill] sm:$0xff] %v11611_v61  ;;  %v14500_v42 = vld [vmem:[#allocation35_spill] sm:$0xff] }
 0x6b6   : > { %v11595_v46 = vpop.f32.mrf.mxu0  ;;  %v11597_v1 = vpop.f32.mrf.mxu1  ;;  %v11606_v14 = vadd.f32 %v14492_v38, %v11532_v36  ;;  %v5360_v38 = vmax.f32 %v5359_v51, %v11591_v15  ;;  %v11626_v2 = vadd.f32 %v14500_v42, %v11420_v31  ;;  %v5201_v31 = vmax.f32 %v5200_v47, %v11611_v61  ;;  %v14508_v42 = vld [vmem:[#allocation43_spill] sm:$0xff]  ;;  %v14514_v47 = vld [vmem:[#allocation38_spill] sm:$0xff] }
 0x6b7   : > { %14486 = vst [vmem:[#allocation31_spill] sm:$0xff] %v11587_v35  ;;  %14489 = vst [vmem:[#allocation103_spill] sm:$0xff] %v11597_v1  ;;  %v5320_v29 = vmax.f32 %v5319_v13, %v11587_v35  ;;  %v14502_v1 = vld [vmem:[#allocation28_spill] sm:$0xff]  ;;  %v14506_v13 = vld [vmem:[#allocation47_spill] sm:$0xff]  ;;  %v11649_v15 = vadd.f32 %v14508_v42, %v11561_v39  ;;  %v11668_v42 = vrot.slane %v11503_v48, %v11079_v23 }
 0x6b8   : > { %14493 = vst [vmem:[#allocation24_spill] sm:$0xff] %v11606_v14  ;;  %v11617_v18 = vpop.f32.mrf.mxu0  ;;  %v11619_v32 = vpop.f32.mrf.mxu1  ;;  %14501 = vst [vmem:[#allocation35_spill] sm:$0xff] %v11626_v2  ;;  %v5240_v63 = vmax.f32 %v5239_v62, %v11606_v14  ;;  %v11643_v51 = vadd.f32 %v14506_v13, %v11536_v56  ;;  %v14512_v13 = vld [vmem:[#allocation32_spill] sm:$0xff] }
 0x6b9   : > { %14498 = vst [vmem:[#allocation104_spill] sm:$0xff] %v11617_v18  ;;  %14499 = vst [vmem:[#allocation105_spill] sm:$0xff] %v11619_v32  ;;  %v11635_v18 = vadd.f32 %v14502_v1, %v11532_v36  ;;  %v5321_v44 = vmax.f32 %v5320_v29, %v11639_v27  ;;  %v5361_v32 = vmax.f32 %v5360_v38, %v11626_v2  ;;  %v14518_v38 = vld [vmem:[#allocation34_spill] sm:$0xff] }
 0x6ba   : > { %14507 = vst [vmem:[#allocation47_spill] sm:$0xff] %v11643_v51  ;;  %v5241_v62 = vmax.f32 %v5240_v63, %v11615_v58  ;;  %14509 = vst [vmem:[#allocation43_spill] sm:$0xff] %v11649_v15  ;;  %v11660_v21 = vadd.f32 %v14512_v13, %v11532_v36  ;;  %v11664_v63 = vadd.f32 %v14514_v47, %v11631_v54  ;;  %v14520_v47 = vld [vmem:[#allocation50_spill] sm:$0xff] }
 0x6bb   : > { %14503 = vst [vmem:[#allocation28_spill] sm:$0xff] %v11635_v18  ;;  %v5281_v14 = vmax.f32 %v5280_v19, %v11635_v18  ;;  %v11672_v58 = vrot.slane %v11503_v48, %v11089_v16  ;;  %v11680_v13 = vadd.f32 %v14518_v38, %v11486_v8  ;;  %v11685_v27 = vadd.f32 %v14520_v47, %v11561_v39  ;;  %v14522_v18 = vld [vmem:[#allocation55_spill] sm:$0xff]  ;;  %v14524_v38 = vld [vmem:[#allocation36_spill] sm:$0xff] }
 0x6bc   : > { %v11651_v35 = vpop.f32.mrf.mxu0  ;;  %v11653_v1 = vpop.f32.mrf.mxu1  ;;  %14513 = vst [vmem:[#allocation32_spill] sm:$0xff] %v11660_v21  ;;  %14515 = vst [vmem:[#allocation38_spill] sm:$0xff] %v11664_v63  ;;  %v11689_v61 = vadd.f32 %v14522_v18, %v11536_v56  ;;  %v11697_v8 = vrot.slane %v11503_v48, %v11120_v59  ;;  %v11703_v47 = vadd.f32 %v14524_v38, %v11532_v36  ;;  %v14526_v18 = vld [vmem:[#allocation40_spill] sm:$0xff]  ;;  %v14531_v36 = vld [vmem:[#allocation61_spill] sm:$0xff] }
 0x6bd   : > { %14510 = vst [vmem:[#allocation106_spill] sm:$0xff] %v11651_v35  ;;  %14511 = vst [vmem:[#allocation107_spill] sm:$0xff] %v11653_v1  ;;  %v5282_v2 = vmax.f32 %v5281_v14, %v11643_v51  ;;  %v5202_v1 = vmax.f32 %v5201_v31, %v11664_v63  ;;  %v5362_v35 = vmax.f32 %v5361_v32, %v11680_v13  ;;  %v14528_v31 = vld [vmem:[#allocation42_spill] sm:$0xff] }
 0x6be   : > { %v11674_v19 = vpop.f32.mrf.mxu0  ;;  %v11676_v29 = vpop.f32.mrf.mxu1  ;;  %14519 = vst [vmem:[#allocation34_spill] sm:$0xff] %v11680_v13  ;;  %14521 = vst [vmem:[#allocation50_spill] sm:$0xff] %v11685_v27  ;;  %v11707_v51 = vadd.f32 %v14526_v18, %v11668_v42  ;;  %v11715_v32 = vadd.f32 %v11237_v12, %v11672_v58  ;;  %v11723_v38 = vadd.f32 %v14531_v36, %v11561_v39  ;;  %v14537_v36 = vld [vmem:[#allocation44_spill] sm:$0xff] }
 0x6bf   : > { %14516 = vst [vmem:[#allocation108_spill] sm:$0xff] %v11674_v19  ;;  %14517 = vst [vmem:[#allocation109_spill] sm:$0xff] %v11676_v29  ;;  %v5242_v19 = vmax.f32 %v5241_v62, %v11649_v15  ;;  %v5322_v29 = vmax.f32 %v5321_v44, %v11660_v21  ;;  %v11711_v62 = vadd.f32 %v14528_v31, %v11631_v54 }
 0x6c0   : > { %14523 = vst [vmem:[#allocation55_spill] sm:$0xff] %v11689_v61  ;;  %14525 = vst [vmem:[#allocation36_spill] sm:$0xff] %v11703_v47  ;;  %v5283_v13 = vmax.f32 %v5282_v2, %v11685_v27  ;;  %v11727_v18 = vadd.f32 %v11172_v0, %v11536_v56  ;;  %v5203_v15 = vmax.f32 %v5202_v1, %v11707_v51 }
 0x6c1   : > { %v11699_v14 = vpop.f32.mrf.mxu0  ;;  %14527 = vst [vmem:[#allocation40_spill] sm:$0xff] %v11707_v51  ;;  %14529 = vst [vmem:[#allocation42_spill] sm:$0xff] %v11711_v62  ;;  %v5323_v21 = vmax.f32 %v5322_v29, %v11689_v61  ;;  %v5243_v12 = vmax.f32 %v5242_v19, %v11711_v62  ;;  %v5363_v2 = vmax.f32 %v5362_v35, %v11703_v47  ;;  %v14535_v29 = vld [vmem:[#allocation48_spill] sm:$0xff] }
 0x6c2   : > { %14530 = vst [vmem:[#allocation110_spill] sm:$0xff] %v11715_v32  ;;  %v11717_v44 = vpop.f32.mrf.mxu1  ;;  %14532 = vst [vmem:[#allocation61_spill] sm:$0xff] %v11723_v38  ;;  %v11738_v61 = vadd.f32 %v14535_v29, %v11631_v54  ;;  %v11742_v27 = vadd.f32 %v14537_v36, %v11668_v42  ;;  %v5204_v0 = vmax.f32 %v5203_v15, %v11715_v32 }
 0x6c3   : > { %14533 = vst [vmem:[#allocation111_spill] sm:$0xff] %v11727_v18  ;;  %v11729_v31 = vpop.f32.mrf.mxu0  ;;  %v11747_v56 = vadd.f32 %v11270_v26, %v11697_v8  ;;  %v11751_v1 = vadd.f32 %v11282_v60, %v11672_v58  ;;  %v5324_v19 = vmax.f32 %v5323_v21, %v11723_v38  ;;  %v5364_v29 = vmax.f32 %v5363_v2, %v11727_v18  ;;  %v14543_v21 = vld [vmem:[#allocation56_spill] sm:$0xff] }
 0x6c4   : > { %v11733_v63 = vpop.f32.mrf.mxu1  ;;  %14536 = vst [vmem:[#allocation48_spill] sm:$0xff] %v11738_v61  ;;  %14538 = vst [vmem:[#allocation44_spill] sm:$0xff] %v11742_v27  ;;  %v5284_v35 = vmax.f32 %v5283_v13, %v11738_v61  ;;  %v11758_v36 = vadd.f32 %v11195_v7, %v11561_v39  ;;  %v5244_v26 = vmax.f32 %v5243_v12, %v11742_v27  ;;  %v14541_v13 = vld [vmem:[#allocation51_spill] sm:$0xff]  ;;  %v11784_v39 = vld [vmem:[%s14021_s4 + $0x18] sm:$0xff] }
 0x6c5   : > { %14534 = vst [vmem:[#allocation112_spill] sm:$0xff] %v11733_v63  ;;  %14539 = vst [vmem:[#allocation113_spill] sm:$0xff] %v11751_v1  ;;  %v11767_v60 = vrot.slane %v11503_v48, %v11163_v43  ;;  %v11771_v61 = vadd.f32 %v14541_v13, %v11668_v42  ;;  %v11775_v2 = vadd.f32 %v14543_v21, %v11631_v54 }
 0x6c6   : > { %14540 = vst [vmem:[#allocation114_spill] sm:$0xff] %v11758_v36  ;;  %v11779_v7 = vadd.f32 %v11336_v53, %v11672_v58  ;;  %v5205_v13 = vmax.f32 %v5204_v0, %v11747_v56  ;;  %v5245_v38 = vmax.f32 %v5244_v26, %v11751_v1  ;;  %v11794_v21 = vadd.f32 %v11312_v40, %v11697_v8 }
 0x6c7   : > { %v11760_v47 = vpop.f32.mrf.mxu0  ;;  %v11762_v15 = vpop.f32.mrf.mxu1  ;;  %14542 = vst [vmem:[#allocation51_spill] sm:$0xff] %v11771_v61  ;;  %14544 = vst [vmem:[#allocation56_spill] sm:$0xff] %v11775_v2  ;;  %v5285_v53 = vmax.f32 %v5284_v35, %v11771_v61  ;;  %v5325_v27 = vmax.f32 %v5324_v19, %v11775_v2  ;;  %v5365_v62 = vmax.f32 %v5364_v29, %v11758_v36 }
 0x6c8   : > { %14545 = vst [vmem:[#allocation115_spill] sm:$0xff] %v11779_v7  ;;  %14547 = vst [vmem:[#allocation117_spill] sm:$0xff] %v11794_v21  ;;  %v11809_v0 = vadd.f32 %v11239_v50, %v11767_v60  ;;  %v11813_v40 = vrot.slane %v11503_v48, %v11203_v4  ;;  %v11817_v35 = vrot.slane %v11784_v39, %v11049_v22 }
 0x6c9   : > { %v11786_v12 = vpop.f32.mrf.mxu0  ;;  %v11788_v18 = vpop.f32.mrf.mxu1  ;;  %v11821_v19 = vadd.f32 %v11187_v37, %v11631_v54  ;;  %v5286_v29 = vmax.f32 %v5285_v53, %v11779_v7  ;;  %v11830_v50 = vadd.f32 %v11393_v11, %v11672_v58  ;;  %v5246_v2 = vmax.f32 %v5245_v38, %v11794_v21 }
 0x6ca   : > { %14546 = vst [vmem:[#allocation116_spill] sm:$0xff] %v11788_v18  ;;  %v14548_v18 = vld [vmem:[#allocation62_spill] sm:$0xff]  ;;  %v5206_v36 = vmax.f32 %v5205_v13, %v11809_v0  ;;  %v11846_v11 = vadd.f32 %v11205_v24, %v11668_v42  ;;  %v11850_v53 = vadd.f32 %v11272_v52, %v11813_v40  ;;  %v11854_v13 = vadd.f32 %v11284_v25, %v11767_v60 }
 0x6cb   : > { %v11799_v32 = vpop.f32.mrf.mxu0  ;;  %v11801_v51 = vpop.f32.mrf.mxu1  ;;  %v11805_v63 = vadd.f32 %v14548_v18, %v11668_v42  ;;  %14550 = vst [vmem:[#allocation118_spill] sm:$0xff] %v11821_v19  ;;  %v11826_v18 = vadd.f32 %v11352_v10, %v11697_v8  ;;  %14552 = vst [vmem:[#allocation120_spill] sm:$0xff] %v11830_v50  ;;  %v5366_v54 = vmax.f32 %v5365_v62, %v11821_v19 }
 0x6cc   : > { %v11842_v10 = vrot.slane %v11784_v39, %v11042_v5  ;;  %14553 = vst [vmem:[#allocation121_spill] sm:$0xff] %v11846_v11  ;;  %14554 = vst [vmem:[#allocation122_spill] sm:$0xff] %v11854_v13  ;;  %v11868_v52 = vadd.f32 %v11412_v30, %v11697_v8  ;;  %v11872_v25 = vadd.f32 %v11448_v49, %v11672_v58 }
 0x6cd   : > { %14549 = vst [vmem:[#allocation62_spill] sm:$0xff] %v11805_v63  ;;  %14551 = vst [vmem:[#allocation119_spill] sm:$0xff] %v11826_v18  ;;  %v11832_v48 = vpop.f32.mrf.mxu0  ;;  %v11834_v26 = vpop.f32.mrf.mxu1  ;;  %v5326_v37 = vmax.f32 %v5325_v27, %v11805_v63  ;;  %v11858_v27 = vadd.f32 %v11505_v20, %v11817_v35  ;;  %v5287_v19 = vmax.f32 %v5286_v29, %v11826_v18 }
 0x6ce   : > { %14555 = vst [vmem:[#allocation123_spill] sm:$0xff] %v11868_v52  ;;  %14556 = vst [vmem:[#allocation124_spill] sm:$0xff] %v11872_v25  ;;  %v5207_v42 = vmax.f32 %v5206_v36, %v11850_v53  ;;  %v5247_v20 = vmax.f32 %v5246_v2, %v11854_v13  ;;  %v5367_v29 = vmax.f32 %v5366_v54, %v11846_v11  ;;  %v14582_v13 = vld [vmem:[#allocation103_spill] sm:$0xff] }
 0x6cf   : > { %v5327_v24 = vmax.f32 %v5326_v37, %v11830_v50  ;;  %v11883_v37 = vadd.f32 %v11338_v3, %v11767_v60  ;;  %v11887_v30 = vadd.f32 %v11314_v55, %v11813_v40  ;;  %v11892_v58 = vadd.f32 %v11518_v17, %v11842_v10 }
 0x6d0   : > { %v11860_v62 = vpop.f32.mrf.mxu0  ;;  %v11862_v38 = vpop.f32.mrf.mxu1  ;;  %v5208_v49 = vmax.f32 %v5207_v42, %v11858_v27  ;;  %v11896_v36 = vadd.f32 %v11551_v6, %v11817_v35  ;;  %v5368_v3 = vmax.f32 %v5367_v29, %v11872_v25  ;;  %v11903_v55 = vadd.f32 %v11459_v33, %v11697_v8 }
 0x6d1   : > { %14557 = vst [vmem:[#allocation125_spill] sm:$0xff] %v11883_v37  ;;  %14558 = vst [vmem:[#allocation126_spill] sm:$0xff] %v11887_v30  ;;  %v5288_v2 = vmax.f32 %v5287_v19, %v11883_v37  ;;  %v5328_v54 = vmax.f32 %v5327_v24, %v11868_v52  ;;  %v5248_v42 = vmax.f32 %v5247_v20, %v11887_v30 }
 0x6d2   : > { %v11876_v63 = vpop.f32.mrf.mxu0  ;;  %v11878_v7 = vpop.f32.mrf.mxu1  ;;  %14559 = vst [vmem:[#allocation127_spill] sm:$0xff] %v11896_v36  ;;  %14560 = vst [vmem:[#allocation128_spill] sm:$0xff] %v11903_v55  ;;  %v11908_v17 = vrot.slane %v11784_v39, %v11069_v57  ;;  %v11916_v19 = vadd.f32 %v11354_v34, %v11813_v40  ;;  %v11920_v24 = vadd.f32 %v11395_v45, %v11767_v60 }
 0x6d3   : > { %v11924_v33 = vadd.f32 %v11595_v46, %v11817_v35  ;;  %v5209_v8 = vmax.f32 %v5208_v49, %v11892_v58  ;;  %v5249_v20 = vmax.f32 %v5248_v42, %v11896_v36  ;;  %v11930_v29 = vadd.f32 %v11563_v9, %v11842_v10 }
 0x6d4   : > { %14561 = vst [vmem:[#allocation129_spill] sm:$0xff] %v11916_v19  ;;  %14562 = vst [vmem:[#allocation130_spill] sm:$0xff] %v11920_v24  ;;  %v5289_v52 = vmax.f32 %v5288_v2, %v11916_v19  ;;  %v5329_v45 = vmax.f32 %v5328_v54, %v11920_v24  ;;  %v5369_v50 = vmax.f32 %v5368_v3, %v11903_v55  ;;  %v14566_v2 = vld [vmem:[#allocation98_spill] sm:$0xff] }
 0x6d5   : > { %14563 = vst [vmem:[#allocation131_spill] sm:$0xff] %v11924_v33  ;;  %14564 = vst [vmem:[#allocation132_spill] sm:$0xff] %v11930_v29  ;;  %v11941_v46 = vadd.f32 %v11414_v28, %v11813_v40  ;;  %v11945_v49 = vadd.f32 %v11507_v41, %v11908_v17  ;;  %v11949_v9 = vrot.slane %v11784_v39, %v11079_v23  ;;  %v14568_v28 = vld [vmem:[#allocation104_spill] sm:$0xff]  ;;  %v14570_v41 = vld [vmem:[#allocation106_spill] sm:$0xff] }
 0x6d6   : > { %v11910_v11 = vpop.f32.mrf.mxu0  ;;  %v11912_v6 = vpop.f32.mrf.mxu1  ;;  %v11953_v42 = vrot.slane %v11784_v39, %v11089_v16  ;;  %v11957_v54 = vadd.f32 %v14566_v2, %v11767_v60  ;;  %v5290_v3 = vmax.f32 %v5289_v52, %v11924_v33  ;;  %v11962_v55 = vadd.f32 %v14568_v28, %v11842_v10 }
 0x6d7   : > { %14565 = vst [vmem:[#allocation133_spill] sm:$0xff] %v11941_v46  ;;  %v11966_v24 = vadd.f32 %v14570_v41, %v11817_v35  ;;  %v5210_v37 = vmax.f32 %v5209_v8, %v11945_v49  ;;  %v5250_v18 = vmax.f32 %v5249_v20, %v11930_v29  ;;  %v5330_v60 = vmax.f32 %v5329_v45, %v11941_v46  ;;  %v14572_v41 = vld [vmem:[#allocation99_spill] sm:$0xff]  ;;  %v14574_v8 = vld [vmem:[#allocation100_spill] sm:$0xff]  ;;  %v14576_v20 = vld [vmem:[#allocation101_spill] sm:$0xff] }
 0x6d8   : > { %v11932_v25 = vpop.f32.mrf.mxu0  ;;  %v11934_v34 = vpop.f32.mrf.mxu1  ;;  %14567 = vst [vmem:[#allocation98_spill] sm:$0xff] %v11957_v54  ;;  %14569 = vst [vmem:[#allocation104_spill] sm:$0xff] %v11962_v55  ;;  %v5370_v52 = vmax.f32 %v5369_v50, %v11957_v54  ;;  %v11978_v2 = vrot.slane %v11784_v39, %v11120_v59  ;;  %v11984_v33 = vadd.f32 %v14572_v41, %v11813_v40  ;;  %v14579_v40 = vld [vmem:[#allocation108_spill] sm:$0xff] }
 0x6d9   : > { %14571 = vst [vmem:[#allocation106_spill] sm:$0xff] %v11966_v24  ;;  %v11988_v36 = vadd.f32 %v14574_v8, %v11949_v9  ;;  %v11992_v29 = vadd.f32 %v14576_v20, %v11908_v17  ;;  %v11996_v50 = vadd.f32 %v11760_v47, %v11953_v42  ;;  %v5291_v54 = vmax.f32 %v5290_v3, %v11962_v55 }
 0x6da   : > { %14573 = vst [vmem:[#allocation99_spill] sm:$0xff] %v11984_v33  ;;  %v5331_v46 = vmax.f32 %v5330_v60, %v11966_v24  ;;  %v12004_v41 = vadd.f32 %v14579_v40, %v11842_v10  ;;  %v12008_v8 = vadd.f32 %v11699_v14, %v11817_v35  ;;  %v5371_v47 = vmax.f32 %v5370_v52, %v11984_v33  ;;  %v14584_v40 = vld [vmem:[#allocation102_spill] sm:$0xff] }
 0x6db   : > { %v11968_v19 = vpop.f32.mrf.mxu0  ;;  %14575 = vst [vmem:[#allocation100_spill] sm:$0xff] %v11988_v36  ;;  %14577 = vst [vmem:[#allocation101_spill] sm:$0xff] %v11992_v29  ;;  %v5211_v20 = vmax.f32 %v5210_v37, %v11988_v36  ;;  %v5251_v30 = vmax.f32 %v5250_v18, %v11992_v29  ;;  %v12015_v21 = vadd.f32 %v14582_v13, %v11908_v17 }
 0x6dc   : > { %v11972_v61 = vpop.f32.mrf.mxu1  ;;  %14578 = vst [vmem:[#allocation134_spill] sm:$0xff] %v11996_v50  ;;  %14580 = vst [vmem:[#allocation108_spill] sm:$0xff] %v12004_v41  ;;  %v12021_v24 = vadd.f32 %v14584_v40, %v11949_v9  ;;  %v12026_v35 = vadd.f32 %v11786_v12, %v11978_v2  ;;  %v12030_v18 = vadd.f32 %v11799_v32, %v11953_v42  ;;  %v14587_v32 = vld [vmem:[#allocation105_spill] sm:$0xff] }
 0x6dd   : > { %v11980_v28 = vpop.f32.mrf.mxu0  ;;  %14581 = vst [vmem:[#allocation135_spill] sm:$0xff] %v12008_v8  ;;  %14583 = vst [vmem:[#allocation103_spill] sm:$0xff] %v12015_v21  ;;  %v5212_v14 = vmax.f32 %v5211_v20, %v11996_v50  ;;  %v5292_v13 = vmax.f32 %v5291_v54, %v12015_v21  ;;  %v5332_v37 = vmax.f32 %v5331_v46, %v12004_v41  ;;  %v14588_v46 = vld [vmem:[#allocation107_spill] sm:$0xff]  ;;  %v14591_v50 = vld [vmem:[#allocation109_spill] sm:$0xff] }
 0x6de   : > { %v11998_v45 = vpop.f32.mrf.mxu1  ;;  %14585 = vst [vmem:[#allocation102_spill] sm:$0xff] %v12021_v24  ;;  %v5372_v52 = vmax.f32 %v5371_v47, %v12008_v8  ;;  %v12037_v40 = vadd.f32 %v11729_v31, %v11842_v10  ;;  %v5252_v12 = vmax.f32 %v5251_v30, %v12021_v24  ;;  %v12044_v55 = vrot.slane %v11784_v39, %v11163_v43  ;;  %v12061_v10 = vld [vmem:[%s14021_s4 + $0x20] sm:$0xff] }
 0x6df   : > { %v12048_v54 = vadd.f32 %v14587_v32, %v11949_v9  ;;  %v12052_v47 = vadd.f32 %v14588_v46, %v11908_v17  ;;  %v12056_v31 = vadd.f32 %v11860_v62, %v11953_v42  ;;  %v5213_v41 = vmax.f32 %v5212_v14, %v12026_v35 }
 0x6e0   : > { %14586 = vst [vmem:[#allocation136_spill] sm:$0xff] %v12037_v40  ;;  %v5253_v32 = vmax.f32 %v5252_v12, %v12030_v18  ;;  %v12069_v46 = vadd.f32 %v11832_v48, %v11978_v2  ;;  %v5373_v24 = vmax.f32 %v5372_v52, %v12037_v40  ;;  %v12078_v36 = vadd.f32 %v14591_v50, %v11949_v9 }
 0x6e1   : > { %v4871_v3 = vpop.f32.mrf.mxu0  ;;  %v12017_v60 = vpop.f32.mrf.mxu1  ;;  %14589 = vst [vmem:[#allocation105_spill] sm:$0xff] %v12052_v47  ;;  %14590 = vst [vmem:[#allocation107_spill] sm:$0xff] %v12056_v31  ;;  %v5293_v21 = vmax.f32 %v5292_v13, %v12048_v54  ;;  %v5333_v62 = vmax.f32 %v5332_v37, %v12052_v47  ;;  %v12082_v14 = vadd.f32 %v11762_v15, %v12044_v55 }
 0x6e2   : > { %14592 = vst [vmem:[#allocation109_spill] sm:$0xff] %v12078_v36  ;;  %v12086_v48 = vrot.slane %v11784_v39, %v11203_v4  ;;  %v12090_v13 = vrot.slane %v12061_v10, %v11049_v22  ;;  %v12094_v37 = vadd.f32 %v11717_v44, %v11908_v17  ;;  %v12099_v50 = vadd.f32 %v11876_v63, %v11978_v2  ;;  %v14595_v63 = vld [vmem:[#allocation112_spill] sm:$0xff] }
 0x6e3   : > { %v4873_v33 = vpop.f32.mrf.mxu0  ;;  %v12039_v20 = vpop.f32.mrf.mxu1  ;;  %v5294_v52 = vmax.f32 %v5293_v21, %v12056_v31  ;;  %v12103_v15 = vadd.f32 %v11910_v11, %v11953_v42  ;;  %v5214_v39 = vmax.f32 %v5213_v41, %v12082_v14  ;;  %v5254_v12 = vmax.f32 %v5253_v32, %v12069_v46  ;;  %v14597_v11 = vld [vmem:[#allocation116_spill] sm:$0xff] }
 0x6e4   : > { %14593 = vst [vmem:[#allocation137_spill] sm:$0xff] %v12094_v37  ;;  %v5334_v44 = vmax.f32 %v5333_v62, %v12078_v36  ;;  %v5374_v17 = vmax.f32 %v5373_v24, %v12094_v37  ;;  %v12113_v21 = vrot.slane %v12061_v10, %v11042_v5  ;;  %v12117_v47 = vadd.f32 %v14595_v63, %v11949_v9 }
 0x6e5   : > { %v4877_v30 = vpop.f32.mrf.mxu0  ;;  %v12063_v8 = vpop.f32.mrf.mxu1  ;;  %14594 = vst [vmem:[#allocation138_spill] sm:$0xff] %v12103_v15  ;;  %v12121_v41 = vadd.f32 %v14597_v11, %v12086_v48  ;;  %v12125_v32 = vadd.f32 %v11801_v51, %v12044_v55  ;;  %v12128_v62 = vadd.f32 %v4871_v3, %v12090_v13  ;;  %v5295_v5 = vmax.f32 %v5294_v52, %v12099_v50 }
 0x6e6   : > { %14596 = vst [vmem:[#allocation112_spill] sm:$0xff] %v12117_v47  ;;  %v5335_v36 = vmax.f32 %v5334_v44, %v12103_v15  ;;  %v12136_v9 = vadd.f32 %v11932_v25, %v11978_v2  ;;  %v12140_v63 = vadd.f32 %v11968_v19, %v11953_v42  ;;  %v5375_v11 = vmax.f32 %v5374_v17, %v12117_v47 }
 0x6e7   : > { %v4879_v29 = vpop.f32.mrf.mxu0  ;;  %v12074_v1 = vpop.f32.mrf.mxu1  ;;  %v5215_v51 = vmax.f32 %v5214_v39, %v12121_v41  ;;  %v5255_v3 = vmax.f32 %v5254_v12, %v12125_v32  ;;  %v12147_v31 = vadd.f32 %v11862_v38, %v12044_v55  ;;  %v12151_v52 = vadd.f32 %v11834_v26, %v12086_v48 }
 0x6e8   : > { %14598 = vst [vmem:[#allocation116_spill] sm:$0xff] %v12136_v9  ;;  %14599 = vst [vmem:[#allocation139_spill] sm:$0xff] %v12140_v63  ;;  %v12155_v44 = vadd.f32 %v4873_v33, %v12113_v21  ;;  %v12158_v19 = vadd.f32 %v4877_v30, %v12090_v13  ;;  %v5336_v38 = vmax.f32 %v5335_v36, %v12136_v9 }
 0x6e9   : > { %v5216_v25 = vmax.f32 %v5215_v51, %v12128_v62  ;;  %v5296_v12 = vmax.f32 %v5295_v5, %v12147_v31  ;;  %v5376_v17 = vmax.f32 %v5375_v11, %v12140_v63  ;;  %v12167_v26 = vadd.f32 %v11980_v28, %v11978_v2 }
 0x6ea   : > { %v4883_v22 = vpop.f32.mrf.mxu0  ;;  %v12107_v40 = vpop.f32.mrf.mxu1  ;;  %v5256_v51 = vmax.f32 %v5255_v3, %v12151_v52  ;;  %v12172_v33 = vrot.slane %v12061_v10, %v11069_v57  ;;  %v12178_v5 = vadd.f32 %v11878_v7, %v12086_v48  ;;  %v12182_v36 = vadd.f32 %v11912_v6, %v12044_v55 }
 0x6eb   : > { %14600 = vst [vmem:[#allocation140_spill] sm:$0xff] %v12167_v26  ;;  %v12185_v2 = vadd.f32 %v4883_v22, %v12090_v13  ;;  %v5217_v28 = vmax.f32 %v5216_v25, %v12155_v44  ;;  %v12190_v57 = vadd.f32 %v4879_v29, %v12113_v21  ;;  %v5377_v7 = vmax.f32 %v5376_v17, %v12167_v26 }
 0x6ec   : > { %v4885_v24 = vpop.f32.mrf.mxu0  ;;  %v12130_v37 = vpop.f32.mrf.mxu1  ;;  %14601 = vst [vmem:[#allocation141_spill] sm:$0xff] %v12182_v36  ;;  %v5257_v3 = vmax.f32 %v5256_v51, %v12158_v19  ;;  %v5297_v11 = vmax.f32 %v5296_v12, %v12178_v5  ;;  %v5337_v63 = vmax.f32 %v5336_v38, %v12182_v36  ;;  %v12197_v6 = vadd.f32 %v11934_v34, %v12086_v48 }
 0x6ed   : > { %v12201_v22 = vadd.f32 %v12017_v60, %v12172_v33  ;;  %v12205_v25 = vrot.slane %v12061_v10, %v11079_v23  ;;  %v12209_v12 = vadd.f32 %v11972_v61, %v12044_v55  ;;  %v12213_v17 = vadd.f32 %v4885_v24, %v12113_v21 }
 0x6ee   : > { %14602 = vst [vmem:[#allocation142_spill] sm:$0xff] %v12197_v6  ;;  %v5298_v38 = vmax.f32 %v5297_v11, %v12185_v2  ;;  %v5258_v26 = vmax.f32 %v5257_v3, %v12190_v57  ;;  %v12224_v36 = vrot.slane %v12061_v10, %v11089_v16  ;;  %v5338_v61 = vmax.f32 %v5337_v63, %v12197_v6 }
 0x6ef   : > { %14603 = vst [vmem:[#allocation143_spill] sm:$0xff] %v12209_v12  ;;  %v5218_v60 = vmax.f32 %v5217_v28, %v12201_v22  ;;  %v5378_v55 = vmax.f32 %v5377_v7, %v12209_v12  ;;  %v12230_v24 = vadd.f32 %v11998_v45, %v12086_v48  ;;  %v12238_v28 = vadd.f32 %v12063_v8, %v12172_v33 }
 0x6f0   : > { %v4889_v42 = vpop.f32.mrf.mxu0  ;;  %v12160_v39 = vpop.f32.mrf.mxu1  ;;  %v12242_v16 = vrot.slane %v12061_v10, %v11120_v59  ;;  %v5299_v63 = vmax.f32 %v5298_v38, %v12213_v17  ;;  %v12259_v59 = vrot.slane %v12061_v10, %v11163_v43  ;;  %v12276_v43 = vrot.slane %v12061_v10, %v11203_v4 }
 0x6f1   : > { %v12216_v34 = vadd.f32 %v4889_v42, %v12090_v13  ;;  %14605 = vst [vmem:[#allocation145_spill] sm:$0xff] %v12230_v24  ;;  %v12234_v42 = vadd.f32 %v12039_v20, %v12205_v25  ;;  %v5259_v8 = vmax.f32 %v5258_v26, %v12238_v28  ;;  %v5379_v38 = vmax.f32 %v5378_v55, %v12230_v24 }
 0x6f2   : > { %v4891_v30 = vpop.f32.mrf.mxu0  ;;  %v12174_v47 = vpop.f32.mrf.mxu1  ;;  %v12294_v10 = vadd.f32 %v12130_v37, %v12205_v25 }
 0x6f3   : > { %14604 = vst [vmem:[#allocation144_spill] sm:$0xff] %v12216_v34  ;;  %v5339_v3 = vmax.f32 %v5338_v61, %v12216_v34  ;;  %v12247_v11 = vadd.f32 %v4891_v30, %v12113_v21  ;;  %v5219_v7 = vmax.f32 %v5218_v60, %v12234_v42  ;;  %v12264_v30 = vadd.f32 %v12107_v40, %v12172_v33 }
 0x6f4   : > { %v12268_v60 = vadd.f32 %v12074_v1, %v12205_v25 }
 0x6f5   : > { %v4895_v9 = vpop.f32.mrf.mxu0  ;;  %14606 = vst [vmem:[#allocation146_spill] sm:$0xff] %v12247_v11  ;;  %v5300_v55 = vmax.f32 %v5299_v63, %v12264_v30  ;;  %v5340_v40 = vmax.f32 %v5339_v3, %v12247_v11 }
 0x6f6   : > { %v4990_v29 = vpop.f32.mrf.mxu1  ;;  %v12250_v45 = vadd.f32 %v4895_v9, %v12090_v13 }
 0x6f7   : > { %v4897_v51 = vpop.f32.mrf.mxu0 }
 0x6f8   : > { %v12220_v23 = vpop.f32.mrf.mxu1  ;;  %14607 = vst [vmem:[#allocation147_spill] sm:$0xff] %v12250_v45  ;;  %v12282_v24 = vadd.f32 %v4897_v51, %v12113_v21  ;;  %v12298_v21 = vadd.f32 %v12160_v39, %v12172_v33 }
 0x6fa   : > { %14608 = vst [vmem:[#allocation148_spill] sm:$0xff] %v12282_v24  ;;  %14609 = vst [vmem:[#allocation149_spill] sm:$0xff] %v12298_v21  ;;  %v5341_v37 = vmax.f32 %v5340_v40, %v12298_v21 }
 0x6fb   : > { %v5061_v20 = vpop.f32.mrf.mxu0  ;;  %v5156_v48 = vpop.f32.mrf.mxu1 }
 0x6fc   : > { %v12255_v12 = vadd.f32 %v5061_v20, %v12224_v36  ;;  %v5380_v20 = vmax.f32 %v5379_v38, %v12250_v45 }
 0x6fd   : > { %v5063_v13 = vpop.f32.mrf.mxu0  ;;  %v5158_v9 = vpop.f32.mrf.mxu1 }
 0x6fe   : > { %v5220_v26 = vmax.f32 %v5219_v7, %v12255_v12  ;;  %v12272_v61 = vadd.f32 %v5063_v13, %v12242_v16  ;;  %v5260_v7 = vmax.f32 %v5259_v8, %v12268_v60  ;;  %v12286_v13 = vadd.f32 %v5156_v48, %v12259_v59 }
 0x6ff   : > { %v5067_v1 = vpop.f32.mrf.mxu0  ;;  %v5162_v34 = vpop.f32.mrf.mxu1  ;;  %v12301_v3 = vadd.f32 %v5158_v9, %v12276_v43 }
 0x700   : > { %v5221_v6 = vmax.f32 %v5220_v26, %v12272_v61  ;;  %v12290_v4 = vadd.f32 %v5067_v1, %v12224_v36  ;;  %v5301_v26 = vmax.f32 %v5300_v55, %v12294_v10  ;;  %v5381_v1 = vmax.f32 %v5380_v20, %v12282_v24 }
 0x701   : > { %v5069_v51 = vpop.f32.mrf.mxu0  ;;  %v5164_v63 = vpop.f32.mrf.mxu1  ;;  %v12312_v11 = vadd.f32 %v5162_v34, %v12259_v59  ;;  %v12324_v55 = vadd.f32 %v4990_v29, %v12172_v33 }
 0x702   : > { %v5261_v48 = vmax.f32 %v5260_v7, %v12290_v4  ;;  %v12305_v8 = vadd.f32 %v5069_v51, %v12242_v16  ;;  %v5222_v38 = vmax.f32 %v5221_v6, %v12286_v13  ;;  %v12321_v6 = vadd.f32 %v12174_v47, %v12205_v25 }
 0x703   : > { %v5073_v39 = vpop.f32.mrf.mxu0  ;;  %v5168_v45 = vpop.f32.mrf.mxu1  ;;  %14610 = vst [vmem:[#allocation150_spill] sm:$0xff] %v12324_v55  ;;  %v12327_v24 = vadd.f32 %v5164_v63, %v12276_v43  ;;  %v5382_v47 = vmax.f32 %v5381_v1, %v12324_v55 }
 0x704   : > { %v5262_v9 = vmax.f32 %v5261_v48, %v12305_v8  ;;  %v12316_v7 = vadd.f32 %v5073_v39, %v12224_v36  ;;  %v5223_v51 = vmax.f32 %v5222_v38, %v12301_v3  ;;  %v5342_v39 = vmax.f32 %v5341_v37, %v12321_v6 }
 0x705   : > { %v5075_v40 = vpop.f32.mrf.mxu0  ;;  %v5170_v20 = vpop.f32.mrf.mxu1  ;;  %v12337_v29 = vadd.f32 %v5168_v45, %v12259_v59 }
 0x706   : > { %v5302_v34 = vmax.f32 %v5301_v26, %v12316_v7  ;;  %v12331_v48 = vadd.f32 %v5075_v40, %v12242_v16  ;;  %5224 = vmax.xlane.f32.xlu0 %v5223_v51  ;;  %v5263_v38 = vmax.f32 %v5262_v9, %v12312_v11  ;;  %v12346_v51 = vadd.f32 %v12220_v23, %v12205_v25 }
 0x707   : > { %v5079_v21 = vpop.f32.mrf.mxu0  ;;  %v5174_v33 = vpop.f32.mrf.mxu1  ;;  %v12349_v1 = vadd.f32 %v5170_v20, %v12276_v43 }
 0x708   : > { %v5303_v63 = vmax.f32 %v5302_v34, %v12331_v48  ;;  %v12341_v15 = vadd.f32 %v5079_v21, %v12224_v36  ;;  %v5264_v26 = vmax.f32 %v5263_v38, %v12327_v24  ;;  %14612 = vst [vmem:[#allocation152_spill] sm:$0xff] %v12346_v51  ;;  %v5383_v34 = vmax.f32 %v5382_v47, %v12346_v51 }
 0x709   : > { %v5081_v9 = vpop.f32.mrf.mxu0  ;;  %v5176_v37 = vpop.f32.mrf.mxu1  ;;  %v12358_v25 = vadd.f32 %v5174_v33, %v12259_v59 }
 0x70a   : > { %14611 = vst [vmem:[#allocation151_spill] sm:$0xff] %v12341_v15  ;;  %v5343_v40 = vmax.f32 %v5342_v39, %v12341_v15  ;;  %v12353_v45 = vadd.f32 %v5081_v9, %v12242_v16  ;;  %5265 = vmax.xlane.f32.xlu0 %v5264_v26  ;;  %v5304_v21 = vmax.f32 %v5303_v63, %v12337_v29 }
 0x70b   : > { %v5085_v38 = vpop.f32.mrf.mxu0  ;;  %v5180_v55 = vpop.f32.mrf.mxu1  ;;  %v12366_v9 = vadd.f32 %v5176_v37, %v12276_v43 }
 0x70c   : > { %v5344_v23 = vmax.f32 %v5343_v40, %v12353_v45  ;;  %v12362_v20 = vadd.f32 %v5085_v38, %v12224_v36  ;;  %v5305_v39 = vmax.f32 %v5304_v21, %v12349_v1  ;;  %v12374_v40 = vadd.f32 %v5180_v55, %v12259_v59  ;;  %v14619_v59 = vld [vmem:[#allocation45_spill] sm:$0xff] }
 0x70d   : > { %v5087_v15 = vpop.f32.mrf.mxu0  ;;  %14614 = vst [vmem:[#allocation154_spill] sm:$0xff] %v12366_v9  ;;  %v5182_v26 = vpop.f32.mrf.mxu1 }
 0x70e   : > { %14613 = vst [vmem:[#allocation153_spill] sm:$0xff] %v12362_v20  ;;  %v5384_v63 = vmax.f32 %v5383_v34, %v12362_v20  ;;  %v12370_v47 = vadd.f32 %v5087_v15, %v12242_v16  ;;  %5306 = vmax.xlane.f32.xlu1 %v5305_v39  ;;  %v5345_v33 = vmax.f32 %v5344_v23, %v12358_v25  ;;  %14616 = vst [vmem:[#allocation156_spill] sm:$0xff] %v12374_v40  ;;  %v14618_v34 = vld [vmem:[#allocation46_spill] sm:$0xff]  ;;  %v14620_v39 = vld [vmem:[#allocation52_spill] sm:$0xff] }
 0x70f   : > { %v12379_v38 = vadd.f32 %v5182_v26, %v12276_v43  ;;  %v14621_v43 = vld [vmem:[#allocation58_spill] sm:$0xff]  ;;  %v14625_v20 = vld [vmem:[#allocation81_spill] sm:$0xff] }
 0x710   : > { %14615 = vst [vmem:[#allocation155_spill] sm:$0xff] %v12370_v47  ;;  %v5385_v36 = vmax.f32 %v5384_v63, %v12370_v47  ;;  %v5346_v21 = vmax.f32 %v5345_v33, %v12366_v9 }
 0x711   : > { %14617 = vst [vmem:[#allocation157_spill] sm:$0xff] %v12379_v38 }
 0x712   : > { %5347 = vmax.xlane.f32.xlu1 %v5346_v21  ;;  %v5386_v37 = vmax.f32 %v5385_v36, %v12374_v40  ;;  %v14622_v36 = vld [vmem:[#allocation60_spill] sm:$0xff] }
 0x714   : > { %v5387_v15 = vmax.f32 %v5386_v37, %v12379_v38  ;;  %v14623_v38 = vld [vmem:[#allocation67_spill] sm:$0xff] }
 0x716   : > { %5388 = vmax.xlane.f32.xlu0 %v5387_v15 }
 0x78f   : > { %v12383_v16 = vpop.xlane.xlu0 %5224 }
 0x790   : > { %v5390_v23 = vsub.f32 %v14618_v34, %v12383_v16  ;;  %v5391_v55 = vsub.f32 %v14619_v59, %v12383_v16  ;;  %v5392_v63 = vsub.f32 %v14620_v39, %v12383_v16  ;;  %v5393_v33 = vsub.f32 %v14621_v43, %v12383_v16  ;;  %v14624_v59 = vld [vmem:[#allocation76_spill] sm:$0xff] }
 0x791   : > { %v5394_v37 = vsub.f32 %v14622_v36, %v12383_v16  ;;  %v5395_v40 = vsub.f32 %v14623_v38, %v12383_v16  ;;  %v5396_v47 = vsub.f32 %v14624_v59, %v12383_v16  ;;  %v5397_v43 = vsub.f32 %v14625_v20, %v12383_v16  ;;  %v14630_v20 = vld [vmem:[#allocation3_spill] sm:$0xff] }
 0x792   : > { %v5590_v26 = vmul.f32 1.442695, %v5390_v23  ;;  %v5592_v21 = vmul.f32 1.442695, %v5391_v55  ;;  %v5594_v15 = vmul.f32 1.442695, %v5392_v63 }
 0x793   : > { %v5596_v34 = vmul.f32 1.442695, %v5393_v33  ;;  %v5598_v39 = vmul.f32 1.442695, %v5394_v37  ;;  %v5600_v23 = vmul.f32 1.442695, %v5395_v40  ;;  %v5401_v40 = vsub.f32 %v14630_v20, %v12383_v16 }
 0x794   : > { %7802 = vpow2.f32 %v5590_v26  ;;  %v14626_v55 = vld [vmem:[#allocation83_spill] sm:$0xff]  ;;  %v5602_v63 = vmul.f32 1.442695, %v5396_v47  ;;  %v14627_v26 = vld [vmem:[#allocation88_spill] sm:$0xff]  ;;  %v5604_v33 = vmul.f32 1.442695, %v5397_v43 }
 0x795   : > { %7804 = vpow2.f32 %v5592_v21  ;;  %v5398_v36 = vsub.f32 %v14626_v55, %v12383_v16  ;;  %v5399_v38 = vsub.f32 %v14627_v26, %v12383_v16  ;;  %v14628_v21 = vld [vmem:[#allocation96_spill] sm:$0xff]  ;;  %v14632_v47 = vld [vmem:[#allocation17_spill] sm:$0xff]  ;;  %v14636_v20 = vld [vmem:[#allocation18_spill] sm:$0xff] }
 0x796   : > { %7806 = vpow2.f32 %v5594_v15  ;;  %v5400_v59 = vsub.f32 %v14628_v21, %v12383_v16  ;;  %v5612_v21 = vmul.f32 1.442695, %v5401_v40  ;;  %v5404_v51 = vsub.f32 %v14636_v20, %v12383_v16 }
 0x797   : > { %7808 = vpow2.f32 %v5596_v34  ;;  %v5606_v37 = vmul.f32 1.442695, %v5398_v36  ;;  %v5608_v34 = vmul.f32 1.442695, %v5399_v38  ;;  %v14634_v36 = vld [vmem:[#allocation19_spill] sm:$0xff] }
 0x798   : > { %7810 = vpow2.f32 %v5598_v39  ;;  %v5402_v39 = vsub.f32 %v14632_v47, %v12383_v16  ;;  %v5618_v20 = vmul.f32 1.442695, %v5404_v51 }
 0x799   : > { %7812 = vpow2.f32 %v5600_v23  ;;  %v5610_v23 = vmul.f32 1.442695, %v5400_v59 }
 0x79a   : > { %7814 = vpow2.f32 %v5602_v63  ;;  %v5403_v63 = vsub.f32 %v14634_v36, %v12383_v16 }
 0x79b   : > { %7816 = vpow2.f32 %v5604_v33 }
 0x79c   : > { %7818 = vpow2.f32 %v5606_v37  ;;  %v5614_v37 = vmul.f32 1.442695, %v5402_v39  ;;  %v5616_v36 = vmul.f32 1.442695, %v5403_v63 }
 0x79d   : > { %7820 = vpow2.f32 %v5608_v34 }
 0x79e   : > { %7822 = vpow2.f32 %v5610_v23 }
 0x79f   : > { %7824 = vpow2.f32 %v5612_v21 }
 0x7a0   : > { %7826 = vpow2.f32 %v5614_v37 }
 0x7a1   : > { %v12407_v15 = vpop.eup %7802  ;;  %7828 = vpow2.f32 %v5616_v36 }
 0x7a2   : > { %14629 = vst [vmem:[#allocation46_spill] sm:$0xff] %v12407_v15  ;;  %v12411_v55 = vpop.eup %7804  ;;  %7830 = vpow2.f32 %v5618_v20 }
 0x7a3   : > { %14631 = vst [vmem:[#allocation45_spill] sm:$0xff] %v12411_v55  ;;  %v5990_v43 = vadd.f32 %v12411_v55, %v12407_v15  ;;  %v12417_v26 = vpop.eup %7806  ;;  %v14638_v55 = vld [vmem:[#allocation20_spill] sm:$0xff] }
 0x7a4   : > { %14633 = vst [vmem:[#allocation52_spill] sm:$0xff] %v12417_v26  ;;  %v12422_v38 = vpop.eup %7808  ;;  %v5405_v15 = vsub.f32 %v14638_v55, %v12383_v16 }
 0x7a5   : > { %v5991_v33 = vadd.f32 %v12417_v26, %v5990_v43  ;;  %14635 = vst [vmem:[#allocation58_spill] sm:$0xff] %v12422_v38  ;;  %v12427_v47 = vpop.eup %7810  ;;  %v14640_v43 = vld [vmem:[#allocation37_spill] sm:$0xff] }
 0x7a6   : > { %14637 = vst [vmem:[#allocation60_spill] sm:$0xff] %v12427_v47  ;;  %v12432_v34 = vpop.eup %7812  ;;  %v5406_v26 = vsub.f32 %v14640_v43, %v12383_v16  ;;  %v5620_v55 = vmul.f32 1.442695, %v5405_v15 }
 0x7a7   : > { %v5992_v59 = vadd.f32 %v12422_v38, %v5991_v33  ;;  %14639 = vst [vmem:[#allocation67_spill] sm:$0xff] %v12432_v34  ;;  %v12437_v23 = vpop.eup %7814  ;;  %v14642_v33 = vld [vmem:[#allocation39_spill] sm:$0xff] }
 0x7a8   : > { %14641 = vst [vmem:[#allocation76_spill] sm:$0xff] %v12437_v23  ;;  %v5407_v38 = vsub.f32 %v14642_v33, %v12383_v16  ;;  %v12442_v21 = vpop.eup %7816  ;;  %v5622_v43 = vmul.f32 1.442695, %v5406_v26  ;;  %7832 = vpow2.f32 %v5620_v55  ;;  %v5411_v26 = vsub.f32 %v11747_v56, %v12383_v16 }
 0x7a9   : > { %v5993_v40 = vadd.f32 %v12427_v47, %v5992_v59  ;;  %14643 = vst [vmem:[#allocation81_spill] sm:$0xff] %v12442_v21  ;;  %v14644_v59 = vld [vmem:[#allocation38_spill] sm:$0xff]  ;;  %v12447_v37 = vpop.eup %7818  ;;  %v5412_v56 = vsub.f32 %v11809_v0, %v12383_v16 }
 0x7aa   : > { %v5408_v47 = vsub.f32 %v14644_v59, %v12383_v16  ;;  %14645 = vst [vmem:[#allocation83_spill] sm:$0xff] %v12447_v37  ;;  %v5624_v15 = vmul.f32 1.442695, %v5407_v38  ;;  %7834 = vpow2.f32 %v5622_v43  ;;  %v5632_v43 = vmul.f32 1.442695, %v5411_v26 }
 0x7ab   : > { %v5994_v39 = vadd.f32 %v12432_v34, %v5993_v40  ;;  %v12449_v40 = vpop.xlane.xlu0 %5265  ;;  %v14646_v34 = vld [vmem:[#allocation40_spill] sm:$0xff]  ;;  %v5414_v26 = vsub.f32 %v11858_v27, %v12383_v16  ;;  %v14657_v27 = vld [vmem:[#allocation74_spill] sm:$0xff] }
 0x7ac   : > { %v5409_v33 = vsub.f32 %v14646_v34, %v12383_v16  ;;  %v5626_v20 = vmul.f32 1.442695, %v5408_v47  ;;  %v14650_v34 = vld [vmem:[#allocation53_spill] sm:$0xff]  ;;  %7836 = vpow2.f32 %v5624_v15 }
 0x7ad   : > { %v5995_v63 = vadd.f32 %v12437_v23, %v5994_v39  ;;  %v12454_v39 = vpop.eup %7820  ;;  %v14648_v23 = vld [vmem:[#allocation110_spill] sm:$0xff]  ;;  %v5430_v55 = vsub.f32 %v14650_v34, %v12449_v40 }
 0x7ae   : > { %14647 = vst [vmem:[#allocation88_spill] sm:$0xff] %v12454_v39  ;;  %v5410_v59 = vsub.f32 %v14648_v23, %v12383_v16  ;;  %v5628_v38 = vmul.f32 1.442695, %v5409_v33  ;;  %7838 = vpow2.f32 %v5626_v20  ;;  %v5413_v33 = vsub.f32 %v11850_v53, %v12383_v16  ;;  %v14655_v53 = vld [vmem:[#allocation68_spill] sm:$0xff] }
 0x7af   : > { %v5996_v51 = vadd.f32 %v12442_v21, %v5995_v63  ;;  %v12461_v21 = vpop.eup %7822 }
 0x7b0   : > { %14649 = vst [vmem:[#allocation96_spill] sm:$0xff] %v12461_v21  ;;  %v12468_v23 = vpop.eup %7824  ;;  %v5630_v47 = vmul.f32 1.442695, %v5410_v59  ;;  %7840 = vpow2.f32 %v5628_v38 }
 0x7b1   : > { %v5997_v36 = vadd.f32 %v12447_v37, %v5996_v51  ;;  %v14651_v37 = vld [vmem:[#allocation49_spill] sm:$0xff]  ;;  %14652 = vst [vmem:[#allocation3_spill] sm:$0xff] %v12468_v23  ;;  %v12475_v15 = vpop.eup %7826 }
 0x7b2   : > { %v5431_v9 = vsub.f32 %v14651_v37, %v12449_v40  ;;  %v12482_v20 = vpop.eup %7828  ;;  %7842 = vpow2.f32 %v5630_v47  ;;  %v5435_v47 = vsub.f32 %v14657_v27, %v12449_v40  ;;  %v14660_v27 = vld [vmem:[#allocation100_spill] sm:$0xff] }
 0x7b3   : > { %v5998_v63 = vadd.f32 %v12454_v39, %v5997_v36  ;;  %v14653_v39 = vld [vmem:[#allocation59_spill] sm:$0xff]  ;;  %7844 = vpow2.f32 %v5632_v43 }
 0x7b4   : > { %v5432_v34 = vsub.f32 %v14653_v39, %v12449_v40  ;;  %v5672_v59 = vmul.f32 1.442695, %v5431_v9  ;;  %v5634_v39 = vmul.f32 1.442695, %v5412_v56  ;;  %v5636_v9 = vmul.f32 1.442695, %v5413_v33 }
 0x7b5   : > { %v5999_v51 = vadd.f32 %v12461_v21, %v5998_v63  ;;  %v5670_v63 = vmul.f32 1.442695, %v5430_v55  ;;  %v14654_v21 = vld [vmem:[#allocation66_spill] sm:$0xff]  ;;  %v5434_v55 = vsub.f32 %v14655_v53, %v12449_v40 }
 0x7b6   : > { %v5433_v0 = vsub.f32 %v14654_v21, %v12449_v40  ;;  %v5674_v38 = vmul.f32 1.442695, %v5432_v34  ;;  %v5415_v21 = vsub.f32 %v11892_v58, %v12383_v16  ;;  %v5638_v34 = vmul.f32 1.442695, %v5414_v26  ;;  %v14659_v58 = vld [vmem:[#allocation82_spill] sm:$0xff] }
 0x7b7   : > { %v6000_v36 = vadd.f32 %v12468_v23, %v5999_v51  ;;  %v12489_v23 = vpop.eup %7830  ;;  %7846 = vpow2.f32 %v5670_v63  ;;  %v5436_v33 = vsub.f32 %v14659_v58, %v12449_v40  ;;  %v5678_v63 = vmul.f32 1.442695, %v5434_v55  ;;  %v14662_v58 = vld [vmem:[#allocation134_spill] sm:$0xff] }
 0x7b8   : > { %14656 = vst [vmem:[#allocation17_spill] sm:$0xff] %v12489_v23  ;;  %7848 = vpow2.f32 %v5672_v59  ;;  %v5676_v56 = vmul.f32 1.442695, %v5433_v0  ;;  %v12496_v43 = vpop.eup %7832  ;;  %v5417_v59 = vsub.f32 %v14660_v27, %v12383_v16  ;;  %v5640_v0 = vmul.f32 1.442695, %v5415_v21  ;;  %v14663_v27 = vld [vmem:[#allocation89_spill] sm:$0xff] }
 0x7b9   : > { %v6001_v37 = vadd.f32 %v12475_v15, %v6000_v36  ;;  %14658 = vst [vmem:[#allocation19_spill] sm:$0xff] %v12496_v43  ;;  %7850 = vpow2.f32 %v5634_v39  ;;  %v5680_v26 = vmul.f32 1.442695, %v5435_v47  ;;  %v5682_v21 = vmul.f32 1.442695, %v5436_v33 }
 0x7ba   : > { %7852 = vpow2.f32 %v5674_v38  ;;  %v5418_v38 = vsub.f32 %v14662_v58, %v12383_v16  ;;  %v5644_v47 = vmul.f32 1.442695, %v5417_v59  ;;  %v14665_v58 = vld [vmem:[#allocation94_spill] sm:$0xff]  ;;  %v14668_v59 = vld [vmem:[#allocation4_spill] sm:$0xff] }
 0x7bb   : > { %v6002_v51 = vadd.f32 %v12482_v20, %v6001_v37  ;;  %v5416_v37 = vsub.f32 %v11945_v49, %v12383_v16  ;;  %7854 = vpow2.f32 %v5636_v9  ;;  %v14661_v49 = vld [vmem:[#allocation87_spill] sm:$0xff]  ;;  %v5438_v9 = vsub.f32 %v14663_v27, %v12449_v40 }
 0x7bc   : > { %v5437_v39 = vsub.f32 %v14661_v49, %v12449_v40  ;;  %7856 = vpow2.f32 %v5676_v56  ;;  %v5419_v56 = vsub.f32 %v12026_v35, %v12383_v16  ;;  %v5646_v33 = vmul.f32 1.442695, %v5418_v38  ;;  %v14670_v38 = vld [vmem:[#allocation5_spill] sm:$0xff] }
 0x7bd   : > { %v6003_v36 = vadd.f32 %v12489_v23, %v6002_v51  ;;  %v12503_v51 = vpop.eup %7834  ;;  %7858 = vpow2.f32 %v5638_v34  ;;  %v5642_v55 = vmul.f32 1.442695, %v5416_v37  ;;  %v5439_v34 = vsub.f32 %v14665_v58, %v12449_v40 }
 0x7be   : > { %7860 = vpow2.f32 %v5678_v63  ;;  %v5684_v37 = vmul.f32 1.442695, %v5437_v39  ;;  %v5420_v63 = vsub.f32 %v12082_v14, %v12383_v16  ;;  %v5421_v39 = vsub.f32 %v12121_v41, %v12383_v16  ;;  %v14672_v41 = vld [vmem:[#allocation21_spill] sm:$0xff] }
 0x7bf   : > { %v6004_v53 = vadd.f32 %v12496_v43, %v6003_v36  ;;  %v12510_v36 = vpop.eup %7836  ;;  %7862 = vpow2.f32 %v5640_v0  ;;  %v5440_v0 = vsub.f32 %v14668_v59, %v12449_v40 }
 0x7c0   : > { %7864 = vpow2.f32 %v5680_v26  ;;  %v5648_v26 = vmul.f32 1.442695, %v5419_v56 }
 0x7c1   : > { %v6005_v23 = vadd.f32 %v12503_v51, %v6004_v53  ;;  %v12517_v53 = vpop.eup %7838  ;;  %7866 = vpow2.f32 %v5642_v55  ;;  %v5441_v55 = vsub.f32 %v14670_v38, %v12449_v40  ;;  %v5423_v38 = vsub.f32 %v12155_v44, %v12383_v16 }
 0x7c2   : > { %14664 = vst [vmem:[#allocation18_spill] sm:$0xff] %v12517_v53  ;;  %7868 = vpow2.f32 %v5682_v21  ;;  %v5650_v21 = vmul.f32 1.442695, %v5420_v63  ;;  %v14674_v63 = vld [vmem:[#allocation23_spill] sm:$0xff] }
 0x7c3   : > { %v6006_v43 = vadd.f32 %v12510_v36, %v6005_v23  ;;  %v12524_v23 = vpop.eup %7840  ;;  %7870 = vpow2.f32 %v5644_v47  ;;  %v5442_v47 = vsub.f32 %v14672_v41, %v12449_v40 }
 0x7c4   : > { %14666 = vst [vmem:[#allocation20_spill] sm:$0xff] %v12524_v23  ;;  %v12528_v27 = vpop.eup %7842  ;;  %7872 = vpow2.f32 %v5684_v37 }
 0x7c5   : > { %v6007_v49 = vadd.f32 %v12517_v53, %v6006_v43  ;;  %14667 = vst [vmem:[#allocation37_spill] sm:$0xff] %v12528_v27  ;;  %v5686_v43 = vmul.f32 1.442695, %v5438_v9  ;;  %v12533_v53 = vpop.eup %7844  ;;  %v5422_v9 = vsub.f32 %v12128_v62, %v12383_v16  ;;  %7874 = vpow2.f32 %v5646_v33 }
 0x7c6   : > { %v12537_v58 = vpop.eup %7846  ;;  %v5652_v62 = vmul.f32 1.442695, %v5421_v39  ;;  %v5443_v33 = vsub.f32 %v14674_v63, %v12449_v40  ;;  %v14676_v39 = vld [vmem:[#allocation22_spill] sm:$0xff] }
 0x7c7   : > { %v6008_v35 = vadd.f32 %v12524_v23, %v6007_v49  ;;  %14669 = vst [vmem:[#allocation39_spill] sm:$0xff] %v12537_v58  ;;  %v5688_v49 = vmul.f32 1.442695, %v5439_v34  ;;  %v12542_v23 = vpop.eup %7848  ;;  %7876 = vpow2.f32 %v5686_v43  ;;  %v5692_v43 = vmul.f32 1.442695, %v5441_v55 }
 0x7c8   : > { %14671 = vst [vmem:[#allocation38_spill] sm:$0xff] %v12542_v23  ;;  %v12548_v56 = vpop.eup %7850  ;;  %v6031_v37 = vadd.f32 %v12542_v23, %v12537_v58  ;;  %7878 = vpow2.f32 %v5648_v26  ;;  %v5424_v23 = vsub.f32 %v12201_v22, %v12383_v16  ;;  %v5654_v44 = vmul.f32 1.442695, %v5422_v9  ;;  %v14678_v9 = vld [vmem:[#allocation24_spill] sm:$0xff] }
 0x7c9   : > { %v6009_v14 = vadd.f32 %v12528_v27, %v6008_v35  ;;  %v5690_v35 = vmul.f32 1.442695, %v5440_v0  ;;  %v12553_v34 = vpop.eup %7852  ;;  %7880 = vpow2.f32 %v5688_v49  ;;  %v5444_v26 = vsub.f32 %v14676_v39, %v12449_v40 }
 0x7ca   : > { %14673 = vst [vmem:[#allocation40_spill] sm:$0xff] %v12553_v34  ;;  %v12559_v41 = vpop.eup %7854  ;;  %v6032_v0 = vadd.f32 %v12553_v34, %v6031_v37  ;;  %7882 = vpow2.f32 %v5650_v21  ;;  %v5425_v37 = vsub.f32 %v12234_v42, %v12383_v16  ;;  %v5656_v22 = vmul.f32 1.442695, %v5423_v38  ;;  %v14680_v38 = vld [vmem:[#allocation41_spill] sm:$0xff] }
 0x7cb   : > { %v6010_v59 = vadd.f32 %v12533_v53, %v6009_v14  ;;  %v12563_v14 = vpop.eup %7856  ;;  %7884 = vpow2.f32 %v5690_v35  ;;  %v5445_v21 = vsub.f32 %v14678_v9, %v12449_v40  ;;  %v5658_v42 = vmul.f32 1.442695, %v5424_v23  ;;  %v14682_v23 = vld [vmem:[#allocation43_spill] sm:$0xff] }
 0x7cc   : > { %14675 = vst [vmem:[#allocation110_spill] sm:$0xff] %v12563_v14  ;;  %v12569_v58 = vpop.eup %7858  ;;  %v6033_v55 = vadd.f32 %v12563_v14, %v6032_v0  ;;  %7886 = vpow2.f32 %v5652_v62  ;;  %v5426_v0 = vsub.f32 %v12255_v12, %v12383_v16  ;;  %v5446_v62 = vsub.f32 %v14680_v38, %v12449_v40 }
 0x7cd   : > { %v6011_v27 = vadd.f32 %v12548_v56, %v6010_v59  ;;  %v5694_v59 = vmul.f32 1.442695, %v5442_v47  ;;  %v12573_v49 = vpop.eup %7860  ;;  %7888 = vpow2.f32 %v5692_v43  ;;  %v5660_v12 = vmul.f32 1.442695, %v5425_v37  ;;  %v14685_v37 = vld [vmem:[#allocation42_spill] sm:$0xff] }
 0x7ce   : > { %14677 = vst [vmem:[#allocation53_spill] sm:$0xff] %v12573_v49  ;;  %v12579_v34 = vpop.eup %7862  ;;  %v6034_v47 = vadd.f32 %v12573_v49, %v6033_v55  ;;  %7890 = vpow2.f32 %v5654_v44  ;;  %v5427_v55 = vsub.f32 %v12272_v61, %v12383_v16  ;;  %v5447_v44 = vsub.f32 %v14682_v23, %v12449_v40 }
 0x7cf   : > { %v6012_v63 = vadd.f32 %v12559_v41, %v6011_v27  ;;  %v5696_v27 = vmul.f32 1.442695, %v5443_v33  ;;  %v12583_v35 = vpop.eup %7864  ;;  %7892 = vpow2.f32 %v5694_v59  ;;  %v5662_v61 = vmul.f32 1.442695, %v5426_v0  ;;  %v14688_v0 = vld [vmem:[#allocation44_spill] sm:$0xff] }
 0x7d0   : > { %14679 = vst [vmem:[#allocation49_spill] sm:$0xff] %v12583_v35  ;;  %v12589_v14 = vpop.eup %7866  ;;  %v6035_v33 = vadd.f32 %v12583_v35, %v6034_v47  ;;  %7894 = vpow2.f32 %v5656_v22  ;;  %v5428_v47 = vsub.f32 %v12286_v13, %v12383_v16  ;;  %v5448_v22 = vsub.f32 %v14685_v37, %v12449_v40  ;;  %v12621_v37 = vpop.xlane.xlu1 %5306 }
 0x7d1   : > { %v6013_v39 = vadd.f32 %v12569_v58, %v6012_v63  ;;  %v5698_v63 = vmul.f32 1.442695, %v5444_v26  ;;  %v12593_v43 = vpop.eup %7868  ;;  %7896 = vpow2.f32 %v5696_v27  ;;  %v5664_v13 = vmul.f32 1.442695, %v5427_v55  ;;  %v14692_v55 = vld [vmem:[#allocation117_spill] sm:$0xff] }
 0x7d2   : > { %14681 = vst [vmem:[#allocation59_spill] sm:$0xff] %v12593_v43  ;;  %v12599_v49 = vpop.eup %7870  ;;  %v6036_v26 = vadd.f32 %v12593_v43, %v6035_v33  ;;  %7898 = vpow2.f32 %v5658_v42  ;;  %v5429_v33 = vsub.f32 %v12301_v3, %v12383_v16  ;;  %v5449_v42 = vsub.f32 %v14688_v0, %v12449_v40  ;;  %v14691_v3 = vld [vmem:[#allocation113_spill] sm:$0xff] }
 0x7d3   : > { %v6014_v9 = vadd.f32 %v12579_v34, %v6013_v39  ;;  %14683 = vst [vmem:[#allocation66_spill] sm:$0xff] %v12599_v49  ;;  %v5700_v39 = vmul.f32 1.442695, %v5445_v21  ;;  %v12603_v59 = vpop.eup %7872  ;;  %7900 = vpow2.f32 %v5698_v63  ;;  %v5450_v16 = vsub.f32 %v14691_v3, %v12449_v40 }
 0x7d4   : > { %14684 = vst [vmem:[#allocation68_spill] sm:$0xff] %v12603_v59  ;;  %v12609_v35 = vpop.eup %7874  ;;  %v6037_v21 = vadd.f32 %v12603_v59, %v6036_v26  ;;  %7902 = vpow2.f32 %v5660_v12  ;;  %v5666_v59 = vmul.f32 1.442695, %v5428_v47  ;;  %v5451_v12 = vsub.f32 %v14692_v55, %v12449_v40  ;;  %v14695_v47 = vld [vmem:[#allocation57_spill] sm:$0xff] }
 0x7d5   : > { %v6015_v38 = vadd.f32 %v12589_v14, %v6014_v9  ;;  %14686 = vst [vmem:[#allocation74_spill] sm:$0xff] %v12609_v35  ;;  %v5702_v9 = vmul.f32 1.442695, %v5446_v62  ;;  %v12613_v27 = vpop.eup %7876  ;;  %7904 = vpow2.f32 %v5700_v39  ;;  %v5704_v62 = vmul.f32 1.442695, %v5447_v44 }
 0x7d6   : > { %14687 = vst [vmem:[#allocation82_spill] sm:$0xff] %v12613_v27  ;;  %v12619_v43 = vpop.eup %7878  ;;  %v6038_v63 = vadd.f32 %v12613_v27, %v6037_v21  ;;  %7906 = vpow2.f32 %v5662_v61  ;;  %v5668_v21 = vmul.f32 1.442695, %v5429_v33  ;;  %v5708_v61 = vmul.f32 1.442695, %v5449_v42 }
 0x7d7   : > { %v6016_v23 = vadd.f32 %v12599_v49, %v6015_v38  ;;  %14689 = vst [vmem:[#allocation100_spill] sm:$0xff] %v12619_v43  ;;  %v12625_v26 = vpop.eup %7880  ;;  %7908 = vpow2.f32 %v5702_v9  ;;  %v5470_v27 = vsub.f32 %v14695_v47, %v12621_v37  ;;  %v14697_v9 = vld [vmem:[#allocation54_spill] sm:$0xff]  ;;  %v5710_v42 = vmul.f32 1.442695, %v5450_v16 }
 0x7d8   : > { %14690 = vst [vmem:[#allocation87_spill] sm:$0xff] %v12625_v26  ;;  %v12631_v0 = vpop.eup %7882  ;;  %v6039_v44 = vadd.f32 %v12625_v26, %v6038_v63  ;;  %7910 = vpow2.f32 %v5664_v13  ;;  %v14699_v13 = vld [vmem:[#allocation122_spill] sm:$0xff]  ;;  %v5712_v63 = vmul.f32 1.442695, %v5451_v12 }
 0x7d9   : > { %v6017_v38 = vadd.f32 %v12609_v35, %v6016_v23  ;;  %14693 = vst [vmem:[#allocation134_spill] sm:$0xff] %v12631_v0  ;;  %v5706_v23 = vmul.f32 1.442695, %v5448_v22  ;;  %v12635_v39 = vpop.eup %7884  ;;  %7912 = vpow2.f32 %v5704_v62  ;;  %v5471_v22 = vsub.f32 %v14697_v9, %v12621_v37  ;;  %v14701_v62 = vld [vmem:[#allocation64_spill] sm:$0xff] }
 0x7da   : > { %14694 = vst [vmem:[#allocation89_spill] sm:$0xff] %v12635_v39  ;;  %v12639_v3 = vpop.eup %7886  ;;  %v6040_v35 = vadd.f32 %v12635_v39, %v6039_v44  ;;  %7914 = vpow2.f32 %v5666_v59  ;;  %v5452_v33 = vsub.f32 %v14699_v13, %v12449_v40  ;;  %v5472_v44 = vsub.f32 %v14701_v62, %v12621_v37  ;;  %v14703_v59 = vld [vmem:[#allocation126_spill] sm:$0xff]  ;;  %v14707_v62 = vld [vmem:[#allocation127_spill] sm:$0xff] }
 0x7db   : > { %v6018_v49 = vadd.f32 %v12619_v43, %v6017_v38  ;;  %14696 = vst [vmem:[#allocation94_spill] sm:$0xff] %v12639_v3  ;;  %v12645_v38 = vpop.eup %7888  ;;  %7916 = vpow2.f32 %v5706_v23  ;;  %v5453_v9 = vsub.f32 %v14703_v59, %v12449_v40  ;;  %v14704_v13 = vld [vmem:[#allocation70_spill] sm:$0xff]  ;;  %v5750_v12 = vmul.f32 1.442695, %v5470_v27  ;;  %v14708_v59 = vld [vmem:[#allocation73_spill] sm:$0xff] }
 0x7dc   : > { %14698 = vst [vmem:[#allocation4_spill] sm:$0xff] %v12645_v38  ;;  %v12649_v26 = vpop.eup %7890  ;;  %7918 = vpow2.f32 %v5668_v21  ;;  %v5473_v16 = vsub.f32 %v14704_v13, %v12621_v37  ;;  %v5752_v23 = vmul.f32 1.442695, %v5471_v22  ;;  %v5454_v21 = vsub.f32 %v14707_v62, %v12449_v40  ;;  %v14711_v22 = vld [vmem:[#allocation132_spill] sm:$0xff] }
 0x7dd   : > { %v6019_v55 = vadd.f32 %v12631_v0, %v6018_v49  ;;  %14700 = vst [vmem:[#allocation5_spill] sm:$0xff] %v12649_v26  ;;  %v6041_v49 = vadd.f32 %v12645_v38, %v6040_v35  ;;  %v12655_v39 = vpop.eup %7892  ;;  %7920 = vpow2.f32 %v5708_v61  ;;  %v5474_v43 = vsub.f32 %v14708_v59, %v12621_v37 }
 0x7de   : > { %14702 = vst [vmem:[#allocation21_spill] sm:$0xff] %v12655_v39  ;;  %v12661_v0 = vpop.eup %7894  ;;  %7922 = vpow2.f32 %v5710_v42  ;;  %v14712_v42 = vld [vmem:[#allocation78_spill] sm:$0xff] }
 0x7df   : > { %v6020_v47 = vadd.f32 %v12639_v3, %v6019_v55  ;;  %14705 = vst [vmem:[#allocation23_spill] sm:$0xff] %v12661_v0  ;;  %v6042_v35 = vadd.f32 %v12655_v39, %v6041_v49  ;;  %v12665_v38 = vpop.eup %7896  ;;  %v5714_v3 = vmul.f32 1.442695, %v5452_v33  ;;  %7924 = vpow2.f32 %v5712_v63 }
 0x7e0   : > { %14706 = vst [vmem:[#allocation22_spill] sm:$0xff] %v12665_v38  ;;  %v12671_v13 = vpop.eup %7898  ;;  %v5455_v39 = vsub.f32 %v14711_v22, %v12449_v40  ;;  %v5475_v33 = vsub.f32 %v14712_v42, %v12621_v37  ;;  %7926 = vpow2.f32 %v5750_v12  ;;  %v5756_v63 = vmul.f32 1.442695, %v5473_v16  ;;  %v14717_v16 = vld [vmem:[#allocation102_spill] sm:$0xff] }
 0x7e1   : > { %v6021_v55 = vadd.f32 %v12649_v26, %v6020_v47  ;;  %14709 = vst [vmem:[#allocation24_spill] sm:$0xff] %v12671_v13  ;;  %v6043_v61 = vadd.f32 %v12665_v38, %v6042_v35  ;;  %v5754_v47 = vmul.f32 1.442695, %v5472_v44  ;;  %v12675_v49 = vpop.eup %7900  ;;  %v5716_v26 = vmul.f32 1.442695, %v5453_v9  ;;  %v14714_v44 = vld [vmem:[#allocation101_spill] sm:$0xff] }
 0x7e2   : > { %14710 = vst [vmem:[#allocation41_spill] sm:$0xff] %v12675_v49  ;;  %v12681_v62 = vpop.eup %7902  ;;  %7928 = vpow2.f32 %v5752_v23  ;;  %v5456_v38 = vsub.f32 %v14714_v44, %v12449_v40  ;;  %v5718_v22 = vmul.f32 1.442695, %v5454_v21  ;;  %v14715_v9 = vld [vmem:[#allocation86_spill] sm:$0xff]  ;;  %v5720_v44 = vmul.f32 1.442695, %v5455_v39 }
 0x7e3   : > { %v6022_v27 = vadd.f32 %v12661_v0, %v6021_v55  ;;  %v6044_v55 = vadd.f32 %v12675_v49, %v6043_v61  ;;  %v12685_v35 = vpop.eup %7904  ;;  %7930 = vpow2.f32 %v5714_v3  ;;  %v5476_v0 = vsub.f32 %v14715_v9, %v12621_v37  ;;  %v14718_v3 = vld [vmem:[#allocation91_spill] sm:$0xff] }
 0x7e4   : > { %14713 = vst [vmem:[#allocation43_spill] sm:$0xff] %v12685_v35  ;;  %v12691_v42 = vpop.eup %7906  ;;  %7932 = vpow2.f32 %v5754_v47  ;;  %v5758_v61 = vmul.f32 1.442695, %v5474_v43  ;;  %v5457_v49 = vsub.f32 %v14717_v16, %v12449_v40  ;;  %v5477_v21 = vsub.f32 %v14718_v3, %v12621_v37 }
 0x7e5   : > { %v6023_v59 = vadd.f32 %v12671_v13, %v6022_v27  ;;  %v6045_v27 = vadd.f32 %v12685_v35, %v6044_v55  ;;  %v12695_v23 = vpop.eup %7908  ;;  %7934 = vpow2.f32 %v5716_v26  ;;  %v5760_v55 = vmul.f32 1.442695, %v5475_v33  ;;  %v14720_v26 = vld [vmem:[#allocation93_spill] sm:$0xff] }
 0x7e6   : > { %14716 = vst [vmem:[#allocation42_spill] sm:$0xff] %v12695_v23  ;;  %v12701_v13 = vpop.eup %7910  ;;  %7936 = vpow2.f32 %v5756_v63  ;;  %v5458_v43 = vsub.f32 %v12030_v18, %v12449_v40  ;;  %v5722_v16 = vmul.f32 1.442695, %v5456_v38  ;;  %v5478_v39 = vsub.f32 %v14720_v26, %v12621_v37  ;;  %v14722_v38 = vld [vmem:[#allocation7_spill] sm:$0xff] }
 0x7e7   : > { %v6024_v12 = vadd.f32 %v12681_v62, %v6023_v59  ;;  %v6046_v59 = vadd.f32 %v12695_v23, %v6045_v27  ;;  %v12705_v47 = vpop.eup %7912  ;;  %7938 = vpow2.f32 %v5718_v22  ;;  %v5762_v27 = vmul.f32 1.442695, %v5476_v0 }
 0x7e8   : > { %14719 = vst [vmem:[#allocation44_spill] sm:$0xff] %v12705_v47  ;;  %v12711_v35 = vpop.eup %7914  ;;  %7940 = vpow2.f32 %v5758_v61  ;;  %v5459_v33 = vsub.f32 %v12069_v46, %v12449_v40  ;;  %v5724_v18 = vmul.f32 1.442695, %v5457_v49  ;;  %v5479_v22 = vsub.f32 %v14722_v38, %v12621_v37  ;;  %v14723_v49 = vld [vmem:[#allocation6_spill] sm:$0xff] }
 0x7e9   : > { %v6025_v9 = vadd.f32 %v12691_v42, %v6024_v12  ;;  %v6047_v12 = vadd.f32 %v12705_v47, %v6046_v59  ;;  %v12715_v63 = vpop.eup %7916  ;;  %7942 = vpow2.f32 %v5720_v44  ;;  %v5764_v59 = vmul.f32 1.442695, %v5477_v21 }
 0x7ea   : > { %14721 = vst [vmem:[#allocation113_spill] sm:$0xff] %v12715_v63  ;;  %v12721_v23 = vpop.eup %7918  ;;  %7944 = vpow2.f32 %v5760_v55  ;;  %v5460_v0 = vsub.f32 %v12125_v32, %v12449_v40  ;;  %v5726_v46 = vmul.f32 1.442695, %v5458_v43  ;;  %v5480_v44 = vsub.f32 %v14723_v49, %v12621_v37  ;;  %v14726_v49 = vld [vmem:[#allocation8_spill] sm:$0xff] }
 0x7eb   : > { %v6026_v3 = vadd.f32 %v12701_v13, %v6025_v9  ;;  %v6048_v9 = vadd.f32 %v12715_v63, %v6047_v12  ;;  %v12725_v61 = vpop.eup %7920  ;;  %7946 = vpow2.f32 %v5722_v16  ;;  %v5766_v12 = vmul.f32 1.442695, %v5478_v39 }
 0x7ec   : > { %v12731_v47 = vpop.eup %7922  ;;  %7948 = vpow2.f32 %v5762_v27  ;;  %v5461_v21 = vsub.f32 %v12151_v52, %v12449_v40  ;;  %v5728_v32 = vmul.f32 1.442695, %v5459_v33  ;;  %v5481_v63 = vsub.f32 %v14726_v49, %v12621_v37  ;;  %v14728_v52 = vld [vmem:[#allocation25_spill] sm:$0xff] }
 0x7ed   : > { %v6027_v26 = vadd.f32 %v12711_v35, %v6026_v3  ;;  %14724 = vst [vmem:[#allocation117_spill] sm:$0xff] %v12731_v47  ;;  %v6049_v3 = vadd.f32 %v12725_v61, %v6048_v9  ;;  %v12735_v55 = vpop.eup %7924  ;;  %7950 = vpow2.f32 %v5724_v18  ;;  %v5462_v39 = vsub.f32 %v12158_v19, %v12449_v40 }
 0x7ee   : > { %v12739_v16 = vpop.eup %7926  ;;  %7952 = vpow2.f32 %v5764_v59  ;;  %v5730_v27 = vmul.f32 1.442695, %v5460_v0  ;;  %v5482_v33 = vsub.f32 %v14728_v52, %v12621_v37  ;;  %v5463_v49 = vsub.f32 %v12190_v57, %v12449_v40  ;;  %v14730_v0 = vld [vmem:[#allocation27_spill] sm:$0xff] }
 0x7ef   : > { %v6028_v38 = vadd.f32 %v12721_v23, %v6027_v26  ;;  %14725 = vst [vmem:[#allocation57_spill] sm:$0xff] %v12739_v16  ;;  %v6050_v43 = vadd.f32 %v12731_v47, %v6049_v3  ;;  %v5768_v26 = vmul.f32 1.442695, %v5479_v22  ;;  %v12744_v9 = vpop.eup %7928  ;;  %7954 = vpow2.f32 %v5726_v46 }
 0x7f0   : > { %14727 = vst [vmem:[#allocation54_spill] sm:$0xff] %v12744_v9  ;;  %v12750_v18 = vpop.eup %7930  ;;  %7956 = vpow2.f32 %v5766_v12  ;;  %v5770_v3 = vmul.f32 1.442695, %v5480_v44  ;;  %v6072_v59 = vadd.f32 %v12744_v9, %v12739_v16  ;;  %v5732_v19 = vmul.f32 1.442695, %v5461_v21  ;;  %v14732_v21 = vld [vmem:[#allocation26_spill] sm:$0xff] }
 0x7f1   : > { %6029 = vadd.xlane.f32.xlu1 %v6028_v38  ;;  %v6051_v38 = vadd.f32 %v12735_v55, %v6050_v43  ;;  %v12755_v22 = vpop.eup %7932  ;;  %7958 = vpow2.f32 %v5728_v32  ;;  %v5483_v46 = vsub.f32 %v14730_v0, %v12621_v37  ;;  %v5772_v12 = vmul.f32 1.442695, %v5481_v63 }
 0x7f2   : > { %14729 = vst [vmem:[#allocation122_spill] sm:$0xff] %v12755_v22  ;;  %v12761_v52 = vpop.eup %7934  ;;  %7960 = vpow2.f32 %v5768_v26  ;;  %v6073_v44 = vadd.f32 %v12755_v22, %v6072_v59  ;;  %v5464_v9 = vsub.f32 %v12238_v28, %v12449_v40  ;;  %v5734_v57 = vmul.f32 1.442695, %v5462_v39  ;;  %v14734_v39 = vld [vmem:[#allocation28_spill] sm:$0xff] }
 0x7f3   : > { %v6052_v47 = vadd.f32 %v12750_v18, %v6051_v38  ;;  %v12765_v43 = vpop.eup %7936  ;;  %7962 = vpow2.f32 %v5730_v27  ;;  %v5484_v32 = vsub.f32 %v14732_v21, %v12621_v37  ;;  %v5774_v38 = vmul.f32 1.442695, %v5482_v33 }
 0x7f4   : > { %14731 = vst [vmem:[#allocation64_spill] sm:$0xff] %v12765_v43  ;;  %v12771_v16 = vpop.eup %7938  ;;  %7964 = vpow2.f32 %v5770_v3  ;;  %v6074_v63 = vadd.f32 %v12765_v43, %v6073_v44  ;;  %v5465_v59 = vsub.f32 %v12268_v60, %v12449_v40  ;;  %v5736_v28 = vmul.f32 1.442695, %v5463_v49  ;;  %v14736_v49 = vld [vmem:[#allocation47_spill] sm:$0xff] }
 0x7f5   : > { %v6053_v0 = vadd.f32 %v12761_v52, %v6052_v47  ;;  %v12775_v26 = vpop.eup %7940  ;;  %7966 = vpow2.f32 %v5732_v19  ;;  %v5485_v27 = vsub.f32 %v14734_v39, %v12621_v37  ;;  %v5776_v47 = vmul.f32 1.442695, %v5483_v46 }
 0x7f6   : > { %14733 = vst [vmem:[#allocation126_spill] sm:$0xff] %v12775_v26  ;;  %v12781_v22 = vpop.eup %7942  ;;  %7968 = vpow2.f32 %v5772_v12  ;;  %v6075_v33 = vadd.f32 %v12775_v26, %v6074_v63  ;;  %v5466_v44 = vsub.f32 %v12290_v4, %v12449_v40  ;;  %v5738_v60 = vmul.f32 1.442695, %v5464_v9  ;;  %v14738_v9 = vld [vmem:[#allocation50_spill] sm:$0xff] }
 0x7f7   : > { %v6054_v21 = vadd.f32 %v12771_v16, %v6053_v0  ;;  %v12785_v3 = vpop.eup %7944  ;;  %7970 = vpow2.f32 %v5734_v57  ;;  %v5486_v19 = vsub.f32 %v14736_v49, %v12621_v37  ;;  %v5778_v0 = vmul.f32 1.442695, %v5484_v32 }
 0x7f8   : > { %14735 = vst [vmem:[#allocation70_spill] sm:$0xff] %v12785_v3  ;;  %v12791_v43 = vpop.eup %7946  ;;  %7972 = vpow2.f32 %v5774_v38  ;;  %v6076_v46 = vadd.f32 %v12785_v3, %v6075_v33  ;;  %v5467_v63 = vsub.f32 %v12305_v8, %v12449_v40  ;;  %v5740_v4 = vmul.f32 1.442695, %v5465_v59  ;;  %v14741_v59 = vld [vmem:[#allocation48_spill] sm:$0xff] }
 0x7f9   : > { %v6055_v39 = vadd.f32 %v12781_v22, %v6054_v21  ;;  %v12795_v12 = vpop.eup %7948  ;;  %7974 = vpow2.f32 %v5736_v28  ;;  %v5487_v57 = vsub.f32 %v14738_v9, %v12621_v37  ;;  %v5780_v21 = vmul.f32 1.442695, %v5485_v27 }
 0x7fa   : > { %14737 = vst [vmem:[#allocation127_spill] sm:$0xff] %v12795_v12  ;;  %v12801_v26 = vpop.eup %7950  ;;  %7976 = vpow2.f32 %v5776_v47  ;;  %v6077_v32 = vadd.f32 %v12795_v12, %v6076_v46  ;;  %v5468_v33 = vsub.f32 %v12312_v11, %v12449_v40  ;;  %v5742_v8 = vmul.f32 1.442695, %v5466_v44  ;;  %v14744_v44 = vld [vmem:[#allocation51_spill] sm:$0xff] }
 0x7fb   : > { %14739 = vst [vmem:[#allocation73_spill] sm:$0xff] %v12801_v26  ;;  %v6056_v49 = vadd.f32 %v12791_v43, %v6055_v39  ;;  %v12805_v38 = vpop.eup %7952  ;;  %7978 = vpow2.f32 %v5738_v60  ;;  %v5488_v28 = vsub.f32 %v14741_v59, %v12621_v37  ;;  %v5782_v39 = vmul.f32 1.442695, %v5486_v19  ;;  %v12823_v59 = vpop.xlane.xlu1 %5347 }
 0x7fc   : > { %14740 = vst [vmem:[#allocation132_spill] sm:$0xff] %v12805_v38  ;;  %v12811_v3 = vpop.eup %7954  ;;  %7980 = vpow2.f32 %v5778_v0  ;;  %v6078_v27 = vadd.f32 %v12805_v38, %v6077_v32  ;;  %v5469_v46 = vsub.f32 %v12327_v24, %v12449_v40  ;;  %v5744_v11 = vmul.f32 1.442695, %v5467_v63  ;;  %v14747_v24 = vld [vmem:[#allocation115_spill] sm:$0xff] }
 0x7fd   : > { %14742 = vst [vmem:[#allocation78_spill] sm:$0xff] %v12811_v3  ;;  %v6057_v9 = vadd.f32 %v12801_v26, %v6056_v49  ;;  %v12815_v47 = vpop.eup %7956  ;;  %7982 = vpow2.f32 %v5740_v4  ;;  %v5489_v60 = vsub.f32 %v14744_v44, %v12621_v37  ;;  %v5784_v19 = vmul.f32 1.442695, %v5487_v57  ;;  %v14748_v63 = vld [vmem:[#allocation119_spill] sm:$0xff] }
 0x7fe   : > { %14743 = vst [vmem:[#allocation101_spill] sm:$0xff] %v12815_v47  ;;  %v12821_v12 = vpop.eup %7958  ;;  %7984 = vpow2.f32 %v5780_v21  ;;  %v6079_v0 = vadd.f32 %v12815_v47, %v6078_v27  ;;  %v5746_v38 = vmul.f32 1.442695, %v5468_v33  ;;  %v5490_v40 = vsub.f32 %v14747_v24, %v12621_v37  ;;  %v14751_v33 = vld [vmem:[#allocation65_spill] sm:$0xff] }
 0x7ff   : > { %14745 = vst [vmem:[#allocation86_spill] sm:$0xff] %v12821_v12  ;;  %v6058_v49 = vadd.f32 %v12811_v3, %v6057_v9  ;;  %v12827_v32 = vpop.eup %7960  ;;  %7986 = vpow2.f32 %v5742_v8  ;;  %v5491_v4 = vsub.f32 %v14748_v63, %v12621_v37  ;;  %v5786_v9 = vmul.f32 1.442695, %v5488_v28 }
 0x800   : > { %14746 = vst [vmem:[#allocation102_spill] sm:$0xff] %v12827_v32  ;;  %v12833_v44 = vpop.eup %7962  ;;  %7988 = vpow2.f32 %v5782_v39  ;;  %v6080_v57 = vadd.f32 %v12827_v32, %v6079_v0  ;;  %v5748_v27 = vmul.f32 1.442695, %v5469_v46  ;;  %v5788_v8 = vmul.f32 1.442695, %v5489_v60  ;;  %v14753_v39 = vld [vmem:[#allocation63_spill] sm:$0xff] }
 0x801   : > { %14749 = vst [vmem:[#allocation91_spill] sm:$0xff] %v12833_v44  ;;  %v6059_v26 = vadd.f32 %v12821_v12, %v6058_v49  ;;  %v12837_v21 = vpop.eup %7964  ;;  %7990 = vpow2.f32 %v5744_v11  ;;  %v5510_v47 = vsub.f32 %v14751_v33, %v12823_v59  ;;  %v5511_v28 = vsub.f32 %v14753_v39, %v12823_v59  ;;  %v14755_v11 = vld [vmem:[#allocation125_spill] sm:$0xff] }
 0x802   : > { %14750 = vst [vmem:[#allocation93_spill] sm:$0xff] %v12837_v21  ;;  %v12841_v24 = vpop.eup %7966  ;;  %7992 = vpow2.f32 %v5784_v19  ;;  %v6081_v3 = vadd.f32 %v12837_v21, %v6080_v57  ;;  %v5492_v46 = vsub.f32 %v14755_v11, %v12621_v37  ;;  %v5790_v60 = vmul.f32 1.442695, %v5490_v40  ;;  %v14757_v19 = vld [vmem:[#allocation71_spill] sm:$0xff] }
 0x803   : > { %14752 = vst [vmem:[#allocation7_spill] sm:$0xff] %v12841_v24  ;;  %v6060_v63 = vadd.f32 %v12833_v44, %v6059_v26  ;;  %v12847_v49 = vpop.eup %7968  ;;  %7994 = vpow2.f32 %v5746_v38  ;;  %v5792_v0 = vmul.f32 1.442695, %v5491_v4  ;;  %v5512_v57 = vsub.f32 %v14757_v19, %v12823_v59  ;;  %v14759_v38 = vld [vmem:[#allocation129_spill] sm:$0xff]  ;;  %v14760_v11 = vld [vmem:[#allocation75_spill] sm:$0xff] }
 0x804   : > { %14754 = vst [vmem:[#allocation6_spill] sm:$0xff] %v12847_v49  ;;  %v12851_v32 = vpop.eup %7970  ;;  %7996 = vpow2.f32 %v5786_v9  ;;  %v6082_v26 = vadd.f32 %v12847_v49, %v6081_v3  ;;  %v5493_v39 = vsub.f32 %v14759_v38, %v12621_v37  ;;  %v5513_v40 = vsub.f32 %v14760_v11, %v12823_v59  ;;  %v14763_v19 = vld [vmem:[#allocation131_spill] sm:$0xff] }
 0x805   : > { %14756 = vst [vmem:[#allocation8_spill] sm:$0xff] %v12851_v32  ;;  %v6061_v33 = vadd.f32 %v12841_v24, %v6060_v63  ;;  %v12857_v21 = vpop.eup %7972  ;;  %7998 = vpow2.f32 %v5748_v27  ;;  %v5830_v4 = vmul.f32 1.442695, %v5510_v47  ;;  %v5832_v9 = vmul.f32 1.442695, %v5511_v28  ;;  %v14764_v38 = vld [vmem:[#allocation79_spill] sm:$0xff] }
 0x806   : > { %14758 = vst [vmem:[#allocation25_spill] sm:$0xff] %v12857_v21  ;;  %v12863_v44 = vpop.eup %7974  ;;  %8000 = vpow2.f32 %v5788_v8  ;;  %v6083_v3 = vadd.f32 %v12857_v21, %v6082_v26  ;;  %v5494_v27 = vsub.f32 %v14763_v19, %v12621_v37  ;;  %v5794_v24 = vmul.f32 1.442695, %v5492_v46  ;;  %v14766_v28 = vld [vmem:[#allocation104_spill] sm:$0xff] }
 0x807   : > { %14761 = vst [vmem:[#allocation27_spill] sm:$0xff] %v12863_v44  ;;  %v6062_v63 = vadd.f32 %v12851_v32, %v6061_v33  ;;  %v12867_v49 = vpop.eup %7976  ;;  %8002 = vpow2.f32 %v5790_v60  ;;  %v5514_v12 = vsub.f32 %v14764_v38, %v12823_v59  ;;  %v5834_v33 = vmul.f32 1.442695, %v5512_v57  ;;  %v14767_v60 = vld [vmem:[#allocation84_spill] sm:$0xff]  ;;  %v14770_v57 = vld [vmem:[#allocation103_spill] sm:$0xff] }
 0x808   : > { %14762 = vst [vmem:[#allocation26_spill] sm:$0xff] %v12867_v49  ;;  %v12873_v11 = vpop.eup %7978  ;;  %8004 = vpow2.f32 %v5792_v0  ;;  %v6084_v8 = vadd.f32 %v12867_v49, %v6083_v3  ;;  %v5495_v21 = vsub.f32 %v14766_v28, %v12621_v37  ;;  %v5796_v32 = vmul.f32 1.442695, %v5493_v39  ;;  %v14771_v39 = vld [vmem:[#allocation92_spill] sm:$0xff] }
 0x809   : > { %v6063_v47 = vadd.f32 %v12863_v44, %v6062_v63  ;;  %v12877_v26 = vpop.eup %7980  ;;  %v5515_v46 = vsub.f32 %v14767_v60, %v12823_v59  ;;  %8006 = vpow2.f32 %v5830_v4  ;;  %v5836_v0 = vmul.f32 1.442695, %v5513_v40 }
 0x80a   : > { %14765 = vst [vmem:[#allocation28_spill] sm:$0xff] %v12877_v26  ;;  %v12883_v19 = vpop.eup %7982  ;;  %v6085_v63 = vadd.f32 %v12877_v26, %v6084_v8  ;;  %8008 = vpow2.f32 %v5832_v9  ;;  %v5496_v49 = vsub.f32 %v14770_v57, %v12621_v37  ;;  %v5798_v28 = vmul.f32 1.442695, %v5494_v27 }
 0x80b   : > { %14768 = vst [vmem:[#allocation47_spill] sm:$0xff] %v12883_v19  ;;  %v6064_v38 = vadd.f32 %v12873_v11, %v6063_v47  ;;  %v12887_v3 = vpop.eup %7984  ;;  %8010 = vpow2.f32 %v5794_v24  ;;  %v5516_v44 = vsub.f32 %v14771_v39, %v12823_v59  ;;  %v5838_v8 = vmul.f32 1.442695, %v5514_v12  ;;  %v14773_v24 = vld [vmem:[#allocation95_spill] sm:$0xff] }
 0x80c   : > { %14769 = vst [vmem:[#allocation50_spill] sm:$0xff] %v12887_v3  ;;  %v12893_v60 = vpop.eup %7986  ;;  %v6086_v47 = vadd.f32 %v12887_v3, %v6085_v63  ;;  %8012 = vpow2.f32 %v5834_v33  ;;  %v5497_v40 = vsub.f32 %v12048_v54, %v12621_v37  ;;  %v5800_v57 = vmul.f32 1.442695, %v5495_v21  ;;  %v14775_v12 = vld [vmem:[#allocation107_spill] sm:$0xff] }
 0x80d   : > { %v6065_v4 = vadd.f32 %v12883_v19, %v6064_v38  ;;  %v12897_v9 = vpop.eup %7988  ;;  %8014 = vpow2.f32 %v5796_v32  ;;  %v5517_v27 = vsub.f32 %v14773_v24, %v12823_v59  ;;  %v5840_v63 = vmul.f32 1.442695, %v5515_v46  ;;  %v14776_v32 = vld [vmem:[#allocation9_spill] sm:$0xff] }
 0x80e   : > { %14772 = vst [vmem:[#allocation48_spill] sm:$0xff] %v12897_v9  ;;  %v12903_v26 = vpop.eup %7990  ;;  %v6087_v38 = vadd.f32 %v12897_v9, %v6086_v47  ;;  %8016 = vpow2.f32 %v5836_v0  ;;  %v5498_v3 = vsub.f32 %v14775_v12, %v12621_v37  ;;  %v5802_v54 = vmul.f32 1.442695, %v5496_v49  ;;  %v14778_v49 = vld [vmem:[#allocation11_spill] sm:$0xff] }
 0x80f   : > { %v6066_v39 = vadd.f32 %v12893_v60, %v6065_v4  ;;  %v12907_v33 = vpop.eup %7992  ;;  %8018 = vpow2.f32 %v5798_v28  ;;  %v5518_v21 = vsub.f32 %v14776_v32, %v12823_v59  ;;  %v5842_v47 = vmul.f32 1.442695, %v5516_v44 }
 0x810   : > { %14774 = vst [vmem:[#allocation51_spill] sm:$0xff] %v12907_v33  ;;  %v12913_v19 = vpop.eup %7994  ;;  %v6088_v4 = vadd.f32 %v12907_v33, %v6087_v38  ;;  %8020 = vpow2.f32 %v5838_v8  ;;  %v5499_v46 = vsub.f32 %v12099_v50, %v12621_v37  ;;  %v5804_v12 = vmul.f32 1.442695, %v5497_v40  ;;  %v14779_v40 = vld [vmem:[#allocation10_spill] sm:$0xff] }
 0x811   : > { %v6067_v24 = vadd.f32 %v12903_v26, %v6066_v39  ;;  %v12917_v0 = vpop.eup %7996  ;;  %8022 = vpow2.f32 %v5800_v57  ;;  %v5519_v28 = vsub.f32 %v14778_v49, %v12823_v59  ;;  %v5844_v38 = vmul.f32 1.442695, %v5517_v27 }
 0x812   : > { %14777 = vst [vmem:[#allocation115_spill] sm:$0xff] %v12917_v0  ;;  %v12923_v9 = vpop.eup %7998  ;;  %v6089_v39 = vadd.f32 %v12917_v0, %v6088_v4  ;;  %8024 = vpow2.f32 %v5840_v63  ;;  %v5500_v44 = vsub.f32 %v12147_v31, %v12621_v37  ;;  %v5806_v50 = vmul.f32 1.442695, %v5498_v3 }
 0x813   : > { %v6068_v32 = vadd.f32 %v12913_v19, %v6067_v24  ;;  %v12927_v8 = vpop.eup %8000  ;;  %8026 = vpow2.f32 %v5802_v54  ;;  %v5520_v57 = vsub.f32 %v14779_v40, %v12823_v59  ;;  %v5846_v4 = vmul.f32 1.442695, %v5518_v21  ;;  %v14782_v40 = vld [vmem:[#allocation12_spill] sm:$0xff] }
 0x814   : > { %v12933_v33 = vpop.eup %8002  ;;  %v6090_v24 = vadd.f32 %v12927_v8, %v6089_v39  ;;  %8028 = vpow2.f32 %v5842_v47  ;;  %v5501_v27 = vsub.f32 %v12178_v5, %v12621_v37  ;;  %v5808_v31 = vmul.f32 1.442695, %v5499_v46  ;;  %v14784_v5 = vld [vmem:[#allocation29_spill] sm:$0xff] }
 0x815   : > { %14780 = vst [vmem:[#allocation119_spill] sm:$0xff] %v12933_v33  ;;  %v6069_v49 = vadd.f32 %v12923_v9, %v6068_v32  ;;  %v12937_v63 = vpop.eup %8004  ;;  %8030 = vpow2.f32 %v5804_v12  ;;  %v5521_v0 = vsub.f32 %v14782_v40, %v12823_v59  ;;  %v5848_v32 = vmul.f32 1.442695, %v5519_v28 }
 0x816   : > { %v12941_v54 = vpop.eup %8006  ;;  %v6091_v3 = vadd.f32 %v12933_v33, %v6090_v24  ;;  %8032 = vpow2.f32 %v5844_v38  ;;  %v5502_v21 = vsub.f32 %v12185_v2, %v12621_v37  ;;  %v5810_v47 = vmul.f32 1.442695, %v5500_v44  ;;  %v14786_v44 = vld [vmem:[#allocation31_spill] sm:$0xff] }
 0x817   : > { %14781 = vst [vmem:[#allocation65_spill] sm:$0xff] %v12941_v54  ;;  %6070 = vadd.xlane.f32.xlu0 %v6069_v49  ;;  %v12946_v39 = vpop.eup %8008  ;;  %8034 = vpow2.f32 %v5806_v50  ;;  %v5522_v46 = vsub.f32 %v14784_v5, %v12823_v59  ;;  %v5850_v24 = vmul.f32 1.442695, %v5520_v57  ;;  %v5503_v40 = vsub.f32 %v12213_v17, %v12621_v37 }
 0x818   : > { %14783 = vst [vmem:[#allocation63_spill] sm:$0xff] %v12946_v39  ;;  %v12952_v12 = vpop.eup %8010  ;;  %v6092_v49 = vadd.f32 %v12937_v63, %v6091_v3  ;;  %8036 = vpow2.f32 %v5846_v4  ;;  %v6113_v38 = vadd.f32 %v12946_v39, %v12941_v54  ;;  %v5812_v2 = vmul.f32 1.442695, %v5501_v27  ;;  %v14788_v27 = vld [vmem:[#allocation30_spill] sm:$0xff] }
 0x819   : > { %v12957_v28 = vpop.eup %8012  ;;  %8038 = vpow2.f32 %v5808_v31  ;;  %v5523_v50 = vsub.f32 %v14786_v44, %v12823_v59  ;;  %v5852_v4 = vmul.f32 1.442695, %v5521_v0  ;;  %v5504_v39 = vsub.f32 %v12264_v30, %v12621_v37 }
 0x81a   : > { %14785 = vst [vmem:[#allocation125_spill] sm:$0xff] %v12957_v28  ;;  %v12963_v5 = vpop.eup %8014  ;;  %v6093_v33 = vadd.f32 %v12952_v12, %v6092_v49  ;;  %8040 = vpow2.f32 %v5848_v32  ;;  %v6114_v57 = vadd.f32 %v12957_v28, %v6113_v38  ;;  %v5814_v17 = vmul.f32 1.442695, %v5502_v21  ;;  %v14790_v21 = vld [vmem:[#allocation32_spill] sm:$0xff] }
 0x81b   : > { %v12967_v3 = vpop.eup %8016  ;;  %8042 = vpow2.f32 %v5810_v47  ;;  %v5524_v31 = vsub.f32 %v14788_v27, %v12823_v59  ;;  %v5854_v49 = vmul.f32 1.442695, %v5522_v46  ;;  %v5505_v38 = vsub.f32 %v12294_v10, %v12621_v37 }
 0x81c   : > { %14787 = vst [vmem:[#allocation71_spill] sm:$0xff] %v12967_v3  ;;  %v12973_v54 = vpop.eup %8018  ;;  %v6094_v44 = vadd.f32 %v12963_v5, %v6093_v33  ;;  %8044 = vpow2.f32 %v5850_v24  ;;  %v6115_v0 = vadd.f32 %v12967_v3, %v6114_v57  ;;  %v5816_v30 = vmul.f32 1.442695, %v5503_v40  ;;  %v14792_v40 = vld [vmem:[#allocation55_spill] sm:$0xff] }
 0x81d   : > { %v12977_v32 = vpop.eup %8020  ;;  %8046 = vpow2.f32 %v5812_v2  ;;  %v5525_v47 = vsub.f32 %v14790_v21, %v12823_v59  ;;  %v5856_v33 = vmul.f32 1.442695, %v5523_v50  ;;  %v5506_v57 = vsub.f32 %v12316_v7, %v12621_v37 }
 0x81e   : > { %14789 = vst [vmem:[#allocation129_spill] sm:$0xff] %v12977_v32  ;;  %v12983_v28 = vpop.eup %8022  ;;  %v6095_v27 = vadd.f32 %v12973_v54, %v6094_v44  ;;  %8048 = vpow2.f32 %v5852_v4  ;;  %v6116_v46 = vadd.f32 %v12977_v32, %v6115_v0  ;;  %v5818_v10 = vmul.f32 1.442695, %v5504_v39  ;;  %v14794_v39 = vld [vmem:[#allocation61_spill] sm:$0xff] }
 0x81f   : > { %v12987_v24 = vpop.eup %8024  ;;  %8050 = vpow2.f32 %v5814_v17  ;;  %v5526_v2 = vsub.f32 %v14792_v40, %v12823_v59  ;;  %v5858_v44 = vmul.f32 1.442695, %v5524_v31  ;;  %v5507_v0 = vsub.f32 %v12331_v48, %v12621_v37 }
 0x820   : > { %14791 = vst [vmem:[#allocation75_spill] sm:$0xff] %v12987_v24  ;;  %v12993_v3 = vpop.eup %8026  ;;  %v6096_v21 = vadd.f32 %v12983_v28, %v6095_v27  ;;  %8052 = vpow2.f32 %v5854_v49  ;;  %v6117_v50 = vadd.f32 %v12987_v24, %v6116_v46  ;;  %v5820_v7 = vmul.f32 1.442695, %v5505_v38  ;;  %v14797_v38 = vld [vmem:[#allocation56_spill] sm:$0xff] }
 0x821   : > { %v12997_v4 = vpop.eup %8028  ;;  %8054 = vpow2.f32 %v5816_v30  ;;  %v5527_v17 = vsub.f32 %v14794_v39, %v12823_v59  ;;  %v5860_v27 = vmul.f32 1.442695, %v5525_v47  ;;  %v5508_v46 = vsub.f32 %v12337_v29, %v12621_v37 }
 0x822   : > { %14793 = vst [vmem:[#allocation131_spill] sm:$0xff] %v12997_v4  ;;  %v13003_v32 = vpop.eup %8030  ;;  %v6097_v40 = vadd.f32 %v12993_v3, %v6096_v21  ;;  %8056 = vpow2.f32 %v5856_v33  ;;  %v6118_v31 = vadd.f32 %v12997_v4, %v6117_v50  ;;  %v5822_v48 = vmul.f32 1.442695, %v5506_v57  ;;  %v14800_v57 = vld [vmem:[#allocation62_spill] sm:$0xff] }
 0x823   : > { %14795 = vst [vmem:[#allocation79_spill] sm:$0xff] %v13003_v32  ;;  %v13007_v49 = vpop.eup %8032  ;;  %8058 = vpow2.f32 %v5818_v10  ;;  %v5528_v30 = vsub.f32 %v14797_v38, %v12823_v59  ;;  %v5862_v21 = vmul.f32 1.442695, %v5526_v2  ;;  %v5509_v50 = vsub.f32 %v12349_v1, %v12621_v37  ;;  %v13025_v38 = vpop.xlane.xlu0 %5388  ;;  %v14803_v1 = vld [vmem:[#allocation120_spill] sm:$0xff] }
 0x824   : > { %14796 = vst [vmem:[#allocation104_spill] sm:$0xff] %v13007_v49  ;;  %v13013_v24 = vpop.eup %8034  ;;  %v6098_v39 = vadd.f32 %v13003_v32, %v6097_v40  ;;  %8060 = vpow2.f32 %v5858_v44  ;;  %v6119_v47 = vadd.f32 %v13007_v49, %v6118_v31  ;;  %v5824_v29 = vmul.f32 1.442695, %v5507_v0  ;;  %v14804_v0 = vld [vmem:[#allocation123_spill] sm:$0xff] }
 0x825   : > { %14798 = vst [vmem:[#allocation84_spill] sm:$0xff] %v13013_v24  ;;  %v13017_v33 = vpop.eup %8036  ;;  %8062 = vpow2.f32 %v5820_v7  ;;  %v5529_v10 = vsub.f32 %v14800_v57, %v12823_v59  ;;  %v5864_v2 = vmul.f32 1.442695, %v5527_v17  ;;  %v5826_v49 = vmul.f32 1.442695, %v5508_v46  ;;  %v14807_v46 = vld [vmem:[#allocation72_spill] sm:$0xff] }
 0x826   : > { %14799 = vst [vmem:[#allocation103_spill] sm:$0xff] %v13017_v33  ;;  %v13023_v4 = vpop.eup %8038  ;;  %v6099_v40 = vadd.f32 %v13013_v24, %v6098_v39  ;;  %8064 = vpow2.f32 %v5860_v27  ;;  %v6120_v44 = vadd.f32 %v13017_v33, %v6119_v47  ;;  %v5530_v37 = vsub.f32 %v14803_v1, %v12823_v59 }
 0x827   : > { %14801 = vst [vmem:[#allocation92_spill] sm:$0xff] %v13023_v4  ;;  %v13029_v31 = vpop.eup %8040  ;;  %8066 = vpow2.f32 %v5822_v48  ;;  %v5531_v7 = vsub.f32 %v14804_v0, %v12823_v59  ;;  %v5866_v39 = vmul.f32 1.442695, %v5528_v30  ;;  %v5828_v47 = vmul.f32 1.442695, %v5509_v50 }
 0x828   : > { %14802 = vst [vmem:[#allocation95_spill] sm:$0xff] %v13029_v31  ;;  %v13035_v57 = vpop.eup %8042  ;;  %v6100_v32 = vadd.f32 %v13023_v4, %v6099_v40  ;;  %8068 = vpow2.f32 %v5862_v21  ;;  %v6121_v17 = vadd.f32 %v13029_v31, %v6120_v44  ;;  %v5868_v48 = vmul.f32 1.442695, %v5529_v10  ;;  %v14809_v21 = vld [vmem:[#allocation69_spill] sm:$0xff] }
 0x829   : > { %14805 = vst [vmem:[#allocation107_spill] sm:$0xff] %v13035_v57  ;;  %v13039_v27 = vpop.eup %8044  ;;  %8070 = vpow2.f32 %v5824_v29  ;;  %v5550_v33 = vsub.f32 %v14807_v46, %v13025_v38  ;;  %v5551_v30 = vsub.f32 %v14809_v21, %v13025_v38  ;;  %v14811_v29 = vld [vmem:[#allocation130_spill] sm:$0xff]  ;;  %v5870_v10 = vmul.f32 1.442695, %v5530_v37 }
 0x82a   : > { %14806 = vst [vmem:[#allocation9_spill] sm:$0xff] %v13039_v27  ;;  %v13043_v1 = vpop.eup %8046  ;;  %v6101_v0 = vadd.f32 %v13035_v57, %v6100_v32  ;;  %8072 = vpow2.f32 %v5864_v2  ;;  %v6122_v24 = vadd.f32 %v13039_v27, %v6121_v17  ;;  %v5532_v50 = vsub.f32 %v14811_v29, %v12823_v59  ;;  %v14813_v2 = vld [vmem:[#allocation77_spill] sm:$0xff]  ;;  %v14816_v29 = vld [vmem:[#allocation80_spill] sm:$0xff] }
 0x82b   : > { %14808 = vst [vmem:[#allocation11_spill] sm:$0xff] %v13043_v1  ;;  %v13049_v40 = vpop.eup %8048  ;;  %8074 = vpow2.f32 %v5826_v49  ;;  %v5872_v44 = vmul.f32 1.442695, %v5531_v7  ;;  %v5552_v17 = vsub.f32 %v14813_v2, %v13025_v38  ;;  %v14815_v49 = vld [vmem:[#allocation133_spill] sm:$0xff]  ;;  %v5553_v37 = vsub.f32 %v14816_v29, %v13025_v38  ;;  %v14819_v2 = vld [vmem:[#allocation106_spill] sm:$0xff] }
 0x82c   : > { %14810 = vst [vmem:[#allocation10_spill] sm:$0xff] %v13049_v40  ;;  %v13053_v31 = vpop.eup %8050  ;;  %v6102_v46 = vadd.f32 %v13043_v1, %v6101_v0  ;;  %8076 = vpow2.f32 %v5866_v39  ;;  %v6123_v32 = vadd.f32 %v13049_v40, %v6122_v24  ;;  %v5533_v21 = vsub.f32 %v14815_v49, %v12823_v59  ;;  %v14820_v49 = vld [vmem:[#allocation85_spill] sm:$0xff] }
 0x82d   : > { %14812 = vst [vmem:[#allocation12_spill] sm:$0xff] %v13053_v31  ;;  %v13059_v27 = vpop.eup %8052  ;;  %8078 = vpow2.f32 %v5828_v47  ;;  %v5910_v7 = vmul.f32 1.442695, %v5550_v33  ;;  %v5912_v39 = vmul.f32 1.442695, %v5551_v30  ;;  %v5534_v47 = vsub.f32 %v14819_v2, %v12823_v59  ;;  %v14823_v30 = vld [vmem:[#allocation108_spill] sm:$0xff] }
 0x82e   : > { %14814 = vst [vmem:[#allocation29_spill] sm:$0xff] %v13059_v27  ;;  %v13065_v57 = vpop.eup %8054  ;;  %v6103_v0 = vadd.f32 %v13053_v31, %v6102_v46  ;;  %8080 = vpow2.f32 %v5868_v48  ;;  %v6124_v24 = vadd.f32 %v13059_v27, %v6123_v32  ;;  %v5874_v1 = vmul.f32 1.442695, %v5532_v50 }
 0x82f   : > { %14817 = vst [vmem:[#allocation31_spill] sm:$0xff] %v13065_v57  ;;  %v13069_v40 = vpop.eup %8056  ;;  %8082 = vpow2.f32 %v5870_v10  ;;  %v5554_v4 = vsub.f32 %v14820_v49, %v13025_v38  ;;  %v5914_v46 = vmul.f32 1.442695, %v5552_v17  ;;  %v5535_v27 = vsub.f32 %v14823_v30, %v12823_v59  ;;  %v14824_v10 = vld [vmem:[#allocation90_spill] sm:$0xff]  ;;  %v14827_v17 = vld [vmem:[#allocation105_spill] sm:$0xff] }
 0x830   : > { %14818 = vst [vmem:[#allocation30_spill] sm:$0xff] %v13069_v40  ;;  %v13075_v29 = vpop.eup %8058  ;;  %v6104_v33 = vadd.f32 %v13065_v57, %v6103_v0  ;;  %8084 = vpow2.f32 %v5872_v44  ;;  %v6125_v48 = vadd.f32 %v13069_v40, %v6124_v24  ;;  %v5876_v31 = vmul.f32 1.442695, %v5533_v21  ;;  %v14828_v21 = vld [vmem:[#allocation97_spill] sm:$0xff] }
 0x831   : > { %14821 = vst [vmem:[#allocation32_spill] sm:$0xff] %v13075_v29  ;;  %v13079_v32 = vpop.eup %8060  ;;  %v5555_v50 = vsub.f32 %v14824_v10, %v13025_v38  ;;  %8086 = vpow2.f32 %v5910_v7  ;;  %v5916_v44 = vmul.f32 1.442695, %v5553_v37  ;;  %v5536_v40 = vsub.f32 %v14827_v17, %v12823_v59  ;;  %v14831_v37 = vld [vmem:[#allocation109_spill] sm:$0xff] }
 0x832   : > { %14822 = vst [vmem:[#allocation55_spill] sm:$0xff] %v13079_v32  ;;  %v13085_v2 = vpop.eup %8062  ;;  %v6105_v49 = vadd.f32 %v13075_v29, %v6104_v33  ;;  %v6126_v0 = vadd.f32 %v13079_v32, %v6125_v48  ;;  %8088 = vpow2.f32 %v5912_v39  ;;  %v5878_v30 = vmul.f32 1.442695, %v5534_v47 }
 0x833   : > { %14825 = vst [vmem:[#allocation61_spill] sm:$0xff] %v13085_v2  ;;  %v13089_v24 = vpop.eup %8064  ;;  %8090 = vpow2.f32 %v5874_v1  ;;  %v5556_v57 = vsub.f32 %v14828_v21, %v13025_v38  ;;  %v5918_v48 = vmul.f32 1.442695, %v5554_v4  ;;  %v5537_v32 = vsub.f32 %v14831_v37, %v12823_v59  ;;  %v14832_v1 = vld [vmem:[#allocation2_spill] sm:$0xff] }
 0x834   : > { %14826 = vst [vmem:[#allocation56_spill] sm:$0xff] %v13089_v24  ;;  %v13095_v10 = vpop.eup %8066  ;;  %v6106_v7 = vadd.f32 %v13085_v2, %v6105_v49  ;;  %v6127_v33 = vadd.f32 %v13089_v24, %v6126_v0  ;;  %8092 = vpow2.f32 %v5914_v46  ;;  %v5880_v17 = vmul.f32 1.442695, %v5535_v27  ;;  %v14835_v4 = vld [vmem:[#allocation138_spill] sm:$0xff] }
 0x835   : > { %14829 = vst [vmem:[#allocation62_spill] sm:$0xff] %v13095_v10  ;;  %v13099_v39 = vpop.eup %8068  ;;  %8094 = vpow2.f32 %v5876_v31  ;;  %v5557_v47 = vsub.f32 %v14832_v1, %v13025_v38  ;;  %v5920_v0 = vmul.f32 1.442695, %v5555_v50  ;;  %v5538_v24 = vsub.f32 %v14835_v4, %v12823_v59  ;;  %v14836_v31 = vld [vmem:[#allocation13_spill] sm:$0xff]  ;;  %v14839_v50 = vld [vmem:[#allocation116_spill] sm:$0xff] }
 0x836   : > { %14830 = vst [vmem:[#allocation120_spill] sm:$0xff] %v13099_v39  ;;  %v13105_v29 = vpop.eup %8070  ;;  %v6107_v21 = vadd.f32 %v13095_v10, %v6106_v7  ;;  %v6128_v49 = vadd.f32 %v13099_v39, %v6127_v33  ;;  %8096 = vpow2.f32 %v5916_v44  ;;  %v5882_v37 = vmul.f32 1.442695, %v5536_v40  ;;  %v14840_v40 = vld [vmem:[#allocation15_spill] sm:$0xff] }
 0x837   : > { %14833 = vst [vmem:[#allocation123_spill] sm:$0xff] %v13105_v29  ;;  %v13109_v46 = vpop.eup %8072  ;;  %8098 = vpow2.f32 %v5878_v30  ;;  %v5558_v27 = vsub.f32 %v14836_v31, %v13025_v38  ;;  %v5922_v33 = vmul.f32 1.442695, %v5556_v57  ;;  %v5539_v39 = vsub.f32 %v14839_v50, %v12823_v59  ;;  %v14843_v57 = vld [vmem:[#allocation141_spill] sm:$0xff] }
 0x838   : > { %14834 = vst [vmem:[#allocation72_spill] sm:$0xff] %v13109_v46  ;;  %v13115_v2 = vpop.eup %8074  ;;  %v6108_v1 = vadd.f32 %v13105_v29, %v6107_v21  ;;  %v6129_v7 = vadd.f32 %v13109_v46, %v6128_v49  ;;  %8100 = vpow2.f32 %v5918_v48  ;;  %v5884_v4 = vmul.f32 1.442695, %v5537_v32  ;;  %v14844_v32 = vld [vmem:[#allocation14_spill] sm:$0xff] }
 0x839   : > { %14837 = vst [vmem:[#allocation69_spill] sm:$0xff] %v13115_v2  ;;  %v13119_v44 = vpop.eup %8076  ;;  %8102 = vpow2.f32 %v5880_v17  ;;  %v5559_v30 = vsub.f32 %v14840_v40, %v13025_v38  ;;  %v5924_v49 = vmul.f32 1.442695, %v5557_v47  ;;  %v5540_v46 = vsub.f32 %v14843_v57, %v12823_v59  ;;  %v14847_v47 = vld [vmem:[#allocation142_spill] sm:$0xff] }
 0x83a   : > { %14838 = vst [vmem:[#allocation130_spill] sm:$0xff] %v13119_v44  ;;  %v13125_v10 = vpop.eup %8078  ;;  %v6109_v31 = vadd.f32 %v13115_v2, %v6108_v1  ;;  %v6130_v21 = vadd.f32 %v13119_v44, %v6129_v7  ;;  %8104 = vpow2.f32 %v5920_v0  ;;  %v5886_v50 = vmul.f32 1.442695, %v5538_v24 }
 0x83b   : > { %14841 = vst [vmem:[#allocation77_spill] sm:$0xff] %v13125_v10  ;;  %v13129_v48 = vpop.eup %8080  ;;  %8106 = vpow2.f32 %v5882_v37  ;;  %v5560_v17 = vsub.f32 %v14844_v32, %v13025_v38  ;;  %v5926_v7 = vmul.f32 1.442695, %v5558_v27  ;;  %v5541_v44 = vsub.f32 %v14847_v47, %v12823_v59  ;;  %v14849_v32 = vld [vmem:[#allocation16_spill] sm:$0xff] }
 0x83c   : > { %14842 = vst [vmem:[#allocation133_spill] sm:$0xff] %v13129_v48  ;;  %v13135_v29 = vpop.eup %8082  ;;  %v6110_v40 = vadd.f32 %v13125_v10, %v6109_v31  ;;  %v6131_v1 = vadd.f32 %v13129_v48, %v6130_v21  ;;  %8108 = vpow2.f32 %v5922_v33  ;;  %v5888_v57 = vmul.f32 1.442695, %v5539_v39  ;;  %v14851_v27 = vld [vmem:[#allocation144_spill] sm:$0xff] }
 0x83d   : > { %14845 = vst [vmem:[#allocation80_spill] sm:$0xff] %v13135_v29  ;;  %v13139_v0 = vpop.eup %8084  ;;  %8110 = vpow2.f32 %v5884_v4  ;;  %v5561_v2 = vsub.f32 %v14849_v32, %v13025_v38  ;;  %v5928_v31 = vmul.f32 1.442695, %v5559_v30  ;;  %v5542_v33 = vsub.f32 %v14851_v27, %v12823_v59  ;;  %v14852_v4 = vld [vmem:[#allocation33_spill] sm:$0xff]  ;;  %v14854_v32 = vld [vmem:[#allocation146_spill] sm:$0xff] }
 0x83e   : > { %14846 = vst [vmem:[#allocation106_spill] sm:$0xff] %v13139_v0  ;;  %v13143_v37 = vpop.eup %8086  ;;  %6111 = vadd.xlane.f32.xlu1 %v6110_v40  ;;  %v6132_v24 = vadd.f32 %v13135_v29, %v6131_v1  ;;  %8112 = vpow2.f32 %v5924_v49  ;;  %v5890_v48 = vmul.f32 1.442695, %v5540_v46  ;;  %v5562_v39 = vsub.f32 %v14852_v4, %v13025_v38  ;;  %v14855_v46 = vld [vmem:[#allocation35_spill] sm:$0xff] }
 0x83f   : > { %14848 = vst [vmem:[#allocation85_spill] sm:$0xff] %v13143_v37  ;;  %v13148_v21 = vpop.eup %8088  ;;  %8114 = vpow2.f32 %v5886_v50  ;;  %v5930_v1 = vmul.f32 1.442695, %v5560_v17  ;;  %v5543_v29 = vsub.f32 %v14854_v32, %v12823_v59  ;;  %v5892_v50 = vmul.f32 1.442695, %v5541_v44  ;;  %v14859_v44 = vld [vmem:[#allocation34_spill] sm:$0xff] }
 0x840   : > { %14850 = vst [vmem:[#allocation108_spill] sm:$0xff] %v13148_v21  ;;  %v13154_v47 = vpop.eup %8090  ;;  %v6133_v40 = vadd.f32 %v13139_v0, %v6132_v24  ;;  %8116 = vpow2.f32 %v5926_v7  ;;  %v6154_v49 = vadd.f32 %v13148_v21, %v13143_v37  ;;  %v5563_v27 = vsub.f32 %v14855_v46, %v13025_v38  ;;  %v14858_v21 = vld [vmem:[#allocation149_spill] sm:$0xff] }
 0x841   : > { %v13159_v30 = vpop.eup %8092  ;;  %8118 = vpow2.f32 %v5888_v57  ;;  %v5932_v7 = vmul.f32 1.442695, %v5561_v2  ;;  %v5544_v37 = vsub.f32 %v14858_v21, %v12823_v59  ;;  %v5894_v32 = vmul.f32 1.442695, %v5542_v33 }
 0x842   : > { %14853 = vst [vmem:[#allocation90_spill] sm:$0xff] %v13159_v30  ;;  %v13165_v4 = vpop.eup %8094  ;;  %v6134_v10 = vadd.f32 %v13154_v47, %v6133_v40  ;;  %8120 = vpow2.f32 %v5928_v31  ;;  %v6155_v17 = vadd.f32 %v13159_v30, %v6154_v49  ;;  %v5564_v57 = vsub.f32 %v14859_v44, %v13025_v38 }
 0x843   : > { %14856 = vst [vmem:[#allocation105_spill] sm:$0xff] %v13165_v4  ;;  %v13169_v24 = vpop.eup %8096  ;;  %8122 = vpow2.f32 %v5890_v48  ;;  %v5934_v40 = vmul.f32 1.442695, %v5562_v39  ;;  %v5545_v49 = vsub.f32 %v12321_v6, %v12823_v59  ;;  %v5896_v21 = vmul.f32 1.442695, %v5543_v29  ;;  %v14861_v48 = vld [vmem:[#allocation36_spill] sm:$0xff] }
 0x844   : > { %14857 = vst [vmem:[#allocation97_spill] sm:$0xff] %v13169_v24  ;;  %v13175_v0 = vpop.eup %8098  ;;  %v6135_v46 = vadd.f32 %v13165_v4, %v6134_v10  ;;  %8124 = vpow2.f32 %v5930_v1  ;;  %v6156_v2 = vadd.f32 %v13169_v24, %v6155_v17  ;;  %v5565_v33 = vsub.f32 %v14861_v48, %v13025_v38  ;;  %v14863_v17 = vld [vmem:[#allocation151_spill] sm:$0xff] }
 0x845   : > { %v13179_v31 = vpop.eup %8100  ;;  %8126 = vpow2.f32 %v5892_v50  ;;  %v5936_v10 = vmul.f32 1.442695, %v5563_v27  ;;  %v5546_v24 = vsub.f32 %v14863_v17, %v12823_v59  ;;  %v5898_v6 = vmul.f32 1.442695, %v5544_v37  ;;  %v14864_v29 = vld [vmem:[#allocation111_spill] sm:$0xff]  ;;  %v14867_v37 = vld [vmem:[#allocation114_spill] sm:$0xff] }
 0x846   : > { %14860 = vst [vmem:[#allocation109_spill] sm:$0xff] %v13179_v31  ;;  %v13185_v30 = vpop.eup %8102  ;;  %v6136_v44 = vadd.f32 %v13175_v0, %v6135_v46  ;;  %8128 = vpow2.f32 %v5932_v7  ;;  %v6157_v39 = vadd.f32 %v13179_v31, %v6156_v2  ;;  %v5566_v50 = vsub.f32 %v14864_v29, %v13025_v38 }
 0x847   : > { %v13189_v1 = vpop.eup %8104  ;;  %8130 = vpow2.f32 %v5894_v32  ;;  %v5938_v46 = vmul.f32 1.442695, %v5564_v57  ;;  %v5547_v2 = vsub.f32 %v12353_v45, %v12823_v59  ;;  %v5900_v17 = vmul.f32 1.442695, %v5545_v49  ;;  %v14869_v49 = vld [vmem:[#allocation118_spill] sm:$0xff] }
 0x848   : > { %14862 = vst [vmem:[#allocation2_spill] sm:$0xff] %v13189_v1  ;;  %v13195_v4 = vpop.eup %8106  ;;  %v6137_v48 = vadd.f32 %v13185_v30, %v6136_v44  ;;  %8132 = vpow2.f32 %v5934_v40  ;;  %v6158_v27 = vadd.f32 %v13189_v1, %v6157_v39  ;;  %v5567_v32 = vsub.f32 %v14867_v37, %v13025_v38 }
 0x849   : > { %14865 = vst [vmem:[#allocation138_spill] sm:$0xff] %v13195_v4  ;;  %v13199_v7 = vpop.eup %8108  ;;  %8134 = vpow2.f32 %v5896_v21  ;;  %v5940_v44 = vmul.f32 1.442695, %v5565_v33  ;;  %v5548_v39 = vsub.f32 %v12358_v25, %v12823_v59  ;;  %v5902_v45 = vmul.f32 1.442695, %v5546_v24  ;;  %v14872_v24 = vld [vmem:[#allocation121_spill] sm:$0xff] }
 0x84a   : > { %14866 = vst [vmem:[#allocation13_spill] sm:$0xff] %v13199_v7  ;;  %v13205_v31 = vpop.eup %8110  ;;  %v6138_v29 = vadd.f32 %v13195_v4, %v6137_v48  ;;  %8136 = vpow2.f32 %v5936_v10  ;;  %v6159_v57 = vadd.f32 %v13199_v7, %v6158_v27  ;;  %v5568_v21 = vsub.f32 %v14869_v49, %v13025_v38  ;;  %v14871_v27 = vld [vmem:[#allocation154_spill] sm:$0xff] }
 0x84b   : > { %v13209_v40 = vpop.eup %8112  ;;  %8138 = vpow2.f32 %v5898_v6  ;;  %v5942_v48 = vmul.f32 1.442695, %v5566_v50  ;;  %v5549_v7 = vsub.f32 %v14871_v27, %v12823_v59  ;;  %v5904_v25 = vmul.f32 1.442695, %v5547_v2 }
 0x84c   : > { %14868 = vst [vmem:[#allocation116_spill] sm:$0xff] %v13209_v40  ;;  %v13215_v1 = vpop.eup %8114  ;;  %v6139_v37 = vadd.f32 %v13205_v31, %v6138_v29  ;;  %8140 = vpow2.f32 %v5938_v46  ;;  %v6160_v33 = vadd.f32 %v13209_v40, %v6159_v57  ;;  %v5569_v6 = vsub.f32 %v14872_v24, %v13025_v38  ;;  %v14874_v40 = vld [vmem:[#allocation124_spill] sm:$0xff] }
 0x84d   : > { %v13219_v10 = vpop.eup %8116  ;;  %8142 = vpow2.f32 %v5900_v17  ;;  %v5944_v29 = vmul.f32 1.442695, %v5567_v32  ;;  %v5906_v57 = vmul.f32 1.442695, %v5548_v39  ;;  %v5570_v59 = vsub.f32 %v14874_v40, %v13025_v38 }
 0x84e   : > { %14870 = vst [vmem:[#allocation15_spill] sm:$0xff] %v13219_v10  ;;  %v13225_v4 = vpop.eup %8118  ;;  %v6140_v49 = vadd.f32 %v13215_v1, %v6139_v37  ;;  %8144 = vpow2.f32 %v5940_v44  ;;  %v6161_v50 = vadd.f32 %v13219_v10, %v6160_v33  ;;  %v5946_v27 = vmul.f32 1.442695, %v5568_v21  ;;  %v14876_v44 = vld [vmem:[#allocation128_spill] sm:$0xff]  ;;  %v14878_v21 = vld [vmem:[#allocation98_spill] sm:$0xff] }
 0x84f   : > { %v13229_v46 = vpop.eup %8120  ;;  %8146 = vpow2.f32 %v5902_v45  ;;  %v5908_v32 = vmul.f32 1.442695, %v5549_v7  ;;  %v5571_v33 = vsub.f32 %v14876_v44, %v13025_v38  ;;  %v5948_v40 = vmul.f32 1.442695, %v5569_v6  ;;  %v14881_v6 = vld [vmem:[#allocation99_spill] sm:$0xff] }
 0x850   : > { %14873 = vst [vmem:[#allocation141_spill] sm:$0xff] %v13229_v46  ;;  %v13233_v17 = vpop.eup %8122  ;;  %v6141_v2 = vadd.f32 %v13225_v4, %v6140_v49  ;;  %8148 = vpow2.f32 %v5942_v48  ;;  %v6162_v24 = vadd.f32 %v13229_v46, %v6161_v50  ;;  %v5572_v48 = vsub.f32 %v14878_v21, %v13025_v38 }
 0x851   : > { %v13237_v37 = vpop.eup %8124  ;;  %8150 = vpow2.f32 %v5904_v25  ;;  %v5950_v25 = vmul.f32 1.442695, %v5570_v59  ;;  %v14884_v59 = vld [vmem:[#allocation135_spill] sm:$0xff] }
 0x852   : > { %14875 = vst [vmem:[#allocation14_spill] sm:$0xff] %v13237_v37  ;;  %v13241_v45 = vpop.eup %8126  ;;  %v6142_v39 = vadd.f32 %v13233_v17, %v6141_v2  ;;  %8152 = vpow2.f32 %v5944_v29  ;;  %v6163_v10 = vadd.f32 %v13237_v37, %v6162_v24  ;;  %v5573_v29 = vsub.f32 %v14881_v6, %v13025_v38 }
 0x853   : > { %v13245_v49 = vpop.eup %8128  ;;  %8154 = vpow2.f32 %v5906_v57  ;;  %v5952_v24 = vmul.f32 1.442695, %v5571_v33 }
 0x854   : > { %14877 = vst [vmem:[#allocation142_spill] sm:$0xff] %v13245_v49  ;;  %v13249_v50 = vpop.eup %8130  ;;  %v6143_v7 = vadd.f32 %v13241_v45, %v6142_v39  ;;  %8156 = vpow2.f32 %v5946_v27  ;;  %v6164_v44 = vadd.f32 %v13245_v49, %v6163_v10  ;;  %v5574_v27 = vsub.f32 %v14884_v59, %v13025_v38 }
 0x855   : > { %14879 = vst [vmem:[#allocation16_spill] sm:$0xff] %v13249_v50  ;;  %v13253_v46 = vpop.eup %8132  ;;  %8158 = vpow2.f32 %v5908_v32  ;;  %v5954_v39 = vmul.f32 1.442695, %v5572_v48 }
 0x856   : > { %14880 = vst [vmem:[#allocation144_spill] sm:$0xff] %v13253_v46  ;;  %v13257_v2 = vpop.eup %8134  ;;  %v6144_v57 = vadd.f32 %v13249_v50, %v6143_v7  ;;  %8160 = vpow2.f32 %v5948_v40  ;;  %v6165_v21 = vadd.f32 %v13253_v46, %v6164_v44  ;;  %v14887_v40 = vld [vmem:[#allocation136_spill] sm:$0xff]  ;;  %v5956_v46 = vmul.f32 1.442695, %v5573_v29 }
 0x857   : > { %14882 = vst [vmem:[#allocation33_spill] sm:$0xff] %v13257_v2  ;;  %v13261_v37 = vpop.eup %8136  ;;  %8162 = vpow2.f32 %v5950_v25  ;;  %v5575_v33 = vsub.f32 %v14887_v40, %v13025_v38  ;;  %v14890_v25 = vld [vmem:[#allocation137_spill] sm:$0xff] }
 0x858   : > { %14883 = vst [vmem:[#allocation146_spill] sm:$0xff] %v13261_v37  ;;  %v13265_v10 = vpop.eup %8138  ;;  %v6145_v32 = vadd.f32 %v13257_v2, %v6144_v57  ;;  %v6166_v6 = vadd.f32 %v13261_v37, %v6165_v21  ;;  %8164 = vpow2.f32 %v5952_v24  ;;  %v5576_v48 = vsub.f32 %v14890_v25, %v13025_v38  ;;  %v14893_v24 = vld [vmem:[#allocation112_spill] sm:$0xff] }
 0x859   : > { %14885 = vst [vmem:[#allocation35_spill] sm:$0xff] %v13265_v10  ;;  %v13269_v49 = vpop.eup %8140  ;;  %8166 = vpow2.f32 %v5954_v39  ;;  %v5958_v37 = vmul.f32 1.442695, %v5574_v27  ;;  %v5577_v29 = vsub.f32 %v14893_v24, %v13025_v38  ;;  %v14895_v39 = vld [vmem:[#allocation139_spill] sm:$0xff] }
 0x85a   : > { %14886 = vst [vmem:[#allocation149_spill] sm:$0xff] %v13269_v49  ;;  %v13273_v7 = vpop.eup %8142  ;;  %v6146_v44 = vadd.f32 %v13265_v10, %v6145_v32  ;;  %v6167_v59 = vadd.f32 %v13269_v49, %v6166_v6  ;;  %8168 = vpow2.f32 %v5956_v46  ;;  %v5960_v49 = vmul.f32 1.442695, %v5575_v33  ;;  %v14898_v46 = vld [vmem:[#allocation140_spill] sm:$0xff] }
 0x85b   : > { %14888 = vst [vmem:[#allocation34_spill] sm:$0xff] %v13273_v7  ;;  %v13277_v50 = vpop.eup %8144  ;;  %v5578_v27 = vsub.f32 %v14895_v39, %v13025_v38  ;;  %8170 = vpow2.f32 %v5958_v37  ;;  %v5579_v33 = vsub.f32 %v14898_v46, %v13025_v38  ;;  %v14900_v37 = vld [vmem:[#allocation143_spill] sm:$0xff] }
 0x85c   : > { %14889 = vst [vmem:[#allocation36_spill] sm:$0xff] %v13277_v50  ;;  %v13281_v57 = vpop.eup %8146  ;;  %v6147_v21 = vadd.f32 %v13273_v7, %v6146_v44  ;;  %v6168_v40 = vadd.f32 %v13277_v50, %v6167_v59  ;;  %v5962_v50 = vmul.f32 1.442695, %v5576_v48  ;;  %8172 = vpow2.f32 %v5960_v49 }
 0x85d   : > { %14891 = vst [vmem:[#allocation151_spill] sm:$0xff] %v13281_v57  ;;  %v13285_v2 = vpop.eup %8148  ;;  %v5580_v48 = vsub.f32 %v14900_v37, %v13025_v38  ;;  %v14904_v37 = vld [vmem:[#allocation147_spill] sm:$0xff] }
 0x85e   : > { %14892 = vst [vmem:[#allocation111_spill] sm:$0xff] %v13285_v2  ;;  %v13289_v32 = vpop.eup %8150  ;;  %v6148_v6 = vadd.f32 %v13281_v57, %v6147_v21  ;;  %v6169_v25 = vadd.f32 %v13285_v2, %v6168_v40  ;;  %v5964_v2 = vmul.f32 1.442695, %v5577_v29  ;;  %8174 = vpow2.f32 %v5962_v50 }
 0x85f   : > { %v13293_v10 = vpop.eup %8152  ;;  %v5968_v29 = vmul.f32 1.442695, %v5579_v33  ;;  %v5970_v50 = vmul.f32 1.442695, %v5580_v48 }
 0x860   : > { %14894 = vst [vmem:[#allocation114_spill] sm:$0xff] %v13293_v10  ;;  %v13297_v44 = vpop.eup %8154  ;;  %v6149_v59 = vadd.f32 %v13289_v32, %v6148_v6  ;;  %v6170_v24 = vadd.f32 %v13293_v10, %v6169_v25  ;;  %v5966_v25 = vmul.f32 1.442695, %v5578_v27  ;;  %8176 = vpow2.f32 %v5964_v2 }
 0x861   : > { %14896 = vst [vmem:[#allocation118_spill] sm:$0xff] %v13297_v44  ;;  %v13301_v7 = vpop.eup %8156 }
 0x862   : > { %14897 = vst [vmem:[#allocation154_spill] sm:$0xff] %v13301_v7  ;;  %v13305_v21 = vpop.eup %8158  ;;  %v6150_v40 = vadd.f32 %v13297_v44, %v6149_v59  ;;  %v6171_v39 = vadd.f32 %v13301_v7, %v6170_v24  ;;  %v14902_v59 = vld [vmem:[#allocation145_spill] sm:$0xff]  ;;  %v5582_v44 = vsub.f32 %v14904_v37, %v13025_v38  ;;  %8178 = vpow2.f32 %v5966_v25 }
 0x863   : > { %v13309_v57 = vpop.eup %8160  ;;  %v5581_v49 = vsub.f32 %v14902_v59, %v13025_v38  ;;  %8180 = vpow2.f32 %v5968_v29 }
 0x864   : > { %14899 = vst [vmem:[#allocation121_spill] sm:$0xff] %v13309_v57  ;;  %v6151_v6 = vadd.f32 %v13305_v21, %v6150_v40  ;;  %v6172_v10 = vadd.f32 %v13309_v57, %v6171_v39  ;;  %v13315_v46 = vpop.eup %8162  ;;  %v14906_v39 = vld [vmem:[#allocation148_spill] sm:$0xff]  ;;  %8182 = vpow2.f32 %v5970_v50  ;;  %v5974_v37 = vmul.f32 1.442695, %v5582_v44 }
 0x865   : > { %14901 = vst [vmem:[#allocation124_spill] sm:$0xff] %v13315_v46  ;;  %v13320_v7 = vpop.eup %8164  ;;  %v5972_v59 = vmul.f32 1.442695, %v5581_v49 }
 0x866   : > { %6152 = vadd.xlane.f32.xlu0 %v6151_v6  ;;  %v6173_v24 = vadd.f32 %v13315_v46, %v6172_v10  ;;  %14903 = vst [vmem:[#allocation128_spill] sm:$0xff] %v13320_v7  ;;  %v13325_v40 = vpop.eup %8166  ;;  %v5583_v6 = vsub.f32 %v14906_v39, %v13025_v38  ;;  %v14908_v10 = vld [vmem:[#allocation150_spill] sm:$0xff] }
 0x867   : > { %14905 = vst [vmem:[#allocation98_spill] sm:$0xff] %v13325_v40  ;;  %v13330_v33 = vpop.eup %8168  ;;  %v5584_v46 = vsub.f32 %v14908_v10, %v13025_v38  ;;  %8184 = vpow2.f32 %v5972_v59 }
 0x868   : > { %v6174_v27 = vadd.f32 %v13320_v7, %v6173_v24  ;;  %14907 = vst [vmem:[#allocation99_spill] sm:$0xff] %v13330_v33  ;;  %v13335_v25 = vpop.eup %8170  ;;  %v14910_v24 = vld [vmem:[#allocation152_spill] sm:$0xff]  ;;  %v5976_v39 = vmul.f32 1.442695, %v5583_v6  ;;  %8186 = vpow2.f32 %v5974_v37 }
 0x869   : > { %14909 = vst [vmem:[#allocation135_spill] sm:$0xff] %v13335_v25  ;;  %v5585_v7 = vsub.f32 %v14910_v24, %v13025_v38  ;;  %v13340_v29 = vpop.eup %8172  ;;  %v5978_v10 = vmul.f32 1.442695, %v5584_v46 }
 0x86a   : > { %v6175_v2 = vadd.f32 %v13325_v40, %v6174_v27  ;;  %v14911_v27 = vld [vmem:[#allocation153_spill] sm:$0xff]  ;;  %8188 = vpow2.f32 %v5976_v39 }
 0x86b   : > { %v5586_v40 = vsub.f32 %v14911_v27, %v13025_v38  ;;  %v13345_v50 = vpop.eup %8174  ;;  %v5980_v24 = vmul.f32 1.442695, %v5585_v7  ;;  %8190 = vpow2.f32 %v5978_v10 }
 0x86c   : > { %v6176_v48 = vadd.f32 %v13330_v33, %v6175_v2  ;;  %14912 = vst [vmem:[#allocation136_spill] sm:$0xff] %v13345_v50  ;;  %v14913_v2 = vld [vmem:[#allocation155_spill] sm:$0xff] }
 0x86d   : > { %v5587_v33 = vsub.f32 %v14913_v2, %v13025_v38  ;;  %v13350_v59 = vpop.eup %8176  ;;  %8192 = vpow2.f32 %v5980_v24 }
 0x86e   : > { %v6177_v49 = vadd.f32 %v13335_v25, %v6176_v48  ;;  %14914 = vst [vmem:[#allocation137_spill] sm:$0xff] %v13350_v59  ;;  %v5982_v48 = vmul.f32 1.442695, %v5586_v40  ;;  %v14915_v25 = vld [vmem:[#allocation156_spill] sm:$0xff] }
 0x86f   : > { %v5588_v57 = vsub.f32 %v14915_v25, %v13025_v38  ;;  %v13355_v37 = vpop.eup %8178  ;;  %v5984_v2 = vmul.f32 1.442695, %v5587_v33 }
 0x870   : > { %v6178_v44 = vadd.f32 %v13340_v29, %v6177_v49  ;;  %14916 = vst [vmem:[#allocation112_spill] sm:$0xff] %v13355_v37  ;;  %v14917_v49 = vld [vmem:[#allocation157_spill] sm:$0xff]  ;;  %v13360_v39 = vpop.eup %8180  ;;  %8194 = vpow2.f32 %v5982_v48 }
 0x871   : > { %v5589_v27 = vsub.f32 %v14917_v49, %v13025_v38  ;;  %14918 = vst [vmem:[#allocation139_spill] sm:$0xff] %v13360_v39  ;;  %v5986_v40 = vmul.f32 1.442695, %v5588_v57  ;;  %v13363_v10 = vpop.eup %8182 }
 0x872   : > { %v6179_v6 = vadd.f32 %v13345_v50, %v6178_v44  ;;  %14919 = vst [vmem:[#allocation140_spill] sm:$0xff] %v13363_v10  ;;  %v14936_v50 = vld [vmem:[#allocation88_spill] sm:$0xff] }
 0x874   : > { %v6180_v46 = vadd.f32 %v13350_v59, %v6179_v6  ;;  %v5988_v6 = vmul.f32 1.442695, %v5589_v27  ;;  %v13366_v38 = vpop.eup %8184 }
 0x875   : > { %14920 = vst [vmem:[#allocation143_spill] sm:$0xff] %v13366_v38  ;;  %v13369_v24 = vpop.eup %8186 }
 0x876   : > { %v6181_v7 = vadd.f32 %v13355_v37, %v6180_v46  ;;  %14921 = vst [vmem:[#allocation145_spill] sm:$0xff] %v13369_v24  ;;  %v14935_v37 = vld [vmem:[#allocation83_spill] sm:$0xff] }
 0x877   : > { %v13372_v48 = vpop.eup %8188 }
 0x878   : > { %v6182_v25 = vadd.f32 %v13360_v39, %v6181_v7  ;;  %14922 = vst [vmem:[#allocation147_spill] sm:$0xff] %v13372_v48  ;;  %v13375_v49 = vpop.eup %8190 }
 0x879   : > { %14923 = vst [vmem:[#allocation148_spill] sm:$0xff] %v13375_v49 }
 0x87a   : > { %v6030_v44 = vpop.xlane.xlu1 %6029  ;;  %v6183_v59 = vadd.f32 %v13363_v10, %v6182_v25  ;;  %v14926_v25 = vld [vmem:[#allocation46_spill] sm:$0xff]  ;;  %v14934_v10 = vld [vmem:[#allocation81_spill] sm:$0xff] }
 0x87b   : > { %8196 = vrcp.f32 %v6030_v44 }
 0x87c   : > { %8198 = vpow2.f32 %v5984_v2  ;;  %v6184_v33 = vadd.f32 %v13366_v38, %v6183_v59  ;;  %v13379_v2 = vpop.eup %8192  ;;  %v14933_v38 = vld [vmem:[#allocation76_spill] sm:$0xff] }
 0x87d   : > { %8200 = vpow2.f32 %v5986_v40  ;;  %14924 = vst [vmem:[#allocation150_spill] sm:$0xff] %v13379_v2  ;;  %v13381_v7 = vpop.eup %8194 }
 0x87e   : > { %8202 = vpow2.f32 %v5988_v6  ;;  %v6185_v57 = vadd.f32 %v13369_v24, %v6184_v33  ;;  %14925 = vst [vmem:[#allocation152_spill] sm:$0xff] %v13381_v7  ;;  %v14927_v33 = vld [vmem:[#allocation45_spill] sm:$0xff]  ;;  %v14931_v24 = vld [vmem:[#allocation60_spill] sm:$0xff] }
 0x880   : > { %v6186_v46 = vadd.f32 %v13372_v48, %v6185_v57 }
 0x882   : > { %v6187_v27 = vadd.f32 %v13375_v49, %v6186_v46  ;;  %v14928_v46 = vld [vmem:[#allocation52_spill] sm:$0xff]  ;;  %v14930_v49 = vld [vmem:[#allocation58_spill] sm:$0xff] }
 0x884   : > { %v6188_v59 = vadd.f32 %v13379_v2, %v6187_v27 }
 0x886   : > { %v6189_v40 = vadd.f32 %v13381_v7, %v6188_v59  ;;  %v14932_v7 = vld [vmem:[#allocation67_spill] sm:$0xff] }
 0x888   : > { %v13384_v44 = vpop.eup %8196 }
 0x889   : > { %v6200_v6 = vmul.f32 %v13384_v44, %v14926_v25  ;;  %v6201_v57 = vmul.f32 %v13384_v44, %v14927_v33  ;;  %v6202_v27 = vmul.f32 %v13384_v44, %v14928_v46  ;;  %v13398_v2 = vpop.eup %8198  ;;  %v6203_v48 = vmul.f32 %v13384_v44, %v14930_v49 }
 0x88a   : > { %14929 = vst [vmem:[#allocation153_spill] sm:$0xff] %v13398_v2  ;;  %v6204_v59 = vmul.f32 %v13384_v44, %v14931_v24  ;;  %v6205_v25 = vmul.f32 %v13384_v44, %v14932_v7  ;;  %v6206_v33 = vmul.f32 %v13384_v44, %v14933_v38  ;;  %v6190_v46 = vadd.f32 %v13398_v2, %v6189_v40  ;;  %v13418_v7 = vpop.eup %8200  ;;  %v14937_v38 = vld [vmem:[#allocation96_spill] sm:$0xff]  ;;  %v14938_v2 = vld [vmem:[#allocation3_spill] sm:$0xff] }
 0x88b   : > { %v6207_v39 = vmul.f32 %v13384_v44, %v14934_v10  ;;  %v6208_v49 = vmul.f32 %v13384_v44, %v14935_v37  ;;  %v6209_v24 = vmul.f32 %v13384_v44, %v14936_v50  ;;  %6400 = vst [vmem:[%s13389_s10] sm:$0xff] %v6200_v6  ;;  %6401 = vst [vmem:[%s13389_s10 + $0x8] sm:$0xff] %v6201_v57  ;;  %v14939_v57 = vld [vmem:[#allocation17_spill] sm:$0xff] }
 0x88c   : > { %6402 = vst [vmem:[%s13389_s10 + $0x10] sm:$0xff] %v6202_v27  ;;  %v6210_v40 = vmul.f32 %v13384_v44, %v14937_v38  ;;  %v6211_v10 = vmul.f32 %v13384_v44, %v14938_v2  ;;  %v6212_v37 = vmul.f32 %v13384_v44, %v12475_v15  ;;  %v6213_v50 = vmul.f32 %v13384_v44, %v12482_v20  ;;  %v14940_v2 = vld [vmem:[#allocation19_spill] sm:$0xff]  ;;  %v13442_v20 = vpop.eup %8202 }
 0x88d   : > { %6403 = vst [vmem:[%s13389_s10 + $0x18] sm:$0xff] %v6203_v48  ;;  %6404 = vst [vmem:[%s13389_s10 + $0x20] sm:$0xff] %v6204_v59  ;;  %v6191_v6 = vadd.f32 %v13418_v7, %v6190_v46  ;;  %v6214_v27 = vmul.f32 %v13384_v44, %v14939_v57  ;;  %v6215_v38 = vmul.f32 %v13384_v44, %v14940_v2  ;;  %v14941_v59 = vld [vmem:[#allocation18_spill] sm:$0xff]  ;;  %v14943_v57 = vld [vmem:[#allocation37_spill] sm:$0xff] }
 0x88e   : > { %6405 = vst [vmem:[%s13389_s10 + $0x28] sm:$0xff] %v6205_v25  ;;  %6406 = vst [vmem:[%s13389_s10 + $0x30] sm:$0xff] %v6206_v33  ;;  %v6216_v15 = vmul.f32 %v13384_v44, %v12503_v51  ;;  %v6217_v48 = vmul.f32 %v13384_v44, %v12510_v36  ;;  %v6218_v25 = vmul.f32 %v13384_v44, %v14941_v59  ;;  %v14942_v33 = vld [vmem:[#allocation20_spill] sm:$0xff] }
 0x88f   : > { %6407 = vst [vmem:[%s13389_s10 + $0x38] sm:$0xff] %v6207_v39  ;;  %6408 = vst [vmem:[%s13389_s10 + $0x40] sm:$0xff] %v6208_v49  ;;  %v6219_v46 = vmul.f32 %v13384_v44, %v14942_v33  ;;  %v6220_v51 = vmul.f32 %v13384_v44, %v14943_v57  ;;  %v6192_v39 = vadd.f32 %v13442_v20, %v6191_v6  ;;  %v14947_v6 = vld [vmem:[#allocation134_spill] sm:$0xff] }
 0x890   : > { %6409 = vst [vmem:[%s13389_s10 + $0x48] sm:$0xff] %v6209_v24  ;;  %6410 = vst [vmem:[%s13389_s10 + $0x50] sm:$0xff] %v6210_v40  ;;  %v6221_v36 = vmul.f32 %v13384_v44, %v12533_v53  ;;  %v6222_v49 = vmul.f32 %v13384_v44, %v12548_v56  ;;  %v6223_v24 = vmul.f32 %v13384_v44, %v12559_v41  ;;  %v14945_v41 = vld [vmem:[#allocation74_spill] sm:$0xff] }
 0x891   : > { %6411 = vst [vmem:[%s13389_s10 + $0x58] sm:$0xff] %v6211_v10  ;;  %6412 = vst [vmem:[%s13389_s10 + $0x60] sm:$0xff] %v6212_v37  ;;  %v6224_v40 = vmul.f32 %v13384_v44, %v12569_v58  ;;  %v6225_v10 = vmul.f32 %v13384_v44, %v12579_v34  ;;  %v6226_v53 = vmul.f32 %v13384_v44, %v12589_v14  ;;  %v14944_v37 = vld [vmem:[#allocation66_spill] sm:$0xff]  ;;  %6193 = vadd.xlane.f32.xlu1 %v6192_v39 }
 0x892   : > { %6413 = vst [vmem:[%s13389_s10 + $0x68] sm:$0xff] %v6213_v50  ;;  %6414 = vst [vmem:[%s13389_s10 + $0x70] sm:$0xff] %v6214_v27  ;;  %v6227_v56 = vmul.f32 %v13384_v44, %v14944_v37  ;;  %v6228_v58 = vmul.f32 %v13384_v44, %v14945_v41  ;;  %v14946_v50 = vld [vmem:[#allocation100_spill] sm:$0xff]  ;;  %v6230_v14 = vmul.f32 %v13384_v44, %v14947_v6  ;;  %v14948_v27 = vld [vmem:[#allocation94_spill] sm:$0xff] }
 0x893   : > { %6415 = vst [vmem:[%s13389_s10 + $0x78] sm:$0xff] %v6215_v38  ;;  %6416 = vst [vmem:[%s13389_s10 + $0x80] sm:$0xff] %v6216_v15  ;;  %v6229_v34 = vmul.f32 %v13384_v44, %v14946_v50  ;;  %v6231_v2 = vmul.f32 %v13384_v44, %v14948_v27  ;;  %v14949_v38 = vld [vmem:[#allocation5_spill] sm:$0xff]  ;;  %v6236_v57 = vmul.f32 %v13384_v44, %v12691_v42  ;;  %v14952_v42 = vld [vmem:[#allocation39_spill] sm:$0xff] }
 0x894   : > { %6417 = vst [vmem:[%s13389_s10 + $0x88] sm:$0xff] %v6217_v48  ;;  %6418 = vst [vmem:[%s13389_s10 + $0x90] sm:$0xff] %v6218_v25  ;;  %v6232_v15 = vmul.f32 %v13384_v44, %v14949_v38  ;;  %v14950_v48 = vld [vmem:[#allocation23_spill] sm:$0xff]  ;;  %v14951_v25 = vld [vmem:[#allocation24_spill] sm:$0xff]  ;;  %v6238_v39 = vmul.f32 %v13384_v44, %v12711_v35 }
 0x895   : > { %6419 = vst [vmem:[%s13389_s10 + $0x98] sm:$0xff] %v6219_v46  ;;  %6420 = vst [vmem:[%s13389_s10 + $0xa0] sm:$0xff] %v6220_v51  ;;  %v6233_v59 = vmul.f32 %v13384_v44, %v14950_v48  ;;  %v6234_v33 = vmul.f32 %v13384_v44, %v14951_v25  ;;  %v6235_v46 = vmul.f32 %v13384_v44, %v12681_v62 }
 0x896   : > { %6421 = vst [vmem:[%s13389_s10 + $0xa8] sm:$0xff] %v6221_v36  ;;  %6422 = vst [vmem:[%s13389_s10 + $0xb0] sm:$0xff] %v6222_v49  ;;  %v6237_v51 = vmul.f32 %v13384_v44, %v12701_v13  ;;  %v6239_v62 = vmul.f32 %v13384_v44, %v12721_v23  ;;  %v14953_v44 = vld [vmem:[#allocation38_spill] sm:$0xff]  ;;  %v14954_v49 = vld [vmem:[#allocation40_spill] sm:$0xff] }
 0x897   : > { %6423 = vst [vmem:[%s13389_s10 + $0xb8] sm:$0xff] %v6223_v24  ;;  %6424 = vst [vmem:[%s13389_s10 + $0xc0] sm:$0xff] %v6224_v40  ;;  %v14955_v40 = vld [vmem:[#allocation110_spill] sm:$0xff] }
 0x898   : > { %6425 = vst [vmem:[%s13389_s10 + $0xc8] sm:$0xff] %v6225_v10  ;;  %6426 = vst [vmem:[%s13389_s10 + $0xd0] sm:$0xff] %v6226_v53  ;;  %v14956_v53 = vld [vmem:[#allocation53_spill] sm:$0xff] }
 0x899   : > { %6427 = vst [vmem:[%s13389_s10 + $0xd8] sm:$0xff] %v6227_v56  ;;  %6428 = vst [vmem:[%s13389_s10 + $0xe0] sm:$0xff] %v6228_v58  ;;  %v14957_v56 = vld [vmem:[#allocation49_spill] sm:$0xff]  ;;  %v14958_v58 = vld [vmem:[#allocation59_spill] sm:$0xff] }
 0x89a   : > { %6429 = vst [vmem:[%s13389_s10 + $0xe8] sm:$0xff] %v6229_v34  ;;  %6430 = vst [vmem:[%s13389_s10 + $0xf0] sm:$0xff] %v6230_v14  ;;  %v14959_v34 = vld [vmem:[#allocation68_spill] sm:$0xff]  ;;  %v14960_v14 = vld [vmem:[#allocation82_spill] sm:$0xff] }
 0x89b   : > { %6431 = vst [vmem:[%s13389_s10 + $0xf8] sm:$0xff] %v6231_v2  ;;  %6432 = vst [vmem:[%s13389_s10 + $0x100] sm:$0xff] %v6232_v15  ;;  %v14961_v2 = vld [vmem:[#allocation87_spill] sm:$0xff]  ;;  %v14962_v15 = vld [vmem:[#allocation89_spill] sm:$0xff] }
 0x89c   : > { %6433 = vst [vmem:[%s13389_s10 + $0x108] sm:$0xff] %v6233_v59  ;;  %6434 = vst [vmem:[%s13389_s10 + $0x110] sm:$0xff] %v6234_v33  ;;  %v14963_v59 = vld [vmem:[#allocation4_spill] sm:$0xff]  ;;  %v14964_v33 = vld [vmem:[#allocation21_spill] sm:$0xff] }
 0x89d   : > { %6435 = vst [vmem:[%s13389_s10 + $0x118] sm:$0xff] %v6235_v46  ;;  %6436 = vst [vmem:[%s13389_s10 + $0x120] sm:$0xff] %v6236_v57  ;;  %v14965_v57 = vld [vmem:[#allocation22_spill] sm:$0xff] }
 0x89e   : > { %6437 = vst [vmem:[%s13389_s10 + $0x128] sm:$0xff] %v6237_v51  ;;  %6438 = vst [vmem:[%s13389_s10 + $0x130] sm:$0xff] %v6238_v39  ;;  %v14966_v39 = vld [vmem:[#allocation41_spill] sm:$0xff] }
 0x89f   : > { %6440 = vst.msk [vmem:[%s13389_s10 + $0x138] sm:$0xff] %vm6439_vm0, %v6239_v62 }
 0x8a0   : > { %v6071_v13 = vpop.xlane.xlu0 %6070 }
 0x8a1   : > { %8204 = vrcp.f32 %v6071_v13  ;;  %v14967_v13 = vld [vmem:[#allocation43_spill] sm:$0xff] }
 0x8ae   : > { %v13522_v35 = vpop.eup %8204 }
 0x8af   : > { %v6240_v23 = vmul.f32 %v13522_v35, %v14952_v42  ;;  %v6241_v36 = vmul.f32 %v13522_v35, %v14953_v44  ;;  %v6242_v24 = vmul.f32 %v13522_v35, %v14954_v49  ;;  %v6243_v10 = vmul.f32 %v13522_v35, %v14955_v40 }
 0x8b0   : > { %v6244_v37 = vmul.f32 %v13522_v35, %v14956_v53  ;;  %v6245_v41 = vmul.f32 %v13522_v35, %v14957_v56  ;;  %v6246_v50 = vmul.f32 %v13522_v35, %v14958_v58  ;;  %v6247_v6 = vmul.f32 %v13522_v35, %v14959_v34  ;;  %v14971_v53 = vld [vmem:[#allocation117_spill] sm:$0xff]  ;;  %v14973_v34 = vld [vmem:[#allocation78_spill] sm:$0xff] }
 0x8b1   : > { %v6248_v27 = vmul.f32 %v13522_v35, %v14960_v14  ;;  %v6249_v38 = vmul.f32 %v13522_v35, %v14961_v2  ;;  %v6250_v48 = vmul.f32 %v13522_v35, %v14962_v15  ;;  %v6251_v25 = vmul.f32 %v13522_v35, %v14963_v59  ;;  %6441 = vst [vmem:[%s13389_s10 + $0x140] sm:$0xff] %v6240_v23  ;;  %v14968_v23 = vld [vmem:[#allocation42_spill] sm:$0xff]  ;;  %v14975_v14 = vld [vmem:[#allocation91_spill] sm:$0xff] }
 0x8b2   : > { %6442 = vst [vmem:[%s13389_s10 + $0x148] sm:$0xff] %v6241_v36  ;;  %6443 = vst [vmem:[%s13389_s10 + $0x150] sm:$0xff] %v6242_v24  ;;  %v6252_v46 = vmul.f32 %v13522_v35, %v14964_v33  ;;  %v6253_v51 = vmul.f32 %v13522_v35, %v14965_v57  ;;  %v6254_v62 = vmul.f32 %v13522_v35, %v14966_v39  ;;  %v14969_v36 = vld [vmem:[#allocation44_spill] sm:$0xff]  ;;  %v14970_v24 = vld [vmem:[#allocation113_spill] sm:$0xff] }
 0x8b3   : > { %6444 = vst [vmem:[%s13389_s10 + $0x158] sm:$0xff] %v6243_v10  ;;  %v6255_v42 = vmul.f32 %v13522_v35, %v14967_v13  ;;  %6445 = vst [vmem:[%s13389_s10 + $0x160] sm:$0xff] %v6244_v37  ;;  %v6256_v44 = vmul.f32 %v13522_v35, %v14968_v23  ;;  %v6257_v49 = vmul.f32 %v13522_v35, %v14969_v36  ;;  %v14979_v33 = vld [vmem:[#allocation47_spill] sm:$0xff]  ;;  %v14982_v13 = vld [vmem:[#allocation122_spill] sm:$0xff] }
 0x8b4   : > { %6446 = vst [vmem:[%s13389_s10 + $0x168] sm:$0xff] %v6245_v41  ;;  %6447 = vst [vmem:[%s13389_s10 + $0x170] sm:$0xff] %v6246_v50  ;;  %v6258_v40 = vmul.f32 %v13522_v35, %v14970_v24  ;;  %v6259_v10 = vmul.f32 %v13522_v35, %v12725_v61  ;;  %v6260_v37 = vmul.f32 %v13522_v35, %v14971_v53  ;;  %v14972_v50 = vld [vmem:[#allocation73_spill] sm:$0xff]  ;;  %v14983_v23 = vld [vmem:[#allocation64_spill] sm:$0xff] }
 0x8b5   : > { %6448 = vst [vmem:[%s13389_s10 + $0x178] sm:$0xff] %v6247_v6  ;;  %6449 = vst [vmem:[%s13389_s10 + $0x180] sm:$0xff] %v6248_v27  ;;  %v6261_v56 = vmul.f32 %v13522_v35, %v12735_v55  ;;  %v6262_v41 = vmul.f32 %v13522_v35, %v12750_v18  ;;  %v6263_v61 = vmul.f32 %v13522_v35, %v12761_v52  ;;  %v14974_v6 = vld [vmem:[#allocation86_spill] sm:$0xff]  ;;  %v14976_v27 = vld [vmem:[#allocation7_spill] sm:$0xff] }
 0x8b6   : > { %6450 = vst [vmem:[%s13389_s10 + $0x188] sm:$0xff] %v6249_v38  ;;  %6451 = vst [vmem:[%s13389_s10 + $0x190] sm:$0xff] %v6250_v48  ;;  %v6264_v58 = vmul.f32 %v13522_v35, %v12771_v16  ;;  %v6265_v55 = vmul.f32 %v13522_v35, %v12781_v22  ;;  %v6266_v18 = vmul.f32 %v13522_v35, %v12791_v43  ;;  %v14977_v38 = vld [vmem:[#allocation8_spill] sm:$0xff]  ;;  %v14978_v48 = vld [vmem:[#allocation27_spill] sm:$0xff] }
 0x8b7   : > { %6452 = vst [vmem:[%s13389_s10 + $0x198] sm:$0xff] %v6251_v25  ;;  %6453 = vst [vmem:[%s13389_s10 + $0x1a0] sm:$0xff] %v6252_v46  ;;  %v6267_v52 = vmul.f32 %v13522_v35, %v14972_v50  ;;  %v6268_v16 = vmul.f32 %v13522_v35, %v14973_v34  ;;  %v6269_v22 = vmul.f32 %v13522_v35, %v14974_v6  ;;  %v14984_v36 = vld [vmem:[#allocation126_spill] sm:$0xff] }
 0x8b8   : > { %6454 = vst [vmem:[%s13389_s10 + $0x1a8] sm:$0xff] %v6253_v51  ;;  %6455 = vst [vmem:[%s13389_s10 + $0x1b0] sm:$0xff] %v6254_v62  ;;  %v6270_v43 = vmul.f32 %v13522_v35, %v14975_v14  ;;  %v6271_v2 = vmul.f32 %v13522_v35, %v14976_v27  ;;  %v6272_v15 = vmul.f32 %v13522_v35, %v14977_v38  ;;  %v14985_v24 = vld [vmem:[#allocation70_spill] sm:$0xff] }
 0x8b9   : > { %6456 = vst [vmem:[%s13389_s10 + $0x1b8] sm:$0xff] %v6255_v42  ;;  %6457 = vst [vmem:[%s13389_s10 + $0x1c0] sm:$0xff] %v6256_v44  ;;  %v6273_v59 = vmul.f32 %v13522_v35, %v14978_v48  ;;  %v6274_v25 = vmul.f32 %v13522_v35, %v12873_v11  ;;  %v6275_v46 = vmul.f32 %v13522_v35, %v14979_v33  ;;  %v14998_v33 = vld [vmem:[#allocation115_spill] sm:$0xff] }
 0x8ba   : > { %6458 = vst [vmem:[%s13389_s10 + $0x1c8] sm:$0xff] %v6257_v49  ;;  %6459 = vst [vmem:[%s13389_s10 + $0x1d0] sm:$0xff] %v6258_v40  ;;  %v6276_v57 = vmul.f32 %v13522_v35, %v12893_v60  ;;  %v6277_v51 = vmul.f32 %v13522_v35, %v12903_v26  ;;  %v6278_v11 = vmul.f32 %v13522_v35, %v12913_v19  ;;  %v14980_v60 = vld [vmem:[#allocation57_spill] sm:$0xff] }
 0x8bb   : > { %6460 = vst [vmem:[%s13389_s10 + $0x1d8] sm:$0xff] %v6259_v10  ;;  %6461 = vst [vmem:[%s13389_s10 + $0x1e0] sm:$0xff] %v6260_v37  ;;  %v6279_v39 = vmul.f32 %v13522_v35, %v12923_v9  ;;  %v14981_v35 = vld [vmem:[#allocation54_spill] sm:$0xff]  ;;  %v14986_v10 = vld [vmem:[#allocation127_spill] sm:$0xff] }
 0x8bc   : > { %6462 = vst [vmem:[%s13389_s10 + $0x1e8] sm:$0xff] %v6261_v56  ;;  %6463 = vst [vmem:[%s13389_s10 + $0x1f0] sm:$0xff] %v6262_v41  ;;  %v14987_v37 = vld [vmem:[#allocation132_spill] sm:$0xff]  ;;  %v14988_v41 = vld [vmem:[#allocation101_spill] sm:$0xff] }
 0x8bd   : > { %6464 = vst [vmem:[%s13389_s10 + $0x1f8] sm:$0xff] %v6263_v61  ;;  %6465 = vst [vmem:[%s13389_s10 + $0x200] sm:$0xff] %v6264_v58  ;;  %v14989_v58 = vld [vmem:[#allocation102_spill] sm:$0xff] }
 0x8be   : > { %6466 = vst [vmem:[%s13389_s10 + $0x208] sm:$0xff] %v6265_v55  ;;  %6467 = vst [vmem:[%s13389_s10 + $0x210] sm:$0xff] %v6266_v18  ;;  %v14990_v18 = vld [vmem:[#allocation93_spill] sm:$0xff] }
 0x8bf   : > { %6468 = vst [vmem:[%s13389_s10 + $0x218] sm:$0xff] %v6267_v52  ;;  %6469 = vst [vmem:[%s13389_s10 + $0x220] sm:$0xff] %v6268_v16  ;;  %v14991_v52 = vld [vmem:[#allocation6_spill] sm:$0xff]  ;;  %v14992_v16 = vld [vmem:[#allocation25_spill] sm:$0xff] }
 0x8c0   : > { %6470 = vst [vmem:[%s13389_s10 + $0x228] sm:$0xff] %v6269_v22  ;;  %6471 = vst [vmem:[%s13389_s10 + $0x230] sm:$0xff] %v6270_v43  ;;  %v14993_v22 = vld [vmem:[#allocation26_spill] sm:$0xff]  ;;  %v14994_v43 = vld [vmem:[#allocation28_spill] sm:$0xff] }
 0x8c1   : > { %6472 = vst [vmem:[%s13389_s10 + $0x238] sm:$0xff] %v6271_v2  ;;  %6473 = vst [vmem:[%s13389_s10 + $0x240] sm:$0xff] %v6272_v15  ;;  %v14995_v2 = vld [vmem:[#allocation50_spill] sm:$0xff]  ;;  %v14996_v15 = vld [vmem:[#allocation48_spill] sm:$0xff] }
 0x8c2   : > { %6474 = vst [vmem:[%s13389_s10 + $0x248] sm:$0xff] %v6273_v59  ;;  %6475 = vst [vmem:[%s13389_s10 + $0x250] sm:$0xff] %v6274_v25  ;;  %v14997_v59 = vld [vmem:[#allocation51_spill] sm:$0xff] }
 0x8c3   : > { %6476 = vst [vmem:[%s13389_s10 + $0x258] sm:$0xff] %v6275_v46  ;;  %6477 = vst [vmem:[%s13389_s10 + $0x260] sm:$0xff] %v6276_v57 }
 0x8c4   : > { %6478 = vst [vmem:[%s13389_s10 + $0x268] sm:$0xff] %v6277_v51  ;;  %6479 = vst [vmem:[%s13389_s10 + $0x270] sm:$0xff] %v6278_v11  ;;  %v14999_v51 = vld [vmem:[#allocation119_spill] sm:$0xff] }
 0x8c5   : > { %6480 = vst.msk [vmem:[%s13389_s10 + $0x278] sm:$0xff] %vm6439_vm0, %v6279_v39 }
 0x8c7   : > { %v6112_v26 = vpop.xlane.xlu1 %6111 }
 0x8c8   : > { %8206 = vrcp.f32 %v6112_v26 }
 0x8d5   : > { %v13645_v19 = vpop.eup %8206 }
 0x8d6   : > { %v6280_v9 = vmul.f32 %v13645_v19, %v14980_v60  ;;  %v6281_v62 = vmul.f32 %v13645_v19, %v14981_v35  ;;  %v6282_v42 = vmul.f32 %v13645_v19, %v14982_v13  ;;  %v6283_v44 = vmul.f32 %v13645_v19, %v14983_v23  ;;  %v15001_v35 = vld [vmem:[#allocation84_spill] sm:$0xff]  ;;  %v15003_v13 = vld [vmem:[#allocation107_spill] sm:$0xff] }
 0x8d7   : > { %v6284_v49 = vmul.f32 %v13645_v19, %v14984_v36  ;;  %v6285_v40 = vmul.f32 %v13645_v19, %v14985_v24  ;;  %v6286_v53 = vmul.f32 %v13645_v19, %v14986_v10  ;;  %v6287_v56 = vmul.f32 %v13645_v19, %v14987_v37 }
 0x8d8   : > { %v6288_v61 = vmul.f32 %v13645_v19, %v14988_v41  ;;  %v6289_v55 = vmul.f32 %v13645_v19, %v14989_v58  ;;  %v6290_v50 = vmul.f32 %v13645_v19, %v14990_v18  ;;  %v6291_v34 = vmul.f32 %v13645_v19, %v14991_v52  ;;  %6481 = vst [vmem:[%s13389_s10 + $0x280] sm:$0xff] %v6280_v9  ;;  %v15000_v9 = vld [vmem:[#allocation79_spill] sm:$0xff] }
 0x8d9   : > { %6482 = vst [vmem:[%s13389_s10 + $0x288] sm:$0xff] %v6281_v62  ;;  %6483 = vst [vmem:[%s13389_s10 + $0x290] sm:$0xff] %v6282_v42  ;;  %v6292_v6 = vmul.f32 %v13645_v19, %v14992_v16  ;;  %v6293_v14 = vmul.f32 %v13645_v19, %v14993_v22  ;;  %v6294_v27 = vmul.f32 %v13645_v19, %v14994_v43  ;;  %v15002_v62 = vld [vmem:[#allocation92_spill] sm:$0xff]  ;;  %v15004_v42 = vld [vmem:[#allocation11_spill] sm:$0xff] }
 0x8da   : > { %6484 = vst [vmem:[%s13389_s10 + $0x298] sm:$0xff] %v6283_v44  ;;  %v6295_v38 = vmul.f32 %v13645_v19, %v14995_v2  ;;  %6485 = vst [vmem:[%s13389_s10 + $0x2a0] sm:$0xff] %v6284_v49  ;;  %v6296_v48 = vmul.f32 %v13645_v19, %v14996_v15  ;;  %v6297_v25 = vmul.f32 %v13645_v19, %v14997_v59  ;;  %v15005_v44 = vld [vmem:[#allocation12_spill] sm:$0xff]  ;;  %v15006_v49 = vld [vmem:[#allocation31_spill] sm:$0xff] }
 0x8db   : > { %6486 = vst [vmem:[%s13389_s10 + $0x2a8] sm:$0xff] %v6285_v40  ;;  %6487 = vst [vmem:[%s13389_s10 + $0x2b0] sm:$0xff] %v6286_v53  ;;  %v6298_v46 = vmul.f32 %v13645_v19, %v14998_v33  ;;  %v6299_v57 = vmul.f32 %v13645_v19, %v12927_v8  ;;  %v6300_v11 = vmul.f32 %v13645_v19, %v14999_v51  ;;  %v15007_v40 = vld [vmem:[#allocation32_spill] sm:$0xff]  ;;  %v15008_v53 = vld [vmem:[#allocation61_spill] sm:$0xff] }
 0x8dc   : > { %6488 = vst [vmem:[%s13389_s10 + $0x2b8] sm:$0xff] %v6287_v56  ;;  %6489 = vst [vmem:[%s13389_s10 + $0x2c0] sm:$0xff] %v6288_v61  ;;  %v6301_v39 = vmul.f32 %v13645_v19, %v12937_v63  ;;  %v6302_v26 = vmul.f32 %v13645_v19, %v12952_v12  ;;  %v6303_v8 = vmul.f32 %v13645_v19, %v12963_v5  ;;  %v15009_v56 = vld [vmem:[#allocation62_spill] sm:$0xff]  ;;  %v15010_v61 = vld [vmem:[#allocation123_spill] sm:$0xff] }
 0x8dd   : > { %6490 = vst [vmem:[%s13389_s10 + $0x2c8] sm:$0xff] %v6289_v55  ;;  %6491 = vst [vmem:[%s13389_s10 + $0x2d0] sm:$0xff] %v6290_v50  ;;  %v6304_v60 = vmul.f32 %v13645_v19, %v12973_v54  ;;  %v6305_v63 = vmul.f32 %v13645_v19, %v12983_v28  ;;  %v6306_v12 = vmul.f32 %v13645_v19, %v12993_v3  ;;  %v15011_v55 = vld [vmem:[#allocation69_spill] sm:$0xff]  ;;  %v15014_v22 = vld [vmem:[#allocation63_spill] sm:$0xff] }
 0x8de   : > { %6492 = vst [vmem:[%s13389_s10 + $0x2d8] sm:$0xff] %v6291_v34  ;;  %6493 = vst [vmem:[%s13389_s10 + $0x2e0] sm:$0xff] %v6292_v6  ;;  %v6307_v5 = vmul.f32 %v13645_v19, %v15000_v9  ;;  %v6308_v54 = vmul.f32 %v13645_v19, %v15001_v35  ;;  %v6309_v28 = vmul.f32 %v13645_v19, %v15002_v62  ;;  %v15012_v50 = vld [vmem:[#allocation77_spill] sm:$0xff]  ;;  %v15016_v2 = vld [vmem:[#allocation71_spill] sm:$0xff] }
 0x8df   : > { %6494 = vst [vmem:[%s13389_s10 + $0x2e8] sm:$0xff] %v6293_v14  ;;  %6495 = vst [vmem:[%s13389_s10 + $0x2f0] sm:$0xff] %v6294_v27  ;;  %v6310_v3 = vmul.f32 %v13645_v19, %v15003_v13  ;;  %v6311_v23 = vmul.f32 %v13645_v19, %v15004_v42  ;;  %v6312_v36 = vmul.f32 %v13645_v19, %v15005_v44  ;;  %v15015_v43 = vld [vmem:[#allocation125_spill] sm:$0xff]  ;;  %v15018_v59 = vld [vmem:[#allocation75_spill] sm:$0xff] }
 0x8e0   : > { %6496 = vst [vmem:[%s13389_s10 + $0x2f8] sm:$0xff] %v6295_v38  ;;  %6497 = vst [vmem:[%s13389_s10 + $0x300] sm:$0xff] %v6296_v48  ;;  %v6313_v24 = vmul.f32 %v13645_v19, %v15006_v49  ;;  %v6314_v10 = vmul.f32 %v13645_v19, %v15007_v40  ;;  %v6315_v37 = vmul.f32 %v13645_v19, %v15008_v53  ;;  %v15017_v15 = vld [vmem:[#allocation129_spill] sm:$0xff]  ;;  %v15019_v33 = vld [vmem:[#allocation131_spill] sm:$0xff] }
 0x8e1   : > { %6498 = vst [vmem:[%s13389_s10 + $0x308] sm:$0xff] %v6297_v25  ;;  %6499 = vst [vmem:[%s13389_s10 + $0x310] sm:$0xff] %v6298_v46  ;;  %v6316_v41 = vmul.f32 %v13645_v19, %v15009_v56  ;;  %v6317_v58 = vmul.f32 %v13645_v19, %v15010_v61  ;;  %v6318_v18 = vmul.f32 %v13645_v19, %v15011_v55  ;;  %v15035_v55 = vld [vmem:[#allocation105_spill] sm:$0xff] }
 0x8e2   : > { %6500 = vst [vmem:[%s13389_s10 + $0x318] sm:$0xff] %v6299_v57  ;;  %6501 = vst [vmem:[%s13389_s10 + $0x320] sm:$0xff] %v6300_v11  ;;  %v6319_v52 = vmul.f32 %v13645_v19, %v15012_v50  ;;  %v15013_v19 = vld [vmem:[#allocation65_spill] sm:$0xff]  ;;  %v15020_v57 = vld [vmem:[#allocation104_spill] sm:$0xff] }
 0x8e3   : > { %6502 = vst [vmem:[%s13389_s10 + $0x328] sm:$0xff] %v6301_v39  ;;  %6503 = vst [vmem:[%s13389_s10 + $0x330] sm:$0xff] %v6302_v26  ;;  %v15021_v11 = vld [vmem:[#allocation103_spill] sm:$0xff] }
 0x8e4   : > { %6504 = vst [vmem:[%s13389_s10 + $0x338] sm:$0xff] %v6303_v8  ;;  %6505 = vst [vmem:[%s13389_s10 + $0x340] sm:$0xff] %v6304_v60  ;;  %v15022_v26 = vld [vmem:[#allocation95_spill] sm:$0xff]  ;;  %v15023_v60 = vld [vmem:[#allocation9_spill] sm:$0xff] }
 0x8e5   : > { %6506 = vst [vmem:[%s13389_s10 + $0x348] sm:$0xff] %v6305_v63  ;;  %6507 = vst [vmem:[%s13389_s10 + $0x350] sm:$0xff] %v6306_v12  ;;  %v15024_v12 = vld [vmem:[#allocation10_spill] sm:$0xff] }
 0x8e6   : > { %6508 = vst [vmem:[%s13389_s10 + $0x358] sm:$0xff] %v6307_v5  ;;  %6509 = vst [vmem:[%s13389_s10 + $0x360] sm:$0xff] %v6308_v54  ;;  %v15025_v5 = vld [vmem:[#allocation29_spill] sm:$0xff]  ;;  %v15026_v54 = vld [vmem:[#allocation30_spill] sm:$0xff] }
 0x8e7   : > { %6510 = vst [vmem:[%s13389_s10 + $0x368] sm:$0xff] %v6309_v28  ;;  %6511 = vst [vmem:[%s13389_s10 + $0x370] sm:$0xff] %v6310_v3  ;;  %v15027_v28 = vld [vmem:[#allocation55_spill] sm:$0xff]  ;;  %v15028_v3 = vld [vmem:[#allocation56_spill] sm:$0xff] }
 0x8e8   : > { %6512 = vst [vmem:[%s13389_s10 + $0x378] sm:$0xff] %v6311_v23  ;;  %6513 = vst [vmem:[%s13389_s10 + $0x380] sm:$0xff] %v6312_v36  ;;  %v15029_v23 = vld [vmem:[#allocation120_spill] sm:$0xff] }
 0x8e9   : > { %6514 = vst [vmem:[%s13389_s10 + $0x388] sm:$0xff] %v6313_v24  ;;  %6515 = vst [vmem:[%s13389_s10 + $0x390] sm:$0xff] %v6314_v10  ;;  %v15030_v36 = vld [vmem:[#allocation72_spill] sm:$0xff]  ;;  %v15031_v24 = vld [vmem:[#allocation130_spill] sm:$0xff] }
 0x8ea   : > { %6516 = vst [vmem:[%s13389_s10 + $0x398] sm:$0xff] %v6315_v37  ;;  %6517 = vst [vmem:[%s13389_s10 + $0x3a0] sm:$0xff] %v6316_v41  ;;  %v15032_v10 = vld [vmem:[#allocation133_spill] sm:$0xff]  ;;  %v15033_v37 = vld [vmem:[#allocation80_spill] sm:$0xff] }
 0x8eb   : > { %6518 = vst [vmem:[%s13389_s10 + $0x3a8] sm:$0xff] %v6317_v58  ;;  %6519 = vst [vmem:[%s13389_s10 + $0x3b0] sm:$0xff] %v6318_v18  ;;  %v15034_v41 = vld [vmem:[#allocation106_spill] sm:$0xff] }
 0x8ec   : > { %6520 = vst.msk [vmem:[%s13389_s10 + $0x3b8] sm:$0xff] %vm6439_vm0, %v6319_v52 }
 0x8ef   : > { %v6153_v34 = vpop.xlane.xlu0 %6152 }
 0x8f0   : > { %8208 = vrcp.f32 %v6153_v34  ;;  %v15036_v34 = vld [vmem:[#allocation138_spill] sm:$0xff] }
 0x8fd   : > { %v13768_v16 = vpop.eup %8208 }
 0x8fe   : > { %v6320_v6 = vmul.f32 %v13768_v16, %v15013_v19  ;;  %v6321_v14 = vmul.f32 %v13768_v16, %v15014_v22  ;;  %v6322_v27 = vmul.f32 %v13768_v16, %v15015_v43  ;;  %v6323_v38 = vmul.f32 %v13768_v16, %v15016_v2  ;;  %v15037_v22 = vld [vmem:[#allocation16_spill] sm:$0xff]  ;;  %v15039_v43 = vld [vmem:[#allocation35_spill] sm:$0xff] }
 0x8ff   : > { %v6324_v48 = vmul.f32 %v13768_v16, %v15017_v15  ;;  %v6325_v25 = vmul.f32 %v13768_v16, %v15018_v59  ;;  %v6326_v46 = vmul.f32 %v13768_v16, %v15019_v33  ;;  %v6327_v51 = vmul.f32 %v13768_v16, %v15020_v57  ;;  %v15041_v2 = vld [vmem:[#allocation151_spill] sm:$0xff] }
 0x900   : > { %v6328_v39 = vmul.f32 %v13768_v16, %v15021_v11  ;;  %v6329_v8 = vmul.f32 %v13768_v16, %v15022_v26  ;;  %v6330_v63 = vmul.f32 %v13768_v16, %v15023_v60  ;;  %v6331_v9 = vmul.f32 %v13768_v16, %v15024_v12  ;;  %6521 = vst [vmem:[%s13389_s10 + $0x3c0] sm:$0xff] %v6320_v6 }
 0x901   : > { %6522 = vst [vmem:[%s13389_s10 + $0x3c8] sm:$0xff] %v6321_v14  ;;  %6523 = vst [vmem:[%s13389_s10 + $0x3d0] sm:$0xff] %v6322_v27  ;;  %v6332_v35 = vmul.f32 %v13768_v16, %v15025_v5  ;;  %v6333_v62 = vmul.f32 %v13768_v16, %v15026_v54  ;;  %v6334_v13 = vmul.f32 %v13768_v16, %v15027_v28  ;;  %v15038_v14 = vld [vmem:[#allocation33_spill] sm:$0xff] }
 0x902   : > { %6524 = vst [vmem:[%s13389_s10 + $0x3d8] sm:$0xff] %v6323_v38  ;;  %v6335_v42 = vmul.f32 %v13768_v16, %v15028_v3  ;;  %6525 = vst [vmem:[%s13389_s10 + $0x3e0] sm:$0xff] %v6324_v48  ;;  %v6336_v44 = vmul.f32 %v13768_v16, %v15029_v23  ;;  %v6337_v49 = vmul.f32 %v13768_v16, %v15030_v36  ;;  %v15042_v48 = vld [vmem:[#allocation118_spill] sm:$0xff] }
 0x903   : > { %6526 = vst [vmem:[%s13389_s10 + $0x3e8] sm:$0xff] %v6325_v25  ;;  %6527 = vst [vmem:[%s13389_s10 + $0x3f0] sm:$0xff] %v6326_v46  ;;  %v6338_v40 = vmul.f32 %v13768_v16, %v15031_v24  ;;  %v6339_v53 = vmul.f32 %v13768_v16, %v15032_v10  ;;  %v6340_v56 = vmul.f32 %v13768_v16, %v15033_v37  ;;  %v15044_v46 = vld [vmem:[#allocation108_spill] sm:$0xff] }
 0x904   : > { %6528 = vst [vmem:[%s13389_s10 + $0x3f8] sm:$0xff] %v6327_v51  ;;  %6529 = vst [vmem:[%s13389_s10 + $0x400] sm:$0xff] %v6328_v39  ;;  %v6341_v61 = vmul.f32 %v13768_v16, %v15034_v41  ;;  %v6342_v58 = vmul.f32 %v13768_v16, %v13154_v47  ;;  %v6343_v18 = vmul.f32 %v13768_v16, %v15035_v55  ;;  %v15045_v51 = vld [vmem:[#allocation90_spill] sm:$0xff]  ;;  %v15046_v39 = vld [vmem:[#allocation97_spill] sm:$0xff] }
 0x905   : > { %6530 = vst [vmem:[%s13389_s10 + $0x408] sm:$0xff] %v6329_v8  ;;  %6531 = vst [vmem:[%s13389_s10 + $0x410] sm:$0xff] %v6330_v63  ;;  %v6344_v50 = vmul.f32 %v13768_v16, %v13175_v0  ;;  %v6345_v52 = vmul.f32 %v13768_v16, %v13185_v30  ;;  %v6346_v47 = vmul.f32 %v13768_v16, %v15036_v34  ;;  %v15047_v8 = vld [vmem:[#allocation109_spill] sm:$0xff]  ;;  %v15048_v63 = vld [vmem:[#allocation2_spill] sm:$0xff] }
 0x906   : > { %6532 = vst [vmem:[%s13389_s10 + $0x418] sm:$0xff] %v6331_v9  ;;  %6533 = vst [vmem:[%s13389_s10 + $0x420] sm:$0xff] %v6332_v35  ;;  %v6347_v19 = vmul.f32 %v13768_v16, %v13205_v31  ;;  %v6348_v0 = vmul.f32 %v13768_v16, %v13215_v1  ;;  %v6349_v30 = vmul.f32 %v13768_v16, %v13225_v4  ;;  %v15049_v9 = vld [vmem:[#allocation13_spill] sm:$0xff]  ;;  %v15050_v35 = vld [vmem:[#allocation116_spill] sm:$0xff] }
 0x907   : > { %6534 = vst [vmem:[%s13389_s10 + $0x428] sm:$0xff] %v6333_v62  ;;  %6535 = vst [vmem:[%s13389_s10 + $0x430] sm:$0xff] %v6334_v13  ;;  %v6350_v6 = vmul.f32 %v13768_v16, %v13233_v17  ;;  %v6351_v31 = vmul.f32 %v13768_v16, %v13241_v45  ;;  %v6352_v1 = vmul.f32 %v13768_v16, %v15037_v22  ;;  %v15040_v45 = vld [vmem:[#allocation34_spill] sm:$0xff]  ;;  %v15051_v62 = vld [vmem:[#allocation15_spill] sm:$0xff] }
 0x908   : > { %6536 = vst [vmem:[%s13389_s10 + $0x438] sm:$0xff] %v6335_v42  ;;  %6537 = vst [vmem:[%s13389_s10 + $0x440] sm:$0xff] %v6336_v44  ;;  %v6353_v4 = vmul.f32 %v13768_v16, %v15038_v14  ;;  %v6354_v17 = vmul.f32 %v13768_v16, %v15039_v43  ;;  %v6355_v27 = vmul.f32 %v13768_v16, %v15040_v45  ;;  %v15052_v13 = vld [vmem:[#allocation141_spill] sm:$0xff]  ;;  %v15053_v42 = vld [vmem:[#allocation14_spill] sm:$0xff] }
 0x909   : > { %6538 = vst [vmem:[%s13389_s10 + $0x448] sm:$0xff] %v6337_v49  ;;  %6539 = vst [vmem:[%s13389_s10 + $0x450] sm:$0xff] %v6338_v40  ;;  %v6356_v38 = vmul.f32 %v13768_v16, %v15041_v2  ;;  %v6357_v15 = vmul.f32 %v13768_v16, %v13289_v32  ;;  %v6358_v59 = vmul.f32 %v13768_v16, %v15042_v48  ;;  %v15054_v44 = vld [vmem:[#allocation142_spill] sm:$0xff]  ;;  %v15055_v49 = vld [vmem:[#allocation144_spill] sm:$0xff] }
 0x90a   : > { %6540 = vst [vmem:[%s13389_s10 + $0x458] sm:$0xff] %v6339_v53  ;;  %6541 = vst [vmem:[%s13389_s10 + $0x460] sm:$0xff] %v6340_v56  ;;  %v6359_v25 = vmul.f32 %v13768_v16, %v13305_v21  ;;  %v15043_v21 = vld [vmem:[#allocation85_spill] sm:$0xff]  ;;  %v15056_v40 = vld [vmem:[#allocation146_spill] sm:$0xff] }
 0x90b   : > { %6542 = vst [vmem:[%s13389_s10 + $0x468] sm:$0xff] %v6341_v61  ;;  %6543 = vst [vmem:[%s13389_s10 + $0x470] sm:$0xff] %v6342_v58  ;;  %v15057_v53 = vld [vmem:[#allocation149_spill] sm:$0xff]  ;;  %v15058_v56 = vld [vmem:[#allocation36_spill] sm:$0xff] }
 0x90c   : > { %6544 = vst [vmem:[%s13389_s10 + $0x478] sm:$0xff] %v6343_v18  ;;  %6545 = vst [vmem:[%s13389_s10 + $0x480] sm:$0xff] %v6344_v50  ;;  %v15059_v61 = vld [vmem:[#allocation111_spill] sm:$0xff]  ;;  %v15060_v55 = vld [vmem:[#allocation114_spill] sm:$0xff] }
 0x90d   : > { %6546 = vst [vmem:[%s13389_s10 + $0x488] sm:$0xff] %v6345_v52  ;;  %6547 = vst [vmem:[%s13389_s10 + $0x490] sm:$0xff] %v6346_v47  ;;  %v15061_v50 = vld [vmem:[#allocation154_spill] sm:$0xff]  ;;  %v15062_v34 = vld [vmem:[#allocation121_spill] sm:$0xff] }
 0x90e   : > { %6548 = vst [vmem:[%s13389_s10 + $0x498] sm:$0xff] %v6347_v19  ;;  %6549 = vst [vmem:[%s13389_s10 + $0x4a0] sm:$0xff] %v6348_v0  ;;  %v15063_v19 = vld [vmem:[#allocation124_spill] sm:$0xff]  ;;  %v15069_v2 = vld [vmem:[#allocation137_spill] sm:$0xff] }
 0x90f   : > { %6550 = vst [vmem:[%s13389_s10 + $0x4a8] sm:$0xff] %v6349_v30  ;;  %6551 = vst [vmem:[%s13389_s10 + $0x4b0] sm:$0xff] %v6350_v6  ;;  %v15064_v30 = vld [vmem:[#allocation128_spill] sm:$0xff] }
 0x910   : > { %6552 = vst [vmem:[%s13389_s10 + $0x4b8] sm:$0xff] %v6351_v31  ;;  %6553 = vst [vmem:[%s13389_s10 + $0x4c0] sm:$0xff] %v6352_v1  ;;  %v15065_v31 = vld [vmem:[#allocation98_spill] sm:$0xff]  ;;  %v15066_v1 = vld [vmem:[#allocation99_spill] sm:$0xff] }
 0x911   : > { %6554 = vst [vmem:[%s13389_s10 + $0x4c8] sm:$0xff] %v6353_v4  ;;  %6555 = vst [vmem:[%s13389_s10 + $0x4d0] sm:$0xff] %v6354_v17  ;;  %v15067_v4 = vld [vmem:[#allocation135_spill] sm:$0xff]  ;;  %v15068_v45 = vld [vmem:[#allocation136_spill] sm:$0xff] }
 0x912   : > { %6556 = vst [vmem:[%s13389_s10 + $0x4d8] sm:$0xff] %v6355_v27  ;;  %6557 = vst [vmem:[%s13389_s10 + $0x4e0] sm:$0xff] %v6356_v38 }
 0x913   : > { %6558 = vst [vmem:[%s13389_s10 + $0x4e8] sm:$0xff] %v6357_v15  ;;  %6559 = vst [vmem:[%s13389_s10 + $0x4f0] sm:$0xff] %v6358_v59  ;;  %v15070_v15 = vld [vmem:[#allocation112_spill] sm:$0xff]  ;;  %v15071_v59 = vld [vmem:[#allocation139_spill] sm:$0xff] }
 0x914   : > { %6560 = vst.msk [vmem:[%s13389_s10 + $0x4f8] sm:$0xff] %vm6439_vm0, %v6359_v25  ;;  %v15072_v25 = vld [vmem:[#allocation140_spill] sm:$0xff] }
 0x91a   : > { %v6194_v32 = vpop.xlane.xlu1 %6193 }
 0x91b   : > { %8210 = vrcp.f32 %v6194_v32 }
 0x928   : > { %v13891_v33 = vpop.eup %8210 }
 0x929   : > { %v6360_v16 = vmul.f32 %v13891_v33, %v15043_v21  ;;  %v6361_v57 = vmul.f32 %v13891_v33, %v15044_v46  ;;  %v6362_v11 = vmul.f32 %v13891_v33, %v15045_v51  ;;  %v6363_v26 = vmul.f32 %v13891_v33, %v15046_v39  ;;  %v15073_v21 = vld [vmem:[#allocation143_spill] sm:$0xff]  ;;  %v15074_v46 = vld [vmem:[#allocation145_spill] sm:$0xff]  ;;  %v15076_v39 = vld [vmem:[#allocation148_spill] sm:$0xff] }
 0x92a   : > { %v6364_v60 = vmul.f32 %v13891_v33, %v15047_v8  ;;  %v6365_v12 = vmul.f32 %v13891_v33, %v15048_v63  ;;  %v6366_v5 = vmul.f32 %v13891_v33, %v15049_v9  ;;  %v6367_v54 = vmul.f32 %v13891_v33, %v15050_v35  ;;  %v15075_v51 = vld [vmem:[#allocation147_spill] sm:$0xff]  ;;  %v15077_v8 = vld [vmem:[#allocation150_spill] sm:$0xff]  ;;  %v15078_v63 = vld [vmem:[#allocation152_spill] sm:$0xff] }
 0x92b   : > { %v6368_v28 = vmul.f32 %v13891_v33, %v15051_v62  ;;  %v6369_v3 = vmul.f32 %v13891_v33, %v15052_v13  ;;  %v6370_v23 = vmul.f32 %v13891_v33, %v15053_v42  ;;  %v6371_v36 = vmul.f32 %v13891_v33, %v15054_v44  ;;  %6561 = vst [vmem:[%s13389_s10 + $0x500] sm:$0xff] %v6360_v16  ;;  %v15079_v9 = vld [vmem:[#allocation153_spill] sm:$0xff] }
 0x92c   : > { %6562 = vst [vmem:[%s13389_s10 + $0x508] sm:$0xff] %v6361_v57  ;;  %6563 = vst [vmem:[%s13389_s10 + $0x510] sm:$0xff] %v6362_v11  ;;  %v6372_v24 = vmul.f32 %v13891_v33, %v15055_v49  ;;  %v6373_v10 = vmul.f32 %v13891_v33, %v15056_v40  ;;  %v6374_v37 = vmul.f32 %v13891_v33, %v15057_v53 }
 0x92d   : > { %6564 = vst [vmem:[%s13389_s10 + $0x518] sm:$0xff] %v6363_v26  ;;  %v6375_v41 = vmul.f32 %v13891_v33, %v15058_v56  ;;  %6565 = vst [vmem:[%s13389_s10 + $0x520] sm:$0xff] %v6364_v60  ;;  %v6376_v58 = vmul.f32 %v13891_v33, %v15059_v61  ;;  %v6377_v18 = vmul.f32 %v13891_v33, %v15060_v55 }
 0x92e   : > { %6566 = vst [vmem:[%s13389_s10 + $0x528] sm:$0xff] %v6365_v12  ;;  %6567 = vst [vmem:[%s13389_s10 + $0x530] sm:$0xff] %v6366_v5  ;;  %v6378_v52 = vmul.f32 %v13891_v33, %v15061_v50  ;;  %v6379_v47 = vmul.f32 %v13891_v33, %v15062_v34  ;;  %v6380_v0 = vmul.f32 %v13891_v33, %v15063_v19 }
 0x92f   : > { %6568 = vst [vmem:[%s13389_s10 + $0x538] sm:$0xff] %v6367_v54  ;;  %6569 = vst [vmem:[%s13389_s10 + $0x540] sm:$0xff] %v6368_v28  ;;  %v6381_v6 = vmul.f32 %v13891_v33, %v15064_v30  ;;  %v6382_v22 = vmul.f32 %v13891_v33, %v15065_v31  ;;  %v6383_v14 = vmul.f32 %v13891_v33, %v15066_v1 }
 0x930   : > { %6570 = vst [vmem:[%s13389_s10 + $0x548] sm:$0xff] %v6369_v3  ;;  %6571 = vst [vmem:[%s13389_s10 + $0x550] sm:$0xff] %v6370_v23  ;;  %v6384_v43 = vmul.f32 %v13891_v33, %v15067_v4  ;;  %v6385_v17 = vmul.f32 %v13891_v33, %v13340_v29  ;;  %v6386_v27 = vmul.f32 %v13891_v33, %v15068_v45 }
 0x931   : > { %6572 = vst [vmem:[%s13389_s10 + $0x558] sm:$0xff] %v6371_v36  ;;  %6573 = vst [vmem:[%s13389_s10 + $0x560] sm:$0xff] %v6372_v24  ;;  %v6387_v38 = vmul.f32 %v13891_v33, %v15069_v2  ;;  %v6388_v48 = vmul.f32 %v13891_v33, %v15070_v15  ;;  %v6389_v29 = vmul.f32 %v13891_v33, %v15071_v59 }
 0x932   : > { %6574 = vst [vmem:[%s13389_s10 + $0x568] sm:$0xff] %v6373_v10  ;;  %6575 = vst [vmem:[%s13389_s10 + $0x570] sm:$0xff] %v6374_v37  ;;  %v6390_v32 = vmul.f32 %v13891_v33, %v15072_v25  ;;  %v6391_v16 = vmul.f32 %v13891_v33, %v15073_v21  ;;  %v6392_v57 = vmul.f32 %v13891_v33, %v15074_v46 }
 0x933   : > { %6576 = vst [vmem:[%s13389_s10 + $0x578] sm:$0xff] %v6375_v41  ;;  %6577 = vst [vmem:[%s13389_s10 + $0x580] sm:$0xff] %v6376_v58  ;;  %v6393_v11 = vmul.f32 %v13891_v33, %v15075_v51  ;;  %v6394_v26 = vmul.f32 %v13891_v33, %v15076_v39  ;;  %v6395_v60 = vmul.f32 %v13891_v33, %v15077_v8 }
 0x934   : > { %6578 = vst [vmem:[%s13389_s10 + $0x588] sm:$0xff] %v6377_v18  ;;  %6579 = vst [vmem:[%s13389_s10 + $0x590] sm:$0xff] %v6378_v52  ;;  %v6396_v12 = vmul.f32 %v13891_v33, %v15078_v63  ;;  %v6397_v5 = vmul.f32 %v13891_v33, %v15079_v9  ;;  %v6398_v35 = vmul.f32 %v13891_v33, %v13418_v7 }
 0x935   : > { %6580 = vst [vmem:[%s13389_s10 + $0x598] sm:$0xff] %v6379_v47  ;;  %6581 = vst [vmem:[%s13389_s10 + $0x5a0] sm:$0xff] %v6380_v0  ;;  %v6399_v54 = vmul.f32 %v13891_v33, %v13442_v20 }
 0x936   : > { %6582 = vst [vmem:[%s13389_s10 + $0x5a8] sm:$0xff] %v6381_v6  ;;  %6583 = vst [vmem:[%s13389_s10 + $0x5b0] sm:$0xff] %v6382_v22 }
 0x937   : > { %6584 = vst [vmem:[%s13389_s10 + $0x5b8] sm:$0xff] %v6383_v14  ;;  %6585 = vst [vmem:[%s13389_s10 + $0x5c0] sm:$0xff] %v6384_v43 }
 0x938   : > { %6586 = vst [vmem:[%s13389_s10 + $0x5c8] sm:$0xff] %v6385_v17  ;;  %6587 = vst [vmem:[%s13389_s10 + $0x5d0] sm:$0xff] %v6386_v27 }
 0x939   : > { %6588 = vst [vmem:[%s13389_s10 + $0x5d8] sm:$0xff] %v6387_v38  ;;  %6589 = vst [vmem:[%s13389_s10 + $0x5e0] sm:$0xff] %v6388_v48 }
 0x93a   : > { %6590 = vst [vmem:[%s13389_s10 + $0x5e8] sm:$0xff] %v6389_v29  ;;  %6591 = vst [vmem:[%s13389_s10 + $0x5f0] sm:$0xff] %v6390_v32 }
 0x93b   : > { %6592 = vst [vmem:[%s13389_s10 + $0x5f8] sm:$0xff] %v6391_v16  ;;  %6593 = vst [vmem:[%s13389_s10 + $0x600] sm:$0xff] %v6392_v57 }
 0x93c   : > { %6594 = vst [vmem:[%s13389_s10 + $0x608] sm:$0xff] %v6393_v11  ;;  %6595 = vst [vmem:[%s13389_s10 + $0x610] sm:$0xff] %v6394_v26 }
 0x93d   : > { %6596 = vst [vmem:[%s13389_s10 + $0x618] sm:$0xff] %v6395_v60  ;;  %6597 = vst [vmem:[%s13389_s10 + $0x620] sm:$0xff] %v6396_v12 }
 0x93e   : > { %6598 = vst [vmem:[%s13389_s10 + $0x628] sm:$0xff] %v6397_v5  ;;  %6599 = vst [vmem:[%s13389_s10 + $0x630] sm:$0xff] %v6398_v35 }
 0x93f   : > { %6600 = vst.msk [vmem:[%s13389_s10 + $0x638] sm:$0xff] %vm6439_vm0, %v6399_v54 }
 0x940 PF: > { %s15_s18 = sadd.s32 1, %s8218_s18  }
 0x941   : > { %p12_p4 = scmp.ge.s32.totalorder %s15_s18, 4  }
 0x943   :  { %14 = sbr.rel (!%p12_p4) target bundleno = 1 (0x1), region = 80 }

</bundles_post_ra>
